<compile_context>
chip_gen: v7x
topology: tpu7x:2x2x1
jax: 0.10.0
libtpu: 0.0.40
codegen_flags: <defaults>
</compile_context>

<pallas_src>
import functools
import math

import jax
import jax.numpy as jnp
from jax.experimental import pallas as pl
from jax.experimental.pallas import tpu as pltpu


def _class_caps_kernel(xr_ref, wb_ref, exp_ref, red_ref, bu_ref, ba_ref, act_ref,
                       pose_ref, act_out_ref, *, iterations, it_min, it_max, eps):
    f32 = jnp.float32
    hp = jax.lax.Precision.HIGHEST

    x = xr_ref[...].astype(f32)          # (N_in, C*16)  block-diag expanded pose rows
    wb = wb_ref[...].astype(f32)         # (C*16, O*16)  expanded transform weights
    exp_mat = exp_ref[...]               # (O, O*16)     0/1: replicate per-o over 16 comps
    red_mat = red_ref[...]               # (O*16, O)     0/1: sum over 16 comps per o
    a_in = act_ref[...].astype(f32)      # (N_in, O)     activations, pre-broadcast to O lanes
    beta_u = bu_ref[...]                 # (1, O)
    beta_a = ba_ref[...]                 # (1, O)

    n_in = x.shape[0]
    o_pp = wb.shape[1]                   # O*16
    o_cap = beta_u.shape[1]              # O
    pp = o_pp // o_cap                   # 16

    # All votes for this batch element in one MXU push: (N_in, O*16), columns
    # ordered (o, p, q) exactly like PyTorch's vote.view(bs, -1, O, 16).
    votes = jnp.dot(x, wb, preferred_element_type=f32, precision=hp)

    half_log_2pi = 0.5 * math.log(2.0 * math.pi)
    beta_u_pp = pp * beta_u              # loop-invariant (1, O)

    rr = jnp.full((n_in, o_cap), 1.0 / o_cap, dtype=f32)
    o_mean = jnp.zeros((1, o_pp), f32)
    o_act = jnp.zeros((1, o_cap), f32)

    for it in range(iterations):  # static unroll, matches the PyTorch routing loop
        inv_temp = it_min + (it_max - it_min) * it / max(1.0, iterations - 1.0)

        rr_prime = rr * a_in                                               # (N_in, O)
        # Reduce-before-expand: (N_in, O) sublane reduce + tiny dot instead of
        # reducing the full (N_in, O*16) expansion.
        rps_o = jnp.sum(rr_prime, axis=0, keepdims=True)                   # (1, O)
        rexp = jnp.dot(rr_prime, exp_mat,
                       preferred_element_type=f32, precision=hp)           # (N_in, O*16)
        rps_exp = jnp.dot(rps_o, exp_mat,
                          preferred_element_type=f32, precision=hp)        # (1, O*16)
        inv_den = pl.reciprocal(rps_exp + eps, approx=False)               # (1, O*16)

        o_mean = jnp.sum(rexp * votes, axis=0, keepdims=True) * inv_den    # (1, O*16)
        diff = votes - o_mean                                              # (N_in, O*16)
        d2 = diff * diff                                                   # diff dies here
        o_var = jnp.sum(rexp * d2, axis=0, keepdims=True) * inv_den        # rexp dies here
        o_stdv = jnp.sqrt(o_var)                                           # (1, O*16)
        log_stdv = jnp.log(o_stdv + eps)                                   # (1, O*16)

        # o_cost[o] = rps[o] * (16*beta_u[o] + sum_p log(stdv[o,p]+eps))
        # (algebraically identical to the reference's expand-then-reduce form).
        o_cost = rps_o * (beta_u_pp +
                          jnp.dot(log_stdv, red_mat,
                                  preferred_element_type=f32, precision=hp))  # (1, O)
        o_cost_mean = jnp.mean(o_cost, axis=1, keepdims=True)              # (1, 1)
        o_cost_stdv = jnp.sqrt(
            jnp.sum((o_cost - o_cost_mean) ** 2, axis=1, keepdims=True) / o_cap)
        o_act_cost = beta_a + (o_cost_mean - o_cost) * pl.reciprocal(
            o_cost_stdv + eps, approx=False)
        o_act = jax.nn.sigmoid(inv_temp * o_act_cost)                      # (1, O)

        if it < iterations - 1:
            # Normal(o_mean, o_stdv).log_prob(votes), reusing d2 and replacing
            # the wide divide with a narrow reciprocal (eps-floored).
            inv_two_var = pl.reciprocal(2.0 * o_var + eps, approx=False)   # (1, O*16)
            shift = log_stdv + half_log_2pi                                # (1, O*16)
            logp = -(d2 * inv_two_var) - shift                             # (N_in, O*16)
            p = jnp.exp(logp)                                              # (N_in, O*16)
            p_sum = jnp.dot(p, red_mat,
                            preferred_element_type=f32, precision=hp)      # (N_in, O)
            ap = o_act * p_sum                                             # (N_in, O)
            rr = ap * pl.reciprocal(
                jnp.sum(ap, axis=1, keepdims=True) + eps, approx=False)

    pose_ref[...] = o_mean[None].astype(pose_ref.dtype)                    # (1, 1, O*16)
    act_out_ref[...] = o_act[None].astype(act_out_ref.dtype)               # (1, 1, O)


@functools.partial(jax.jit, static_argnames=("iterations",))
def class_caps_forward(pose, activation, w, beta_u, beta_a, *, iterations):
    bs, c_in, p_sz, p_sz2, h, w_sp = pose.shape
    assert p_sz == 4 and p_sz2 == 4
    o_cap = w.shape[1]
    pp = p_sz * p_sz                  # 16
    n_in = h * w_sp * c_in
    assert iterations >= 1
    # TODO(synk): pad N_in when H*W*C is not a multiple of 8 (not needed here).
    assert n_in % 8 == 0

    it_min = 1.0
    it_max = float(min(iterations, 3.0))
    eps = 1e-9
    f32 = jnp.float32

    # ---- tiny layout prep; all heavy math happens in the kernel -------------
    # pose (bs, C, 4, 4, H, W) -> rows ordered (h, w, c) like PyTorch's
    # vote.view(bs, -1, O, 16), expanded block-diagonally over C so the
    # per-capsule-type 4x4 weights become one dense matmul.
    pose_rows = jnp.transpose(pose, (0, 4, 5, 1, 2, 3)).reshape(bs, h * w_sp, c_in, pp)
    eye_c = jnp.eye(c_in, dtype=f32)
    xr = (pose_rows[:, :, :, None, :].astype(f32)
          * eye_c[None, None, :, :, None]).reshape(bs * n_in, c_in * pp)

    # W (C, O, 4, 4) -> WB[(c,p,k), (o,p',q)] = W[c,o,k,q] * (p == p')
    eye_p = jnp.eye(p_sz, dtype=f32)
    wb = jnp.einsum("cokq,pr->cpkorq", w.astype(f32), eye_p).reshape(c_in * pp, o_cap * pp)

    # 0/1 expansion matrix: E[o, o*16 + p] = 1 ; reduction matrix is its transpose.
    exp_mat = jnp.repeat(jnp.eye(o_cap, dtype=f32), pp, axis=1)           # (O, O*16)
    red_mat = exp_mat.T                                                   # (O*16, O)

    # Activations flattened in PyTorch's (c, h, w) order (the reference pairs
    # them elementwise with (h, w, c)-ordered vote rows; we reproduce that),
    # pre-broadcast to O lanes so the in-kernel rr_prime multiply is a plain
    # VPU op (no per-iteration lane broadcast, no skinny (N_in, 1) DMA tile).
    act_rows = jnp.broadcast_to(
        activation.astype(f32).reshape(bs * n_in, 1), (bs * n_in, o_cap))

    bu = beta_u.astype(f32).reshape(1, o_cap)
    ba = beta_a.astype(f32).reshape(1, o_cap)

    kernel = functools.partial(_class_caps_kernel, iterations=iterations,
                               it_min=it_min, it_max=it_max, eps=eps)

    out_shapes = (
        jax.ShapeDtypeStruct((bs, 1, o_cap * pp), f32),
        jax.ShapeDtypeStruct((bs, 1, o_cap), f32),
    )

    pose_flat, act_out = pl.pallas_call(
        kernel,
        out_shape=out_shapes,
        grid_spec=pltpu.PrefetchScalarGridSpec(
            num_scalar_prefetch=0,
            grid=(bs,),
            in_specs=[
                pl.BlockSpec((n_in, c_in * pp), lambda b: (b, 0)),        # XR rows
                pl.BlockSpec((c_in * pp, o_cap * pp), lambda b: (0, 0)),  # WB
                pl.BlockSpec((o_cap, o_cap * pp), lambda b: (0, 0)),      # E
                pl.BlockSpec((o_cap * pp, o_cap), lambda b: (0, 0)),      # E^T
                pl.BlockSpec((1, o_cap), lambda b: (0, 0)),               # beta_u
                pl.BlockSpec((1, o_cap), lambda b: (0, 0)),               # beta_a
                pl.BlockSpec((n_in, o_cap), lambda b: (b, 0)),            # activations (pre-broadcast)
            ],
            out_specs=[
                pl.BlockSpec((1, 1, o_cap * pp), lambda b: (b, 0, 0)),    # pose (O*16)
                pl.BlockSpec((1, 1, o_cap), lambda b: (b, 0, 0)),         # activation (O)
            ],
        ),
        compiler_params=pltpu.CompilerParams(
            dimension_semantics=("parallel",)),
    )(xr, wb, exp_mat, red_mat, bu, ba, act_rows)

    pose_out = pose_flat.reshape(bs, o_cap, p_sz, p_sz)
    act_final = act_out.reshape(bs, o_cap)
    return pose_out, act_final


def _reference_forward(pose, activation, w, beta_u, beta_a, iterations):
    """Plain-JAX line-by-line mirror of ClassCaps.forward + EM routing."""
    bs, c_in, p_sz, _, h, w_sp = pose.shape
    o_cap = w.shape[1]
    pp = p_sz * p_sz
    eps = 1e-9
    it_min = 1.0
    it_max = min(iterations, 3.0)
    hp = jax.lax.Precision.HIGHEST

    pose_p = jnp.transpose(pose, (0, 4, 5, 1, 2, 3))                      # (bs,H,W,C,4,4)
    vote = jnp.einsum("bhwcpk,cokq->bhwcopq", pose_p, w, precision=hp)
    votes = vote.reshape(bs, h * w_sp * c_in, o_cap, pp)
    i_act = activation.reshape(bs, c_in * h * w_sp)

    rr = jnp.ones((bs, h * w_sp * c_in, o_cap), jnp.float32) / o_cap
    beta_v = beta_u.reshape(1, 1, o_cap, 1)
    beta_a_r = beta_a.reshape(1, o_cap)
    o_mean = None
    o_act = None
    for it in range(iterations):
        inv_temp = it_min + (it_max - it_min) * it / max(1.0, iterations - 1.0)
        rr_prime = rr * i_act[..., None]
        rr_ps = jnp.sum(rr_prime, axis=-2, keepdims=True)[..., None]      # (bs,1,O,1)
        o_mean = (jnp.sum(rr_prime[..., None] * votes, axis=-3, keepdims=True)
                  / (rr_ps + eps))                                        # (bs,1,O,16)
        o_stdv = jnp.sqrt(
            jnp.sum(rr_prime[..., None] * (votes - o_mean) ** 2, axis=-3, keepdims=True)
            / (rr_ps + eps))
        o_cost = jnp.squeeze(
            jnp.sum((beta_v + jnp.log(o_stdv + eps)) * rr_ps, axis=-1))   # (bs,O)
        o_cost_mean = jnp.mean(o_cost, axis=-1, keepdims=True)
        o_cost_stdv = jnp.sqrt(
            jnp.sum((o_cost - o_cost_mean) ** 2, axis=-1, keepdims=True) / o_cap)
        o_act_cost = beta_a_r + (o_cost_mean - o_cost) / (o_cost_stdv + eps)
        o_act = jax.nn.sigmoid(inv_temp * o_act_cost)
        if it < iterations - 1:
            logp = (-((votes - o_mean) ** 2) / (2.0 * o_stdv ** 2)
                    - jnp.log(o_stdv) - 0.5 * jnp.log(2.0 * jnp.pi))
            p = jnp.exp(logp)
            ap = o_act[:, None, :] * jnp.sum(p, axis=-1)
            rr = ap / (jnp.sum(ap, axis=-1, keepdims=True) + eps)

    pose_out = jnp.squeeze(o_mean, axis=1).reshape(bs, o_cap, p_sz, p_sz)
    return pose_out, o_act


if __name__ == "__main__":
    # Small deterministic config: batch=2, 8 input capsule types on a 4x4 grid
    # (N_in = 128 in-capsules), 10 output class capsules, 3 EM iterations.
    bs, in_caps, h, w_sp, out_caps, iters = 2, 8, 4, 4, 10, 3
    key = jax.random.PRNGKey(0)
    k1, k2, k3, k4, k5 = jax.random.split(key, 5)

    pose_in = jax.random.normal(k1, (bs, in_caps, 4, 4, h, w_sp), jnp.float32)
    act_in = jax.random.uniform(k2, (bs, in_caps, h, w_sp), jnp.float32,
                                minval=0.1, maxval=0.9)
    w_param = 0.5 * jax.random.normal(k3, (in_caps, out_caps, 4, 4), jnp.float32)
    beta_u = jax.random.normal(k4, (out_caps,), jnp.float32)
    beta_a = jax.random.normal(k5, (out_caps,), jnp.float32)

    pose_out, act_out = class_caps_forward(
        pose_in, act_in, w_param, beta_u, beta_a, iterations=iters)
    jax.block_until_ready((pose_out, act_out))

    pose_ref, act_ref = _reference_forward(
        pose_in, act_in, w_param, beta_u, beta_a, iters)

    assert pose_out.shape == (bs, out_caps, 4, 4), pose_out.shape
    assert act_out.shape == (bs, out_caps), act_out.shape
    assert jnp.allclose(pose_out, pose_ref, atol=2e-3, rtol=2e-3), \
        float(jnp.max(jnp.abs(pose_out - pose_ref)))
    assert jnp.allclose(act_out, act_ref, atol=2e-3, rtol=2e-3), \
        float(jnp.max(jnp.abs(act_out - act_ref)))

    print("KERNEL_OK")
</pallas_src>

<mosaic_0001>
module attributes {stable_mosaic.version = 11 : i64} {
  func.func @_class_caps_kernel(%arg0: i32, %arg1: memref<128x128xf32, #tpu.memory_space<vmem>>, %arg2: memref<128x160xf32, #tpu.memory_space<vmem>>, %arg3: memref<10x160xf32, #tpu.memory_space<vmem>>, %arg4: memref<160x10xf32, #tpu.memory_space<vmem>>, %arg5: memref<1x10xf32, #tpu.memory_space<vmem>>, %arg6: memref<1x10xf32, #tpu.memory_space<vmem>>, %arg7: memref<128x10xf32, #tpu.memory_space<vmem>>, %arg8: memref<1x1x160xf32, #tpu.memory_space<vmem>>, %arg9: memref<1x1x10xf32, #tpu.memory_space<vmem>>) attributes {dimension_semantics = [#tpu.dimension_semantics<parallel>], iteration_bounds = array<i64: 2>, scalar_prefetch = 0 : i64, scratch_operands = 0 : i64, tpu.core_type = #tpu.core_type<tc>, window_params = [{transform_indices = @transform_0, window_bounds = array<i64: 128, 128>}, {pipeline_mode = #tpu.pipeline_mode<synchronous>, transform_indices = @transform_1, window_bounds = array<i64: 128, 160>}, {pipeline_mode = #tpu.pipeline_mode<synchronous>, transform_indices = @transform_2, window_bounds = array<i64: 10, 160>}, {pipeline_mode = #tpu.pipeline_mode<synchronous>, transform_indices = @transform_3, window_bounds = array<i64: 160, 10>}, {pipeline_mode = #tpu.pipeline_mode<synchronous>, transform_indices = @transform_4, window_bounds = array<i64: 1, 10>}, {pipeline_mode = #tpu.pipeline_mode<synchronous>, transform_indices = @transform_5, window_bounds = array<i64: 1, 10>}, {transform_indices = @transform_6, window_bounds = array<i64: 128, 10>}, {transform_indices = @transform_7, window_bounds = array<i64: 1, 1, 160>}, {transform_indices = @transform_8, window_bounds = array<i64: 1, 1, 10>}]} {
    %c0 = arith.constant 0 : index
    %c0_0 = arith.constant 0 : index
    %0 = vector.load %arg1[%c0, %c0_0] : memref<128x128xf32, #tpu.memory_space<vmem>>, vector<128x128xf32>
    %c0_1 = arith.constant 0 : index
    %c0_2 = arith.constant 0 : index
    %1 = vector.load %arg2[%c0_1, %c0_2] : memref<128x160xf32, #tpu.memory_space<vmem>>, vector<128x160xf32>
    %c0_3 = arith.constant 0 : index
    %c0_4 = arith.constant 0 : index
    %2 = vector.load %arg3[%c0_3, %c0_4] : memref<10x160xf32, #tpu.memory_space<vmem>>, vector<10x160xf32>
    %c0_5 = arith.constant 0 : index
    %c0_6 = arith.constant 0 : index
    %3 = vector.load %arg4[%c0_5, %c0_6] : memref<160x10xf32, #tpu.memory_space<vmem>>, vector<160x10xf32>
    %c0_7 = arith.constant 0 : index
    %c0_8 = arith.constant 0 : index
    %4 = vector.load %arg7[%c0_7, %c0_8] : memref<128x10xf32, #tpu.memory_space<vmem>>, vector<128x10xf32>
    %c0_9 = arith.constant 0 : index
    %c0_10 = arith.constant 0 : index
    %5 = vector.load %arg5[%c0_9, %c0_10] : memref<1x10xf32, #tpu.memory_space<vmem>>, vector<1x10xf32>
    %c0_11 = arith.constant 0 : index
    %c0_12 = arith.constant 0 : index
    %6 = vector.load %arg6[%c0_11, %c0_12] : memref<1x10xf32, #tpu.memory_space<vmem>>, vector<1x10xf32>
    %cst = arith.constant dense<0.000000e+00> : vector<128x160xf32>
    %7 = tpu.matmul %0, %1, %cst {dimension_numbers = #tpu.dot_dimension_numbers<[1], [0], [0], [1], [0, 0, 1, 1], [], []>, precision = #tpu.contract_precision<fp32>} : vector<128x128xf32>, vector<128x160xf32>, vector<128x160xf32> -> vector<128x160xf32>
    %cst_13 = arith.constant 1.600000e+01 : f32
    %8 = vector.broadcast %cst_13 : f32 to vector<1x10xf32>
    %9 = arith.mulf %8, %5 : vector<1x10xf32>
    %cst_14 = arith.constant 1.000000e-01 : f32
    %10 = vector.broadcast %cst_14 : f32 to vector<128x10xf32>
    %11 = arith.mulf %10, %4 : vector<128x10xf32>
    %cst_15 = arith.constant dense<0.000000e+00> : vector<10xf32>
    %12 = vector.multi_reduction <add>, %11, %cst_15 [0] : vector<128x10xf32> to vector<10xf32>
    %13 = vector.shape_cast %12 : vector<10xf32> to vector<1x10xf32>
    %cst_16 = arith.constant dense<0.000000e+00> : vector<128x160xf32>
    %14 = tpu.matmul %11, %2, %cst_16 {dimension_numbers = #tpu.dot_dimension_numbers<[1], [0], [0], [1], [0, 0, 1, 1], [], []>, precision = #tpu.contract_precision<fp32>} : vector<128x10xf32>, vector<10x160xf32>, vector<128x160xf32> -> vector<128x160xf32>
    %cst_17 = arith.constant dense<0.000000e+00> : vector<1x160xf32>
    %15 = tpu.matmul %13, %2, %cst_17 {dimension_numbers = #tpu.dot_dimension_numbers<[1], [0], [0], [1], [0, 0, 1, 1], [], []>, precision = #tpu.contract_precision<fp32>} : vector<1x10xf32>, vector<10x160xf32>, vector<1x160xf32> -> vector<1x160xf32>
    %cst_18 = arith.constant 9.99999971E-10 : f32
    %16 = vector.broadcast %cst_18 : f32 to vector<1x160xf32>
    %17 = arith.addf %15, %16 : vector<1x160xf32>
    %18 = tpu.reciprocal %17 : vector<1x160xf32> -> vector<1x160xf32>
    %19 = arith.mulf %14, %7 : vector<128x160xf32>
    %cst_19 = arith.constant dense<0.000000e+00> : vector<160xf32>
    %20 = vector.multi_reduction <add>, %19, %cst_19 [0] : vector<128x160xf32> to vector<160xf32>
    %21 = vector.shape_cast %20 : vector<160xf32> to vector<1x160xf32>
    %22 = arith.mulf %21, %18 : vector<1x160xf32>
    %23 = vector.broadcast %22 : vector<1x160xf32> to vector<128x160xf32>
    %24 = arith.subf %7, %23 : vector<128x160xf32>
    %25 = arith.mulf %24, %24 : vector<128x160xf32>
    %26 = arith.mulf %14, %25 : vector<128x160xf32>
    %cst_20 = arith.constant dense<0.000000e+00> : vector<160xf32>
    %27 = vector.multi_reduction <add>, %26, %cst_20 [0] : vector<128x160xf32> to vector<160xf32>
    %28 = vector.shape_cast %27 : vector<160xf32> to vector<1x160xf32>
    %29 = arith.mulf %28, %18 : vector<1x160xf32>
    %30 = math.sqrt %29 : vector<1x160xf32>
    %cst_21 = arith.constant 9.99999971E-10 : f32
    %31 = vector.broadcast %cst_21 : f32 to vector<1x160xf32>
    %32 = arith.addf %30, %31 : vector<1x160xf32>
    %33 = math.log %32 : vector<1x160xf32>
    %cst_22 = arith.constant dense<0.000000e+00> : vector<1x10xf32>
    %34 = tpu.matmul %33, %3, %cst_22 {dimension_numbers = #tpu.dot_dimension_numbers<[1], [0], [0], [1], [0, 0, 1, 1], [], []>, precision = #tpu.contract_precision<fp32>} : vector<1x160xf32>, vector<160x10xf32>, vector<1x10xf32> -> vector<1x10xf32>
    %35 = arith.addf %9, %34 : vector<1x10xf32>
    %36 = arith.mulf %13, %35 : vector<1x10xf32>
    %cst_23 = arith.constant dense<0.000000e+00> : vector<1xf32>
    %37 = vector.multi_reduction <add>, %36, %cst_23 [1] : vector<1x10xf32> to vector<1xf32>
    %38 = vector.shape_cast %37 : vector<1xf32> to vector<1x1xf32>
    %cst_24 = arith.constant 1.000000e+01 : f32
    %39 = vector.broadcast %cst_24 : f32 to vector<1x1xf32>
    %40 = arith.divf %38, %39 : vector<1x1xf32>
    %41 = vector.broadcast %40 : vector<1x1xf32> to vector<1x10xf32>
    %42 = arith.subf %36, %41 : vector<1x10xf32>
    %43 = arith.mulf %42, %42 : vector<1x10xf32>
    %cst_25 = arith.constant dense<0.000000e+00> : vector<1xf32>
    %44 = vector.multi_reduction <add>, %43, %cst_25 [1] : vector<1x10xf32> to vector<1xf32>
    %45 = vector.shape_cast %44 : vector<1xf32> to vector<1x1xf32>
    %cst_26 = arith.constant 1.000000e+01 : f32
    %46 = vector.broadcast %cst_26 : f32 to vector<1x1xf32>
    %47 = arith.divf %45, %46 : vector<1x1xf32>
    %48 = math.sqrt %47 : vector<1x1xf32>
    %49 = vector.broadcast %40 : vector<1x1xf32> to vector<1x10xf32>
    %50 = arith.subf %49, %36 : vector<1x10xf32>
    %cst_27 = arith.constant 9.99999971E-10 : f32
    %51 = vector.broadcast %cst_27 : f32 to vector<1x1xf32>
    %52 = arith.addf %48, %51 : vector<1x1xf32>
    %53 = tpu.reciprocal %52 : vector<1x1xf32> -> vector<1x1xf32>
    %54 = vector.broadcast %53 : vector<1x1xf32> to vector<1x10xf32>
    %55 = arith.mulf %50, %54 : vector<1x10xf32>
    %56 = arith.addf %6, %55 : vector<1x10xf32>
    %cst_28 = arith.constant 1.000000e+00 : f32
    %57 = vector.broadcast %cst_28 : f32 to vector<1x10xf32>
    %58 = arith.mulf %57, %56 : vector<1x10xf32>
    %59 = arith.negf %58 : vector<1x10xf32>
    %60 = math.exp %59 : vector<1x10xf32>
    %cst_29 = arith.constant 1.000000e+00 : f32
    %61 = vector.broadcast %cst_29 : f32 to vector<1x10xf32>
    %62 = arith.addf %61, %60 : vector<1x10xf32>
    %63 = arith.divf %61, %62 : vector<1x10xf32>
    %cst_30 = arith.constant 2.000000e+00 : f32
    %64 = vector.broadcast %cst_30 : f32 to vector<1x160xf32>
    %65 = arith.mulf %64, %29 : vector<1x160xf32>
    %cst_31 = arith.constant 9.99999971E-10 : f32
    %66 = vector.broadcast %cst_31 : f32 to vector<1x160xf32>
    %67 = arith.addf %65, %66 : vector<1x160xf32>
    %68 = tpu.reciprocal %67 : vector<1x160xf32> -> vector<1x160xf32>
    %cst_32 = arith.constant 0.918938517 : f32
    %69 = vector.broadcast %cst_32 : f32 to vector<1x160xf32>
    %70 = arith.addf %33, %69 : vector<1x160xf32>
    %71 = vector.broadcast %68 : vector<1x160xf32> to vector<128x160xf32>
    %72 = arith.mulf %25, %71 : vector<128x160xf32>
    %cst_33 = arith.constant 0.000000e+00 : f32
    %73 = vector.broadcast %cst_33 : f32 to vector<128x160xf32>
    %74 = arith.subf %73, %72 : vector<128x160xf32>
    %75 = vector.broadcast %70 : vector<1x160xf32> to vector<128x160xf32>
    %76 = arith.subf %74, %75 : vector<128x160xf32>
    %77 = math.exp %76 : vector<128x160xf32>
    %cst_34 = arith.constant dense<0.000000e+00> : vector<128x10xf32>
    %78 = tpu.matmul %77, %3, %cst_34 {dimension_numbers = #tpu.dot_dimension_numbers<[1], [0], [0], [1], [0, 0, 1, 1], [], []>, precision = #tpu.contract_precision<fp32>} : vector<128x160xf32>, vector<160x10xf32>, vector<128x10xf32> -> vector<128x10xf32>
    %79 = vector.broadcast %63 : vector<1x10xf32> to vector<128x10xf32>
    %80 = arith.mulf %79, %78 : vector<128x10xf32>
    %cst_35 = arith.constant dense<0.000000e+00> : vector<128xf32>
    %81 = vector.multi_reduction <add>, %80, %cst_35 [1] : vector<128x10xf32> to vector<128xf32>
    %82 = vector.shape_cast %81 : vector<128xf32> to vector<128x1xf32>
    %cst_36 = arith.constant 9.99999971E-10 : f32
    %83 = vector.broadcast %cst_36 : f32 to vector<128x1xf32>
    %84 = arith.addf %82, %83 : vector<128x1xf32>
    %85 = tpu.reciprocal %84 : vector<128x1xf32> -> vector<128x1xf32>
    %86 = vector.broadcast %85 : vector<128x1xf32> to vector<128x10xf32>
    %87 = arith.mulf %80, %86 : vector<128x10xf32>
    %88 = arith.mulf %87, %4 : vector<128x10xf32>
    %cst_37 = arith.constant dense<0.000000e+00> : vector<10xf32>
    %89 = vector.multi_reduction <add>, %88, %cst_37 [0] : vector<128x10xf32> to vector<10xf32>
    %90 = vector.shape_cast %89 : vector<10xf32> to vector<1x10xf32>
    %cst_38 = arith.constant dense<0.000000e+00> : vector<128x160xf32>
    %91 = tpu.matmul %88, %2, %cst_38 {dimension_numbers = #tpu.dot_dimension_numbers<[1], [0], [0], [1], [0, 0, 1, 1], [], []>, precision = #tpu.contract_precision<fp32>} : vector<128x10xf32>, vector<10x160xf32>, vector<128x160xf32> -> vector<128x160xf32>
    %cst_39 = arith.constant dense<0.000000e+00> : vector<1x160xf32>
    %92 = tpu.matmul %90, %2, %cst_39 {dimension_numbers = #tpu.dot_dimension_numbers<[1], [0], [0], [1], [0, 0, 1, 1], [], []>, precision = #tpu.contract_precision<fp32>} : vector<1x10xf32>, vector<10x160xf32>, vector<1x160xf32> -> vector<1x160xf32>
    %cst_40 = arith.constant 9.99999971E-10 : f32
    %93 = vector.broadcast %cst_40 : f32 to vector<1x160xf32>
    %94 = arith.addf %92, %93 : vector<1x160xf32>
    %95 = tpu.reciprocal %94 : vector<1x160xf32> -> vector<1x160xf32>
    %96 = arith.mulf %91, %7 : vector<128x160xf32>
    %cst_41 = arith.constant dense<0.000000e+00> : vector<160xf32>
    %97 = vector.multi_reduction <add>, %96, %cst_41 [0] : vector<128x160xf32> to vector<160xf32>
    %98 = vector.shape_cast %97 : vector<160xf32> to vector<1x160xf32>
    %99 = arith.mulf %98, %95 : vector<1x160xf32>
    %100 = vector.broadcast %99 : vector<1x160xf32> to vector<128x160xf32>
    %101 = arith.subf %7, %100 : vector<128x160xf32>
    %102 = arith.mulf %101, %101 : vector<128x160xf32>
    %103 = arith.mulf %91, %102 : vector<128x160xf32>
    %cst_42 = arith.constant dense<0.000000e+00> : vector<160xf32>
    %104 = vector.multi_reduction <add>, %103, %cst_42 [0] : vector<128x160xf32> to vector<160xf32>
    %105 = vector.shape_cast %104 : vector<160xf32> to vector<1x160xf32>
    %106 = arith.mulf %105, %95 : vector<1x160xf32>
    %107 = math.sqrt %106 : vector<1x160xf32>
    %cst_43 = arith.constant 9.99999971E-10 : f32
    %108 = vector.broadcast %cst_43 : f32 to vector<1x160xf32>
    %109 = arith.addf %107, %108 : vector<1x160xf32>
    %110 = math.log %109 : vector<1x160xf32>
    %cst_44 = arith.constant dense<0.000000e+00> : vector<1x10xf32>
    %111 = tpu.matmul %110, %3, %cst_44 {dimension_numbers = #tpu.dot_dimension_numbers<[1], [0], [0], [1], [0, 0, 1, 1], [], []>, precision = #tpu.contract_precision<fp32>} : vector<1x160xf32>, vector<160x10xf32>, vector<1x10xf32> -> vector<1x10xf32>
    %112 = arith.addf %9, %111 : vector<1x10xf32>
    %113 = arith.mulf %90, %112 : vector<1x10xf32>
    %cst_45 = arith.constant dense<0.000000e+00> : vector<1xf32>
    %114 = vector.multi_reduction <add>, %113, %cst_45 [1] : vector<1x10xf32> to vector<1xf32>
    %115 = vector.shape_cast %114 : vector<1xf32> to vector<1x1xf32>
    %cst_46 = arith.constant 1.000000e+01 : f32
    %116 = vector.broadcast %cst_46 : f32 to vector<1x1xf32>
    %117 = arith.divf %115, %116 : vector<1x1xf32>
    %118 = vector.broadcast %117 : vector<1x1xf32> to vector<1x10xf32>
    %119 = arith.subf %113, %118 : vector<1x10xf32>
    %120 = arith.mulf %119, %119 : vector<1x10xf32>
    %cst_47 = arith.constant dense<0.000000e+00> : vector<1xf32>
    %121 = vector.multi_reduction <add>, %120, %cst_47 [1] : vector<1x10xf32> to vector<1xf32>
    %122 = vector.shape_cast %121 : vector<1xf32> to vector<1x1xf32>
    %cst_48 = arith.constant 1.000000e+01 : f32
    %123 = vector.broadcast %cst_48 : f32 to vector<1x1xf32>
    %124 = arith.divf %122, %123 : vector<1x1xf32>
    %125 = math.sqrt %124 : vector<1x1xf32>
    %126 = vector.broadcast %117 : vector<1x1xf32> to vector<1x10xf32>
    %127 = arith.subf %126, %113 : vector<1x10xf32>
    %cst_49 = arith.constant 9.99999971E-10 : f32
    %128 = vector.broadcast %cst_49 : f32 to vector<1x1xf32>
    %129 = arith.addf %125, %128 : vector<1x1xf32>
    %130 = tpu.reciprocal %129 : vector<1x1xf32> -> vector<1x1xf32>
    %131 = vector.broadcast %130 : vector<1x1xf32> to vector<1x10xf32>
    %132 = arith.mulf %127, %131 : vector<1x10xf32>
    %133 = arith.addf %6, %132 : vector<1x10xf32>
    %cst_50 = arith.constant 2.000000e+00 : f32
    %134 = vector.broadcast %cst_50 : f32 to vector<1x10xf32>
    %135 = arith.mulf %134, %133 : vector<1x10xf32>
    %136 = arith.negf %135 : vector<1x10xf32>
    %137 = math.exp %136 : vector<1x10xf32>
    %cst_51 = arith.constant 1.000000e+00 : f32
    %138 = vector.broadcast %cst_51 : f32 to vector<1x10xf32>
    %139 = arith.addf %138, %137 : vector<1x10xf32>
    %140 = arith.divf %138, %139 : vector<1x10xf32>
    %cst_52 = arith.constant 2.000000e+00 : f32
    %141 = vector.broadcast %cst_52 : f32 to vector<1x160xf32>
    %142 = arith.mulf %141, %106 : vector<1x160xf32>
    %cst_53 = arith.constant 9.99999971E-10 : f32
    %143 = vector.broadcast %cst_53 : f32 to vector<1x160xf32>
    %144 = arith.addf %142, %143 : vector<1x160xf32>
    %145 = tpu.reciprocal %144 : vector<1x160xf32> -> vector<1x160xf32>
    %cst_54 = arith.constant 0.918938517 : f32
    %146 = vector.broadcast %cst_54 : f32 to vector<1x160xf32>
    %147 = arith.addf %110, %146 : vector<1x160xf32>
    %148 = vector.broadcast %145 : vector<1x160xf32> to vector<128x160xf32>
    %149 = arith.mulf %102, %148 : vector<128x160xf32>
    %cst_55 = arith.constant 0.000000e+00 : f32
    %150 = vector.broadcast %cst_55 : f32 to vector<128x160xf32>
    %151 = arith.subf %150, %149 : vector<128x160xf32>
    %152 = vector.broadcast %147 : vector<1x160xf32> to vector<128x160xf32>
    %153 = arith.subf %151, %152 : vector<128x160xf32>
    %154 = math.exp %153 : vector<128x160xf32>
    %cst_56 = arith.constant dense<0.000000e+00> : vector<128x10xf32>
    %155 = tpu.matmul %154, %3, %cst_56 {dimension_numbers = #tpu.dot_dimension_numbers<[1], [0], [0], [1], [0, 0, 1, 1], [], []>, precision = #tpu.contract_precision<fp32>} : vector<128x160xf32>, vector<160x10xf32>, vector<128x10xf32> -> vector<128x10xf32>
    %156 = vector.broadcast %140 : vector<1x10xf32> to vector<128x10xf32>
    %157 = arith.mulf %156, %155 : vector<128x10xf32>
    %cst_57 = arith.constant dense<0.000000e+00> : vector<128xf32>
    %158 = vector.multi_reduction <add>, %157, %cst_57 [1] : vector<128x10xf32> to vector<128xf32>
    %159 = vector.shape_cast %158 : vector<128xf32> to vector<128x1xf32>
    %cst_58 = arith.constant 9.99999971E-10 : f32
    %160 = vector.broadcast %cst_58 : f32 to vector<128x1xf32>
    %161 = arith.addf %159, %160 : vector<128x1xf32>
    %162 = tpu.reciprocal %161 : vector<128x1xf32> -> vector<128x1xf32>
    %163 = vector.broadcast %162 : vector<128x1xf32> to vector<128x10xf32>
    %164 = arith.mulf %157, %163 : vector<128x10xf32>
    %165 = arith.mulf %164, %4 : vector<128x10xf32>
    %cst_59 = arith.constant dense<0.000000e+00> : vector<10xf32>
    %166 = vector.multi_reduction <add>, %165, %cst_59 [0] : vector<128x10xf32> to vector<10xf32>
    %167 = vector.shape_cast %166 : vector<10xf32> to vector<1x10xf32>
    %cst_60 = arith.constant dense<0.000000e+00> : vector<128x160xf32>
    %168 = tpu.matmul %165, %2, %cst_60 {dimension_numbers = #tpu.dot_dimension_numbers<[1], [0], [0], [1], [0, 0, 1, 1], [], []>, precision = #tpu.contract_precision<fp32>} : vector<128x10xf32>, vector<10x160xf32>, vector<128x160xf32> -> vector<128x160xf32>
    %cst_61 = arith.constant dense<0.000000e+00> : vector<1x160xf32>
    %169 = tpu.matmul %167, %2, %cst_61 {dimension_numbers = #tpu.dot_dimension_numbers<[1], [0], [0], [1], [0, 0, 1, 1], [], []>, precision = #tpu.contract_precision<fp32>} : vector<1x10xf32>, vector<10x160xf32>, vector<1x160xf32> -> vector<1x160xf32>
    %cst_62 = arith.constant 9.99999971E-10 : f32
    %170 = vector.broadcast %cst_62 : f32 to vector<1x160xf32>
    %171 = arith.addf %169, %170 : vector<1x160xf32>
    %172 = tpu.reciprocal %171 : vector<1x160xf32> -> vector<1x160xf32>
    %173 = arith.mulf %168, %7 : vector<128x160xf32>
    %cst_63 = arith.constant dense<0.000000e+00> : vector<160xf32>
    %174 = vector.multi_reduction <add>, %173, %cst_63 [0] : vector<128x160xf32> to vector<160xf32>
    %175 = vector.shape_cast %174 : vector<160xf32> to vector<1x160xf32>
    %176 = arith.mulf %175, %172 : vector<1x160xf32>
    %177 = vector.broadcast %176 : vector<1x160xf32> to vector<128x160xf32>
    %178 = arith.subf %7, %177 : vector<128x160xf32>
    %179 = arith.mulf %178, %178 : vector<128x160xf32>
    %180 = arith.mulf %168, %179 : vector<128x160xf32>
    %cst_64 = arith.constant dense<0.000000e+00> : vector<160xf32>
    %181 = vector.multi_reduction <add>, %180, %cst_64 [0] : vector<128x160xf32> to vector<160xf32>
    %182 = vector.shape_cast %181 : vector<160xf32> to vector<1x160xf32>
    %183 = arith.mulf %182, %172 : vector<1x160xf32>
    %184 = math.sqrt %183 : vector<1x160xf32>
    %cst_65 = arith.constant 9.99999971E-10 : f32
    %185 = vector.broadcast %cst_65 : f32 to vector<1x160xf32>
    %186 = arith.addf %184, %185 : vector<1x160xf32>
    %187 = math.log %186 : vector<1x160xf32>
    %cst_66 = arith.constant dense<0.000000e+00> : vector<1x10xf32>
    %188 = tpu.matmul %187, %3, %cst_66 {dimension_numbers = #tpu.dot_dimension_numbers<[1], [0], [0], [1], [0, 0, 1, 1], [], []>, precision = #tpu.contract_precision<fp32>} : vector<1x160xf32>, vector<160x10xf32>, vector<1x10xf32> -> vector<1x10xf32>
    %189 = arith.addf %9, %188 : vector<1x10xf32>
    %190 = arith.mulf %167, %189 : vector<1x10xf32>
    %cst_67 = arith.constant dense<0.000000e+00> : vector<1xf32>
    %191 = vector.multi_reduction <add>, %190, %cst_67 [1] : vector<1x10xf32> to vector<1xf32>
    %192 = vector.shape_cast %191 : vector<1xf32> to vector<1x1xf32>
    %cst_68 = arith.constant 1.000000e+01 : f32
    %193 = vector.broadcast %cst_68 : f32 to vector<1x1xf32>
    %194 = arith.divf %192, %193 : vector<1x1xf32>
    %195 = vector.broadcast %194 : vector<1x1xf32> to vector<1x10xf32>
    %196 = arith.subf %190, %195 : vector<1x10xf32>
    %197 = arith.mulf %196, %196 : vector<1x10xf32>
    %cst_69 = arith.constant dense<0.000000e+00> : vector<1xf32>
    %198 = vector.multi_reduction <add>, %197, %cst_69 [1] : vector<1x10xf32> to vector<1xf32>
    %199 = vector.shape_cast %198 : vector<1xf32> to vector<1x1xf32>
    %cst_70 = arith.constant 1.000000e+01 : f32
    %200 = vector.broadcast %cst_70 : f32 to vector<1x1xf32>
    %201 = arith.divf %199, %200 : vector<1x1xf32>
    %202 = math.sqrt %201 : vector<1x1xf32>
    %203 = vector.broadcast %194 : vector<1x1xf32> to vector<1x10xf32>
    %204 = arith.subf %203, %190 : vector<1x10xf32>
    %cst_71 = arith.constant 9.99999971E-10 : f32
    %205 = vector.broadcast %cst_71 : f32 to vector<1x1xf32>
    %206 = arith.addf %202, %205 : vector<1x1xf32>
    %207 = tpu.reciprocal %206 : vector<1x1xf32> -> vector<1x1xf32>
    %208 = vector.broadcast %207 : vector<1x1xf32> to vector<1x10xf32>
    %209 = arith.mulf %204, %208 : vector<1x10xf32>
    %210 = arith.addf %6, %209 : vector<1x10xf32>
    %cst_72 = arith.constant 3.000000e+00 : f32
    %211 = vector.broadcast %cst_72 : f32 to vector<1x10xf32>
    %212 = arith.mulf %211, %210 : vector<1x10xf32>
    %213 = arith.negf %212 : vector<1x10xf32>
    %214 = math.exp %213 : vector<1x10xf32>
    %cst_73 = arith.constant 1.000000e+00 : f32
    %215 = vector.broadcast %cst_73 : f32 to vector<1x10xf32>
    %216 = arith.addf %215, %214 : vector<1x10xf32>
    %217 = arith.divf %215, %216 : vector<1x10xf32>
    %218 = vector.shape_cast %176 : vector<1x160xf32> to vector<1x1x160xf32>
    %c0_74 = arith.constant 0 : index
    %c0_75 = arith.constant 0 : index
    %c0_76 = arith.constant 0 : index
    %219 = vector.load %arg8[%c0_74, %c0_75, %c0_76] : memref<1x1x160xf32, #tpu.memory_space<vmem>>, vector<1x1x160xf32>
    tpu.vector_store %arg8[%c0_74, %c0_75, %c0_76], %218 {strides = array<i32>} : memref<1x1x160xf32, #tpu.memory_space<vmem>>, vector<1x1x160xf32>,
    %220 = vector.shape_cast %217 : vector<1x10xf32> to vector<1x1x10xf32>
    %c0_77 = arith.constant 0 : index
    %c0_78 = arith.constant 0 : index
    %c0_79 = arith.constant 0 : index
    %221 = vector.load %arg9[%c0_77, %c0_78, %c0_79] : memref<1x1x10xf32, #tpu.memory_space<vmem>>, vector<1x1x10xf32>
    tpu.vector_store %arg9[%c0_77, %c0_78, %c0_79], %220 {strides = array<i32>} : memref<1x1x10xf32, #tpu.memory_space<vmem>>, vector<1x1x10xf32>,
    return
  }
  func.func @transform_0(%arg0: i32) -> (i32, i32) {
    %c0_i32 = arith.constant 0 : i32
    %c0_i32_0 = arith.constant 0 : i32
    return %arg0, %c0_i32 : i32, i32
  }
  func.func @transform_1(%arg0: i32) -> (i32, i32) {
    %c0_i32 = arith.constant 0 : i32
    %c0_i32_0 = arith.constant 0 : i32
    %c0_i32_1 = arith.constant 0 : i32
    return %c0_i32, %c0_i32_0 : i32, i32
  }
  func.func @transform_2(%arg0: i32) -> (i32, i32) {
    %c0_i32 = arith.constant 0 : i32
    %c0_i32_0 = arith.constant 0 : i32
    %c0_i32_1 = arith.constant 0 : i32
    return %c0_i32, %c0_i32_0 : i32, i32
  }
  func.func @transform_3(%arg0: i32) -> (i32, i32) {
    %c0_i32 = arith.constant 0 : i32
    %c0_i32_0 = arith.constant 0 : i32
    %c0_i32_1 = arith.constant 0 : i32
    return %c0_i32, %c0_i32_0 : i32, i32
  }
  func.func @transform_4(%arg0: i32) -> (i32, i32) {
    %c0_i32 = arith.constant 0 : i32
    %c0_i32_0 = arith.constant 0 : i32
    %c0_i32_1 = arith.constant 0 : i32
    return %c0_i32, %c0_i32_0 : i32, i32
  }
  func.func @transform_5(%arg0: i32) -> (i32, i32) {
    %c0_i32 = arith.constant 0 : i32
    %c0_i32_0 = arith.constant 0 : i32
    %c0_i32_1 = arith.constant 0 : i32
    return %c0_i32, %c0_i32_0 : i32, i32
  }
  func.func @transform_6(%arg0: i32) -> (i32, i32) {
    %c0_i32 = arith.constant 0 : i32
    %c0_i32_0 = arith.constant 0 : i32
    return %arg0, %c0_i32 : i32, i32
  }
  func.func @transform_7(%arg0: i32) -> (i32, i32, i32) {
    %c0_i32 = arith.constant 0 : i32
    %c0_i32_0 = arith.constant 0 : i32
    %c0_i32_1 = arith.constant 0 : i32
    return %arg0, %c0_i32, %c0_i32_0 : i32, i32, i32
  }
  func.func @transform_8(%arg0: i32) -> (i32, i32, i32) {
    %c0_i32 = arith.constant 0 : i32
    %c0_i32_0 = arith.constant 0 : i32
    %c0_i32_1 = arith.constant 0 : i32
    return %arg0, %c0_i32, %c0_i32_0 : i32, i32, i32
  }
}

</mosaic_0001>

<bundles_post_ra>
// kernel: class_caps_forward.1
= control target key start
LH: loop header
LB: loop body
LE: loop exit
PB: predicated region body
PF: predicated region fallthrough
CT: control target
= control target key end

     0   :  { %14 = vsyncpa [#allocation3], 0  ;;  %s23284_s0 = inlined_call_operand.vmem [shape: f32[256,128], index: 0, kind: input, shape index: {}]   ;;  %s23285_s1 = inlined_call_operand.vmem [shape: f32[128,160], index: 1, kind: input, shape index: {}]   ;;  %s23286_s2 = inlined_call_operand.vmem [shape: f32[10,160], index: 2, kind: input, shape index: {}]   ;;  %s23287_s3 = inlined_call_operand.vmem [shape: f32[160,10], index: 3, kind: input, shape index: {}]   ;;  %s23288_s4 = inlined_call_operand.vmem [shape: f32[1,10], index: 4, kind: input, shape index: {}]   ;;  %s23289_s5 = inlined_call_operand.vmem [shape: f32[1,10], index: 5, kind: input, shape index: {}]   ;;  %s23290_s6 = inlined_call_operand.vmem [shape: f32[256,10], index: 6, kind: input, shape index: {}]   ;;  %s23291_s7 = inlined_call_operand.vmem [shape: f32[2,1,160], index: 7, kind: output, shape index: {0}]   ;;  %s23292_s8 = inlined_call_operand.hbm [shape: f32[2,1,10], index: 8, kind: output, shape index: {1}]  }
   0x1   :  { %16 = vsyncpa [#allocation3 + $0x1], 0  ;;  %s17169_s27 = smov 0   ;;  %s17171_s28 = smov 0  }
   0x2   :  { %s17173_s29 = smov 0   ;;  %s17175_s30 = smov 0  }
   0x3 LB: > { %s17190_s9 = sadd.s32 4294967295, %s17118_s30   ;;  %s14473_s10 = sadd.s32 4294967294, %s17118_s30   ;;  %s17118_s30 = sphi %s17175_s30, %s25294_s30   ;;  %s17114_s29 = sphi %s17173_s29, %s25293_s29   ;;  %s17110_s28 = sphi %s17171_s28, %s25292_s28   ;;  %s17106_s27 = sphi %s17169_s27, %s25291_s27  }
   0x4   : > { %s17194_s11 = sadd.s32 1, %s17118_s30   ;;  %s212_s12 = sadd.s32 1, %s17114_s29 }
   0x5   : > { %s209_s13 = ssub.s32 %s17118_s30, %s17194_s11  ;;  %p222_p0 = scmp.ne.s32.totalorder %s17114_s29, %s17110_s28 }
   0x6   : > { %p210_p1 = scmp.eq.s32.totalorder %s209_s13, 0  ;;  %p223_p2 = scmp.eq.s32.totalorder %s17190_s9, 1 }
   0x7   : > { %p228_p3 = scmp.ne.s32.totalorder %s17110_s28, %s17106_s27  ;;  %p229_p4 = scmp.eq.s32.totalorder %s14473_s10, 1 }
   0x8   : > { %s17205_s14 = scalar_select %p210_p1, %s17114_s29, %s212_s12  }
   0x9   : > { %p17207_p5 = por %p223_p2, %p222_p0  ;;  %p17211_p6 = por %p229_p4, %p228_p3 }
   0xa   : > { %p14476_p7 = scmp.ge.s32.totalorder %s17118_s30, 1  ;;  %p280_p8 = scmp.lt.s32.totalorder %s17118_s30, 3 }
   0xc   : > { %p281_p9 = pnand %p14476_p7, %p280_p8 }
   0xe   : > { %284 = sbr.rel (%p281_p9) target bundleno = 4751 (0x128f), region = 48 }
  0x15   : > { %v355_v0 = vld [vmem:[%s23285_s1 + $0x8] sm:$0xff]  ;;  %v357_v1 = vld [vmem:[%s23285_s1 + $0x18] sm:$0xff]  ;;  %v354_v2 = vld [vmem:[%s23285_s1] sm:$0xff]  ;;  %vm2121_vm0 = vcmask 1041408   ;;  %s17227_s23 = sshll.u32 %s17190_s9, 4  ;;  %v23298_v9 = vmov 0.0  }
  0x16   : > { %v428_v3 = vand.u32 4294901760, %v355_v0  ;;  %v432_v4 = vand.u32 4294901760, %v357_v1  ;;  %v356_v5 = vld [vmem:[%s23285_s1 + $0x10] sm:$0xff]  ;;  %v430_v6 = vand.u32 4294901760, %v354_v2  ;;  %v359_v7 = vld [vmem:[%s23285_s1 + $0x28] sm:$0xff]  ;;  %v361_v8 = vld [vmem:[%s23285_s1 + $0x38] sm:$0xff]  ;;  %2196 = vmatprep.mubr.f32.mxu1 %v23298_v9  ;;  %524 = vmatprep.mubr.f32.mxu0 %v23298_v9  ;;  %s23241_s21 = scalar_lea.hbm %s23292_s8, %s17227_s23 }
  0x17   : > { %v434_v10 = vand.u32 4294901760, %v356_v5  ;;  %v436_v11 = vand.u32 4294901760, %v359_v7  ;;  %v440_v12 = vand.u32 4294901760, %v361_v8  ;;  %v358_v13 = vld [vmem:[%s23285_s1 + $0x20] sm:$0xff]  ;;  %v360_v14 = vld [vmem:[%s23285_s1 + $0x30] sm:$0xff]  ;;  %v363_v15 = vld [vmem:[%s23285_s1 + $0x48] sm:$0xff] }
  0x18   : > { %v17249_v16 = vpack.c.bf16 %v432_v4, %v428_v3  ;;  %v17251_v17 = vsub.f32 %v355_v0, %v428_v3  ;;  %v17253_v18 = vsub.f32 %v357_v1, %v432_v4  ;;  %v17255_v19 = vsub.f32 %v354_v2, %v430_v6  ;;  %v365_v20 = vld [vmem:[%s23285_s1 + $0x58] sm:$0xff]  ;;  %v362_v21 = vld [vmem:[%s23285_s1 + $0x40] sm:$0xff]  ;;  %v364_v22 = vld [vmem:[%s23285_s1 + $0x50] sm:$0xff]  ;;  %p323_p10 = scmp.lt.s32.totalorder %s17227_s23, 31  ;;  %p334_p11 = scmp.lt.s32.totalorder %s17190_s9, 1 }
  0x19   : > { %v17267_v23 = vpack.c.bf16 %v434_v10, %v430_v6  ;;  %v17269_v24 = vsub.f32 %v356_v5, %v434_v10  ;;  %v17271_v25 = vpack.c.bf16 %v440_v12, %v436_v11  ;;  %v17273_v26 = vsub.f32 %v359_v7, %v436_v11  ;;  %v389_v27 = vld [vmem:[%s23286_s2 + $0x18] sm:$0x3]  ;;  %v387_v32 = vld [vmem:[%s23286_s2 + $0x8] sm:$0xff]  ;;  %v386_v43 = vld [vmem:[%s23286_s2] sm:$0xff]  ;;  %s17123_s25 = smov [#allocation2]  }
  0x1a   : > { %24099 = vst [vmem:[#allocation5_spill] sm:$0xff] %v17249_v16  ;;  %24100 = vst [vmem:[#allocation6_spill] sm:$0xff] %v17251_v17  ;;  %14489 = vmatprep.subr.bf16.mxu0 %v17249_v16  ;;  %v17279_v28 = vsub.f32 %v361_v8, %v440_v12  ;;  %v438_v29 = vand.u32 4294901760, %v358_v13  ;;  %v442_v30 = vand.u32 4294901760, %v360_v14  ;;  %v444_v31 = vand.u32 4294901760, %v363_v15  ;;  %v367_v37 = vld [vmem:[%s23285_s1 + $0x68] sm:$0xff] }
  0x1b   : > { %24101 = vst [vmem:[#allocation7_spill] sm:$0xff] %v17253_v18  ;;  %24102 = vst [vmem:[#allocation8_spill] sm:$0xff] %v17267_v23  ;;  %14491 = vmatpush1.bf16.msra.mxu0 %v17267_v23  ;;  %v448_v33 = vand.u32 4294901760, %v365_v20  ;;  %v446_v34 = vand.u32 4294901760, %v362_v21  ;;  %v450_v35 = vand.u32 4294901760, %v364_v22  ;;  %v2126_v36 = vsel %vm2121_vm0, %v389_v27, 0 }
  0x1c   : > { %24103 = vst [vmem:[#allocation9_spill] sm:$0xff] %v17271_v25  ;;  %v369_v38 = vld [vmem:[%s23285_s1 + $0x78] sm:$0xff]  ;;  %14493 = vmatprep.subr.bf16.mxu0 %v17271_v25  ;;  %v17293_v39 = vpack.c.bf16 %v442_v30, %v438_v29  ;;  %v17295_v40 = vsub.f32 %v358_v13, %v438_v29  ;;  %v17297_v41 = vsub.f32 %v360_v14, %v442_v30  ;;  %v388_v44 = vld [vmem:[%s23286_s2 + $0x10] sm:$0x3]  ;;  %v366_v45 = vld [vmem:[%s23285_s1 + $0x60] sm:$0xff]  ;;  %s17313_s19 = scalar_select %p323_p10, %s17227_s23, 31 }
  0x1d   : > { %v17299_v42 = vsub.f32 %v363_v15, %v444_v31  ;;  %v17315_v46 = vpack.c.bf16 %v448_v33, %v444_v31  ;;  %v17317_v47 = vsub.f32 %v365_v20, %v448_v33  ;;  %v17319_v48 = vpack.c.bf16 %v450_v35, %v446_v34  ;;  %v368_v50 = vld [vmem:[%s23285_s1 + $0x70] sm:$0xff]  ;;  %v371_v63 = vld [vmem:[%s23285_s1 + $0x88] sm:$0xff]  ;;  %v373_v0 = vld [vmem:[%s23285_s1 + $0x98] sm:$0xff]  ;;  %s25296_s9 = smov (!%p334_p11, %s17190_s9), 1  ;;  %s17060_s10 = sshll.u32 %s17123_s25, 4  ;;  %s17061_s10 = int_to_ptr.vmem [resolvable:$false] %s17060_s10 }
  0x1e   : > { %24104 = vst [vmem:[#allocation10_spill] sm:$0xff] %v17293_v39  ;;  %v17321_v49 = vsub.f32 %v362_v21, %v446_v34  ;;  %v17326_v51 = vsub.f32 %v364_v22, %v450_v35  ;;  %v2128_v52 = vand.u32 4294901760, %v387_v32  ;;  %v2132_v53 = vand.u32 4294901760, %v2126_v36  ;;  %s14478_s22 = sshll.u32 %s17313_s19, 3  ;;  %v370_v22 = vld [vmem:[%s23285_s1 + $0x80] sm:$0xff]  ;;  %v375_v33 = vld [vmem:[%s23285_s1 + $0xa8] sm:$0xff] }
  0x1f   : > { %24105 = vst [vmem:[#allocation11_spill] sm:$0xff] %v17315_v46  ;;  %24106 = vst [vmem:[#allocation12_spill] sm:$0xff] %v17319_v48  ;;  %v452_v54 = vand.u32 4294901760, %v367_v37  ;;  %14495 = vmatpush1.bf16.msra.mxu0 %v17293_v39  ;;  %v456_v55 = vand.u32 4294901760, %v369_v38  ;;  %v2123_v56 = vsel %vm2121_vm0, %v388_v44, 0  ;;  %v2130_v57 = vand.u32 4294901760, %v386_v43  ;;  %s17336_s26 = scalar_lea.vmem %s23290_s6, %s14478_s22  ;;  %s17492_s17 = scalar_lea.vmem %s23284_s0, %s14478_s22 }
  0x20   : > { %v454_v58 = vand.u32 4294901760, %v366_v45  ;;  %14497 = vmatprep.subr.bf16.mxu0 %v17315_v46  ;;  %v17339_v59 = vpack.c.bf16 %v2132_v53, %v2128_v52  ;;  %v2134_v61 = vand.u32 4294901760, %v2123_v56  ;;  %v458_v62 = vand.u32 4294901760, %v368_v50  ;;  %v410_v1 = vld [vmem:[%s17336_s26] sm:$0xff] }
  0x21   : > { %v17341_v60 = vsub.f32 %v367_v37, %v452_v54  ;;  %v17350_v2 = vpack.c.bf16 %v456_v55, %v452_v54  ;;  %v17352_v3 = vsub.f32 %v369_v38, %v456_v55  ;;  %v17356_v5 = vsub.f32 %v387_v32, %v2128_v52  ;;  %v372_v32 = vld [vmem:[%s23285_s1 + $0x90] sm:$0xff]  ;;  %v377_v38 = vld [vmem:[%s23285_s1 + $0xb8] sm:$0xff] }
  0x22   : > { %24107 = vst [vmem:[#allocation13_spill] sm:$0xff] %v17339_v59  ;;  %v17354_v4 = vsub.f32 %v366_v45, %v454_v58  ;;  %14681 = vmatprep.subr.bf16.mxu1 %v17339_v59  ;;  %v17359_v6 = vpack.c.bf16 %v2134_v61, %v2130_v57  ;;  %v17361_v7 = vpack.c.bf16 %v458_v62, %v454_v58  ;;  %v460_v12 = vand.u32 4294901760, %v371_v63 }
  0x23   : > { %24108 = vst [vmem:[#allocation14_spill] sm:$0xff] %v17350_v2  ;;  %v17363_v8 = vsub.f32 %v368_v50, %v458_v62  ;;  %v17365_v10 = vsub.f32 %v2126_v36, %v2132_v53  ;;  %14499 = vmatpush1.bf16.msra.mxu0 %v17319_v48  ;;  %v23297_v11 = vand.u32 4294901760, %v17356_v5  ;;  %v464_v13 = vand.u32 4294901760, %v373_v0  ;;  %v411_v62 = vld [vmem:[%s17336_s26 + $0x8] sm:$0xff] }
  0x24   : > { %24109 = vst [vmem:[#allocation15_spill] sm:$0xff] %v17359_v6  ;;  %24110 = vst [vmem:[#allocation16_spill] sm:$0xff] %v17361_v7  ;;  %v2019_v14 = vmul.f32 0.1, %v410_v1  ;;  %14501 = vmatprep.subr.bf16.mxu0 %v17350_v2  ;;  %14683 = vmatpush1.bf16.msra.mxu1 %v17359_v6  ;;  %vm2035_vm1 = vcmask 80896   ;;  %v17372_v20 = vsub.f32 %v386_v43, %v2130_v57  ;;  %v17374_v21 = vsub.f32 %v2123_v56, %v2134_v61 }
  0x25   : > { %v23295_v15 = vand.u32 4294901760, %v17365_v10  ;;  %v2376_v27 = vsub.f32 %v17356_v5, %v23297_v11  ;;  %v17382_v29 = vpack.c.bf16 %v464_v13, %v460_v12  ;;  %v17384_v30 = vsub.f32 %v371_v63, %v460_v12  ;;  %v374_v63 = vld [vmem:[%s23285_s1 + $0xa0] sm:$0xff] }
  0x26   : > { %24111 = vst [vmem:[#allocation17_spill] sm:$0xff] %v17372_v20  ;;  %24112 = vst [vmem:[#allocation18_spill] sm:$0xff] %v17374_v21  ;;  %v17386_v31 = vsub.f32 %v373_v0, %v464_v13  ;;  %v2036_v35 = vsel %vm2035_vm1, %v2019_v14, 0.0  ;;  %v2074_v36 = vsel %vm2035_vm1, %v2019_v14, 0  ;;  %v23294_v37 = vand.u32 4294901760, %v17372_v20  ;;  %v376_v0 = vld [vmem:[%s23285_s1 + $0xb0] sm:$0xff] }
  0x27   : > { %24113 = vst [vmem:[#allocation19_spill] sm:$0xff] %v17382_v29  ;;  %v2388_v34 = vsub.f32 %v17365_v10, %v23295_v15  ;;  %14503 = vmatpush1.bf16.msra.mxu0 %v17361_v7  ;;  %v2377_v43 = vand.u32 4294901760, %v2376_v27  ;;  %v17404_v44 = vand.u32 4294901760, %v2074_v36  ;;  %v23293_v45 = vand.u32 4294901760, %v17374_v21  ;;  %v381_v27 = vld [vmem:[%s23285_s1 + $0xd8] sm:$0xff] }
  0x28   : > { %v462_v50 = vand.u32 4294901760, %v370_v22  ;;  %14505 = vmatprep.subr.bf16.mxu0 %v17382_v29  ;;  %v2382_v53 = vsub.f32 %v17372_v20, %v23294_v37  ;;  %v466_v54 = vand.u32 4294901760, %v372_v32  ;;  %v468_v55 = vand.u32 4294901760, %v375_v33 }
  0x29   : > { %24114 = vst [vmem:[#allocation20_spill] sm:$0xff] %v17404_v44  ;;  %v2389_v52 = vand.u32 4294901760, %v2388_v34  ;;  %v17412_v56 = vsub.f32 %v2074_v36, %v17404_v44  ;;  %v2394_v57 = vsub.f32 %v17374_v21, %v23293_v45  ;;  %v472_v61 = vand.u32 4294901760, %v377_v38 }
  0x2a   : > { %v17417_v58 = vsub.f32 %v370_v22, %v462_v50  ;;  %v2383_v12 = vand.u32 4294901760, %v2382_v53  ;;  %v17428_v13 = vpack.c.bf16 %v466_v54, %v462_v50  ;;  %v17430_v14 = vsub.f32 %v372_v32, %v466_v54  ;;  %v379_v22 = vld [vmem:[%s23285_s1 + $0xc8] sm:$0xff] }
  0x2b   : > { %24115 = vst [vmem:[#allocation21_spill] sm:$0xff] %v17412_v56  ;;  %v17426_v1 = vpack.c.bf16 %v2389_v52, %v2377_v43  ;;  %v23296_v34 = vand.u32 4294901760, %v17412_v56  ;;  %v2395_v36 = vand.u32 4294901760, %v2394_v57  ;;  %v17439_v45 = vpack.c.bf16 %v472_v61, %v468_v55  ;;  %v412_v57 = vld [vmem:[%s17336_s26 + $0x10] sm:$0xff] }
  0x2c   : > { %24117 = vst [vmem:[#allocation23_spill] sm:$0xff] %v17428_v13  ;;  %v17441_v43 = vsub.f32 %v375_v33, %v468_v55  ;;  %14507 = vmatpush1.bf16.msra.mxu0 %v17428_v13  ;;  %v17445_v32 = vsub.f32 %v377_v38, %v472_v61  ;;  %v2020_v50 = vmul.f32 0.1, %v411_v62  ;;  %v470_v52 = vand.u32 4294901760, %v374_v63 }
  0x2d   : > { %24116 = vst [vmem:[#allocation22_spill] sm:$0xff] %v17426_v1  ;;  %24118 = vst [vmem:[#allocation24_spill] sm:$0xff] %v17439_v45  ;;  %14685 = vmatprep.subr.bf16.mxu1 %v17426_v1  ;;  %v474_v53 = vand.u32 4294901760, %v376_v0  ;;  %v2200_v54 = vsub.f32 %v17412_v56, %v23296_v34  ;;  %v17450_v37 = vpack.c.bf16 %v2395_v36, %v2383_v12  ;;  %14509 = vmatprep.subr.bf16.mxu0 %v17439_v45  ;;  %v378_v34 = vld [vmem:[%s23285_s1 + $0xc0] sm:$0xff]  ;;  %v380_v12 = vld [vmem:[%s23285_s1 + $0xd0] sm:$0xff]  ;;  %vm3903_vm2 = vcmask 261120  }
  0x2e   : > { %v476_v33 = vand.u32 4294901760, %v379_v22  ;;  %v480_v55 = vand.u32 4294901760, %v381_v27  ;;  %v2037_v15 = vsel %vm2035_vm1, %v2020_v50, 0.0  ;;  %v2077_v38 = vsel %vm2035_vm1, %v2020_v50, 0  ;;  %v383_v36 = vld [vmem:[%s23285_s1 + $0xe8] sm:$0xff] }
  0x2f   : > { %24119 = vst [vmem:[#allocation25_spill] sm:$0xff] %v17450_v37  ;;  %v17456_v61 = vpack.c.bf16 %v474_v53, %v470_v52  ;;  %v17458_v62 = vsub.f32 %v374_v63, %v470_v52  ;;  %v2201_v11 = vand.u32 4294901760, %v2200_v54  ;;  %v2038_v9 = vadd.f32 %v2037_v15, %v2036_v35  ;;  %v385_v63 = vld [vmem:[%s23285_s1 + $0xf8] sm:$0xff] }
  0x30   : > { %v17469_v50 = vand.u32 4294901760, %v2077_v38  ;;  %v17471_v1 = vsub.f32 %v376_v0, %v474_v53  ;;  %v413_v52 = vld [vmem:[%s17336_s26 + $0x18] sm:$0xff]  ;;  %v17478_v45 = vpack.c.bf16 %v480_v55, %v476_v33  ;;  %v17480_v13 = vsub.f32 %v379_v22, %v476_v33 }
  0x31   : > { %24120 = vst [vmem:[#allocation26_spill] sm:$0xff] %v17456_v61  ;;  %14511 = vmatpush1.bf16.msra.mxu0 %v17456_v61  ;;  %v17482_v29 = vsub.f32 %v381_v27, %v480_v55  ;;  %v2021_v54 = vmul.f32 0.1, %v412_v57  ;;  %2202 = vmatmul.mubr.f32.vlgmr.msra.gmra.mrb[0].mxu1 %v2201_v11  ;;  %v478_v35 = vand.u32 4294901760, %v378_v34  ;;  %v482_v0 = vand.u32 4294901760, %v380_v12 }
  0x32   : > { %24121 = vst [vmem:[#allocation27_spill] sm:$0xff] %v17469_v50  ;;  %24122 = vst [vmem:[#allocation28_spill] sm:$0xff] %v17478_v45  ;;  %v17485_v15 = vsub.f32 %v2077_v38, %v17469_v50  ;;  %v484_v53 = vand.u32 4294901760, %v383_v36  ;;  %14687 = vmatpush1.bf16.msra.mxu1 %v17450_v37  ;;  %v24124_v22 = vmov 0.0   ;;  %v488_v33 = vand.u32 4294901760, %v385_v63  ;;  %14513 = vmatprep.subr.bf16.mxu0 %v17478_v45  ;;  %v382_v37 = vld [vmem:[%s23285_s1 + $0xe0] sm:$0xff] }
  0x33   : > { %2207 = vmatprep.mubr.f32.mxu1 %v24124_v22  ;;  %v2039_v27 = vsel %vm2035_vm1, %v2021_v54, 0.0  ;;  %v2080_v11 = vsel %vm2035_vm1, %v2021_v54, 0  ;;  %v2022_v55 = vmul.f32 0.1, %v413_v52  ;;  %v17502_v7 = vpack.c.bf16 %v482_v0, %v478_v35  ;;  %v384_v54 = vld [vmem:[%s23285_s1 + $0xf0] sm:$0xff] }
  0x34   : > { %24123 = vst [vmem:[#allocation29_spill] sm:$0xff] %v17485_v15  ;;  %v2040_v38 = vadd.f32 %v2039_v27, %v2038_v9  ;;  %v17500_v61 = vand.u32 4294901760, %v2080_v11  ;;  %v17510_v2 = vsub.f32 %v378_v34, %v478_v35  ;;  %v17512_v52 = vsub.f32 %v380_v12, %v482_v0  ;;  %v338_v27 = vld [vmem:[%s17492_s17] sm:$0xff] }
  0x35   : > { %24126 = vst [vmem:[#allocation31_spill] sm:$0xff] %v17502_v7  ;;  %v17514_v57 = vpack.c.bf16 %v488_v33, %v484_v53  ;;  %v17516_v9 = vsub.f32 %v383_v36, %v484_v53  ;;  %v24128_v45 = vand.u32 4294901760, %v17485_v15  ;;  %14515 = vmatpush1.bf16.msra.mxu0 %v17502_v7  ;;  %v17526_v34 = vsub.f32 %v385_v63, %v488_v33  ;;  %v414_v35 = vld [vmem:[%s17336_s26 + $0x20] sm:$0xff]  ;;  %v415_v63 = vld [vmem:[%s17336_s26 + $0x28] sm:$0xff]  ;;  %v340_v33 = vld [vmem:[%s17492_s17 + $0x10] sm:$0xff] }
  0x36   : > { %24125 = vst [vmem:[#allocation30_spill] sm:$0xff] %v17500_v61  ;;  %v17523_v46 = vsub.f32 %v2080_v11, %v17500_v61  ;;  %v2041_v12 = vsel %vm2035_vm1, %v2022_v55, 0.0  ;;  %v2083_v0 = vsel %vm2035_vm1, %v2022_v55, 0  ;;  %v486_v53 = vand.u32 4294901760, %v382_v37 }
  0x37   : > { %24127 = vst [vmem:[#allocation32_spill] sm:$0xff] %v17514_v57  ;;  %v2211_v48 = vsub.f32 %v17485_v15, %v24128_v45  ;;  %24130 = vst [vmem:[#allocation34_spill] sm:$0xff] %v17526_v34  ;;  %14517 = vmatprep.subr.bf16.mxu0 %v17514_v57  ;;  %v2042_v36 = vadd.f32 %v2041_v12, %v2040_v38  ;;  %v490_v39 = vand.u32 4294901760, %v384_v54  ;;  %v339_v45 = vld [vmem:[%s17492_s17 + $0x8] sm:$0xff]  ;;  %v17534_v23 = vand.u32 4294901760, %v2083_v0 }
  0x38   : > { %24129 = vst [vmem:[#allocation33_spill] sm:$0xff] %v17523_v46  ;;  %v23338_v11 = vand.u32 4294901760, %v17523_v46  ;;  %v17536_v15 = vand.u32 4294901760, %v338_v27  ;;  %v17542_v6 = vsub.f32 %v382_v37, %v486_v53  ;;  %v2023_v38 = vmul.f32 0.1, %v414_v35 }
  0x39   : > { %v2212_v25 = vand.u32 4294901760, %v2211_v48  ;;  %24131 = vst [vmem:[#allocation35_spill] sm:$0xff] %v17534_v23  ;;  %v17540_v7 = vpack.c.bf16 %v490_v39, %v486_v53  ;;  %v17544_v57 = vsub.f32 %v384_v54, %v490_v39  ;;  %v17550_v55 = vsub.f32 %v2083_v0, %v17534_v23  ;;  %v343_v23 = vld [vmem:[%s17492_s17 + $0x28] sm:$0xff] }
  0x3a   : > { %24132 = vst [vmem:[#allocation36_spill] sm:$0xff] %v17536_v15  ;;  %v2222_v48 = vsub.f32 %v17523_v46, %v23338_v11  ;;  %v17553_v12 = vsub.f32 %v338_v27, %v17536_v15  ;;  %v17555_v56 = vand.u32 4294901760, %v339_v45  ;;  %v2043_v39 = vsel %vm2035_vm1, %v2023_v38, 0.0  ;;  %v416_v11 = vld [vmem:[%s17336_s26 + $0x30] sm:$0xff] }
  0x3b   : > { %24133 = vst [vmem:[#allocation37_spill] sm:$0xff] %v17540_v7  ;;  %2213 = vmatmul.mubr.f32.gmra.mrb[2].mxu1 %v2212_v25  ;;  %24134 = vst [vmem:[#allocation38_spill] sm:$0xff] %v17550_v55  ;;  %14519 = vmatpush1.bf16.msra.mxu0 %v17540_v7  ;;  %v2086_v25 = vsel %vm2035_vm1, %v2023_v38, 0  ;;  %v2024_v37 = vmul.f32 0.1, %v415_v63  ;;  %v17561_v54 = vand.u32 4294901760, %v340_v33  ;;  %v2044_v53 = vadd.f32 %v2043_v39, %v2042_v36 }
  0x3c   : > { %24135 = vst [vmem:[#allocation39_spill] sm:$0xff] %v17553_v12  ;;  %24136 = vst [vmem:[#allocation40_spill] sm:$0xff] %v17555_v56  ;;  %2218 = vmatprep.mubr.f32.mxu1 %v24124_v22  ;;  %v2223_v35 = vand.u32 4294901760, %v2222_v48  ;;  %v23347_v0 = vand.u32 4294901760, %v17550_v55  ;;  %v23352_v27 = vand.u32 4294901760, %v17553_v12  ;;  %v17566_v46 = vand.u32 4294901760, %v2086_v25 }
  0x3d   : > { %24137 = vst [vmem:[#allocation41_spill] sm:$0xff] %v17561_v54  ;;  %v17569_v16 = vsub.f32 %v339_v45, %v17555_v56  ;;  %v2045_v7 = vsel %vm2035_vm1, %v2024_v37, 0.0  ;;  %v2089_v15 = vsel %vm2035_vm1, %v2024_v37, 0  ;;  %v341_v38 = vld [vmem:[%s17492_s17 + $0x18] sm:$0xff]  ;;  %vm4838_vm7 = vcmask 73728  }
  0x3e   : > { %24138 = vst [vmem:[#allocation42_spill] sm:$0xff] %v17566_v46  ;;  %v2233_v63 = vsub.f32 %v17550_v55, %v23347_v0  ;;  %v528_v36 = vsub.f32 %v17553_v12, %v23352_v27  ;;  %v2046_v48 = vadd.f32 %v2045_v7, %v2044_v53  ;;  %v17580_v39 = vand.u32 4294901760, %v2089_v15  ;;  %v418_v53 = vld [vmem:[%s17336_s26 + $0x40] sm:$0xff] }
  0x3f   : > { %24139 = vst [vmem:[#allocation43_spill] sm:$0xff] %v17569_v16  ;;  %2224 = vmatmul.mubr.f32.gmra.mrb[4].mxu1 %v2223_v35  ;;  %v17584_v45 = vsub.f32 %v2086_v25, %v17566_v46  ;;  %v23359_v37 = vand.u32 4294901760, %v17569_v16  ;;  %v17588_v35 = vsub.f32 %v340_v33, %v17561_v54  ;;  %v2025_v0 = vmul.f32 0.1, %v416_v11  ;;  %v417_v54 = vld [vmem:[%s17336_s26 + $0x38] sm:$0xff]  ;;  %v342_v11 = vld [vmem:[%s17492_s17 + $0x20] sm:$0xff] }
  0x40   : > { %24140 = vst [vmem:[#allocation44_spill] sm:$0xff] %v17580_v39  ;;  %2229 = vmatprep.mubr.f32.mxu1 %v24124_v22  ;;  %v2234_v55 = vand.u32 4294901760, %v2233_v63  ;;  %v529_v56 = vand.u32 4294901760, %v528_v36  ;;  %v17591_v27 = vsub.f32 %v2089_v15, %v17580_v39  ;;  %v17593_v7 = vand.u32 4294901760, %v341_v38 }
  0x41   : > { %24141 = vst [vmem:[#allocation45_spill] sm:$0xff] %v17584_v45  ;;  %24142 = vst [vmem:[#allocation46_spill] sm:$0xff] %v17588_v35  ;;  %v539_v25 = vsub.f32 %v17569_v16, %v23359_v37  ;;  %v2047_v33 = vsel %vm2035_vm1, %v2025_v0, 0.0  ;;  %v2092_v36 = vsel %vm2035_vm1, %v2025_v0, 0  ;;  %v24146_v37 = vand.u32 4294901760, %v17584_v45 }
  0x42   : > { %24143 = vst [vmem:[#allocation47_spill] sm:$0xff] %v17591_v27  ;;  %24144 = vst [vmem:[#allocation48_spill] sm:$0xff] %v17593_v7  ;;  %530 = vmatmul.mubr.f32.vlgmr.msra.gmra.mrb[0].mxu0 %v529_v56  ;;  %v23372_v63 = vand.u32 4294901760, %v17591_v27  ;;  %v2048_v15 = vadd.f32 %v2047_v33, %v2046_v48  ;;  %v17606_v39 = vsub.f32 %v341_v38, %v17593_v7  ;;  %v24147_v56 = vand.u32 4294901760, %v17588_v35 }
  0x43   : > { %2235 = vmatmul.mubr.f32.gmra.mrb[6].mxu1 %v2234_v55  ;;  %v2244_v12 = vsub.f32 %v17584_v45, %v24146_v37  ;;  %535 = vmatprep.mubr.f32.mxu0 %v24124_v22  ;;  %v540_v55 = vand.u32 4294901760, %v539_v25  ;;  %v17617_v33 = vand.u32 4294901760, %v2092_v36  ;;  %v2026_v16 = vmul.f32 0.1, %v417_v54 }
  0x44   : > { %24145 = vst [vmem:[#allocation49_spill] sm:$0xff] %v17606_v39  ;;  %2240 = vmatprep.mubr.f32.mxu1 %v24124_v22  ;;  %v550_v48 = vsub.f32 %v17588_v35, %v24147_v56  ;;  %v2255_v0 = vsub.f32 %v17591_v27, %v23372_v63  ;;  %v23373_v38 = vand.u32 4294901760, %v17606_v39  ;;  %v17623_v7 = vand.u32 4294901760, %v342_v11 }
  0x45   : > { %24148 = vst [vmem:[#allocation50_spill] sm:$0xff] %v17617_v33  ;;  %v2245_v46 = vand.u32 4294901760, %v2244_v12  ;;  %v17626_v25 = vsub.f32 %v2092_v36, %v17617_v33  ;;  %v2027_v45 = vmul.f32 0.1, %v418_v53  ;;  %v2049_v63 = vsel %vm2035_vm1, %v2026_v16, 0.0 }
  0x46   : > { %24149 = vst [vmem:[#allocation51_spill] sm:$0xff] %v17623_v7  ;;  %v551_v37 = vand.u32 4294901760, %v550_v48  ;;  %541 = vmatmul.mubr.f32.gmra.mrb[2].mxu0 %v540_v55  ;;  %v2256_v56 = vand.u32 4294901760, %v2255_v0  ;;  %v561_v35 = vsub.f32 %v17606_v39, %v23373_v38  ;;  %v2095_v54 = vsel %vm2035_vm1, %v2026_v16, 0  ;;  %v419_v55 = vld [vmem:[%s17336_s26 + $0x48] sm:$0xff] }
  0x47   : > { %24150 = vst [vmem:[#allocation52_spill] sm:$0xff] %v17626_v25  ;;  %2246 = vmatmul.mubr.f32.gmra.mrb[8].mxu1 %v2245_v46  ;;  %546 = vmatprep.mubr.f32.mxu0 %v24124_v22  ;;  %v23382_v12 = vand.u32 4294901760, %v17626_v25  ;;  %v2050_v48 = vadd.f32 %v2049_v63, %v2048_v15  ;;  %v17636_v36 = vand.u32 4294901760, %v2095_v54  ;;  %v17639_v53 = vsub.f32 %v342_v11, %v17623_v7 }
  0x48   : > { %2251 = vmatprep.mubr.f32.mxu1 %v24124_v22  ;;  %v562_v0 = vand.u32 4294901760, %v561_v35  ;;  %v2051_v38 = vsel %vm2035_vm1, %v2027_v45, 0.0  ;;  %v2098_v39 = vsel %vm2035_vm1, %v2027_v45, 0  ;;  %v17645_v16 = vand.u32 4294901760, %v343_v23 }
  0x49   : > { %24151 = vst [vmem:[#allocation53_spill] sm:$0xff] %v17636_v36  ;;  %24152 = vst [vmem:[#allocation54_spill] sm:$0xff] %v17639_v53  ;;  %v2266_v46 = vsub.f32 %v17626_v25, %v23382_v12  ;;  %v17651_v63 = vsub.f32 %v2095_v54, %v17636_v36  ;;  %v23383_v11 = vand.u32 4294901760, %v17639_v53  ;;  %v2052_v15 = vadd.f32 %v2051_v38, %v2050_v48  ;;  %v421_v36 = vld [vmem:[%s17336_s26 + $0x58] sm:$0xff] }
  0x4a   : > { %24153 = vst [vmem:[#allocation55_spill] sm:$0xff] %v17645_v16  ;;  %552 = vmatmul.mubr.f32.gmra.mrb[4].mxu0 %v551_v37  ;;  %v17654_v27 = vand.u32 4294901760, %v2098_v39  ;;  %v17657_v35 = vsub.f32 %v343_v23, %v17645_v16  ;;  %v2028_v45 = vmul.f32 0.1, %v419_v55  ;;  %v24160_v16 = vand.u32 4294901760, %v17253_v18 }
  0x4b   : > { %24154 = vst [vmem:[#allocation56_spill] sm:$0xff] %v17651_v63  ;;  %2257 = vmatmul.mubr.f32.gmra.mrb[10].mxu1 %v2256_v56  ;;  %v2267_v33 = vand.u32 4294901760, %v2266_v46  ;;  %557 = vmatprep.mubr.f32.mxu0 %v24124_v22  ;;  %v23390_v54 = vand.u32 4294901760, %v17651_v63  ;;  %v572_v38 = vsub.f32 %v17639_v53, %v23383_v11  ;;  %v344_v46 = vld [vmem:[%s17492_s17 + $0x30] sm:$0xff] }
  0x4c   : > { %24155 = vst [vmem:[#allocation57_spill] sm:$0xff] %v17654_v27  ;;  %24156 = vst [vmem:[#allocation58_spill] sm:$0xff] %v17657_v35  ;;  %2262 = vmatprep.mubr.f32.mxu1 %v24124_v22  ;;  %v17668_v23 = vsub.f32 %v2098_v39, %v17654_v27  ;;  %v23391_v48 = vand.u32 4294901760, %v17657_v35  ;;  %v2053_v56 = vsel %vm2035_vm1, %v2028_v45, 0.0  ;;  %v2101_v55 = vsel %vm2035_vm1, %v2028_v45, 0  ;;  %v345_v39 = vld [vmem:[%s17492_s17 + $0x38] sm:$0xff] }
  0x4d   : > { %v2277_v12 = vsub.f32 %v17651_v63, %v23390_v54  ;;  %v573_v11 = vand.u32 4294901760, %v572_v38  ;;  %v2054_v37 = vadd.f32 %v2053_v56, %v2052_v15  ;;  %v17677_v7 = vand.u32 4294901760, %v2101_v55 }
  0x4e   : > { %24157 = vst [vmem:[#allocation59_spill] sm:$0xff] %v17668_v23  ;;  %563 = vmatmul.mubr.f32.gmra.mrb[6].mxu0 %v562_v0  ;;  %v583_v53 = vsub.f32 %v17657_v35, %v23391_v48  ;;  %v24159_v45 = vand.u32 4294901760, %v17251_v17  ;;  %v716_v54 = vsub.f32 %v17253_v18, %v24160_v16  ;;  %v17693_v15 = vand.u32 4294901760, %v344_v46  ;;  %v420_v48 = vld [vmem:[%s17336_s26 + $0x50] sm:$0xff] }
  0x4f   : > { %24158 = vst [vmem:[#allocation60_spill] sm:$0xff] %v17677_v7  ;;  %2268 = vmatmul.mubr.f32.gmra.mrb[12].mxu1 %v2267_v33  ;;  %v2278_v38 = vand.u32 4294901760, %v2277_v12  ;;  %568 = vmatprep.mubr.f32.mxu0 %v24124_v22  ;;  %v17691_v0 = vsub.f32 %v2101_v55, %v17677_v7  ;;  %v23410_v56 = vand.u32 4294901760, %v17255_v19  ;;  %v23409_v27 = vand.u32 4294901760, %v17269_v24 }
  0x50   : > { %v704_v25 = vsub.f32 %v17251_v17, %v24159_v45  ;;  %24162 = vst [vmem:[#allocation62_spill] sm:$0xff] %v17693_v15  ;;  %2273 = vmatprep.mubr.f32.mxu1 %v24124_v22  ;;  %v24163_v45 = vand.u32 4294901760, %v17668_v23  ;;  %v584_v33 = vand.u32 4294901760, %v583_v53  ;;  %v717_v35 = vand.u32 4294901760, %v716_v54 }
  0x51   : > { %24161 = vst [vmem:[#allocation61_spill] sm:$0xff] %v17691_v0  ;;  %v23408_v63 = vand.u32 4294901760, %v17691_v0  ;;  %v17704_v55 = vsub.f32 %v344_v46, %v17693_v15  ;;  %v710_v7 = vsub.f32 %v17255_v19, %v23410_v56  ;;  %v2029_v61 = vmul.f32 0.1, %v420_v48 }
  0x52   : > { %v2288_v16 = vsub.f32 %v17668_v23, %v24163_v45  ;;  %v705_v12 = vand.u32 4294901760, %v704_v25  ;;  %574 = vmatmul.mubr.f32.gmra.mrb[8].mxu0 %v573_v11  ;;  %v17711_v45 = vand.u32 4294901760, %v345_v39  ;;  %v722_v46 = vsub.f32 %v17269_v24, %v23409_v27 }
  0x53   : > { %24164 = vst [vmem:[#allocation63_spill] sm:$0xff] %v17704_v55  ;;  %2279 = vmatmul.mubr.f32.gmra.mrb[14].mxu1 %v2278_v38  ;;  %579 = vmatprep.mubr.f32.mxu0 %v24124_v22  ;;  %v2299_v25 = vsub.f32 %v17691_v0, %v23408_v63  ;;  %v23413_v53 = vand.u32 4294901760, %v17704_v55  ;;  %v711_v54 = vand.u32 4294901760, %v710_v7  ;;  %v2055_v11 = vsel %vm2035_vm1, %v2029_v61, 0.0  ;;  %v346_v0 = vld [vmem:[%s17492_s17 + $0x40] sm:$0xff] }
  0x54   : > { %v2289_v18 = vand.u32 4294901760, %v2288_v16  ;;  %v14520_v17 = vpack.c.bf16 %v717_v35, %v705_v12  ;;  %24165 = vst [vmem:[#allocation64_spill] sm:$0xff] %v17711_v45  ;;  %2284 = vmatprep.mubr.f32.mxu1 %v24124_v22  ;;  %v2104_v35 = vsel %vm2035_vm1, %v2029_v61, 0  ;;  %v17725_v48 = vsub.f32 %v345_v39, %v17711_v45 }
  0x55   : > { %v2030_v38 = vmul.f32 0.1, %v421_v36  ;;  %v2300_v16 = vand.u32 4294901760, %v2299_v25  ;;  %v594_v7 = vsub.f32 %v17704_v55, %v23413_v53  ;;  %v723_v12 = vand.u32 4294901760, %v722_v46 }
  0x56   : > { %14521 = vmatprep.subr.bf16.mxu0 %v14520_v17  ;;  %24166 = vst [vmem:[#allocation65_spill] sm:$0xff] %v17725_v48  ;;  %v2056_v63 = vadd.f32 %v2055_v11, %v2054_v37  ;;  %585 = vmatmul.mubr.f32.gmra.mrb[10].mxu0 %v584_v33  ;;  %v17730_v27 = vand.u32 4294901760, %v2104_v35  ;;  %v23414_v17 = vand.u32 4294901760, %v17725_v48  ;;  %v23416_v46 = vand.u32 4294901760, %v17273_v26 }
  0x57   : > { %v2057_v56 = vsel %vm2035_vm1, %v2030_v38, 0.0  ;;  %v2107_v61 = vsel %vm2035_vm1, %v2030_v38, 0  ;;  %2290 = vmatmul.mubr.f32.gmra.mrb[16].mxu1 %v2289_v18  ;;  %590 = vmatprep.mubr.f32.mxu0 %v24124_v22  ;;  %v595_v36 = vand.u32 4294901760, %v594_v7  ;;  %v14522_v39 = vpack.c.bf16 %v723_v12, %v711_v54 }
  0x58   : > { %24167 = vst [vmem:[#allocation66_spill] sm:$0xff] %v17730_v27  ;;  %v2058_v25 = vadd.f32 %v2057_v56, %v2056_v63  ;;  %v17737_v53 = vand.u32 4294901760, %v2107_v61  ;;  %2295 = vmatprep.mubr.f32.mxu1 %v24124_v22  ;;  %v17741_v37 = vsub.f32 %v2104_v35, %v17730_v27  ;;  %v605_v33 = vsub.f32 %v17725_v48, %v23414_v17  ;;  %v422_v35 = vld [vmem:[%s17336_s26 + $0x60] sm:$0xff] }
  0x59   : > { %v23415_v18 = vand.u32 4294901760, %v17279_v28  ;;  %14523 = vmatpush1.bf16.msra.mxu0 %v14522_v39  ;;  %v17751_v63 = vand.u32 4294901760, %v346_v0  ;;  %v23419_v56 = vand.u32 4294901760, %v17295_v40  ;;  %v23426_v54 = vand.u32 4294901760, %v17297_v41 }
  0x5a   : > { %24168 = vst [vmem:[#allocation67_spill] sm:$0xff] %v17737_v53  ;;  %24169 = vst [vmem:[#allocation68_spill] sm:$0xff] %v17741_v37  ;;  %v17749_v11 = vsub.f32 %v2107_v61, %v17737_v53  ;;  %596 = vmatmul.mubr.f32.gmra.mrb[12].mxu0 %v595_v36  ;;  %v23433_v38 = vand.u32 4294901760, %v17741_v37  ;;  %v606_v7 = vand.u32 4294901760, %v605_v33  ;;  %v728_v12 = vsub.f32 %v17273_v26, %v23416_v46 }
  0x5b   : > { %24171 = vst [vmem:[#allocation70_spill] sm:$0xff] %v17751_v63  ;;  %v740_v61 = vsub.f32 %v17279_v28, %v23415_v18  ;;  %2301 = vmatmul.mubr.f32.gmra.mrb[18].mxu1 %v2300_v16  ;;  %601 = vmatprep.mubr.f32.mxu0 %v24124_v22  ;;  %v17766_v36 = vsub.f32 %v346_v0, %v17751_v63  ;;  %v2031_v39 = vmul.f32 0.1, %v422_v35  ;;  %v347_v63 = vld [vmem:[%s17492_s17 + $0x48] sm:$0xff] }
  0x5c   : > { %24170 = vst [vmem:[#allocation69_spill] sm:$0xff] %v17749_v11  ;;  %v734_v33 = vsub.f32 %v17295_v40, %v23419_v56  ;;  %v746_v17 = vsub.f32 %v17297_v41, %v23426_v54  ;;  %2306 = vmatprep.mubr.f32.mxu1 %v24124_v22  ;;  %v2310_v16 = vsub.f32 %v17741_v37, %v23433_v38  ;;  %v729_v18 = vand.u32 4294901760, %v728_v12  ;;  %v423_v54 = vld [vmem:[%s17336_s26 + $0x68] sm:$0xff]  ;;  %v348_v12 = vld [vmem:[%s17492_s17 + $0x50] sm:$0xff] }
  0x5d   : > { %24172 = vst [vmem:[#allocation71_spill] sm:$0xff] %v17766_v36  ;;  %v741_v46 = vand.u32 4294901760, %v740_v61  ;;  %v24173_v0 = vand.u32 4294901760, %v17749_v11  ;;  %v23434_v56 = vand.u32 4294901760, %v17766_v36  ;;  %v2059_v15 = vsel %vm2035_vm1, %v2031_v39, 0.0 }
  0x5e   : > { %v735_v55 = vand.u32 4294901760, %v734_v33  ;;  %v747_v23 = vand.u32 4294901760, %v746_v17  ;;  %v2311_v45 = vand.u32 4294901760, %v2310_v16  ;;  %607 = vmatmul.mubr.f32.gmra.mrb[14].mxu0 %v606_v7  ;;  %v2110_v38 = vsel %vm2035_vm1, %v2031_v39, 0 }
  0x5f   : > { %v2321_v48 = vsub.f32 %v17749_v11, %v24173_v0  ;;  %v14524_v53 = vpack.c.bf16 %v741_v46, %v729_v18  ;;  %612 = vmatprep.mubr.f32.mxu0 %v24124_v22  ;;  %v616_v35 = vsub.f32 %v17766_v36, %v23434_v56  ;;  %v2060_v33 = vadd.f32 %v2059_v15, %v2058_v25 }
  0x60   : > { %v14526_v0 = vpack.c.bf16 %v747_v23, %v735_v55  ;;  %2312 = vmatmul.mubr.f32.gmra.mrb[20].mxu1 %v2311_v45  ;;  %v17791_v17 = vand.u32 4294901760, %v2110_v38  ;;  %v17793_v7 = vand.u32 4294901760, %v347_v63  ;;  %v2032_v46 = vmul.f32 0.1, %v423_v54 }
  0x61   : > { %v2322_v61 = vand.u32 4294901760, %v2321_v48  ;;  %14525 = vmatprep.subr.bf16.mxu0 %v14524_v53  ;;  %v23436_v18 = vand.u32 4294901760, %v17299_v42  ;;  %2317 = vmatprep.mubr.f32.mxu1 %v24124_v22  ;;  %v617_v48 = vand.u32 4294901760, %v616_v35  ;;  %v23435_v39 = vand.u32 4294901760, %v17317_v47 }
  0x62   : > { %24174 = vst [vmem:[#allocation72_spill] sm:$0xff] %v17791_v17  ;;  %24175 = vst [vmem:[#allocation73_spill] sm:$0xff] %v17793_v7  ;;  %14527 = vmatpush1.bf16.msra.mxu0 %v14526_v0  ;;  %v17798_v16 = vand.u32 4294901760, %v348_v12  ;;  %v23439_v23 = vand.u32 4294901760, %v17321_v49  ;;  %v17802_v15 = vsub.f32 %v2110_v38, %v17791_v17  ;;  %v17805_v55 = vsub.f32 %v347_v63, %v17793_v7 }
  0x63   : > { %v2061_v45 = vsel %vm2035_vm1, %v2032_v46, 0.0  ;;  %v2113_v53 = vsel %vm2035_vm1, %v2032_v46, 0  ;;  %618 = vmatmul.mubr.f32.gmra.mrb[16].mxu0 %v617_v48  ;;  %v752_v35 = vsub.f32 %v17299_v42, %v23436_v18  ;;  %v764_v38 = vsub.f32 %v17317_v47, %v23435_v39  ;;  %v424_v48 = vld [vmem:[%s17336_s26 + $0x70] sm:$0xff]  ;;  %v349_v18 = vld [vmem:[%s17492_s17 + $0x58] sm:$0xff] }
  0x64   : > { %24176 = vst [vmem:[#allocation74_spill] sm:$0xff] %v17798_v16  ;;  %24177 = vst [vmem:[#allocation75_spill] sm:$0xff] %v17802_v15  ;;  %v2062_v25 = vadd.f32 %v2061_v45, %v2060_v33  ;;  %v17809_v54 = vand.u32 4294901760, %v2113_v53  ;;  %2323 = vmatmul.mubr.f32.gmra.mrb[22].mxu1 %v2322_v61  ;;  %v23448_v63 = vand.u32 4294901760, %v17802_v15  ;;  %623 = vmatprep.mubr.f32.mxu0 %v24124_v22  ;;  %v23451_v0 = vand.u32 4294901760, %v17805_v55 }
  0x65   : > { %24178 = vst [vmem:[#allocation76_spill] sm:$0xff] %v17805_v55  ;;  %v17821_v33 = vsub.f32 %v348_v12, %v17798_v16  ;;  %v758_v46 = vsub.f32 %v17321_v49, %v23439_v23  ;;  %2328 = vmatprep.mubr.f32.mxu1 %v24124_v22  ;;  %v753_v61 = vand.u32 4294901760, %v752_v35  ;;  %v765_v56 = vand.u32 4294901760, %v764_v38 }
  0x66   : > { %24179 = vst [vmem:[#allocation77_spill] sm:$0xff] %v17809_v54  ;;  %v17829_v45 = vsub.f32 %v2113_v53, %v17809_v54  ;;  %v23452_v39 = vand.u32 4294901760, %v17326_v51  ;;  %v2332_v12 = vsub.f32 %v17802_v15, %v23448_v63  ;;  %v627_v36 = vsub.f32 %v17805_v55, %v23451_v0 }
  0x67   : > { %24180 = vst [vmem:[#allocation78_spill] sm:$0xff] %v17821_v33  ;;  %v23453_v23 = vand.u32 4294901760, %v17821_v33  ;;  %v759_v11 = vand.u32 4294901760, %v758_v46  ;;  %v14528_v37 = vpack.c.bf16 %v765_v56, %v753_v61  ;;  %v2033_v38 = vmul.f32 0.1, %v424_v48 }
  0x68   : > { %24181 = vst [vmem:[#allocation79_spill] sm:$0xff] %v17829_v45  ;;  %v23456_v53 = vand.u32 4294901760, %v17829_v45  ;;  %v770_v35 = vsub.f32 %v17326_v51, %v23452_v39  ;;  %v2333_v16 = vand.u32 4294901760, %v2332_v12  ;;  %v628_v7 = vand.u32 4294901760, %v627_v36  ;;  %v425_v39 = vld [vmem:[%s17336_s26 + $0x78] sm:$0xff] }
  0x69   : > { %v638_v63 = vsub.f32 %v17821_v33, %v23453_v23  ;;  %v17847_v15 = vand.u32 4294901760, %v349_v18  ;;  %14529 = vmatprep.subr.bf16.mxu0 %v14528_v37  ;;  %v2063_v56 = vsel %vm2035_vm1, %v2033_v38, 0.0  ;;  %v2116_v61 = vsel %vm2035_vm1, %v2033_v38, 0 }
  0x6a   : > { %v2343_v46 = vsub.f32 %v17829_v45, %v23456_v53  ;;  %v771_v0 = vand.u32 4294901760, %v770_v35  ;;  %2334 = vmatmul.mubr.f32.gmra.mrb[24].mxu1 %v2333_v16  ;;  %629 = vmatmul.mubr.f32.gmra.mrb[18].mxu0 %v628_v7  ;;  %v2064_v48 = vadd.f32 %v2063_v56, %v2062_v25  ;;  %v17855_v12 = vand.u32 4294901760, %v2116_v61  ;;  %v350_v53 = vld [vmem:[%s17492_s17 + $0x60] sm:$0xff] }
  0x6b   : > { %24182 = vst [vmem:[#allocation80_spill] sm:$0xff] %v17847_v15  ;;  %v639_v36 = vand.u32 4294901760, %v638_v63  ;;  %v17858_v23 = vsub.f32 %v349_v18, %v17847_v15  ;;  %2339 = vmatprep.mubr.f32.mxu1 %v24124_v22  ;;  %634 = vmatprep.mubr.f32.mxu0 %v24124_v22  ;;  %v23458_v35 = vand.u32 4294901760, %v17341_v60  ;;  %v23457_v38 = vand.u32 4294901760, %v17352_v3 }
  0x6c   : > { %24183 = vst [vmem:[#allocation81_spill] sm:$0xff] %v17855_v12  ;;  %v2344_v33 = vand.u32 4294901760, %v2343_v46  ;;  %v14530_v37 = vpack.c.bf16 %v771_v0, %v759_v11  ;;  %v17865_v7 = vsub.f32 %v2116_v61, %v17855_v12  ;;  %v2034_v25 = vmul.f32 0.1, %v425_v39 }
  0x6d   : > { %24184 = vst [vmem:[#allocation82_spill] sm:$0xff] %v17858_v23  ;;  %v23459_v16 = vand.u32 4294901760, %v17858_v23  ;;  %v23466_v18 = vand.u32 4294901760, %v17354_v4  ;;  %v776_v63 = vsub.f32 %v17341_v60, %v23458_v35  ;;  %v788_v11 = vsub.f32 %v17352_v3, %v23457_v38 }
  0x6e   : > { %24185 = vst [vmem:[#allocation83_spill] sm:$0xff] %v17865_v7  ;;  %14531 = vmatpush1.bf16.msra.mxu0 %v14530_v37  ;;  %v17878_v46 = vpack.c.bf16 %v17365_v10, %v17356_v5  ;;  %2345 = vmatmul.mubr.f32.gmra.mrb[26].mxu1 %v2344_v33  ;;  %v23464_v39 = vand.u32 4294901760, %v17865_v7  ;;  %v2065_v61 = vsel %vm2035_vm1, %v2034_v25, 0.0  ;;  %v2119_v37 = vsel %vm2035_vm1, %v2034_v25, 0 }
  0x6f   : > { %640 = vmatmul.mubr.f32.gmra.mrb[20].mxu0 %v639_v36  ;;  %v649_v56 = vsub.f32 %v17858_v23, %v23459_v16  ;;  %2350 = vmatprep.mubr.f32.mxu1 %v24124_v22  ;;  %v777_v38 = vand.u32 4294901760, %v776_v63  ;;  %v789_v35 = vand.u32 4294901760, %v788_v11  ;;  %v17889_v0 = vadd.f32 %v2065_v61, %v2064_v48 }
  0x70   : > { %24186 = vst [vmem:[#allocation84_spill] sm:$0xff] %v17878_v46  ;;  %645 = vmatprep.mubr.f32.mxu0 %v24124_v22  ;;  %v17891_v33 = vand.u32 4294901760, %v2119_v37  ;;  %v2354_v36 = vsub.f32 %v17865_v7, %v23464_v39  ;;  %v782_v25 = vsub.f32 %v17354_v4, %v23466_v18  ;;  %v24189_v23 = vand.u32 4294901760, %v17363_v8  ;;  %14689 = vmatprep.subr.bf16.mxu1 %v17878_v46 }
  0x71   : > { %24187 = vst [vmem:[#allocation85_spill] sm:$0xff] %v17889_v0  ;;  %v650_v16 = vand.u32 4294901760, %v649_v56  ;;  %v14532_v48 = vpack.c.bf16 %v789_v35, %v777_v38  ;;  %v17906_v11 = vand.u32 4294901760, %v350_v53  ;;  %v23467_v0 = vand.u32 4294901760, %v17384_v30  ;;  %v351_v38 = vld [vmem:[%s17492_s17 + $0x68] sm:$0xff] }
  0x72   : > { %24188 = vst [vmem:[#allocation86_spill] sm:$0xff] %v17891_v33  ;;  %v794_v55 = vsub.f32 %v17363_v8, %v24189_v23  ;;  %v17904_v63 = vsub.f32 %v2119_v37, %v17891_v33  ;;  %v2355_v61 = vand.u32 4294901760, %v2354_v36  ;;  %v783_v56 = vand.u32 4294901760, %v782_v25 }
  0x73   : > { %24191 = vst [vmem:[#allocation88_spill] sm:$0xff] %v17906_v11  ;;  %651 = vmatmul.mubr.f32.gmra.mrb[22].mxu0 %v650_v16  ;;  %14533 = vmatprep.subr.bf16.mxu0 %v14532_v48  ;;  %v17912_v23 = vsub.f32 %v350_v53, %v17906_v11  ;;  %v23474_v35 = vand.u32 4294901760, %v17386_v31  ;;  %v800_v16 = vsub.f32 %v17384_v30, %v23467_v0 }
  0x74   : > { %24190 = vst [vmem:[#allocation87_spill] sm:$0xff] %v17904_v63  ;;  %v795_v39 = vand.u32 4294901760, %v794_v55  ;;  %v23468_v18 = vand.u32 4294901760, %v17904_v63  ;;  %656 = vmatprep.mubr.f32.mxu0 %v24124_v22  ;;  %2356 = vmatmul.mubr.f32.gmra.mrb[28].mxu1 %v2355_v61  ;;  %v23473_v55 = vand.u32 4294901760, %v17417_v58  ;;  %v23480_v61 = vand.u32 4294901760, %v17430_v14 }
  0x75   : > { %24192 = vst [vmem:[#allocation89_spill] sm:$0xff] %v17912_v23  ;;  %2361 = vmatprep.mubr.f32.mxu1 %v24124_v22  ;;  %v23479_v53 = vand.u32 4294901760, %v17912_v23  ;;  %v812_v25 = vsub.f32 %v17386_v31, %v23474_v35  ;;  %v352_v35 = vld [vmem:[%s17492_s17 + $0x70] sm:$0xff] }
  0x76   : > { %v14534_v37 = vpack.c.bf16 %v795_v39, %v783_v56  ;;  %v2365_v36 = vsub.f32 %v17904_v63, %v23468_v18  ;;  %v801_v39 = vand.u32 4294901760, %v800_v16  ;;  %v806_v48 = vsub.f32 %v17417_v58, %v23473_v55 }
  0x77   : > { %v17932_v56 = vand.u32 4294901760, %v351_v38  ;;  %v660_v18 = vsub.f32 %v17912_v23, %v23479_v53  ;;  %v813_v46 = vand.u32 4294901760, %v812_v25  ;;  %v23481_v55 = vand.u32 4294901760, %v17441_v43 }
  0x78   : > { %14535 = vmatpush1.bf16.msra.mxu0 %v14534_v37  ;;  %v2366_v0 = vand.u32 4294901760, %v2365_v36  ;;  %v807_v63 = vand.u32 4294901760, %v806_v48  ;;  %v818_v37 = vsub.f32 %v17430_v14, %v23480_v61  ;;  %v17947_v36 = vpack.c.bf16 %v17374_v21, %v17372_v20 }
  0x79   : > { %24193 = vst [vmem:[#allocation90_spill] sm:$0xff] %v17932_v56  ;;  %v17941_v16 = vsub.f32 %v351_v38, %v17932_v56  ;;  %v661_v7 = vand.u32 4294901760, %v660_v18  ;;  %v14536_v45 = vpack.c.bf16 %v813_v46, %v801_v39  ;;  %v23482_v25 = vand.u32 4294901760, %v17445_v32 }
  0x7a   : > { %2367 = vmatmul.mubr.f32.gmra.mrb[30].mxu1 %v2366_v0  ;;  %24195 = vst [vmem:[#allocation92_spill] sm:$0xff] %v17947_v36  ;;  %v819_v48 = vand.u32 4294901760, %v818_v37  ;;  %v824_v38 = vsub.f32 %v17441_v43, %v23481_v55  ;;  %v23486_v61 = vand.u32 4294901760, %v17458_v62  ;;  %v23489_v0 = vand.u32 4294901760, %v17471_v1 }
  0x7b   : > { %24194 = vst [vmem:[#allocation91_spill] sm:$0xff] %v17941_v16  ;;  %2457 = vmatprep.mubr.f32.mxu1 %v24124_v22  ;;  %v23485_v53 = vand.u32 4294901760, %v17941_v16  ;;  %662 = vmatmul.mubr.f32.gmra.mrb[24].mxu0 %v661_v7  ;;  %v836_v18 = vsub.f32 %v17445_v32, %v23482_v25  ;;  %v17960_v46 = vand.u32 4294901760, %v352_v35  ;;  %v23493_v39 = vand.u32 4294901760, %v17480_v13 }
  0x7c   : > { %14537 = vmatprep.subr.bf16.mxu0 %v14536_v45  ;;  %v14538_v37 = vpack.c.bf16 %v819_v48, %v807_v63  ;;  %667 = vmatprep.mubr.f32.mxu0 %v24124_v22  ;;  %v825_v7 = vand.u32 4294901760, %v824_v38  ;;  %v830_v45 = vsub.f32 %v17458_v62, %v23486_v61  ;;  %v842_v23 = vsub.f32 %v17471_v1, %v23489_v0 }
  0x7d   : > { %24196 = vst [vmem:[#allocation93_spill] sm:$0xff] %v17960_v46  ;;  %v671_v55 = vsub.f32 %v17941_v16, %v23485_v53  ;;  %v837_v25 = vand.u32 4294901760, %v836_v18  ;;  %v17975_v63 = vsub.f32 %v352_v35, %v17960_v46  ;;  %v848_v48 = vsub.f32 %v17480_v13, %v23493_v39  ;;  %v353_v53 = vld [vmem:[%s17492_s17 + $0x78] sm:$0xff]  ;;  %s320_s17 = sand.u32 1, %s17110_s28  }
  0x7e   : > { %2459 = vmatmul.mubr.f32.vlgmr.msra.gmra.mrb[0].mxu1 %v17404_v44  ;;  %14539 = vmatpush1.bf16.msra.mxu0 %v14538_v37  ;;  %v831_v61 = vand.u32 4294901760, %v830_v45  ;;  %v23496_v44 = vand.u32 4294901760, %v17482_v29  ;;  %v23494_v18 = vand.u32 4294901760, %v17510_v2  ;;  %v843_v16 = vand.u32 4294901760, %v842_v23  ;;  %s321_s19 = scalar_lea.vmem [#allocation2], %s320_s17  ;;  %s14367_s24 = scalar_lea.sflag [#allocation3], %s320_s17 }
  0x7f   : > { %24197 = vst [vmem:[#allocation94_spill] sm:$0xff] %v17975_v63  ;;  %14691 = vmatpush1.bf16.msra.mxu1 %v17947_v36  ;;  %v672_v38 = vand.u32 4294901760, %v671_v55  ;;  %2464 = vmatprep.mubr.f32.mxu1 %v24124_v22  ;;  %v14540_v0 = vpack.c.bf16 %v837_v25, %v825_v7  ;;  %v23495_v35 = vand.u32 4294901760, %v17975_v63  ;;  %v849_v21 = vand.u32 4294901760, %v848_v48  ;;  %s14382_s22 = sshll.u32 %s321_s19, 4  ;;  %s23243_s22 = int_to_ptr.vmem [resolvable:$true] %s14382_s22 }
  0x80   : > { %14693 = vmatprep.subr.bf16.mxu1 %v17339_v59  ;;  %v860_v37 = vsub.f32 %v17482_v29, %v23496_v44  ;;  %v854_v55 = vsub.f32 %v17510_v2, %v23494_v18  ;;  %v23501_v45 = vand.u32 4294901760, %v17512_v52  ;;  %v17994_v39 = vand.u32 4294901760, %v353_v53  ;;  %v24201_v59 = vld [vmem:[#allocation7_spill] sm:$0xff]  ;;  %p17063_p1 = scmp.lt.s32.totalorder %s23243_s22, %s17061_s10 }
  0x81   : > { %673 = vmatmul.mubr.f32.gmra.mrb[26].mxu0 %v672_v38  ;;  %14541 = vmatprep.subr.bf16.mxu0 %v14540_v0  ;;  %v14542_v23 = vpack.c.bf16 %v843_v16, %v831_v61  ;;  %v682_v25 = vsub.f32 %v17975_v63, %v23495_v35  ;;  %v23502_v7 = vand.u32 4294901760, %v17516_v9  ;;  %v23507_v48 = vand.u32 4294901760, %v17526_v34  ;;  %v24200_v63 = vld [vmem:[#allocation6_spill] sm:$0xff] }
  0x82   : > { %24198 = vst [vmem:[#allocation95_spill] sm:$0xff] %v17994_v39  ;;  %2466 = vmatmul.mubr.f32.gmra.mrb[2].mxu1 %v17469_v50  ;;  %678 = vmatprep.mubr.f32.mxu0 %v24124_v22  ;;  %v861_v38 = vand.u32 4294901760, %v860_v37  ;;  %v855_v18 = vand.u32 4294901760, %v854_v55  ;;  %v866_v0 = vsub.f32 %v17512_v52, %v23501_v45  ;;  %v18008_v61 = vsub.f32 %v353_v53, %v17994_v39  ;;  %v24199_v53 = vld [vmem:[#allocation30_spill] sm:$0xff] }
  0x83   : > { %2471 = vmatprep.mubr.f32.mxu1 %v24124_v22  ;;  %14543 = vmatpush1.bf16.msra.mxu0 %v14542_v23  ;;  %v683_v16 = vand.u32 4294901760, %v682_v25  ;;  %v872_v35 = vsub.f32 %v17516_v9, %v23502_v7  ;;  %v884_v44 = vsub.f32 %v17526_v34, %v23507_v48  ;;  %v23511_v37 = vand.u32 4294901760, %v17542_v6 }
  0x84   : > { %v14544_v55 = vpack.c.bf16 %v861_v38, %v849_v21  ;;  %v867_v36 = vand.u32 4294901760, %v866_v0  ;;  %v23509_v50 = vand.u32 4294901760, %v18008_v61  ;;  %v23510_v45 = vand.u32 4294901760, %v17544_v57 }
  0x85   : > { %684 = vmatmul.mubr.f32.gmra.mrb[28].mxu0 %v683_v16  ;;  %v873_v23 = vand.u32 4294901760, %v872_v35  ;;  %v885_v25 = vand.u32 4294901760, %v884_v44  ;;  %v878_v7 = vsub.f32 %v17542_v6, %v23511_v37  ;;  %v14552_v48 = vpack.c.bf16 %v24201_v59, %v24200_v63  ;;  %v24203_v37 = vld [vmem:[#allocation42_spill] sm:$0xff] }
  0x86   : > { %2473 = vmatmul.mubr.f32.gmra.mrb[4].mxu1 %v24199_v53  ;;  %14545 = vmatprep.subr.bf16.mxu0 %v14544_v55  ;;  %v14546_v20 = vpack.c.bf16 %v867_v36, %v855_v18  ;;  %v693_v21 = vsub.f32 %v18008_v61, %v23509_v50  ;;  %v890_v35 = vsub.f32 %v17544_v57, %v23510_v45  ;;  %v24202_v18 = vld [vmem:[#allocation35_spill] sm:$0xff]  ;;  %v24204_v53 = vld [vmem:[#allocation36_spill] sm:$0xff] }
  0x87   : > { %689 = vmatprep.mubr.f32.mxu0 %v24124_v22  ;;  %2478 = vmatprep.mubr.f32.mxu1 %v24124_v22  ;;  %v14548_v44 = vpack.c.bf16 %v885_v25, %v873_v23  ;;  %v879_v38 = vand.u32 4294901760, %v878_v7  ;;  %v14560_v36 = vpack.c.bf16 %v17317_v47, %v17299_v42  ;;  %v14562_v55 = vpack.c.bf16 %v17326_v51, %v17321_v49 }
  0x88   : > { %14547 = vmatpush1.bf16.msra.mxu0 %v14546_v20  ;;  %v694_v0 = vand.u32 4294901760, %v693_v21  ;;  %v891_v16 = vand.u32 4294901760, %v890_v35  ;;  %v14564_v50 = vpack.c.bf16 %v17352_v3, %v17341_v60  ;;  %v14566_v45 = vpack.c.bf16 %v17363_v8, %v17354_v4 }
  0x89   : > { %14549 = vmatprep.subr.bf16.mxu0 %v14548_v44  ;;  %v14568_v20 = vpack.c.bf16 %v17386_v31, %v17384_v30  ;;  %v14570_v23 = vpack.c.bf16 %v17430_v14, %v17417_v58  ;;  %v14572_v25 = vpack.c.bf16 %v17445_v32, %v17441_v43  ;;  %v14574_v21 = vpack.c.bf16 %v17471_v1, %v17458_v62 }
  0x8a   : > { %2480 = vmatmul.mubr.f32.gmra.mrb[6].mxu1 %v24202_v18  ;;  %695 = vmatmul.mubr.f32.gmra.mrb[30].mxu0 %v694_v0  ;;  %v14550_v7 = vpack.c.bf16 %v891_v16, %v879_v38  ;;  %v14576_v35 = vpack.c.bf16 %v17482_v29, %v17480_v13  ;;  %v14578_v44 = vpack.c.bf16 %v17512_v52, %v17510_v2 }
  0x8b   : > { %2485 = vmatprep.mubr.f32.mxu1 %v24124_v22  ;;  %925 = vmatprep.mubr.f32.mxu0 %v24124_v22  ;;  %v14554_v38 = vpack.c.bf16 %v17269_v24, %v17255_v19  ;;  %v14580_v0 = vpack.c.bf16 %v17526_v34, %v17516_v9  ;;  %v14582_v16 = vpack.c.bf16 %v17544_v57, %v17542_v6  ;;  %v24205_v34 = vld [vmem:[#allocation44_spill] sm:$0xff] }
  0x8c   : > { %14551 = vmatpush1.bf16.msra.mxu0 %v14550_v7  ;;  %v14556_v18 = vpack.c.bf16 %v17279_v28, %v17273_v26  ;;  %v14558_v7 = vpack.c.bf16 %v17297_v41, %v17295_v40 }
  0x8d   : > { %14553 = vmatprep.subr.bf16.mxu0 %v14552_v48  ;;  %v24207_v48 = vld [vmem:[#allocation50_spill] sm:$0xff] }
  0x8e   : > { %2487 = vmatmul.mubr.f32.gmra.mrb[8].mxu1 %v24203_v37  ;;  %v24206_v37 = vld [vmem:[#allocation40_spill] sm:$0xff] }
  0x8f   : > { %2492 = vmatprep.mubr.f32.mxu1 %v24124_v22  ;;  %927 = vmatmul.mubr.f32.vlgmr.msra.gmra.mrb[0].mxu0 %v24204_v53  ;;  %v24208_v53 = vld [vmem:[#allocation41_spill] sm:$0xff] }
  0x90   : > { %932 = vmatprep.mubr.f32.mxu0 %v24124_v22  ;;  %14555 = vmatpush1.bf16.msra.mxu0 %v14554_v38  ;;  %v24209_v38 = vld [vmem:[#allocation53_spill] sm:$0xff] }
  0x91   : > { %14557 = vmatprep.subr.bf16.mxu0 %v14556_v18  ;;  %v24210_v18 = vld [vmem:[#allocation48_spill] sm:$0xff] }
  0x92   : > { %2494 = vmatmul.mubr.f32.gmra.mrb[10].mxu1 %v24205_v34  ;;  %v24272_v34 = vld [vmem:[#allocation18_spill] sm:$0xff] }
  0x93   : > { %2499 = vmatprep.mubr.f32.mxu1 %v24124_v22  ;;  %934 = vmatmul.mubr.f32.gmra.mrb[2].mxu0 %v24206_v37  ;;  %v24262_v37 = vld [vmem:[#allocation37_spill] sm:$0xff] }
  0x94   : > { %939 = vmatprep.mubr.f32.mxu0 %v24124_v22  ;;  %14559 = vmatpush1.bf16.msra.mxu0 %v14558_v7  ;;  %v24211_v7 = vld [vmem:[#allocation57_spill] sm:$0xff] }
  0x95   : > { %14561 = vmatprep.subr.bf16.mxu0 %v14560_v36  ;;  %v24212_v36 = vld [vmem:[#allocation51_spill] sm:$0xff] }
  0x96   : > { %2501 = vmatmul.mubr.f32.gmra.mrb[12].mxu1 %v24207_v48  ;;  %v24259_v48 = vand.u32 4294901760, %v24200_v63  ;;  %v24265_v63 = vld [vmem:[#allocation79_spill] sm:$0xff] }
  0x97   : > { %2506 = vmatprep.mubr.f32.mxu1 %v24124_v22  ;;  %941 = vmatmul.mubr.f32.gmra.mrb[4].mxu0 %v24208_v53  ;;  %v24255_v53 = vld [vmem:[#allocation63_spill] sm:$0xff] }
  0x98   : > { %946 = vmatprep.mubr.f32.mxu0 %v24124_v22  ;;  %14563 = vmatpush1.bf16.msra.mxu0 %v14562_v55  ;;  %v24213_v55 = vld [vmem:[#allocation60_spill] sm:$0xff] }
  0x99   : > { %14565 = vmatprep.subr.bf16.mxu0 %v14564_v50  ;;  %v24214_v50 = vld [vmem:[#allocation55_spill] sm:$0xff] }
  0x9a   : > { %2508 = vmatmul.mubr.f32.gmra.mrb[14].mxu1 %v24209_v38  ;;  %v24251_v38 = vld [vmem:[#allocation58_spill] sm:$0xff] }
  0x9b   : > { %2513 = vmatprep.mubr.f32.mxu1 %v24124_v22  ;;  %948 = vmatmul.mubr.f32.gmra.mrb[6].mxu0 %v24210_v18  ;;  %v24249_v18 = vld [vmem:[#allocation61_spill] sm:$0xff] }
  0x9c   : > { %953 = vmatprep.mubr.f32.mxu0 %v24124_v22  ;;  %14567 = vmatpush1.bf16.msra.mxu0 %v14566_v45  ;;  %v24215_v45 = vld [vmem:[#allocation62_spill] sm:$0xff] }
  0x9d   : > { %14569 = vmatprep.subr.bf16.mxu0 %v14568_v20  ;;  %v24216_v20 = vld [vmem:[#allocation67_spill] sm:$0xff] }
  0x9e   : > { %2515 = vmatmul.mubr.f32.gmra.mrb[16].mxu1 %v24211_v7  ;;  %v24248_v7 = vld [vmem:[#allocation23_spill] sm:$0xff] }
  0x9f   : > { %2520 = vmatprep.mubr.f32.mxu1 %v24124_v22  ;;  %955 = vmatmul.mubr.f32.gmra.mrb[8].mxu0 %v24212_v36  ;;  %v24247_v36 = vld [vmem:[#allocation54_spill] sm:$0xff] }
  0xa0   : > { %960 = vmatprep.mubr.f32.mxu0 %v24124_v22  ;;  %14571 = vmatpush1.bf16.msra.mxu0 %v14570_v23  ;;  %v24217_v23 = vld [vmem:[#allocation64_spill] sm:$0xff] }
  0xa1   : > { %14573 = vmatprep.subr.bf16.mxu0 %v14572_v25  ;;  %v24218_v25 = vld [vmem:[#allocation5_spill] sm:$0xff] }
  0xa2   : > { %2522 = vmatmul.mubr.f32.gmra.mrb[18].mxu1 %v24213_v55  ;;  %v24246_v55 = vld [vmem:[#allocation19_spill] sm:$0xff] }
  0xa3   : > { %2527 = vmatprep.mubr.f32.mxu1 %v24124_v22  ;;  %962 = vmatmul.mubr.f32.gmra.mrb[10].mxu0 %v24214_v50  ;;  %v24245_v50 = vld [vmem:[#allocation59_spill] sm:$0xff] }
  0xa4   : > { %967 = vmatprep.mubr.f32.mxu0 %v24124_v22  ;;  %14575 = vmatpush1.bf16.msra.mxu0 %v14574_v21  ;;  %v24219_v21 = vld [vmem:[#allocation70_spill] sm:$0xff] }
  0xa5   : > { %14577 = vmatprep.subr.bf16.mxu0 %v14576_v35  ;;  %v24220_v35 = vld [vmem:[#allocation73_spill] sm:$0xff] }
  0xa6   : > { %2529 = vmatmul.mubr.f32.gmra.mrb[20].mxu1 %v17730_v27  ;;  %v24244_v27 = vld [vmem:[#allocation16_spill] sm:$0xff] }
  0xa7   : > { %2534 = vmatprep.mubr.f32.mxu1 %v24124_v22  ;;  %969 = vmatmul.mubr.f32.gmra.mrb[12].mxu0 %v24215_v45  ;;  %v24243_v45 = vld [vmem:[#allocation49_spill] sm:$0xff] }
  0xa8   : > { %974 = vmatprep.mubr.f32.mxu0 %v24124_v22  ;;  %14579 = vmatpush1.bf16.msra.mxu0 %v14578_v44  ;;  %v24221_v44 = vld [vmem:[#allocation74_spill] sm:$0xff] }
  0xa9   : > { %14581 = vmatprep.subr.bf16.mxu0 %v14580_v0  ;;  %v24222_v0 = vand.u32 4294901760, %v17356_v5  ;;  %v24228_v5 = vld [vmem:[#allocation33_spill] sm:$0xff] }
  0xaa   : > { %2536 = vmatmul.mubr.f32.gmra.mrb[22].mxu1 %v24216_v20  ;;  %v24242_v20 = vld [vmem:[#allocation14_spill] sm:$0xff] }
  0xab   : > { %2541 = vmatprep.mubr.f32.mxu1 %v24124_v22  ;;  %976 = vmatmul.mubr.f32.gmra.mrb[14].mxu0 %v24217_v23  ;;  %v24241_v23 = vld [vmem:[#allocation56_spill] sm:$0xff] }
  0xac   : > { %981 = vmatprep.mubr.f32.mxu0 %v24124_v22  ;;  %14583 = vmatpush1.bf16.msra.mxu0 %v14582_v16  ;;  %v24223_v16 = vand.u32 4294901760, %v17365_v10  ;;  %v24229_v10 = vld [vmem:[#allocation38_spill] sm:$0xff] }
  0xad   : > { %14585 = vmatprep.subr.bf16.mxu0 %v24218_v25 }
  0xae   : > { %2543 = vmatmul.mubr.f32.gmra.mrb[24].mxu1 %v17791_v17  ;;  %v24240_v17 = vld [vmem:[#allocation12_spill] sm:$0xff] }
  0xaf   : > { %2548 = vmatprep.mubr.f32.mxu1 %v24124_v22  ;;  %983 = vmatmul.mubr.f32.gmra.mrb[16].mxu0 %v24219_v21  ;;  %v24239_v21 = vld [vmem:[#allocation46_spill] sm:$0xff] }
  0xb0   : > { %988 = vmatprep.mubr.f32.mxu0 %v24124_v22 }
  0xb2   : > { %2550 = vmatmul.mubr.f32.gmra.mrb[26].mxu1 %v17809_v54  ;;  %v24226_v54 = vld [vmem:[#allocation15_spill] sm:$0xff] }
  0xb3   : > { %2555 = vmatprep.mubr.f32.mxu1 %v24124_v22  ;;  %990 = vmatmul.mubr.f32.gmra.mrb[18].mxu0 %v24220_v35  ;;  %v18118_v35 = vpack.c.bf16 %v24223_v16, %v24222_v0  ;;  %v24230_v0 = vld [vmem:[#allocation45_spill] sm:$0xff]  ;;  %v24231_v16 = vld [vmem:[#allocation39_spill] sm:$0xff] }
  0xb4   : > { %995 = vmatprep.mubr.f32.mxu0 %v24124_v22 }
  0xb5   : > { %24224 = vst [vmem:[#allocation6_spill] sm:$0xff] %v18118_v35 }
  0xb6   : > { %2557 = vmatmul.mubr.f32.gmra.mrb[28].mxu1 %v17855_v12  ;;  %v24225_v12 = vld [vmem:[#allocation21_spill] sm:$0xff] }
  0xb7   : > { %2562 = vmatprep.mubr.f32.mxu1 %v24124_v22  ;;  %997 = vmatmul.mubr.f32.gmra.mrb[20].mxu0 %v24221_v44  ;;  %v24238_v44 = vld [vmem:[#allocation11_spill] sm:$0xff] }
  0xb8   : > { %1002 = vmatprep.mubr.f32.mxu0 %v24124_v22 }
  0xba   : > { %2564 = vmatmul.mubr.f32.gmra.mrb[30].mxu1 %v17891_v33  ;;  %v24237_v33 = vld [vmem:[#allocation52_spill] sm:$0xff] }
  0xbb   : > { %2642 = vmatprep.mubr.f32.mxu1 %v24124_v22  ;;  %1004 = vmatmul.mubr.f32.gmra.mrb[22].mxu0 %v17847_v15  ;;  %v24227_v15 = vld [vmem:[#allocation29_spill] sm:$0xff] }
  0xbc   : > { %1009 = vmatprep.mubr.f32.mxu0 %v24124_v22 }
  0xbe   : > { %2645 = vmatmul.mubr.f32.vlgmr.msra.gmra.mrb[0].mxu1 %v24225_v12 }
  0xbf   : > { %14695 = vmatpush1.bf16.msra.mxu1 %v24226_v54  ;;  %2650 = vmatprep.mubr.f32.mxu1 %v24124_v22 }
  0xc0   : > { %1011 = vmatmul.mubr.f32.gmra.mrb[24].mxu0 %v17906_v11  ;;  %14697 = vmatprep.subr.bf16.mxu1 %v18118_v35  ;;  %v24232_v35 = vld [vmem:[#allocation8_spill] sm:$0xff]  ;;  %v24235_v11 = vld [vmem:[#allocation43_spill] sm:$0xff] }
  0xc1   : > { %1016 = vmatprep.mubr.f32.mxu0 %v24124_v22 }
  0xc2   : > { %2653 = vmatmul.mubr.f32.gmra.mrb[2].mxu1 %v24227_v15 }
  0xc3   : > { %2658 = vmatprep.mubr.f32.mxu1 %v24124_v22 }
  0xc4   : > { %1018 = vmatmul.mubr.f32.gmra.mrb[26].mxu0 %v17932_v56  ;;  %v24234_v56 = vld [vmem:[#allocation9_spill] sm:$0xff] }
  0xc5   : > { %1023 = vmatprep.mubr.f32.mxu0 %v24124_v22 }
  0xc6   : > { %2661 = vmatmul.mubr.f32.gmra.mrb[4].mxu1 %v24228_v5 }
  0xc7   : > { %2666 = vmatprep.mubr.f32.mxu1 %v24124_v22 }
  0xc8   : > { %1025 = vmatmul.mubr.f32.gmra.mrb[28].mxu0 %v17960_v46  ;;  %v24233_v46 = vld [vmem:[#allocation47_spill] sm:$0xff] }
  0xc9   : > { %1030 = vmatprep.mubr.f32.mxu0 %v24124_v22 }
  0xca   : > { %2669 = vmatmul.mubr.f32.gmra.mrb[6].mxu1 %v24229_v10 }
  0xcb   : > { %2674 = vmatprep.mubr.f32.mxu1 %v24124_v22 }
  0xcc   : > { %1032 = vmatmul.mubr.f32.gmra.mrb[30].mxu0 %v17994_v39  ;;  %v24236_v39 = vld [vmem:[#allocation10_spill] sm:$0xff] }
  0xcd   : > { %1166 = vmatprep.mubr.f32.mxu0 %v24124_v22 }
  0xce   : > { %2677 = vmatmul.mubr.f32.gmra.mrb[8].mxu1 %v24230_v0 }
  0xcf   : > { %2682 = vmatprep.mubr.f32.mxu1 %v24124_v22 }
  0xd0   : > { %1169 = vmatmul.mubr.f32.vlgmr.msra.gmra.mrb[0].mxu0 %v24231_v16 }
  0xd1   : > { %1174 = vmatprep.mubr.f32.mxu0 %v24124_v22  ;;  %14587 = vmatpush1.bf16.msra.mxu0 %v24232_v35  ;;  %v24273_v35 = vand.u32 4294901760, %v24272_v34  ;;  %v24279_v34 = vand.u32 4294901760, %v24227_v15  ;;  %v24284_v15 = vand.u32 4294901760, %v17255_v19  ;;  %v24290_v19 = vand.u32 4294901760, %v17295_v40 }
  0xd2   : > { %2685 = vmatmul.mubr.f32.gmra.mrb[10].mxu1 %v24233_v46  ;;  %14589 = vmatprep.subr.bf16.mxu0 %v24234_v56  ;;  %v24263_v56 = vld [vmem:[#allocation75_spill] sm:$0xff]  ;;  %v24296_v40 = vand.u32 4294901760, %v17321_v49  ;;  %v24302_v49 = vand.u32 4294901760, %v17354_v4  ;;  %v24308_v4 = vand.u32 4294901760, %v17417_v58  ;;  %v24314_v58 = vand.u32 4294901760, %v17458_v62 }
  0xd3   : > { %2690 = vmatprep.mubr.f32.mxu1 %v24124_v22  ;;  %v24321_v62 = vand.u32 4294901760, %v17512_v52  ;;  %v24328_v52 = vand.u32 4294901760, %v17544_v57  ;;  %v24333_v57 = vand.u32 4294901760, %v24265_v63 }
  0xd4   : > { %1177 = vmatmul.mubr.f32.gmra.mrb[2].mxu0 %v24235_v11 }
  0xd5   : > { %1182 = vmatprep.mubr.f32.mxu0 %v24124_v22  ;;  %14591 = vmatpush1.bf16.msra.mxu0 %v24236_v39 }
  0xd6   : > { %2693 = vmatmul.mubr.f32.gmra.mrb[12].mxu1 %v24237_v33  ;;  %14593 = vmatprep.subr.bf16.mxu0 %v24238_v44  ;;  %v24258_v44 = vld [vmem:[#allocation32_spill] sm:$0xff] }
  0xd7   : > { %2698 = vmatprep.mubr.f32.mxu1 %v24124_v22 }
  0xd8   : > { %1185 = vmatmul.mubr.f32.gmra.mrb[4].mxu0 %v24239_v21 }
  0xd9   : > { %1190 = vmatprep.mubr.f32.mxu0 %v24124_v22  ;;  %14595 = vmatpush1.bf16.msra.mxu0 %v24240_v17  ;;  %v24254_v17 = vld [vmem:[#allocation28_spill] sm:$0xff] }
  0xda   : > { %2701 = vmatmul.mubr.f32.gmra.mrb[14].mxu1 %v24241_v23  ;;  %14597 = vmatprep.subr.bf16.mxu0 %v24242_v20  ;;  %v24250_v20 = vld [vmem:[#allocation24_spill] sm:$0xff] }
  0xdb   : > { %2706 = vmatprep.mubr.f32.mxu1 %v24124_v22 }
  0xdc   : > { %1193 = vmatmul.mubr.f32.gmra.mrb[6].mxu0 %v24243_v45 }
  0xdd   : > { %1198 = vmatprep.mubr.f32.mxu0 %v24124_v22  ;;  %14599 = vmatpush1.bf16.msra.mxu0 %v24244_v27  ;;  %v24252_v27 = vld [vmem:[#allocation26_spill] sm:$0xff] }
  0xde   : > { %2709 = vmatmul.mubr.f32.gmra.mrb[16].mxu1 %v24245_v50  ;;  %14601 = vmatprep.subr.bf16.mxu0 %v24246_v55  ;;  %v24253_v55 = vld [vmem:[#allocation68_spill] sm:$0xff] }
  0xdf   : > { %2714 = vmatprep.mubr.f32.mxu1 %v24124_v22 }
  0xe0   : > { %1201 = vmatmul.mubr.f32.gmra.mrb[8].mxu0 %v24247_v36 }
  0xe1   : > { %1206 = vmatprep.mubr.f32.mxu0 %v24124_v22  ;;  %14603 = vmatpush1.bf16.msra.mxu0 %v24248_v7  ;;  %v24256_v7 = vld [vmem:[#allocation31_spill] sm:$0xff] }
  0xe2   : > { %2717 = vmatmul.mubr.f32.gmra.mrb[18].mxu1 %v24249_v18  ;;  %14605 = vmatprep.subr.bf16.mxu0 %v24250_v20  ;;  %v24257_v20 = vld [vmem:[#allocation69_spill] sm:$0xff] }
  0xe3   : > { %2722 = vmatprep.mubr.f32.mxu1 %v24124_v22 }
  0xe4   : > { %1209 = vmatmul.mubr.f32.gmra.mrb[10].mxu0 %v24251_v38 }
  0xe5   : > { %1214 = vmatprep.mubr.f32.mxu0 %v24124_v22  ;;  %14607 = vmatpush1.bf16.msra.mxu0 %v24252_v27  ;;  %v24260_v27 = vand.u32 4294901760, %v24201_v59  ;;  %v24266_v59 = vld [vmem:[#allocation76_spill] sm:$0xff] }
  0xe6   : > { %2725 = vmatmul.mubr.f32.gmra.mrb[20].mxu1 %v24253_v55  ;;  %14609 = vmatprep.subr.bf16.mxu0 %v24254_v17  ;;  %v24261_v17 = vld [vmem:[#allocation65_spill] sm:$0xff] }
  0xe7   : > { %2730 = vmatprep.mubr.f32.mxu1 %v24124_v22  ;;  %v14616_v39 = vpack.c.bf16 %v24260_v27, %v24259_v48  ;;  %v24267_v27 = vld [vmem:[#allocation83_spill] sm:$0xff]  ;;  %v24268_v48 = vld [vmem:[#allocation78_spill] sm:$0xff] }
  0xe8   : > { %1217 = vmatmul.mubr.f32.gmra.mrb[12].mxu0 %v24255_v53 }
  0xe9   : > { %1222 = vmatprep.mubr.f32.mxu0 %v24124_v22  ;;  %14611 = vmatpush1.bf16.msra.mxu0 %v24256_v7  ;;  %v24264_v7 = vld [vmem:[#allocation71_spill] sm:$0xff] }
  0xea   : > { %2733 = vmatmul.mubr.f32.gmra.mrb[22].mxu1 %v24257_v20  ;;  %14613 = vmatprep.subr.bf16.mxu0 %v24258_v44 }
  0xeb   : > { %2738 = vmatprep.mubr.f32.mxu1 %v24124_v22 }
  0xec   : > { %1225 = vmatmul.mubr.f32.gmra.mrb[14].mxu0 %v24261_v17 }
  0xed   : > { %1230 = vmatprep.mubr.f32.mxu0 %v24124_v22  ;;  %14615 = vmatpush1.bf16.msra.mxu0 %v24262_v37  ;;  %v24270_v37 = vld [vmem:[#allocation17_spill] sm:$0xff] }
  0xee   : > { %2741 = vmatmul.mubr.f32.gmra.mrb[24].mxu1 %v24263_v56  ;;  %14617 = vmatprep.subr.bf16.mxu0 %v14616_v39  ;;  %v24269_v39 = vld [vmem:[#allocation87_spill] sm:$0xff]  ;;  %v24271_v44 = vand.u32 4294901760, %v24270_v37 }
  0xef   : > { %2746 = vmatprep.mubr.f32.mxu1 %v24124_v22  ;;  %v24280_v37 = vld [vmem:[#allocation91_spill] sm:$0xff] }
  0xf0   : > { %1233 = vmatmul.mubr.f32.gmra.mrb[16].mxu0 %v24264_v7  ;;  %v18208_v54 = vpack.c.bf16 %v24273_v35, %v24271_v44  ;;  %v24282_v35 = vld [vmem:[#allocation94_spill] sm:$0xff]  ;;  %v24283_v44 = vand.u32 4294901760, %v24229_v10 }
  0xf1   : > { %1238 = vmatprep.mubr.f32.mxu0 %v24124_v22 }
  0xf2   : > { %2749 = vmatmul.mubr.f32.gmra.mrb[26].mxu1 %v24265_v63  ;;  %24274 = vst [vmem:[#allocation7_spill] sm:$0xff] %v18208_v54 }
  0xf3   : > { %2754 = vmatprep.mubr.f32.mxu1 %v24124_v22 }
  0xf4   : > { %1241 = vmatmul.mubr.f32.gmra.mrb[18].mxu0 %v24266_v59  ;;  %v24275_v59 = vld [vmem:[#allocation82_spill] sm:$0xff] }
  0xf5   : > { %1246 = vmatprep.mubr.f32.mxu0 %v24124_v22 }
  0xf6   : > { %2757 = vmatmul.mubr.f32.gmra.mrb[28].mxu1 %v24267_v27  ;;  %v24276_v27 = vand.u32 4294901760, %v24225_v12  ;;  %v24281_v12 = vand.u32 4294901760, %v24228_v5  ;;  %v24285_v5 = vand.u32 4294901760, %v17269_v24  ;;  %v24291_v24 = vand.u32 4294901760, %v17297_v41 }
  0xf7   : > { %2762 = vmatprep.mubr.f32.mxu1 %v24124_v22  ;;  %v24297_v41 = vand.u32 4294901760, %v17326_v51  ;;  %v24303_v51 = vand.u32 4294901760, %v17363_v8  ;;  %v24309_v8 = vand.u32 4294901760, %v17430_v14  ;;  %v24315_v14 = vand.u32 4294901760, %v17471_v1 }
  0xf8   : > { %1249 = vmatmul.mubr.f32.gmra.mrb[20].mxu0 %v24268_v48  ;;  %v24278_v48 = vld [vmem:[#allocation13_spill] sm:$0xff]  ;;  %v24320_v1 = vand.u32 4294901760, %v17510_v2  ;;  %v24327_v2 = vand.u32 4294901760, %v17542_v6  ;;  %v24332_v6 = vand.u32 4294901760, %v24264_v7 }
  0xf9   : > { %1254 = vmatprep.mubr.f32.mxu0 %v24124_v22 }
  0xfa   : > { %2765 = vmatmul.mubr.f32.gmra.mrb[30].mxu1 %v24269_v39  ;;  %v24277_v39 = vld [vmem:[#allocation89_spill] sm:$0xff] }
  0xfb   : > { %2839 = vmatprep.mubr.f32.mxu1 %v24124_v22 }
  0xfc   : > { %1257 = vmatmul.mubr.f32.gmra.mrb[22].mxu0 %v24275_v59 }
  0xfd   : > { %1262 = vmatprep.mubr.f32.mxu0 %v24124_v22 }
  0xfe   : > { %2843 = vmatmul.mubr.f32.vlgmr.msra.gmra.mrb[0].mxu1 %v24276_v27  ;;  %v14618_v27 = vpack.c.bf16 %v24285_v5, %v24284_v15  ;;  %v14622_v15 = vpack.c.bf16 %v24291_v24, %v24290_v19  ;;  %v24298_v5 = vand.u32 4294901760, %v24237_v33  ;;  %v14630_v33 = vpack.c.bf16 %v24303_v51, %v24302_v49  ;;  %v24353_v49 = vld [vmem:[#allocation36_spill] sm:$0xff] }
  0xff   : > { %14699 = vmatpush1.bf16.msra.mxu1 %v18208_v54  ;;  %2848 = vmatprep.mubr.f32.mxu1 %v24124_v22  ;;  %v24288_v54 = vand.u32 4294901760, %v17279_v28  ;;  %v24294_v28 = vand.u32 4294901760, %v17317_v47  ;;  %v24300_v47 = vand.u32 4294901760, %v17352_v3  ;;  %v24306_v3 = vand.u32 4294901760, %v17386_v31  ;;  %v24355_v51 = vld [vmem:[#allocation44_spill] sm:$0xff] }
 0x100   : > { %1265 = vmatmul.mubr.f32.gmra.mrb[24].mxu0 %v24277_v39  ;;  %14701 = vmatprep.subr.bf16.mxu1 %v24278_v48  ;;  %v24312_v31 = vand.u32 4294901760, %v17445_v32  ;;  %v24316_v19 = vand.u32 4294901760, %v24249_v18  ;;  %v24318_v32 = vand.u32 4294901760, %v17482_v29  ;;  %v14642_v18 = vpack.c.bf16 %v24321_v62, %v24320_v1  ;;  %v24379_v1 = vld [vmem:[#allocation67_spill] sm:$0xff]  ;;  %v24380_v62 = vld [vmem:[#allocation32_spill] sm:$0xff] }
 0x101   : > { %1270 = vmatprep.mubr.f32.mxu0 %v24124_v22  ;;  %v24323_v29 = vand.u32 4294901760, %v17516_v9  ;;  %v24330_v9 = vand.u32 4294901760, %v24261_v17  ;;  %v24334_v17 = vld [vmem:[#allocation76_spill] sm:$0xff] }
 0x102   : > { %2852 = vmatmul.mubr.f32.gmra.mrb[2].mxu1 %v24279_v34  ;;  %v24286_v34 = vand.u32 4294901760, %v24230_v0  ;;  %v24292_v0 = vand.u32 4294901760, %v24233_v46  ;;  %v14626_v46 = vpack.c.bf16 %v24297_v41, %v24296_v40  ;;  %v24342_v40 = vand.u32 4294901760, %v24275_v59  ;;  %v24343_v41 = vld [vmem:[#allocation20_spill] sm:$0xff] }
 0x103   : > { %2857 = vmatprep.mubr.f32.mxu1 %v24124_v22  ;;  %v24347_v59 = vand.u32 4294901760, %v24280_v37 }
 0x104   : > { %1273 = vmatmul.mubr.f32.gmra.mrb[26].mxu0 %v24280_v37  ;;  %v24352_v37 = vld [vmem:[#allocation42_spill] sm:$0xff] }
 0x105   : > { %1278 = vmatprep.mubr.f32.mxu0 %v24124_v22 }
 0x106   : > { %2861 = vmatmul.mubr.f32.gmra.mrb[4].mxu1 %v24281_v12  ;;  %v24287_v12 = vand.u32 4294901760, %v17273_v26  ;;  %v24293_v26 = vand.u32 4294901760, %v17299_v42  ;;  %v24299_v42 = vand.u32 4294901760, %v17341_v60  ;;  %v24305_v60 = vand.u32 4294901760, %v17384_v30 }
 0x107   : > { %2866 = vmatprep.mubr.f32.mxu1 %v24124_v22  ;;  %v24311_v30 = vand.u32 4294901760, %v17441_v43  ;;  %v24317_v43 = vand.u32 4294901760, %v17480_v13  ;;  %v24324_v13 = vld [vmem:[#allocation34_spill] sm:$0xff] }
 0x108   : > { %1281 = vmatmul.mubr.f32.gmra.mrb[28].mxu0 %v24282_v35  ;;  %v14620_v10 = vpack.c.bf16 %v24288_v54, %v24287_v12  ;;  %v14624_v54 = vpack.c.bf16 %v24294_v28, %v24293_v26  ;;  %v14632_v12 = vpack.c.bf16 %v24306_v3, %v24305_v60  ;;  %v24329_v28 = vand.u32 4294901760, %v24257_v20  ;;  %v24359_v60 = vld [vmem:[#allocation50_spill] sm:$0xff]  ;;  %v24360_v3 = vld [vmem:[#allocation11_spill] sm:$0xff] }
 0x109   : > { %1286 = vmatprep.mubr.f32.mxu0 %v24124_v22  ;;  %v14640_v24 = vpack.c.bf16 %v24318_v32, %v24317_v43  ;;  %v24335_v20 = vand.u32 4294901760, %v24334_v17  ;;  %v24375_v43 = vld [vmem:[#allocation66_spill] sm:$0xff]  ;;  %v24376_v32 = vld [vmem:[#allocation28_spill] sm:$0xff]  ;;  %v24396_v17 = vld [vmem:[#allocation85_spill] sm:$0xff] }
 0x10a   : > { %2870 = vmatmul.mubr.f32.gmra.mrb[6].mxu1 %v24283_v44  ;;  %v24289_v44 = vand.u32 4294901760, %v24231_v16  ;;  %v24295_v16 = vand.u32 4294901760, %v24235_v11  ;;  %v24301_v11 = vand.u32 4294901760, %v24239_v21  ;;  %v24307_v21 = vand.u32 4294901760, %v24243_v45 }
 0x10b   : > { %2875 = vmatprep.mubr.f32.mxu1 %v24124_v22  ;;  %v24313_v45 = vand.u32 4294901760, %v24247_v36  ;;  %v24319_v36 = vand.u32 4294901760, %v24251_v38  ;;  %v24326_v38 = vand.u32 4294901760, %v24255_v53  ;;  %v24331_v53 = vand.u32 4294901760, %v24263_v56  ;;  %v24336_v56 = vld [vmem:[#allocation83_spill] sm:$0xff] }
 0x10c   : > { %1289 = vmatmul.mubr.f32.gmra.mrb[30].mxu0 %v18008_v61 }
 0x10d   : > { %1391 = vmatprep.mubr.f32.mxu0 %v24124_v22 }
 0x10e   : > { %2879 = vmatmul.mubr.f32.gmra.mrb[8].mxu1 %v24286_v34  ;;  %v24304_v34 = vand.u32 4294901760, %v24241_v23  ;;  %v14634_v23 = vpack.c.bf16 %v24309_v8, %v24308_v4  ;;  %v24363_v4 = vld [vmem:[#allocation53_spill] sm:$0xff]  ;;  %v24364_v8 = vld [vmem:[#allocation14_spill] sm:$0xff] }
 0x10f   : > { %2884 = vmatprep.mubr.f32.mxu1 %v24124_v22 }
 0x110   : > { %1395 = vmatmul.mubr.f32.vlgmr.msra.gmra.mrb[0].mxu0 %v24289_v44  ;;  %v14636_v44 = vpack.c.bf16 %v24312_v31, %v24311_v30  ;;  %v24367_v30 = vld [vmem:[#allocation57_spill] sm:$0xff]  ;;  %v24368_v31 = vld [vmem:[#allocation19_spill] sm:$0xff] }
 0x111   : > { %1400 = vmatprep.mubr.f32.mxu0 %v24124_v22  ;;  %14619 = vmatpush1.bf16.msra.mxu0 %v14618_v27  ;;  %v14628_v27 = vpack.c.bf16 %v24300_v47, %v24299_v42  ;;  %v24346_v42 = vld [vmem:[#allocation27_spill] sm:$0xff]  ;;  %v24348_v47 = vld [vmem:[#allocation30_spill] sm:$0xff] }
 0x112   : > { %2888 = vmatmul.mubr.f32.gmra.mrb[10].mxu1 %v24292_v0  ;;  %14621 = vmatprep.subr.bf16.mxu0 %v14620_v10  ;;  %v24310_v10 = vand.u32 4294901760, %v24245_v50  ;;  %v14638_v50 = vpack.c.bf16 %v24315_v14, %v24314_v58  ;;  %v24325_v0 = vand.u32 4294901760, %v24324_v13  ;;  %v24371_v58 = vld [vmem:[#allocation60_spill] sm:$0xff]  ;;  %v24384_v13 = vld [vmem:[#allocation70_spill] sm:$0xff] }
 0x113   : > { %2893 = vmatprep.mubr.f32.mxu1 %v24124_v22  ;;  %v24372_v14 = vld [vmem:[#allocation24_spill] sm:$0xff] }
 0x114   : > { %1404 = vmatmul.mubr.f32.gmra.mrb[2].mxu0 %v24295_v16  ;;  %v14644_v26 = vpack.c.bf16 %v24325_v0, %v24323_v29  ;;  %v24340_v16 = vld [vmem:[#allocation87_spill] sm:$0xff]  ;;  %v24383_v29 = vld [vmem:[#allocation72_spill] sm:$0xff]  ;;  %v24385_v0 = vld [vmem:[#allocation77_spill] sm:$0xff] }
 0x115   : > { %1409 = vmatprep.mubr.f32.mxu0 %v24124_v22  ;;  %14623 = vmatpush1.bf16.msra.mxu0 %v14622_v15  ;;  %v24322_v15 = vand.u32 4294901760, %v24253_v55  ;;  %v14646_v55 = vpack.c.bf16 %v24328_v52, %v24327_v2  ;;  %v24341_v63 = vand.u32 4294901760, %v24340_v16  ;;  %v24388_v2 = vld [vmem:[#allocation74_spill] sm:$0xff] }
 0x116   : > { %2897 = vmatmul.mubr.f32.gmra.mrb[12].mxu1 %v24298_v5  ;;  %14625 = vmatprep.subr.bf16.mxu0 %v14624_v54  ;;  %v24337_v54 = vand.u32 4294901760, %v24336_v56  ;;  %v24345_v5 = vand.u32 4294901760, %v24277_v39  ;;  %v24349_v39 = vand.u32 4294901760, %v24282_v35  ;;  %v24354_v35 = vld [vmem:[#allocation8_spill] sm:$0xff]  ;;  %v24389_v52 = vld [vmem:[#allocation86_spill] sm:$0xff] }
 0x117   : > { %2902 = vmatprep.mubr.f32.mxu1 %v24124_v22 }
 0x118   : > { %1413 = vmatmul.mubr.f32.gmra.mrb[4].mxu0 %v24301_v11  ;;  %v24351_v11 = vand.u32 4294901760, %v18008_v61  ;;  %v24357_v61 = vld [vmem:[#allocation40_spill] sm:$0xff] }
 0x119   : > { %1418 = vmatprep.mubr.f32.mxu0 %v24124_v22  ;;  %14627 = vmatpush1.bf16.msra.mxu0 %v14626_v46  ;;  %v24344_v46 = vld [vmem:[#allocation15_spill] sm:$0xff] }
 0x11a   : > { %2906 = vmatmul.mubr.f32.gmra.mrb[14].mxu1 %v24304_v34  ;;  %14629 = vmatprep.subr.bf16.mxu0 %v14628_v27  ;;  %v24350_v27 = vld [vmem:[#allocation35_spill] sm:$0xff]  ;;  %v24358_v34 = vld [vmem:[#allocation10_spill] sm:$0xff] }
 0x11b   : > { %2911 = vmatprep.mubr.f32.mxu1 %v24124_v22 }
 0x11c   : > { %1422 = vmatmul.mubr.f32.gmra.mrb[6].mxu0 %v24307_v21  ;;  %v24362_v21 = vld [vmem:[#allocation12_spill] sm:$0xff] }
 0x11d   : > { %1427 = vmatprep.mubr.f32.mxu0 %v24124_v22  ;;  %14631 = vmatpush1.bf16.msra.mxu0 %v14630_v33  ;;  %v24356_v33 = vld [vmem:[#allocation9_spill] sm:$0xff] }
 0x11e   : > { %2915 = vmatmul.mubr.f32.gmra.mrb[16].mxu1 %v24310_v10  ;;  %14633 = vmatprep.subr.bf16.mxu0 %v14632_v12  ;;  %v24361_v12 = vld [vmem:[#allocation41_spill] sm:$0xff]  ;;  %v24366_v10 = vld [vmem:[#allocation16_spill] sm:$0xff] }
 0x11f   : > { %2920 = vmatprep.mubr.f32.mxu1 %v24124_v22 }
 0x120   : > { %1431 = vmatmul.mubr.f32.gmra.mrb[8].mxu0 %v24313_v45  ;;  %v24370_v45 = vld [vmem:[#allocation23_spill] sm:$0xff] }
 0x121   : > { %1436 = vmatprep.mubr.f32.mxu0 %v24124_v22  ;;  %14635 = vmatpush1.bf16.msra.mxu0 %v14634_v23  ;;  %v24365_v23 = vld [vmem:[#allocation48_spill] sm:$0xff] }
 0x122   : > { %2924 = vmatmul.mubr.f32.gmra.mrb[18].mxu1 %v24316_v19  ;;  %14637 = vmatprep.subr.bf16.mxu0 %v14636_v44  ;;  %v24369_v44 = vld [vmem:[#allocation51_spill] sm:$0xff]  ;;  %v24374_v19 = vld [vmem:[#allocation26_spill] sm:$0xff] }
 0x123   : > { %2929 = vmatprep.mubr.f32.mxu1 %v24124_v22 }
 0x124   : > { %1440 = vmatmul.mubr.f32.gmra.mrb[10].mxu0 %v24319_v36  ;;  %v24378_v36 = vld [vmem:[#allocation31_spill] sm:$0xff] }
 0x125   : > { %1445 = vmatprep.mubr.f32.mxu0 %v24124_v22  ;;  %14639 = vmatpush1.bf16.msra.mxu0 %v14638_v50  ;;  %v24373_v50 = vld [vmem:[#allocation55_spill] sm:$0xff] }
 0x126   : > { %2933 = vmatmul.mubr.f32.gmra.mrb[20].mxu1 %v24322_v15  ;;  %14641 = vmatprep.subr.bf16.mxu0 %v14640_v24  ;;  %v24377_v24 = vld [vmem:[#allocation62_spill] sm:$0xff]  ;;  %v24382_v15 = vld [vmem:[#allocation37_spill] sm:$0xff] }
 0x127   : > { %2938 = vmatprep.mubr.f32.mxu1 %v24124_v22 }
 0x128   : > { %1449 = vmatmul.mubr.f32.gmra.mrb[12].mxu0 %v24326_v38  ;;  %v24387_v38 = vld [vmem:[#allocation81_spill] sm:$0xff] }
 0x129   : > { %1454 = vmatprep.mubr.f32.mxu0 %v24124_v22  ;;  %14643 = vmatpush1.bf16.msra.mxu0 %v14642_v18  ;;  %v24381_v18 = vld [vmem:[#allocation64_spill] sm:$0xff] }
 0x12a   : > { %2942 = vmatmul.mubr.f32.gmra.mrb[22].mxu1 %v24329_v28  ;;  %14645 = vmatprep.subr.bf16.mxu0 %v14644_v26  ;;  %v24386_v26 = vld [vmem:[#allocation73_spill] sm:$0xff]  ;;  %v24391_v28 = vld [vmem:[#allocation88_spill] sm:$0xff] }
 0x12b   : > { %2947 = vmatprep.mubr.f32.mxu1 %v24124_v22 }
 0x12c   : > { %1458 = vmatmul.mubr.f32.gmra.mrb[14].mxu0 %v24330_v9  ;;  %v24392_v9 = vld [vmem:[#allocation22_spill] sm:$0xff] }
 0x12d   : > { %1463 = vmatprep.mubr.f32.mxu0 %v24124_v22  ;;  %14647 = vmatpush1.bf16.msra.mxu0 %v14646_v55  ;;  %v24390_v55 = vld [vmem:[#allocation80_spill] sm:$0xff] }
 0x12e   : > { %2951 = vmatmul.mubr.f32.gmra.mrb[24].mxu1 %v24331_v53  ;;  %14649 = vmatprep.subr.bf16.mxu0 %v24218_v25  ;;  %v24338_v25 = vld [vmem:[#allocation78_spill] sm:$0xff] }
 0x12f   : > { %2956 = vmatprep.mubr.f32.mxu1 %v24124_v22  ;;  %v24339_v7 = vand.u32 4294901760, %v24338_v25  ;;  %v24393_v53 = vld [vmem:[#allocation90_spill] sm:$0xff] }
 0x130   : > { %1467 = vmatmul.mubr.f32.gmra.mrb[16].mxu0 %v24332_v6  ;;  %v24394_v6 = vld [vmem:[#allocation93_spill] sm:$0xff] }
 0x131   : > { %1472 = vmatprep.mubr.f32.mxu0 %v24124_v22 }
 0x132   : > { %2960 = vmatmul.mubr.f32.gmra.mrb[26].mxu1 %v24333_v57  ;;  %v24395_v57 = vld [vmem:[#allocation95_spill] sm:$0xff] }
 0x133   : > { %2965 = vmatprep.mubr.f32.mxu1 %v24124_v22 }
 0x134   : > { %1476 = vmatmul.mubr.f32.gmra.mrb[18].mxu0 %v24335_v20  ;;  %v2067_v20 = vrot.slane %v24396_v17, 4 }
 0x135   : > { %1481 = vmatprep.mubr.f32.mxu0 %v24124_v22 }
 0x136   : > { %2969 = vmatmul.mubr.f32.gmra.mrb[28].mxu1 %v24337_v54  ;;  %v2068_v56 = vadd.f32 %v2067_v20, %v24396_v17 }
 0x137   : > { %2974 = vmatprep.mubr.f32.mxu1 %v24124_v22 }
 0x138   : > { %1485 = vmatmul.mubr.f32.gmra.mrb[20].mxu0 %v24339_v7  ;;  %v2069_v54 = vrot.slane %v2068_v56, 2 }
 0x139   : > { %1490 = vmatprep.mubr.f32.mxu0 %v24124_v22 }
 0x13a   : > { %2978 = vmatmul.mubr.f32.gmra.mrb[30].mxu1 %v24341_v63  ;;  %v2070_v25 = vadd.f32 %v2069_v54, %v2068_v56 }
 0x13b   : > { %3060 = vmatprep.mubr.f32.mxu1 %v24124_v22 }
 0x13c   : > { %1494 = vmatmul.mubr.f32.gmra.mrb[22].mxu0 %v24342_v40  ;;  %v2071_v7 = vrot.slane %v2070_v25, 1 }
 0x13d   : > { %1499 = vmatprep.mubr.f32.mxu0 %v24124_v22 }
 0x13e   : > { %3062 = vmatmul.mubr.f32.vlgmr.msra.gmra.mrb[0].mxu1 %v24343_v41  ;;  %v18494_v16 = vadd.f32 %v2071_v7, %v2070_v25 }
 0x13f   : > { %14703 = vmatpush1.bf16.msra.mxu1 %v24344_v46  ;;  %3067 = vmatprep.mubr.f32.mxu1 %v24124_v22 }
 0x140   : > { %1503 = vmatmul.mubr.f32.gmra.mrb[24].mxu0 %v24345_v5  ;;  %14705 = vmatprep.subr.bf16.mxu1 %v24278_v48  ;;  %24397 = vst [vmem:[#allocation5_spill] sm:$0xff] %v18494_v16  ;;  %v3355_v63 = vsel %vm2035_vm1, %v18494_v16, 0 }
 0x141   : > { %1508 = vmatprep.mubr.f32.mxu0 %v24124_v22  ;;  %v3426_v40 = vand.u32 4294901760, %v3355_v63 }
 0x142   : > { %3069 = vmatmul.mubr.f32.gmra.mrb[2].mxu1 %v24346_v42 }
 0x143   : > { %3074 = vmatprep.mubr.f32.mxu1 %v24124_v22 }
 0x144   : > { %1512 = vmatmul.mubr.f32.gmra.mrb[26].mxu0 %v24347_v59 }
 0x145   : > { %1517 = vmatprep.mubr.f32.mxu0 %v24124_v22 }
 0x146   : > { %3076 = vmatmul.mubr.f32.gmra.mrb[4].mxu1 %v24348_v47 }
 0x147   : > { %3081 = vmatprep.mubr.f32.mxu1 %v24124_v22 }
 0x148   : > { %1521 = vmatmul.mubr.f32.gmra.mrb[28].mxu0 %v24349_v39  ;;  %v24399_v39 = vld [vmem:[#allocation84_spill] sm:$0xff] }
 0x149   : > { %1526 = vmatprep.mubr.f32.mxu0 %v24124_v22 }
 0x14a   : > { %3083 = vmatmul.mubr.f32.gmra.mrb[6].mxu1 %v24350_v27 }
 0x14b   : > { %3088 = vmatprep.mubr.f32.mxu1 %v24124_v22 }
 0x14c   : > { %1530 = vmatmul.mubr.f32.gmra.mrb[30].mxu0 %v24351_v11  ;;  %v24401_v11 = vld [vmem:[#allocation6_spill] sm:$0xff] }
 0x14d   : > { %1696 = vmatprep.mubr.f32.mxu0 %v24124_v22 }
 0x14e   : > { %3090 = vmatmul.mubr.f32.gmra.mrb[8].mxu1 %v24352_v37 }
 0x14f   : > { %3095 = vmatprep.mubr.f32.mxu1 %v24124_v22 }
 0x150   : > { %1698 = vmatmul.mubr.f32.vlgmr.msra.gmra.mrb[0].mxu0 %v24353_v49 }
 0x151   : > { %1703 = vmatprep.mubr.f32.mxu0 %v24124_v22  ;;  %14651 = vmatpush1.bf16.msra.mxu0 %v24354_v35 }
 0x152   : > { %3097 = vmatmul.mubr.f32.gmra.mrb[10].mxu1 %v24355_v51  ;;  %14653 = vmatprep.subr.bf16.mxu0 %v24356_v33 }
 0x153   : > { %3102 = vmatprep.mubr.f32.mxu1 %v24124_v22 }
 0x154   : > { %1705 = vmatmul.mubr.f32.gmra.mrb[2].mxu0 %v24357_v61 }
 0x155   : > { %1710 = vmatprep.mubr.f32.mxu0 %v24124_v22  ;;  %14655 = vmatpush1.bf16.msra.mxu0 %v24358_v34 }
 0x156   : > { %3104 = vmatmul.mubr.f32.gmra.mrb[12].mxu1 %v24359_v60  ;;  %14657 = vmatprep.subr.bf16.mxu0 %v24360_v3 }
 0x157   : > { %3109 = vmatprep.mubr.f32.mxu1 %v24124_v22 }
 0x158   : > { %1712 = vmatmul.mubr.f32.gmra.mrb[4].mxu0 %v24361_v12 }
 0x159   : > { %1717 = vmatprep.mubr.f32.mxu0 %v24124_v22  ;;  %14659 = vmatpush1.bf16.msra.mxu0 %v24362_v21 }
 0x15a   : > { %3111 = vmatmul.mubr.f32.gmra.mrb[14].mxu1 %v24363_v4  ;;  %14661 = vmatprep.subr.bf16.mxu0 %v24364_v8 }
 0x15b   : > { %3116 = vmatprep.mubr.f32.mxu1 %v24124_v22 }
 0x15c   : > { %1719 = vmatmul.mubr.f32.gmra.mrb[6].mxu0 %v24365_v23 }
 0x15d   : > { %1724 = vmatprep.mubr.f32.mxu0 %v24124_v22  ;;  %14663 = vmatpush1.bf16.msra.mxu0 %v24366_v10 }
 0x15e   : > { %3118 = vmatmul.mubr.f32.gmra.mrb[16].mxu1 %v24367_v30  ;;  %14665 = vmatprep.subr.bf16.mxu0 %v24368_v31 }
 0x15f   : > { %3123 = vmatprep.mubr.f32.mxu1 %v24124_v22 }
 0x160   : > { %1726 = vmatmul.mubr.f32.gmra.mrb[8].mxu0 %v24369_v44 }
 0x161   : > { %1731 = vmatprep.mubr.f32.mxu0 %v24124_v22  ;;  %14667 = vmatpush1.bf16.msra.mxu0 %v24370_v45 }
 0x162   : > { %3125 = vmatmul.mubr.f32.gmra.mrb[18].mxu1 %v24371_v58  ;;  %14669 = vmatprep.subr.bf16.mxu0 %v24372_v14 }
 0x163   : > { %3130 = vmatprep.mubr.f32.mxu1 %v24124_v22 }
 0x164   : > { %1733 = vmatmul.mubr.f32.gmra.mrb[10].mxu0 %v24373_v50 }
 0x165   : > { %1738 = vmatprep.mubr.f32.mxu0 %v24124_v22  ;;  %14671 = vmatpush1.bf16.msra.mxu0 %v24374_v19 }
 0x166   : > { %3132 = vmatmul.mubr.f32.gmra.mrb[20].mxu1 %v24375_v43  ;;  %14673 = vmatprep.subr.bf16.mxu0 %v24376_v32 }
 0x167   : > { %3137 = vmatprep.mubr.f32.mxu1 %v24124_v22 }
 0x168   : > { %1740 = vmatmul.mubr.f32.gmra.mrb[12].mxu0 %v24377_v24 }
 0x169   : > { %1745 = vmatprep.mubr.f32.mxu0 %v24124_v22  ;;  %14675 = vmatpush1.bf16.msra.mxu0 %v24378_v36 }
 0x16a   : > { %3139 = vmatmul.mubr.f32.gmra.mrb[22].mxu1 %v24379_v1  ;;  %14677 = vmatprep.subr.bf16.mxu0 %v24380_v62 }
 0x16b   : > { %3144 = vmatprep.mubr.f32.mxu1 %v24124_v22 }
 0x16c   : > { %1747 = vmatmul.mubr.f32.gmra.mrb[14].mxu0 %v24381_v18 }
 0x16d   : > { %1752 = vmatprep.mubr.f32.mxu0 %v24124_v22  ;;  %14679 = vmatpush1.bf16.msra.mxu0 %v24382_v15 }
 0x16e   : > { %3146 = vmatmul.mubr.f32.gmra.mrb[24].mxu1 %v24383_v29 }
 0x16f   : > { %3151 = vmatprep.mubr.f32.mxu1 %v24124_v22 }
 0x170   : > { %1754 = vmatmul.mubr.f32.gmra.mrb[16].mxu0 %v24384_v13 }
 0x171   : > { %1759 = vmatprep.mubr.f32.mxu0 %v24124_v22 }
 0x172   : > { %3153 = vmatmul.mubr.f32.gmra.mrb[26].mxu1 %v24385_v0 }
 0x173   : > { %3158 = vmatprep.mubr.f32.mxu1 %v24124_v22 }
 0x174   : > { %1761 = vmatmul.mubr.f32.gmra.mrb[18].mxu0 %v24386_v26 }
 0x175   : > { %1766 = vmatprep.mubr.f32.mxu0 %v24124_v22 }
 0x176   : > { %3160 = vmatmul.mubr.f32.gmra.mrb[28].mxu1 %v24387_v38 }
 0x177   : > { %3165 = vmatprep.mubr.f32.mxu1 %v24124_v22 }
 0x178   : > { %1768 = vmatmul.mubr.f32.gmra.mrb[20].mxu0 %v24388_v2 }
 0x179   : > { %1773 = vmatprep.mubr.f32.mxu0 %v24124_v22 }
 0x17a   : > { %3167 = vmatmul.mubr.f32.gmra.mrb[30].mxu1 %v24389_v52 }
 0x17b   : > { %3241 = vmatprep.mubr.f32.mxu1 %v24124_v22 }
 0x17c   : > { %1775 = vmatmul.mubr.f32.gmra.mrb[22].mxu0 %v24390_v55 }
 0x17d   : > { %1780 = vmatprep.mubr.f32.mxu0 %v24124_v22 }
 0x17e   : > { %3243 = vmatmul.mubr.f32.vlgmr.msra.gmra.mrb[0].mxu1 %v24343_v41  ;;  %v3427_v41 = vsub.f32 %v3355_v63, %v3426_v40 }
 0x17f   : > { %14707 = vmatpush1.bf16.msra.mxu1 %v24344_v46  ;;  %3248 = vmatprep.mubr.f32.mxu1 %v24124_v22 }
 0x180   : > { %1782 = vmatmul.mubr.f32.gmra.mrb[24].mxu0 %v24391_v28  ;;  %14709 = vmatprep.subr.bf16.mxu1 %v24392_v9  ;;  %v3428_v5 = vand.u32 4294901760, %v3427_v41 }
 0x181   : > { %1787 = vmatprep.mubr.f32.mxu0 %v24124_v22 }
 0x182   : > { %3250 = vmatmul.mubr.f32.gmra.mrb[2].mxu1 %v24346_v42  ;;  %v3429_v42 = vsub.f32 %v3427_v41, %v3428_v5 }
 0x183   : > { %3255 = vmatprep.mubr.f32.mxu1 %v24124_v22 }
 0x184   : > { %1789 = vmatmul.mubr.f32.gmra.mrb[26].mxu0 %v24393_v53  ;;  %v3430_v59 = vand.u32 4294901760, %v3429_v42 }
 0x185   : > { %1794 = vmatprep.mubr.f32.mxu0 %v24124_v22 }
 0x186   : > { %3257 = vmatmul.mubr.f32.gmra.mrb[4].mxu1 %v24348_v47  ;;  %v24398_v47 = vld [vmem:[#allocation25_spill] sm:$0xff] }
 0x187   : > { %3262 = vmatprep.mubr.f32.mxu1 %v24124_v22 }
 0x188   : > { %1796 = vmatmul.mubr.f32.gmra.mrb[28].mxu0 %v24394_v6 }
 0x189   : > { %1801 = vmatprep.mubr.f32.mxu0 %v24124_v22 }
 0x18a   : > { %3264 = vmatmul.mubr.f32.gmra.mrb[6].mxu1 %v24350_v27  ;;  %v24400_v27 = vld [vmem:[#allocation92_spill] sm:$0xff] }
 0x18b   : > { %3269 = vmatprep.mubr.f32.mxu1 %v24124_v22 }
 0x18c   : > { %1803 = vmatmul.mubr.f32.gmra.mrb[30].mxu0 %v24395_v57 }
 0x18d   : > { %1905 = vmatprep.mubr.f32.mxu0 %v24124_v22 }
 0x18e   : > { %3271 = vmatmul.mubr.f32.gmra.mrb[8].mxu1 %v24352_v37  ;;  %v24402_v37 = vld [vmem:[#allocation7_spill] sm:$0xff] }
 0x18f   : > { %3276 = vmatprep.mubr.f32.mxu1 %v24124_v22 }
 0x190   : > { %1907 = vmatmul.mubr.f32.vlgmr.msra.gmra.mrb[0].mxu0 %v24353_v49 }
 0x191   : > { %1912 = vmatprep.mubr.f32.mxu0 %v24124_v22 }
 0x192   : > { %3278 = vmatmul.mubr.f32.gmra.mrb[10].mxu1 %v24355_v51 }
 0x193   : > { %3283 = vmatprep.mubr.f32.mxu1 %v24124_v22 }
 0x194   : > { %1914 = vmatmul.mubr.f32.gmra.mrb[2].mxu0 %v24357_v61 }
 0x195   : > { %1919 = vmatprep.mubr.f32.mxu0 %v24124_v22 }
 0x196   : > { %3285 = vmatmul.mubr.f32.gmra.mrb[12].mxu1 %v24359_v60 }
 0x197   : > { %3290 = vmatprep.mubr.f32.mxu1 %v24124_v22 }
 0x198   : > { %1921 = vmatmul.mubr.f32.gmra.mrb[4].mxu0 %v24361_v12 }
 0x199   : > { %1926 = vmatprep.mubr.f32.mxu0 %v24124_v22 }
 0x19a   : > { %3292 = vmatmul.mubr.f32.gmra.mrb[14].mxu1 %v24363_v4 }
 0x19b   : > { %3297 = vmatprep.mubr.f32.mxu1 %v24124_v22 }
 0x19c   : > { %1928 = vmatmul.mubr.f32.gmra.mrb[6].mxu0 %v24365_v23 }
 0x19d   : > { %1933 = vmatprep.mubr.f32.mxu0 %v24124_v22 }
 0x19e   : > { %3299 = vmatmul.mubr.f32.gmra.mrb[16].mxu1 %v24367_v30 }
 0x19f   : > { %3304 = vmatprep.mubr.f32.mxu1 %v24124_v22 }
 0x1a0   : > { %1935 = vmatmul.mubr.f32.gmra.mrb[8].mxu0 %v24369_v44 }
 0x1a1   : > { %1940 = vmatprep.mubr.f32.mxu0 %v24124_v22 }
 0x1a2   : > { %3306 = vmatmul.mubr.f32.gmra.mrb[18].mxu1 %v24371_v58 }
 0x1a3   : > { %3311 = vmatprep.mubr.f32.mxu1 %v24124_v22 }
 0x1a4   : > { %1942 = vmatmul.mubr.f32.gmra.mrb[10].mxu0 %v24373_v50 }
 0x1a5   : > { %1947 = vmatprep.mubr.f32.mxu0 %v24124_v22 }
 0x1a6   : > { %3313 = vmatmul.mubr.f32.gmra.mrb[20].mxu1 %v24375_v43 }
 0x1a7   : > { %3318 = vmatprep.mubr.f32.mxu1 %v24124_v22 }
 0x1a8   : > { %1949 = vmatmul.mubr.f32.gmra.mrb[12].mxu0 %v24377_v24 }
 0x1a9   : > { %1954 = vmatprep.mubr.f32.mxu0 %v24124_v22 }
 0x1aa   : > { %3320 = vmatmul.mubr.f32.gmra.mrb[22].mxu1 %v24379_v1 }
 0x1ab   : > { %3325 = vmatprep.mubr.f32.mxu1 %v24124_v22 }
 0x1ac   : > { %1956 = vmatmul.mubr.f32.gmra.mrb[14].mxu0 %v24381_v18 }
 0x1ad   : > { %1961 = vmatprep.mubr.f32.mxu0 %v24124_v22 }
 0x1ae   : > { %3327 = vmatmul.mubr.f32.gmra.mrb[24].mxu1 %v24383_v29 }
 0x1af   : > { %3332 = vmatprep.mubr.f32.mxu1 %v24124_v22 }
 0x1b0   : > { %1963 = vmatmul.mubr.f32.gmra.mrb[16].mxu0 %v24384_v13 }
 0x1b1   : > { %1968 = vmatprep.mubr.f32.mxu0 %v24124_v22 }
 0x1b2   : > { %3334 = vmatmul.mubr.f32.gmra.mrb[26].mxu1 %v24385_v0 }
 0x1b3   : > { %3339 = vmatprep.mubr.f32.mxu1 %v24124_v22 }
 0x1b4   : > { %1970 = vmatmul.mubr.f32.gmra.mrb[18].mxu0 %v24386_v26 }
 0x1b5   : > { %1975 = vmatprep.mubr.f32.mxu0 %v24124_v22 }
 0x1b6   : > { %3341 = vmatmul.mubr.f32.gmra.mrb[28].mxu1 %v24387_v38 }
 0x1b7   : > { %3346 = vmatprep.mubr.f32.mxu1 %v24124_v22 }
 0x1b8   : > { %1977 = vmatmul.mubr.f32.gmra.mrb[20].mxu0 %v24388_v2 }
 0x1b9   : > { %1982 = vmatprep.mubr.f32.mxu0 %v24124_v22 }
 0x1ba   : > { %3348 = vmatmul.mubr.f32.gmra.mrb[30].mxu1 %v24389_v52 }
 0x1bb   : > { %3425 = vmatprep.mubr.f32.mxu1 %v24124_v22 }
 0x1bc   : > { %1984 = vmatmul.mubr.f32.gmra.mrb[22].mxu0 %v24390_v55 }
 0x1bd   : > { %1989 = vmatprep.mubr.f32.mxu0 %v24124_v22 }
 0x1be   : > { %3431 = vmatmul.mubr.f32.vlgmr.msra.gmra.mrb[32].mxu1 %v3430_v59 }
 0x1bf   : > { %14711 = vmatpush1.bf16.msra.mxu1 %v24398_v47  ;;  %3521 = vmatprep.mubr.f32.mxu1 %v24124_v22 }
 0x1c0   : > { %1991 = vmatmul.mubr.f32.gmra.mrb[24].mxu0 %v24391_v28  ;;  %14713 = vmatprep.subr.bf16.mxu1 %v24399_v39 }
 0x1c1   : > { %1996 = vmatprep.mubr.f32.mxu0 %v24124_v22 }
 0x1c4   : > { %1998 = vmatmul.mubr.f32.gmra.mrb[26].mxu0 %v24393_v53 }
 0x1c5   : > { %2003 = vmatprep.mubr.f32.mxu0 %v24124_v22 }
 0x1c6   : > { %3523 = vmatmul.mubr.f32.vlgmr.msra.gmra.mrb[32].mxu1 %v3426_v40 }
 0x1c7   : > { %14715 = vmatpush1.bf16.msra.mxu1 %v24400_v27  ;;  %3601 = vmatprep.mubr.f32.mxu1 %v24124_v22 }
 0x1c8   : > { %2005 = vmatmul.mubr.f32.gmra.mrb[28].mxu0 %v24394_v6  ;;  %14717 = vmatprep.subr.bf16.mxu1 %v24278_v48 }
 0x1c9   : > { %2010 = vmatprep.mubr.f32.mxu0 %v24124_v22 }
 0x1cc   : > { %2012 = vmatmul.mubr.f32.gmra.mrb[30].mxu0 %v24395_v57 }
 0x1ce   : > { %3604 = vmatmul.mubr.f32.vlgmr.msra.gmra.mrb[32].mxu1 %v3427_v41 }
 0x1cf   : > { %14719 = vmatpush1.bf16.msra.mxu1 %v24344_v46  ;;  %3678 = vmatprep.mubr.f32.mxu1 %v24124_v22 }
 0x1d0   : > { %14721 = vmatprep.subr.bf16.mxu1 %v24401_v11 }
 0x1d6   : > { %3682 = vmatmul.mubr.f32.vlgmr.msra.gmra.mrb[32].mxu1 %v3428_v5 }
 0x1d7   : > { %14723 = vmatpush1.bf16.msra.mxu1 %v24402_v37  ;;  %3764 = vmatprep.mubr.f32.mxu1 %v24124_v22 }
 0x1d8   : > { %14725 = vmatprep.subr.bf16.mxu1 %v24278_v48 }
 0x1de   : > { %3766 = vmatmul.mubr.f32.vlgmr.msra.gmra.mrb[32].mxu1 %v3426_v40 }
 0x1df   : > { %14727 = vmatpush1.bf16.msra.mxu1 %v24344_v46  ;;  %3840 = vmatprep.mubr.f32.mxu1 %v24124_v22 }
 0x1e6   : > { %3842 = vmatmul.mubr.f32.vlgmr.msra.gmra.mrb[32].mxu1 %v3426_v40 }
 0x251   : > { %v18545_v49 = vpop.f32.mrb[0].mxu1 }
 0x252   : > { %v18547_v35 = vpop.f32.mrb[1].mxu1 }
 0x253   : > { %24403 = vst [vmem:[#allocation21_spill] sm:$0xff] %v18547_v35 }
 0x255   : > { %v18549_v51 = vpop.f32.mrb[2].mxu1 }
 0x256   : > { %v18551_v33 = vpop.f32.mrb[3].mxu1 }
 0x257   : > { %24404 = vst [vmem:[#allocation29_spill] sm:$0xff] %v18551_v33 }
 0x259   : > { %v18553_v61 = vpop.f32.mrb[4].mxu1 }
 0x25a   : > { %v18555_v34 = vpop.f32.mrb[5].mxu1 }
 0x25b   : > { %24405 = vst [vmem:[#allocation33_spill] sm:$0xff] %v18555_v34 }
 0x25d   : > { %v18557_v60 = vpop.f32.mrb[6].mxu1 }
 0x25e   : > { %v18559_v3 = vpop.f32.mrb[7].mxu1 }
 0x25f   : > { %24406 = vst [vmem:[#allocation38_spill] sm:$0xff] %v18559_v3 }
 0x261   : > { %v18561_v12 = vpop.f32.mrb[8].mxu1 }
 0x262   : > { %24407 = vst [vmem:[#allocation45_spill] sm:$0xff] %v18561_v12  ;;  %v18563_v21 = vpop.f32.mrb[9].mxu1 }
 0x263   : > { %24408 = vst [vmem:[#allocation39_spill] sm:$0xff] %v18563_v21  ;;  %v18565_v4 = vpop.f32.mrb[0].mxu0 }
 0x264   : > { %24409 = vst [vmem:[#allocation47_spill] sm:$0xff] %v18565_v4  ;;  %v3850_v8 = vmul.f32 %v18545_v49, %v18565_v4  ;;  %v18569_v23 = vpop.f32.mrb[1].mxu0 }
 0x265   : > { %24410 = vst [vmem:[#allocation43_spill] sm:$0xff] %v18569_v23  ;;  %v3851_v10 = vmul.f32 %v18547_v35, %v18569_v23  ;;  %v18573_v30 = vpop.f32.mrb[10].mxu1 }
 0x266   : > { %24411 = vst [vmem:[#allocation52_spill] sm:$0xff] %v18573_v30  ;;  %v18575_v31 = vpop.f32.mrb[11].mxu1 }
 0x267   : > { %24412 = vst [vmem:[#allocation46_spill] sm:$0xff] %v18575_v31  ;;  %v18577_v44 = vpop.f32.mrb[2].mxu0  ;;  %v3904_v32 = vsel %vm3903_vm2, %v3851_v10, 0.0 }
 0x268   : > { %24413 = vst [vmem:[#allocation56_spill] sm:$0xff] %v18577_v44  ;;  %v3852_v45 = vmul.f32 %v18549_v51, %v18577_v44  ;;  %v18581_v58 = vpop.f32.mrb[3].mxu0 }
 0x269   : > { %24414 = vst [vmem:[#allocation49_spill] sm:$0xff] %v18581_v58  ;;  %v3853_v14 = vmul.f32 %v18551_v33, %v18581_v58  ;;  %v18585_v50 = vpop.f32.mrb[12].mxu1 }
 0x26a   : > { %24415 = vst [vmem:[#allocation59_spill] sm:$0xff] %v18585_v50  ;;  %v3882_v19 = vadd.f32 %v3852_v45, %v3850_v8  ;;  %v18587_v43 = vpop.f32.mrb[13].mxu1 }
 0x26b   : > { %24416 = vst [vmem:[#allocation54_spill] sm:$0xff] %v18587_v43  ;;  %v3905_v24 = vsel %vm3903_vm2, %v3853_v14, 0.0  ;;  %v18591_v36 = vpop.f32.mrb[4].mxu0 }
 0x26c   : > { %24417 = vst [vmem:[#allocation61_spill] sm:$0xff] %v18591_v36  ;;  %v3906_v1 = vadd.f32 %v3905_v24, %v3904_v32  ;;  %v3854_v62 = vmul.f32 %v18553_v61, %v18591_v36  ;;  %v18595_v18 = vpop.f32.mrb[5].mxu0 }
 0x26d   : > { %24418 = vst [vmem:[#allocation58_spill] sm:$0xff] %v18595_v18  ;;  %v3855_v15 = vmul.f32 %v18555_v34, %v18595_v18  ;;  %v18599_v29 = vpop.f32.mrb[14].mxu1 }
 0x26e   : > { %24419 = vst [vmem:[#allocation68_spill] sm:$0xff] %v18599_v29  ;;  %v3883_v13 = vadd.f32 %v3882_v19, %v3854_v62  ;;  %v18601_v0 = vpop.f32.mrb[15].mxu1 }
 0x26f   : > { %24420 = vst [vmem:[#allocation63_spill] sm:$0xff] %v18601_v0  ;;  %v3907_v26 = vsel %vm3903_vm2, %v3855_v15, 0.0  ;;  %v18604_v38 = vpop.f32.mrb[6].mxu0 }
 0x270   : > { %24421 = vst [vmem:[#allocation69_spill] sm:$0xff] %v18604_v38  ;;  %v3908_v2 = vadd.f32 %v3907_v26, %v3906_v1  ;;  %v3856_v52 = vmul.f32 %v18557_v60, %v18604_v38  ;;  %v18608_v55 = vpop.f32.mrb[7].mxu0 }
 0x271   : > { %24422 = vst [vmem:[#allocation65_spill] sm:$0xff] %v18608_v55  ;;  %v3857_v28 = vmul.f32 %v18559_v3, %v18608_v55  ;;  %v18612_v53 = vpop.f32.mrb[16].mxu1 }
 0x272   : > { %24423 = vst [vmem:[#allocation75_spill] sm:$0xff] %v18612_v53  ;;  %v3884_v6 = vadd.f32 %v3883_v13, %v3856_v52  ;;  %v18614_v57 = vpop.f32.mrb[17].mxu1 }
 0x273   : > { %24424 = vst [vmem:[#allocation71_spill] sm:$0xff] %v18614_v57  ;;  %v3909_v17 = vsel %vm3903_vm2, %v3857_v28, 0.0  ;;  %v18617_v20 = vpop.f32.mrb[8].mxu0 }
 0x274   : > { %24425 = vst [vmem:[#allocation79_spill] sm:$0xff] %v18617_v20  ;;  %v3910_v56 = vadd.f32 %v3909_v17, %v3908_v2  ;;  %v3858_v54 = vmul.f32 %v18561_v12, %v18617_v20  ;;  %v18621_v25 = vpop.f32.mrb[9].mxu0 }
 0x275   : > { %24426 = vst [vmem:[#allocation17_spill] sm:$0xff] %v18621_v25  ;;  %v3859_v7 = vmul.f32 %v18563_v21, %v18621_v25  ;;  %v18625_v63 = vpop.f32.mrb[18].mxu1 }
 0x276   : > { %24427 = vst [vmem:[#allocation18_spill] sm:$0xff] %v18625_v63  ;;  %v3885_v40 = vadd.f32 %v3884_v6, %v3858_v54  ;;  %v18627_v41 = vpop.f32.mrb[19].mxu1 }
 0x277   : > { %24428 = vst [vmem:[#allocation82_spill] sm:$0xff] %v18627_v41  ;;  %v3911_v5 = vsel %vm3903_vm2, %v3859_v7, 0.0  ;;  %v18630_v42 = vpop.f32.mrb[10].mxu0 }
 0x278   : > { %24429 = vst [vmem:[#allocation89_spill] sm:$0xff] %v18630_v42  ;;  %v3912_v59 = vadd.f32 %v3911_v5, %v3910_v56  ;;  %v3860_v8 = vmul.f32 %v18573_v30, %v18630_v42  ;;  %v18634_v10 = vpop.f32.mrb[11].mxu0 }
 0x279   : > { %24430 = vst [vmem:[#allocation91_spill] sm:$0xff] %v18634_v10  ;;  %v3861_v45 = vmul.f32 %v18575_v31, %v18634_v10  ;;  %v18638_v14 = vpop.f32.mrb[20].mxu1 }
 0x27a   : > { %24431 = vst [vmem:[#allocation94_spill] sm:$0xff] %v18638_v14  ;;  %v3886_v19 = vadd.f32 %v3885_v40, %v3860_v8  ;;  %v18640_v32 = vpop.f32.mrb[21].mxu1 }
 0x27b   : > { %24432 = vst [vmem:[#allocation34_spill] sm:$0xff] %v18640_v32  ;;  %v3913_v24 = vsel %vm3903_vm2, %v3861_v45, 0.0  ;;  %v18643_v1 = vpop.f32.mrb[12].mxu0 }
 0x27c   : > { %24433 = vst [vmem:[#allocation76_spill] sm:$0xff] %v18643_v1  ;;  %v3914_v62 = vadd.f32 %v3913_v24, %v3912_v59  ;;  %v3862_v15 = vmul.f32 %v18585_v50, %v18643_v1  ;;  %v18647_v13 = vpop.f32.mrb[13].mxu0  ;;  %v18674_v24 = vld [vmem:[%s23287_s3] sm:$0xff] }
 0x27d   : > { %24434 = vst [vmem:[#allocation83_spill] sm:$0xff] %v18647_v13  ;;  %v3863_v26 = vmul.f32 %v18587_v43, %v18647_v13  ;;  %v18651_v2 = vpop.f32.mrb[22].mxu1 }
 0x27e   : > { %24435 = vst [vmem:[#allocation78_spill] sm:$0xff] %v18651_v2  ;;  %v3887_v52 = vadd.f32 %v3886_v19, %v3862_v15  ;;  %v18653_v28 = vpop.f32.mrb[23].mxu1 }
 0x27f   : > { %24436 = vst [vmem:[#allocation87_spill] sm:$0xff] %v18653_v28  ;;  %v3915_v6 = vsel %vm3903_vm2, %v3863_v26, 0.0  ;;  %v18656_v17 = vpop.f32.mrb[14].mxu0 }
 0x280   : > { %24437 = vst [vmem:[#allocation20_spill] sm:$0xff] %v18656_v17  ;;  %v3916_v56 = vadd.f32 %v3915_v6, %v3914_v62  ;;  %v3864_v54 = vmul.f32 %v18599_v29, %v18656_v17  ;;  %v18660_v7 = vpop.f32.mrb[15].mxu0  ;;  %v18679_v62 = vld [vmem:[%s23287_s3 + $0x8] sm:$0xff]  ;;  %v23537_v6 = vand.u32 4294901760, %v18674_v24 }
 0x281   : > { %24438 = vst [vmem:[#allocation27_spill] sm:$0xff] %v18660_v7  ;;  %v3865_v40 = vmul.f32 %v18601_v0, %v18660_v7  ;;  %v18664_v5 = vpop.f32.mrb[24].mxu1 }
 0x282   : > { %24439 = vst [vmem:[#allocation30_spill] sm:$0xff] %v18664_v5  ;;  %v3888_v59 = vadd.f32 %v3887_v52, %v3864_v54  ;;  %v18666_v8 = vpop.f32.mrb[25].mxu1  ;;  %v23539_v54 = vand.u32 4294901760, %v18679_v62 }
 0x283   : > { %24440 = vst [vmem:[#allocation35_spill] sm:$0xff] %v18666_v8  ;;  %v3917_v45 = vsel %vm3903_vm2, %v3865_v40, 0.0  ;;  %v18669_v19 = vpop.f32.mrb[16].mxu0 }
 0x284   : > { %24441 = vst [vmem:[#allocation42_spill] sm:$0xff] %v18669_v19  ;;  %v3918_v15 = vadd.f32 %v3917_v45, %v3916_v56  ;;  %v3866_v26 = vmul.f32 %v18612_v53, %v18669_v19  ;;  %v18683_v52 = vpop.f32.mrb[17].mxu0  ;;  %v18696_v56 = vsub.f32 %v18674_v24, %v23537_v6  ;;  %v18701_v45 = vsub.f32 %v18679_v62, %v23539_v54 }
 0x285   : > { %24442 = vst [vmem:[#allocation36_spill] sm:$0xff] %v18683_v52  ;;  %v3867_v40 = vmul.f32 %v18614_v57, %v18683_v52  ;;  %v18689_v37 = vpop.f32.mrb[26].mxu1 }
 0x286   : > { %24443 = vst [vmem:[#allocation8_spill] sm:$0xff] %v18689_v37  ;;  %v3889_v11 = vadd.f32 %v3888_v59, %v3866_v26  ;;  %v18691_v27 = vpop.f32.mrb[27].mxu1  ;;  %24445 = vst [vmem:[#allocation9_spill] sm:$0xff] %v18696_v56  ;;  %v18709_v59 = vld [vmem:[%s23287_s3 + $0x10] sm:$0xff]  ;;  %v18714_v26 = vld [vmem:[%s23287_s3 + $0x18] sm:$0xff]  ;;  %v23556_v48 = vand.u32 4294901760, %v18696_v56 }
 0x287   : > { %24444 = vst [vmem:[#allocation44_spill] sm:$0xff] %v18691_v27  ;;  %24446 = vst [vmem:[#allocation40_spill] sm:$0xff] %v18701_v45  ;;  %v3919_v39 = vsel %vm3903_vm2, %v3867_v40, 0.0  ;;  %v18704_v47 = vpop.f32.mrb[18].mxu0  ;;  %v23548_v40 = vand.u32 4294901760, %v18709_v59  ;;  %v23549_v9 = vand.u32 4294901760, %v18714_v26 }
 0x288   : > { %24447 = vst [vmem:[#allocation10_spill] sm:$0xff] %v18704_v47  ;;  %v3920_v6 = vadd.f32 %v3919_v39, %v3918_v15  ;;  %v3868_v16 = vmul.f32 %v18625_v63, %v18704_v47  ;;  %v18718_v54 = vpop.f32.mrb[19].mxu0  ;;  %v23559_v57 = vand.u32 4294901760, %v18701_v45 }
 0x289   : > { %24448 = vst [vmem:[#allocation50_spill] sm:$0xff] %v18718_v54  ;;  %v3869_v22 = vmul.f32 %v18627_v41, %v18718_v54  ;;  %v18724_v46 = vpop.f32.mrb[28].mxu1  ;;  %v18733_v15 = vsub.f32 %v18709_v59, %v23548_v40  ;;  %v18738_v43 = vsub.f32 %v18714_v26, %v23549_v9  ;;  %v4234_v40 = vsub.f32 %v18696_v56, %v23556_v48 }
 0x28a   : > { %24449 = vst [vmem:[#allocation11_spill] sm:$0xff] %v18724_v46  ;;  %v3890_v0 = vadd.f32 %v3889_v11, %v3868_v16  ;;  %v18728_v39 = vpop.f32.mrb[29].mxu1  ;;  %v18746_v16 = vld [vmem:[%s23287_s3 + $0x20] sm:$0xff]  ;;  %v18751_v11 = vld [vmem:[%s23287_s3 + $0x28] sm:$0xff] }
 0x28b   : > { %24450 = vst [vmem:[#allocation41_spill] sm:$0xff] %v18728_v39  ;;  %24451 = vst [vmem:[#allocation12_spill] sm:$0xff] %v18733_v15  ;;  %v3921_v41 = vsel %vm3903_vm2, %v3869_v22, 0.0  ;;  %v18741_v31 = vpop.f32.mrb[20].mxu0  ;;  %v4241_v22 = vsub.f32 %v18701_v45, %v23559_v57  ;;  %v23563_v63 = vand.u32 4294901760, %v18746_v16  ;;  %v4235_v48 = vand.u32 4294901760, %v4234_v40 }
 0x28c   : > { %24452 = vst [vmem:[#allocation53_spill] sm:$0xff] %v18738_v43  ;;  %24453 = vst [vmem:[#allocation14_spill] sm:$0xff] %v18741_v31  ;;  %v3922_v9 = vadd.f32 %v3921_v41, %v3920_v6  ;;  %v3870_v21 = vmul.f32 %v18638_v14, %v18741_v31  ;;  %v18761_v3 = vpop.f32.mrb[21].mxu0  ;;  %v23568_v35 = vand.u32 4294901760, %v18733_v15 }
 0x28d   : > { %24454 = vst [vmem:[#allocation48_spill] sm:$0xff] %v18761_v3  ;;  %v3871_v53 = vmul.f32 %v18640_v32, %v18761_v3  ;;  %v18767_v33 = vpop.f32.mrb[30].mxu1  ;;  %v4242_v29 = vand.u32 4294901760, %v4241_v22  ;;  %v18776_v14 = vsub.f32 %v18746_v16, %v23563_v63  ;;  %v23564_v32 = vmov 0.0|0.0  }
 0x28e   : > { %24455 = vst [vmem:[#allocation16_spill] sm:$0xff] %v18767_v33  ;;  %v3891_v57 = vadd.f32 %v3890_v0, %v3870_v21  ;;  %v18770_v41 = vpop.f32.mrb[31].mxu1  ;;  %14728 = vmatprep.subr.bf16.mxu0 %v23564_v32  ;;  %14758 = vmatprep.subr.bf16.mxu1 %v23564_v32  ;;  %v18788_v21 = vld [vmem:[%s23287_s3 + $0x30] sm:$0xff]  ;;  %v18793_v0 = vld [vmem:[%s23287_s3 + $0x38] sm:$0xff]  ;;  %v24460_v22 = vand.u32 4294901760, %v18751_v11  ;;  %v24463_v3 = vand.u32 4294901760, %v18738_v43 }
 0x28f   : > { %24456 = vst [vmem:[#allocation57_spill] sm:$0xff] %v18770_v41  ;;  %24457 = vst [vmem:[#allocation19_spill] sm:$0xff] %v18776_v14  ;;  %v3923_v34 = vsel %vm3903_vm2, %v3871_v53, 0.0  ;;  %v18779_v50 = vpop.f32.mrb[22].mxu0  ;;  %v18783_v40 = vpack.c.bf16 %v4242_v29, %v4235_v48  ;;  %v4248_v53 = vsub.f32 %v18733_v15, %v23568_v35  ;;  %v23577_v6 = vand.u32 4294901760, %v18788_v21 }
 0x290   : > { %24458 = vst [vmem:[#allocation51_spill] sm:$0xff] %v18779_v50  ;;  %v18801_v63 = vsub.f32 %v18751_v11, %v24460_v22  ;;  %v3924_v48 = vadd.f32 %v3923_v34, %v3922_v9  ;;  %v3872_v29 = vmul.f32 %v18651_v2, %v18779_v50  ;;  %v18805_v32 = vpop.f32.mrb[23].mxu0  ;;  %v4255_v22 = vsub.f32 %v18738_v43, %v24463_v3 }
 0x291   : > { %24459 = vst [vmem:[#allocation23_spill] sm:$0xff] %v18783_v40  ;;  %24462 = vst [vmem:[#allocation24_spill] sm:$0xff] %v18805_v32  ;;  %v3873_v12 = vmul.f32 %v18653_v28, %v18805_v32  ;;  %14760 = vmatpush1.bf16.msra.mxu1 %v18783_v40  ;;  %v4249_v35 = vand.u32 4294901760, %v4248_v53  ;;  %v23578_v9 = vand.u32 4294901760, %v18776_v14  ;;  %v24464_v2 = vmov 0.0|0.0  }
 0x292   : > { %24461 = vst [vmem:[#allocation60_spill] sm:$0xff] %v18801_v63  ;;  %v3892_v34 = vadd.f32 %v3891_v57, %v3872_v29  ;;  %14761 = vmatprep.subr.bf16.mxu1 %v24464_v2  ;;  %v18821_v30 = vsub.f32 %v18788_v21, %v23577_v6  ;;  %v4256_v53 = vand.u32 4294901760, %v4255_v22  ;;  %v18832_v57 = vld [vmem:[%s23287_s3 + $0x40] sm:$0xff]  ;;  %v18837_v29 = vld [vmem:[%s23287_s3 + $0x48] sm:$0xff]  ;;  %v24467_v6 = vand.u32 4294901760, %v18793_v0 }
 0x293   : > { %v3925_v28 = vsel %vm3903_vm2, %v3873_v12, 0.0  ;;  %v18824_v40 = vpop.f32.mrb[24].mxu0  ;;  %v4262_v3 = vsub.f32 %v18776_v14, %v23578_v9  ;;  %v24470_v32 = vand.u32 4294901760, %v18801_v63 }
 0x294   : > { %24465 = vst [vmem:[#allocation55_spill] sm:$0xff] %v18821_v30  ;;  %24466 = vst [vmem:[#allocation26_spill] sm:$0xff] %v18824_v40  ;;  %v18842_v12 = vsub.f32 %v18793_v0, %v24467_v6  ;;  %v3926_v22 = vadd.f32 %v3925_v28, %v3924_v48  ;;  %v3874_v54 = vmul.f32 %v18664_v5, %v18824_v40  ;;  %v18846_v9 = vpop.f32.mrb[25].mxu0  ;;  %v23598_v6 = vand.u32 4294901760, %v18837_v29 }
 0x295   : > { %24469 = vst [vmem:[#allocation28_spill] sm:$0xff] %v18846_v9  ;;  %v4269_v52 = vsub.f32 %v18801_v63, %v24470_v32  ;;  %v3875_v13 = vmul.f32 %v18666_v8, %v18846_v9  ;;  %v18854_v10 = vpack.c.bf16 %v4256_v53, %v4249_v35  ;;  %v4263_v25 = vand.u32 4294901760, %v4262_v3 }
 0x296   : > { %24468 = vst [vmem:[#allocation66_spill] sm:$0xff] %v18842_v12  ;;  %v3893_v28 = vadd.f32 %v3892_v34, %v3874_v54  ;;  %v24472_v48 = vand.u32 4294901760, %v18674_v24  ;;  %v24473_v5 = vand.u32 4294901760, %v18679_v62  ;;  %v23605_v32 = vand.u32 4294901760, %v18821_v30  ;;  %v18872_v54 = vld [vmem:[%s23287_s3 + $0x50] sm:$0xff] }
 0x297   : > { %24471 = vst [vmem:[#allocation62_spill] sm:$0xff] %v18854_v10  ;;  %v4270_v18 = vand.u32 4294901760, %v4269_v52  ;;  %v3927_v7 = vsel %vm3903_vm2, %v3875_v13, 0.0  ;;  %v18865_v58 = vpop.f32.mrb[26].mxu0  ;;  %14763 = vmatpush1.bf16.msra.mxu1 %v18854_v10  ;;  %v23606_v35 = vand.u32 4294901760, %v18842_v12  ;;  %v24476_v24 = vand.u32 4294901760, %v18832_v57 }
 0x298   : > { %v18861_v55 = vpack.c.bf16 %v24473_v5, %v24472_v48  ;;  %24475 = vst [vmem:[#allocation67_spill] sm:$0xff] %v18865_v58  ;;  %v18877_v5 = vld [vmem:[%s23287_s3 + $0x58] sm:$0xff]  ;;  %v18887_v62 = vsub.f32 %v18837_v29, %v23598_v6  ;;  %v3928_v52 = vadd.f32 %v3927_v7, %v3926_v22  ;;  %v3876_v34 = vmul.f32 %v18689_v37, %v18865_v58  ;;  %v18891_v53 = vpop.f32.mrb[27].mxu0 }
 0x299   : > { %v18882_v13 = vsub.f32 %v18832_v57, %v24476_v24  ;;  %24479 = vst [vmem:[#allocation37_spill] sm:$0xff] %v18891_v53  ;;  %14764 = vmatprep.subr.bf16.mxu1 %v24464_v2  ;;  %v18895_v3 = vpack.c.bf16 %v4270_v18, %v4263_v25  ;;  %v3877_v24 = vmul.f32 %v18691_v27, %v18891_v53  ;;  %v24481_v18 = vand.u32 4294901760, %v18709_v59 }
 0x29a   : > { %24474 = vst [vmem:[#allocation31_spill] sm:$0xff] %v18861_v55  ;;  %24478 = vst [vmem:[#allocation64_spill] sm:$0xff] %v18887_v62  ;;  %14730 = vmatpush1.bf16.msra.mxu0 %v18861_v55  ;;  %v4276_v7 = vsub.f32 %v18821_v30, %v23605_v32  ;;  %v4283_v22 = vsub.f32 %v18842_v12, %v23606_v35  ;;  %v3894_v10 = vadd.f32 %v3893_v28, %v3876_v34 }
 0x29b   : > { %24477 = vst [vmem:[#allocation32_spill] sm:$0xff] %v18882_v13  ;;  %24480 = vst [vmem:[#allocation72_spill] sm:$0xff] %v18895_v3  ;;  %14731 = vmatprep.subr.bf16.mxu0 %v24464_v2  ;;  %v24482_v25 = vand.u32 4294901760, %v18714_v26  ;;  %v23608_v55 = vand.u32 4294901760, %v18882_v13  ;;  %v23617_v27 = vand.u32 4294901760, %v18887_v62  ;;  %v3929_v8 = vsel %vm3903_vm2, %v3877_v24, 0.0  ;;  %14766 = vmatpush1.bf16.msra.mxu1 %v18895_v3 }
 0x29c   : > { %v18917_v32 = vpop.f32.mrb[28].mxu0  ;;  %v4277_v35 = vand.u32 4294901760, %v4276_v7  ;;  %v4284_v37 = vand.u32 4294901760, %v4283_v22  ;;  %v24485_v28 = vand.u32 4294901760, %v18872_v54  ;;  %v18928_v26 = vld [vmem:[%s23287_s3 + $0x60] sm:$0xff]  ;;  %v3930_v34 = vadd.f32 %v3929_v8, %v3928_v52  ;;  %14767 = vmatprep.subr.bf16.mxu1 %v24464_v2  ;;  %v18942_v22 = vld [vmem:[%s23287_s3 + $0x68] sm:$0xff] }
 0x29d   : > { %v18912_v48 = vpack.c.bf16 %v24482_v25, %v24481_v18  ;;  %24484 = vst [vmem:[#allocation77_spill] sm:$0xff] %v18917_v32  ;;  %v3878_v24 = vmul.f32 %v18724_v46, %v18917_v32  ;;  %v18932_v18 = vpop.f32.mrb[29].mxu0  ;;  %v4290_v7 = vsub.f32 %v18882_v13, %v23608_v55  ;;  %v24489_v3 = vand.u32 4294901760, %v18746_v16 }
 0x29e   : > { %v18923_v59 = vsub.f32 %v18872_v54, %v24485_v28  ;;  %24487 = vst [vmem:[#allocation81_spill] sm:$0xff] %v18932_v18  ;;  %v3879_v52 = vmul.f32 %v18728_v39, %v18932_v18  ;;  %v18948_v25 = vpack.c.bf16 %v4284_v37, %v4277_v35  ;;  %v4297_v28 = vsub.f32 %v18887_v62, %v23617_v27 }
 0x29f   : > { %24483 = vst [vmem:[#allocation70_spill] sm:$0xff] %v18912_v48  ;;  %14733 = vmatpush1.bf16.msra.mxu0 %v18912_v48  ;;  %v3895_v6 = vadd.f32 %v3894_v10, %v3878_v24  ;;  %v24490_v48 = vand.u32 4294901760, %v18751_v11  ;;  %v4291_v8 = vand.u32 4294901760, %v4290_v7  ;;  %v24492_v39 = vand.u32 4294901760, %v18877_v5  ;;  %v18966_v35 = vpop.f32.mrb[30].mxu0 }
 0x2a0   : > { %24486 = vst [vmem:[#allocation73_spill] sm:$0xff] %v18923_v59  ;;  %14734 = vmatprep.subr.bf16.mxu0 %v24464_v2  ;;  %24488 = vst [vmem:[#allocation74_spill] sm:$0xff] %v18948_v25  ;;  %v23618_v55 = vand.u32 4294901760, %v18923_v59  ;;  %v3931_v37 = vsel %vm3903_vm2, %v3879_v52, 0.0  ;;  %14769 = vmatpush1.bf16.msra.mxu1 %v18948_v25  ;;  %v4298_v27 = vand.u32 4294901760, %v4297_v28  ;;  %v4170_v16 = vand.u32 4294901760, %v18942_v22 }
 0x2a1   : > { %v18958_v46 = vpack.c.bf16 %v24490_v48, %v24489_v3  ;;  %v18963_v18 = vsub.f32 %v18877_v5, %v24492_v39  ;;  %24494 = vst [vmem:[#allocation88_spill] sm:$0xff] %v18966_v35  ;;  %v3932_v11 = vadd.f32 %v3931_v37, %v3930_v34  ;;  %v3880_v3 = vmul.f32 %v18767_v33, %v18966_v35  ;;  %v18975_v48 = vpop.f32.mrb[31].mxu0 }
 0x2a2   : > { %v4304_v10 = vsub.f32 %v18923_v59, %v23618_v55  ;;  %24495 = vst [vmem:[#allocation90_spill] sm:$0xff] %v18975_v48  ;;  %14770 = vmatprep.subr.bf16.mxu1 %v24464_v2  ;;  %v24496_v24 = vand.u32 4294901760, %v18928_v26  ;;  %v3881_v52 = vmul.f32 %v18770_v41, %v18975_v48  ;;  %v24498_v34 = vand.u32 4294901760, %v18788_v21  ;;  %v18997_v55 = vld [vmem:[%s23287_s3 + $0x70] sm:$0xff]  ;;  %v405_v21 = vld [vmem:[%s23287_s3 + $0x78] sm:$0xff] }
 0x2a3   : > { %24491 = vst [vmem:[#allocation86_spill] sm:$0xff] %v18958_v46  ;;  %24493 = vst [vmem:[#allocation80_spill] sm:$0xff] %v18963_v18  ;;  %14736 = vmatpush1.bf16.msra.mxu0 %v18958_v46  ;;  %v24499_v28 = vand.u32 4294901760, %v18793_v0  ;;  %v18999_v39 = vadd.f32 %v3895_v6, %v3880_v3  ;;  %v24502_v59 = vand.u32 4294901760, %v18963_v18  ;;  %v19012_v0 = vld [vmem:[%s23287_s3 + $0x80] sm:$0xff] }
 0x2a4   : > { %v18983_v7 = vsub.f32 %v18928_v26, %v24496_v24  ;;  %14737 = vmatprep.subr.bf16.mxu0 %v24464_v2  ;;  %v19001_v24 = vpack.c.bf16 %v4298_v27, %v4291_v8  ;;  %v4305_v25 = vand.u32 4294901760, %v4304_v10  ;;  %v19017_v27 = vsub.f32 %v18942_v22, %v4170_v16 }
 0x2a5   : > { %v18992_v37 = vpack.c.bf16 %v24499_v28, %v24498_v34  ;;  %v4311_v46 = vsub.f32 %v18963_v18, %v24502_v59  ;;  %v3933_v34 = vsel %vm3903_vm2, %v3881_v52, 0.0  ;;  %v24504_v59 = vand.u32 4294901760, %v18832_v57 }
 0x2a6   : > { %24497 = vst [vmem:[#allocation93_spill] sm:$0xff] %v18983_v7  ;;  %24501 = vst [vmem:[#allocation85_spill] sm:$0xff] %v19001_v24  ;;  %v23627_v6 = vand.u32 4294901760, %v18983_v7  ;;  %v19019_v8 = vadd.f32 %v3933_v34, %v3932_v11  ;;  %v24505_v10 = vand.u32 4294901760, %v18837_v29  ;;  %14772 = vmatpush1.bf16.msra.mxu1 %v19001_v24  ;;  %v4173_v52 = vand.u32 4294901760, %v18997_v55  ;;  %v407_v29 = vld [vmem:[%s23287_s3 + $0x88] sm:$0xff] }
 0x2a7   : > { %24500 = vst [vmem:[#allocation95_spill] sm:$0xff] %v18992_v37  ;;  %24503 = vst [vmem:[#allocation96_spill] sm:$0xff] %v19017_v27  ;;  %14739 = vmatpush1.bf16.msra.mxu0 %v18992_v37  ;;  %v4312_v28 = vand.u32 4294901760, %v4311_v46  ;;  %14773 = vmatprep.subr.bf16.mxu1 %v24464_v2  ;;  %v23634_v11 = vand.u32 4294901760, %v19017_v27  ;;  %v4176_v57 = vand.u32 4294901760, %v405_v21  ;;  %v4179_v34 = vand.u32 4294901760, %v19012_v0 }
 0x2a8   : > { %v19026_v3 = vpack.c.bf16 %v24505_v10, %v24504_v59  ;;  %14740 = vmatprep.subr.bf16.mxu0 %v24464_v2  ;;  %v4318_v22 = vsub.f32 %v18983_v7, %v23627_v6  ;;  %v19043_v59 = vsub.f32 %v18997_v55, %v4173_v52  ;;  %v408_v10 = vld [vmem:[%s23287_s3 + $0x90] sm:$0xff]  ;;  %v24510_v18 = vand.u32 4294901760, %v18872_v54  ;;  %v409_v54 = vld [vmem:[%s23287_s3 + $0x98] sm:$0xff] }
 0x2a9   : > { %v19040_v46 = vpack.c.bf16 %v4312_v28, %v4305_v25  ;;  %v4325_v6 = vsub.f32 %v19017_v27, %v23634_v11  ;;  %v19051_v7 = vsub.f32 %v405_v21, %v4176_v57  ;;  %v24511_v25 = vand.u32 4294901760, %v18877_v5 }
 0x2aa   : > { %24506 = vst [vmem:[#allocation97_spill] sm:$0xff] %v19026_v3  ;;  %24508 = vst [vmem:[#allocation99_spill] sm:$0xff] %v19043_v59  ;;  %v4319_v24 = vand.u32 4294901760, %v4318_v22  ;;  %v23645_v55 = vand.u32 4294901760, %v19043_v59  ;;  %v4182_v37 = vand.u32 4294901760, %v407_v29  ;;  %v19066_v11 = vsub.f32 %v19012_v0, %v4179_v34 }
 0x2ab   : > { %24507 = vst [vmem:[#allocation98_spill] sm:$0xff] %v19040_v46  ;;  %24509 = vst [vmem:[#allocation100_spill] sm:$0xff] %v19051_v7  ;;  %14742 = vmatpush1.bf16.msra.mxu0 %v19026_v3  ;;  %v19058_v28 = vpack.c.bf16 %v24511_v25, %v24510_v18  ;;  %14775 = vmatpush1.bf16.msra.mxu1 %v19040_v46  ;;  %v4326_v22 = vand.u32 4294901760, %v4325_v6  ;;  %v23643_v21 = vand.u32 4294901760, %v19051_v7  ;;  %v4185_v5 = vand.u32 4294901760, %v408_v10 }
 0x2ac   : > { %14743 = vmatprep.subr.bf16.mxu0 %v24464_v2  ;;  %14776 = vmatprep.subr.bf16.mxu1 %v24464_v2  ;;  %v4332_v18 = vsub.f32 %v19043_v59, %v23645_v55  ;;  %v23644_v46 = vand.u32 4294901760, %v19066_v11  ;;  %v19080_v27 = vsub.f32 %v407_v29, %v4182_v37  ;;  %v24515_v0 = vand.u32 4294901760, %v18928_v26 }
 0x2ad   : > { %24512 = vst [vmem:[#allocation101_spill] sm:$0xff] %v19058_v28  ;;  %v19074_v25 = vpack.c.bf16 %v4326_v22, %v4319_v24  ;;  %v4339_v6 = vsub.f32 %v19051_v7, %v23643_v21  ;;  %v4188_v33 = vand.u32 4294901760, %v409_v54  ;;  %v19093_v21 = vsub.f32 %v408_v10, %v4185_v5 }
 0x2ae   : > { %24514 = vst [vmem:[#allocation103_spill] sm:$0xff] %v19080_v27  ;;  %v19085_v3 = vpack.c.bf16 %v4170_v16, %v24515_v0  ;;  %v4333_v41 = vand.u32 4294901760, %v4332_v18  ;;  %v4346_v22 = vsub.f32 %v19066_v11, %v23644_v46  ;;  %v23646_v29 = vand.u32 4294901760, %v19080_v27 }
 0x2af   : > { %24513 = vst [vmem:[#allocation102_spill] sm:$0xff] %v19074_v25  ;;  %14745 = vmatpush1.bf16.msra.mxu0 %v19058_v28  ;;  %14778 = vmatpush1.bf16.msra.mxu1 %v19074_v25  ;;  %v4340_v24 = vand.u32 4294901760, %v4339_v6  ;;  %24517 = vst [vmem:[#allocation105_spill] sm:$0xff] %v19093_v21  ;;  %v19096_v26 = vsub.f32 %v409_v54, %v4188_v33  ;;  %v23649_v6 = vand.u32 4294901760, %v19093_v21  ;;  %v3897_v55 = vrot.slane %v18999_v39, 4 }
 0x2b0   : > { %24516 = vst [vmem:[#allocation104_spill] sm:$0xff] %v19085_v3  ;;  %14746 = vmatprep.subr.bf16.mxu0 %v24464_v2  ;;  %14779 = vmatprep.subr.bf16.mxu1 %v24464_v2  ;;  %v4347_v18 = vand.u32 4294901760, %v4346_v22  ;;  %v4353_v0 = vsub.f32 %v19080_v27, %v23646_v29  ;;  %v19105_v46 = vpack.c.bf16 %v4176_v57, %v4173_v52 }
 0x2b1   : > { %24518 = vst [vmem:[#allocation106_spill] sm:$0xff] %v19096_v26  ;;  %v19098_v16 = vpack.c.bf16 %v4340_v24, %v4333_v41  ;;  %v23653_v10 = vand.u32 4294901760, %v19096_v26  ;;  %v4360_v54 = vsub.f32 %v19093_v21, %v23649_v6  ;;  %v3935_v24 = vrot.slane %v19019_v8, 4 }
 0x2b2   : > { %24520 = vst [vmem:[#allocation108_spill] sm:$0xff] %v19105_v46  ;;  %v4354_v41 = vand.u32 4294901760, %v4353_v0  ;;  %v19122_v29 = vpack.c.bf16 %v4182_v37, %v4179_v34 }
 0x2b3   : > { %24519 = vst [vmem:[#allocation107_spill] sm:$0xff] %v19098_v16  ;;  %14748 = vmatpush1.bf16.msra.mxu0 %v19085_v3  ;;  %14781 = vmatpush1.bf16.msra.mxu1 %v19098_v16  ;;  %v4367_v52 = vsub.f32 %v19096_v26, %v23653_v10  ;;  %v4361_v22 = vand.u32 4294901760, %v4360_v54  ;;  %v3898_v16 = vadd.f32 %v3897_v55, %v18999_v39 }
 0x2b4   : > { %14749 = vmatprep.subr.bf16.mxu0 %v24464_v2  ;;  %14782 = vmatprep.subr.bf16.mxu1 %v24464_v2  ;;  %v19119_v57 = vpack.c.bf16 %v4354_v41, %v4347_v18  ;;  %24522 = vst [vmem:[#allocation110_spill] sm:$0xff] %v19122_v29  ;;  %v3936_v6 = vadd.f32 %v3935_v24, %v19019_v8 }
 0x2b5   : > { %v4368_v0 = vand.u32 4294901760, %v4367_v52  ;;  %v19132_v18 = vpack.c.bf16 %v4188_v33, %v4185_v5  ;;  %v3899_v41 = vrot.slane %v3898_v16, 2  ;;  %v19140_v54 = vpack.c.bf16 %v18701_v45, %v18696_v56  ;;  %v24539_v56 = vld [vmem:[#allocation36_spill] sm:$0xff] }
 0x2b6   : > { %24521 = vst [vmem:[#allocation109_spill] sm:$0xff] %v19119_v57  ;;  %v3937_v55 = vrot.slane %v3936_v6, 2  ;;  %v23652_v5 = vlaneseq  ;;  %v19145_v52 = vpack.c.bf16 %v18738_v43, %v18733_v15 }
 0x2b7   : > { %14751 = vmatpush1.bf16.msra.mxu0 %v19105_v46  ;;  %14784 = vmatpush1.bf16.msra.mxu1 %v19119_v57  ;;  %v19129_v25 = vpack.c.bf16 %v4368_v0, %v4361_v22  ;;  %24524 = vst [vmem:[#allocation112_spill] sm:$0xff] %v19132_v18  ;;  %24525 = vst [vmem:[#allocation113_spill] sm:$0xff] %v19140_v54  ;;  %v3900_v33 = vadd.f32 %v3899_v41, %v3898_v16 }
 0x2b8   : > { %14752 = vmatprep.subr.bf16.mxu0 %v24464_v2  ;;  %14785 = vmatprep.subr.bf16.mxu1 %v24464_v2  ;;  %v3938_v24 = vadd.f32 %v3937_v55, %v3936_v6  ;;  %24526 = vst [vmem:[#allocation114_spill] sm:$0xff] %v19145_v52  ;;  %v19148_v0 = vshrl.u32 %v23652_v5, 7  ;;  %v19161_v55 = vpack.c.bf16 %v18842_v12, %v18821_v30  ;;  %v24535_v30 = vld [vmem:[#allocation17_spill] sm:$0xff] }
 0x2b9   : > { %24523 = vst [vmem:[#allocation111_spill] sm:$0xff] %v19129_v25  ;;  %v3843_v37 = vpop.f32.mrb[32].mxu1  ;;  %v3901_v22 = vrot.slane %v3900_v33, 1 }
 0x2ba   : > { %v15724_v39 = vadd.f32 1e-09, %v3843_v37  ;;  %v3845_v34 = vpop.f32.mrb[33].mxu1  ;;  %24527 = vst [vmem:[#allocation115_spill] sm:$0xff] %v19148_v0  ;;  %v3939_v37 = vrot.slane %v3938_v24, 1  ;;  %v19155_v16 = vsub.s32 0, %v19148_v0 }
 0x2bb   : > { %14754 = vmatpush1.bf16.msra.mxu0 %v19122_v29  ;;  %14787 = vmatpush1.bf16.msra.mxu1 %v19129_v25  ;;  %v15725_v8 = vadd.f32 1e-09, %v3845_v34  ;;  %v3902_v34 = vadd.f32 %v3901_v22, %v3900_v33  ;;  %24530 = vst [vmem:[#allocation118_spill] sm:$0xff] %v19161_v55  ;;  %v19170_v33 = vpack.c.bf16 %v18887_v62, %v18882_v13 }
 0x2bc   : > { %14755 = vmatprep.subr.bf16.mxu0 %v24464_v2  ;;  %14818 = vmatprep.subr.bf16.mxu1 %v24464_v2  ;;  %16762 = vrcp.f32 %v15724_v39  ;;  %v19152_v39 = vpack.c.bf16 %v18801_v63, %v18776_v14  ;;  %24529 = vst [vmem:[#allocation117_spill] sm:$0xff] %v19155_v16  ;;  %v3940_v6 = vadd.f32 %v3939_v37, %v3938_v24  ;;  %v24536_v63 = vld [vmem:[#allocation91_spill] sm:$0xff] }
 0x2bd   : > { %16764 = vrcp.f32 %v15725_v8  ;;  %24531 = vst [vmem:[#allocation119_spill] sm:$0xff] %v19170_v33  ;;  %v24537_v14 = vld [vmem:[#allocation83_spill] sm:$0xff]  ;;  %v24559_v33 = vld [vmem:[#allocation54_spill] sm:$0xff] }
 0x2be   : > { %24528 = vst [vmem:[#allocation116_spill] sm:$0xff] %v19152_v39 }
 0x2bf   : > { %14757 = vmatpush1.bf16.msra.mxu0 %v19132_v18 }
 0x2c0   : > { %14788 = vmatprep.subr.bf16.mxu0 %v24464_v2 }
 0x2c6   : > { %v19157_v41 = vpop.eup %16762 }
 0x2c7   : > { %v19163_v8 = vpop.eup %16764  ;;  %v3941_v5 = vmul.f32 %v19157_v41, %v3902_v34 }
 0x2c8   : > { %v3942_v10 = vmul.f32 %v19163_v8, %v3940_v6 }
 0x2c9   : > { %v3946_v25 = vrot.slane %v3941_v5, %v19155_v16 }
 0x2cb   : > { %v3951_v22 = vsub.f32 %v18565_v4, %v3946_v25  ;;  %v3953_v24 = vsub.f32 %v18577_v44, %v3946_v25  ;;  %v3955_v37 = vsub.f32 %v18591_v36, %v3946_v25  ;;  %v3957_v0 = vsub.f32 %v18604_v38, %v3946_v25 }
 0x2cc   : > { %v3959_v57 = vsub.f32 %v18617_v20, %v3946_v25  ;;  %v3961_v34 = vsub.f32 %v18630_v42, %v3946_v25  ;;  %v3963_v6 = vsub.f32 %v18643_v1, %v3946_v25  ;;  %v3965_v5 = vsub.f32 %v18656_v17, %v3946_v25 }
 0x2cd   : > { %v3967_v12 = vsub.f32 %v18669_v19, %v3946_v25  ;;  %v3969_v62 = vsub.f32 %v18704_v47, %v3946_v25  ;;  %v3971_v4 = vsub.f32 %v18741_v31, %v3946_v25  ;;  %v3973_v44 = vsub.f32 %v18779_v50, %v3946_v25 }
 0x2ce   : > { %v19185_v36 = vsub.f32 %v18824_v40, %v3946_v25  ;;  %v19188_v38 = vsub.f32 %v18865_v58, %v3946_v25  ;;  %v19191_v42 = vsub.f32 %v18917_v32, %v3946_v25  ;;  %v19194_v1 = vsub.f32 %v18966_v35, %v3946_v25  ;;  %v24532_v35 = vld [vmem:[#allocation49_spill] sm:$0xff] }
 0x2cf   : > { %v19196_v17 = vmul.f32 %v3951_v22, %v3951_v22  ;;  %v19198_v19 = vmul.f32 %v3953_v24, %v3953_v24  ;;  %v19200_v47 = vmul.f32 %v3955_v37, %v3955_v37  ;;  %v19202_v31 = vmul.f32 %v3957_v0, %v3957_v0 }
 0x2d0   : > { %v3950_v32 = vrot.slane %v3942_v10, %v19155_v16  ;;  %v19209_v50 = vmul.f32 %v3959_v57, %v3959_v57  ;;  %v19211_v25 = vmul.f32 %v3961_v34, %v3961_v34  ;;  %v19213_v22 = vmul.f32 %v3963_v6, %v3963_v6  ;;  %v24534_v10 = vld [vmem:[#allocation65_spill] sm:$0xff] }
 0x2d1   : > { %v4015_v40 = vmul.f32 %v19196_v17, %v18545_v49  ;;  %v4017_v58 = vmul.f32 %v19198_v19, %v18549_v51  ;;  %v4019_v24 = vmul.f32 %v19200_v47, %v18553_v61  ;;  %v4021_v0 = vmul.f32 %v19202_v31, %v18557_v60  ;;  %v24533_v51 = vld [vmem:[#allocation58_spill] sm:$0xff]  ;;  %v24538_v61 = vld [vmem:[#allocation27_spill] sm:$0xff] }
 0x2d2   : > { %v3952_v49 = vsub.f32 %v18569_v23, %v3950_v32  ;;  %v3954_v20 = vsub.f32 %v24532_v35, %v3950_v32  ;;  %v3956_v13 = vsub.f32 %v24533_v51, %v3950_v32  ;;  %v3958_v57 = vsub.f32 %v24534_v10, %v3950_v32  ;;  %v24541_v23 = vld [vmem:[#allocation48_spill] sm:$0xff] }
 0x2d3   : > { %v4047_v37 = vadd.f32 %v4017_v58, %v4015_v40  ;;  %v3960_v34 = vsub.f32 %v24535_v30, %v3950_v32  ;;  %v3962_v6 = vsub.f32 %v24536_v63, %v3950_v32  ;;  %v3964_v43 = vsub.f32 %v24537_v14, %v3950_v32  ;;  %v24540_v58 = vld [vmem:[#allocation50_spill] sm:$0xff]  ;;  %v24542_v51 = vld [vmem:[#allocation24_spill] sm:$0xff] }
 0x2d4   : > { %v3966_v45 = vsub.f32 %v24538_v61, %v3950_v32  ;;  %v3968_v60 = vsub.f32 %v24539_v56, %v3950_v32  ;;  %v19229_v40 = vsub.f32 %v24540_v58, %v3950_v32  ;;  %v19232_v35 = vsub.f32 %v24541_v23, %v3950_v32  ;;  %v24544_v56 = vld [vmem:[#allocation81_spill] sm:$0xff]  ;;  %v24545_v10 = vld [vmem:[#allocation52_spill] sm:$0xff] }
 0x2d5   : > { %v4048_v15 = vadd.f32 %v4047_v37, %v4019_v24  ;;  %v19235_v18 = vsub.f32 %v24542_v51, %v3950_v32  ;;  %v19238_v30 = vsub.f32 %v18846_v9, %v3950_v32  ;;  %v19241_v63 = vsub.f32 %v18891_v53, %v3950_v32  ;;  %v24543_v24 = vld [vmem:[#allocation45_spill] sm:$0xff] }
 0x2d6   : > { %v4023_v37 = vmul.f32 %v19209_v50, %v24543_v24  ;;  %v19246_v14 = vsub.f32 %v24544_v56, %v3950_v32  ;;  %v19249_v58 = vsub.f32 %v18975_v48, %v3950_v32  ;;  %v19251_v23 = vmul.f32 %v3952_v49, %v3952_v49  ;;  %v24546_v24 = vld [vmem:[#allocation59_spill] sm:$0xff]  ;;  %v24547_v49 = vld [vmem:[#allocation21_spill] sm:$0xff]  ;;  %v24548_v48 = vld [vmem:[#allocation68_spill] sm:$0xff] }
 0x2d7   : > { %v4049_v61 = vadd.f32 %v4048_v15, %v4021_v0  ;;  %v19253_v51 = vmul.f32 %v3965_v5, %v3965_v5  ;;  %v4025_v9 = vmul.f32 %v19211_v25, %v24545_v10  ;;  %v19257_v53 = vmul.f32 %v3954_v20, %v3954_v20  ;;  %v24549_v20 = vld [vmem:[#allocation29_spill] sm:$0xff] }
 0x2d8   : > { %v19259_v59 = vmul.f32 %v3967_v12, %v3967_v12  ;;  %v4027_v15 = vmul.f32 %v19213_v22, %v24546_v24  ;;  %v19263_v56 = vmul.f32 %v3956_v13, %v3956_v13  ;;  %v19265_v32 = vmul.f32 %v3969_v62, %v3969_v62  ;;  %v24550_v24 = vld [vmem:[#allocation75_spill] sm:$0xff] }
 0x2d9   : > { %v4050_v7 = vadd.f32 %v4049_v61, %v4023_v37  ;;  %v4016_v5 = vmul.f32 %v19251_v23, %v24547_v49  ;;  %v4029_v29 = vmul.f32 %v19253_v51, %v24548_v48  ;;  %v19271_v61 = vmul.f32 %v3958_v57, %v3958_v57  ;;  %v24552_v48 = vld [vmem:[#allocation18_spill] sm:$0xff] }
 0x2da   : > { %v4018_v12 = vmul.f32 %v19257_v53, %v24549_v20  ;;  %v19275_v37 = vmul.f32 %v3971_v4, %v3971_v4  ;;  %v19279_v62 = vmul.f32 %v3960_v34, %v3960_v34  ;;  %v19283_v46 = vmul.f32 %v3973_v44, %v3973_v44  ;;  %v24553_v4 = vld [vmem:[#allocation38_spill] sm:$0xff] }
 0x2db   : > { %v4051_v0 = vadd.f32 %v4050_v7, %v4025_v9  ;;  %v4031_v9 = vmul.f32 %v19259_v59, %v24550_v24  ;;  %v24551_v7 = vld [vmem:[#allocation33_spill] sm:$0xff]  ;;  %v4033_v57 = vmul.f32 %v19265_v32, %v24552_v48  ;;  %v19288_v20 = vmul.f32 %v3962_v6, %v3962_v6  ;;  %v24554_v24 = vld [vmem:[#allocation94_spill] sm:$0xff] }
 0x2dc   : > { %v4020_v49 = vmul.f32 %v19263_v56, %v24551_v7  ;;  %v4022_v3 = vmul.f32 %v19271_v61, %v24553_v4  ;;  %v19295_v34 = vmul.f32 %v19185_v36, %v19185_v36  ;;  %v4035_v7 = vmul.f32 %v19275_v37, %v24554_v24  ;;  %v24558_v24 = vld [vmem:[#allocation30_spill] sm:$0xff] }
 0x2dd   : > { %v4052_v10 = vadd.f32 %v4051_v0, %v4027_v15  ;;  %v4068_v15 = vsel %vm3903_vm2, %v4016_v5, 0.0  ;;  %v24555_v5 = vld [vmem:[#allocation39_spill] sm:$0xff]  ;;  %v19310_v36 = vmul.f32 %v19191_v42, %v19191_v42 }
 0x2de   : > { %v4024_v6 = vmul.f32 %v19279_v62, %v24555_v5  ;;  %v19321_v5 = vmul.f32 %v3968_v60, %v3968_v60  ;;  %v24562_v60 = vld [vmem:[#allocation8_spill] sm:$0xff] }
 0x2df   : > { %v4053_v13 = vadd.f32 %v4052_v10, %v4029_v29  ;;  %v4069_v29 = vsel %vm3903_vm2, %v4018_v12, 0.0  ;;  %v19297_v10 = vmul.f32 %v3964_v43, %v3964_v43  ;;  %v24556_v43 = vld [vmem:[#allocation78_spill] sm:$0xff] }
 0x2e0   : > { %v4070_v44 = vadd.f32 %v4069_v29, %v4068_v15  ;;  %v4037_v12 = vmul.f32 %v19283_v46, %v24556_v43  ;;  %v19314_v29 = vmul.f32 %v3966_v45, %v3966_v45  ;;  %v19328_v45 = vpack.c.bf16 %v19080_v27, %v19066_v11  ;;  %v24563_v43 = vld [vmem:[#allocation63_spill] sm:$0xff] }
 0x2e1   : > { %v4054_v0 = vadd.f32 %v4053_v13, %v4031_v9  ;;  %v4071_v9 = vsel %vm3903_vm2, %v4020_v49, 0.0  ;;  %v19306_v13 = vmul.f32 %v19188_v38, %v19188_v38  ;;  %v4073_v49 = vsel %vm3903_vm2, %v4022_v3, 0.0 }
 0x2e2   : > { %v4072_v15 = vadd.f32 %v4071_v9, %v4070_v44  ;;  %v4039_v38 = vmul.f32 %v19295_v34, %v24558_v24  ;;  %v4028_v42 = vmul.f32 %v19297_v10, %v24559_v33  ;;  %v4075_v44 = vsel %vm3903_vm2, %v4024_v6, 0.0  ;;  %24560 = vst [vmem:[#allocation45_spill] sm:$0xff] %v19328_v45 }
 0x2e3   : > { %v4055_v48 = vadd.f32 %v4054_v0, %v4033_v57  ;;  %v24557_v57 = vld [vmem:[#allocation46_spill] sm:$0xff]  ;;  %v19336_v3 = vmul.f32 %v19194_v1, %v19194_v1  ;;  %v19342_v6 = vmul.f32 %v19229_v40, %v19229_v40  ;;  %v19351_v24 = vmul.f32 %v19232_v35, %v19232_v35 }
 0x2e4   : > { %v4026_v0 = vmul.f32 %v19288_v20, %v24557_v57  ;;  %v4074_v28 = vadd.f32 %v4073_v49, %v4072_v15  ;;  %v4079_v40 = vsel %vm3903_vm2, %v4028_v42, 0.0  ;;  %v24568_v42 = vld [vmem:[#allocation34_spill] sm:$0xff] }
 0x2e5   : > { %v4056_v4 = vadd.f32 %v4055_v48, %v4035_v7  ;;  %v19332_v7 = vpack.c.bf16 %v19096_v26, %v19093_v21  ;;  %v4041_v48 = vmul.f32 %v19306_v13, %v24562_v60 }
 0x2e6   : > { %v4076_v33 = vadd.f32 %v4075_v44, %v4074_v28  ;;  %v4077_v15 = vsel %vm3903_vm2, %v4026_v0, 0.0  ;;  %v24565_v28 = vld [vmem:[#allocation71_spill] sm:$0xff]  ;;  %v19360_v0 = vmul.f32 %v19235_v18, %v19235_v18  ;;  %v19374_v18 = vmul.f32 %v19241_v63, %v19241_v63 }
 0x2e7   : > { %v4057_v55 = vadd.f32 %v4056_v4, %v4037_v12  ;;  %24561 = vst [vmem:[#allocation52_spill] sm:$0xff] %v19332_v7  ;;  %v4030_v12 = vmul.f32 %v19314_v29, %v24563_v43  ;;  %v24564_v4 = vld [vmem:[#allocation11_spill] sm:$0xff]  ;;  %v19388_v63 = vmul.f32 %v19249_v58, %v19249_v58 }
 0x2e8   : > { %v4043_v57 = vmul.f32 %v19310_v36, %v24564_v4  ;;  %v4078_v49 = vadd.f32 %v4077_v15, %v4076_v33  ;;  %v24567_v33 = vld [vmem:[#allocation82_spill] sm:$0xff]  ;;  %v19367_v4 = vmul.f32 %v19238_v30, %v19238_v30  ;;  %v19381_v30 = vmul.f32 %v19246_v14, %v19246_v14  ;;  %v24572_v14 = vld [vmem:[#allocation41_spill] sm:$0xff] }
 0x2e9   : > { %v4058_v9 = vadd.f32 %v4057_v55, %v4039_v38  ;;  %v4032_v55 = vmul.f32 %v19321_v5, %v24565_v28  ;;  %v24566_v38 = vld [vmem:[#allocation16_spill] sm:$0xff]  ;;  %v4081_v35 = vsel %vm3903_vm2, %v4030_v12, 0.0  ;;  %v4036_v28 = vmul.f32 %v19351_v24, %v24568_v42 }
 0x2ea   : > { %v4045_v44 = vmul.f32 %v19336_v3, %v24566_v38  ;;  %v4080_v60 = vadd.f32 %v4079_v40, %v4078_v49  ;;  %v24569_v40 = vld [vmem:[#allocation87_spill] sm:$0xff]  ;;  %v24571_v42 = vld [vmem:[#allocation44_spill] sm:$0xff] }
 0x2eb   : > { %v4059_v1 = vadd.f32 %v4058_v9, %v4041_v48  ;;  %v4034_v48 = vmul.f32 %v19342_v6, %v24567_v33  ;;  %v4038_v12 = vmul.f32 %v19360_v0, %v24569_v40  ;;  %v4087_v33 = vsel %vm3903_vm2, %v4036_v28, 0.0 }
 0x2ec   : > { %v4082_v9 = vadd.f32 %v4081_v35, %v4080_v60 }
 0x2ed   : > { %v4060_v43 = vadd.f32 %v4059_v1, %v4043_v57  ;;  %v4083_v57 = vsel %vm3903_vm2, %v4032_v55, 0.0  ;;  %v4085_v38 = vsel %vm3903_vm2, %v4034_v48, 0.0  ;;  %v4042_v48 = vmul.f32 %v19374_v18, %v24571_v42 }
 0x2ee   : > { %v4084_v49 = vadd.f32 %v4083_v57, %v4082_v9 }
 0x2ef   : > { %v4061_v15 = vadd.f32 %v4060_v43, %v4045_v44  ;;  %v24570_v43 = vld [vmem:[#allocation35_spill] sm:$0xff]  ;;  %v4093_v58 = vsel %vm3903_vm2, %v4042_v48, 0.0 }
 0x2f0   : > { %v4086_v44 = vadd.f32 %v4085_v38, %v4084_v49  ;;  %v4040_v55 = vmul.f32 %v19367_v4, %v24570_v43 }
 0x2f1   : > { %v4062_v1 = vrot.slane %v4061_v15, 4 }
 0x2f2   : > { %v4088_v35 = vadd.f32 %v4087_v33, %v4086_v44  ;;  %v4091_v40 = vsel %vm3903_vm2, %v4040_v55, 0.0  ;;  %v24573_v44 = vld [vmem:[#allocation57_spill] sm:$0xff] }
 0x2f3   : > { %v4063_v60 = vadd.f32 %v4062_v1, %v4061_v15  ;;  %v4089_v15 = vsel %vm3903_vm2, %v4038_v12, 0.0  ;;  %v4044_v1 = vmul.f32 %v19381_v30, %v24572_v14  ;;  %v4046_v43 = vmul.f32 %v19388_v63, %v24573_v44 }
 0x2f4   : > { %v4090_v57 = vadd.f32 %v4089_v15, %v4088_v35 }
 0x2f5   : > { %v4064_v9 = vrot.slane %v4063_v60, 2  ;;  %v4095_v42 = vsel %vm3903_vm2, %v4044_v1, 0.0 }
 0x2f6   : > { %v4092_v38 = vadd.f32 %v4091_v40, %v4090_v57 }
 0x2f7   : > { %v4065_v49 = vadd.f32 %v4064_v9, %v4063_v60  ;;  %v4097_v60 = vsel %vm3903_vm2, %v4046_v43, 0.0 }
 0x2f8   : > { %v4094_v33 = vadd.f32 %v4093_v58, %v4092_v38 }
 0x2f9   : > { %v4066_v28 = vrot.slane %v4065_v49, 1 }
 0x2fa   : > { %v4096_v21 = vadd.f32 %v4095_v42, %v4094_v33 }
 0x2fb   : > { %v4067_v26 = vadd.f32 %v4066_v28, %v4065_v49 }
 0x2fc   : > { %v4098_v35 = vadd.f32 %v4097_v60, %v4096_v21 }
 0x2fd   : > { %v4105_v12 = vmul.f32 %v19157_v41, %v4067_v26 }
 0x2fe   : > { %v4099_v9 = vrot.slane %v4098_v35, 4 }
 0x2ff   : > { %16766 = vrsqrt.f32 %v4105_v12  ;;  %v4868_v55 = vmul.f32 2.0, %v4105_v12  ;;  %vm4109_vm3 = vcmp.eq.f32.partialorder %v4105_v12, inf  ;;  %v4112_v1 = vand.u32 2147483648, %v4105_v12 }
 0x300   : > { %v4100_v15 = vadd.f32 %v4099_v9, %v4098_v35  ;;  %vm4111_vm4 = vcmp.eq.f32.partialorder %v4105_v12, 0.0 }
 0x301   : > { %v4870_v14 = vadd.f32 1e-09, %v4868_v55 }
 0x302   : > { %v4101_v57 = vrot.slane %v4100_v15, 2 }
 0x303   : > { %16768 = vrcp.f32 %v4870_v14 }
 0x304   : > { %v4102_v40 = vadd.f32 %v4101_v57, %v4100_v15 }
 0x306   : > { %v4103_v44 = vrot.slane %v4102_v40, 1 }
 0x308   : > { %v4104_v48 = vadd.f32 %v4103_v44, %v4102_v40 }
 0x309   : > { %v16767_v27 = vpop.eup %16766 }
 0x30a   : > { %v4108_v49 = vmul.f32 %v16767_v27, %v4105_v12  ;;  %v4106_v38 = vmul.f32 %v19163_v8, %v4104_v48 }
 0x30c   : > { %v4110_v26 = vsel %vm4109_vm3, %v4105_v12, %v4108_v49  ;;  %16770 = vrsqrt.f32 %v4106_v38  ;;  %v4869_v21 = vmul.f32 2.0, %v4106_v38  ;;  %vm4116_vm5 = vcmp.eq.f32.partialorder %v4106_v38, inf }
 0x30d   : > { %v4113_v41 = vsel %vm4111_vm4, %v4112_v1, %v4110_v26  ;;  %v16769_v58 = vpop.eup %16768  ;;  %v4119_v27 = vand.u32 2147483648, %v4106_v38  ;;  %vm4118_vm6 = vcmp.eq.f32.partialorder %v4106_v38, 0.0 }
 0x30e   : > { %v4121_v28 = vadd.f32 1e-09, %v4113_v41  ;;  %v4871_v43 = vadd.f32 1e-09, %v4869_v21  ;;  %v19404_v33 = vrot.slane %v16769_v58, %v19155_v16 }
 0x310   : > { %16772 = vlog2.f32 %v4121_v28  ;;  %v4884_v8 = vmul.f32 %v19404_v33, %v19196_v17  ;;  %v4886_v15 = vmul.f32 %v19404_v33, %v19198_v19  ;;  %v4888_v57 = vmul.f32 %v19404_v33, %v19200_v47 }
 0x311   : > { %16774 = vrcp.f32 %v4871_v43  ;;  %v4890_v40 = vmul.f32 %v19404_v33, %v19202_v31  ;;  %v4892_v44 = vmul.f32 %v19404_v33, %v19209_v50  ;;  %v4894_v17 = vmul.f32 %v19404_v33, %v19211_v25 }
 0x312   : > { %v4916_v49 = vsub.f32 0.0, %v4884_v8  ;;  %v4918_v19 = vsub.f32 0.0, %v4886_v15  ;;  %v4896_v47 = vmul.f32 %v19404_v33, %v19213_v22  ;;  %v4898_v50 = vmul.f32 %v19404_v33, %v19253_v51 }
 0x313   : > { %v4922_v41 = vsub.f32 0.0, %v4890_v40  ;;  %v4924_v31 = vsub.f32 0.0, %v4892_v44  ;;  %v4926_v58 = vsub.f32 0.0, %v4894_v17  ;;  %v4906_v40 = vmul.f32 %v19404_v33, %v19283_v46 }
 0x314   : > { %v4930_v8 = vsub.f32 0.0, %v4898_v50 }
 0x316   : > { %v16771_v42 = vpop.eup %16770 }
 0x317   : > { %v4115_v60 = vmul.f32 %v16771_v42, %v4106_v38  ;;  %v4900_v42 = vmul.f32 %v19404_v33, %v19259_v59 }
 0x319   : > { %v4117_v9 = vsel %vm4116_vm5, %v4106_v38, %v4115_v60  ;;  %v4920_v38 = vsub.f32 0.0, %v4888_v57  ;;  %v4928_v60 = vsub.f32 0.0, %v4896_v47  ;;  %v4932_v59 = vsub.f32 0.0, %v4900_v42 }
 0x31a   : > { %v16773_v35 = vpop.eup %16772  ;;  %v4120_v12 = vsel %vm4118_vm6, %v4119_v27, %v4117_v9  ;;  %v4902_v27 = vmul.f32 %v19404_v33, %v19265_v32  ;;  %v4904_v57 = vmul.f32 %v19404_v33, %v19275_v37 }
 0x31b   : > { %v4124_v55 = vmul.f32 0.6931472, %v16773_v35  ;;  %v4122_v14 = vadd.f32 1e-09, %v4120_v12  ;;  %v16775_v26 = vpop.eup %16774 }
 0x31c   : > { %v19443_v51 = vrot.slane %v16775_v26, %v19155_v16  ;;  %v4934_v32 = vsub.f32 0.0, %v4902_v27 }
 0x31d   : > { %v4874_v48 = vadd.f32 0.9189385, %v4124_v55  ;;  %16776 = vlog2.f32 %v4122_v14  ;;  %v19447_v35 = vand.u32 4294901760, %v4124_v55 }
 0x31e   : > { %v4885_v14 = vmul.f32 %v19443_v51, %v19251_v23  ;;  %v4889_v17 = vmul.f32 %v19443_v51, %v19263_v56  ;;  %v4891_v23 = vmul.f32 %v19443_v51, %v19271_v61  ;;  %v4893_v46 = vmul.f32 %v19443_v51, %v19279_v62 }
 0x31f   : > { %v19419_v1 = vrot.slane %v4874_v48, %v19155_v16  ;;  %v19465_v48 = vsub.f32 %v4124_v55, %v19447_v35  ;;  %v4895_v55 = vmul.f32 %v19443_v51, %v19288_v20  ;;  %v4936_v56 = vsub.f32 0.0, %v4904_v57 }
 0x320   : > { %v4923_v42 = vsub.f32 0.0, %v4891_v23 }
 0x321   : > { %v19426_v21 = vsub.f32 %v4916_v49, %v19419_v1  ;;  %v19429_v28 = vsub.f32 %v4918_v19, %v19419_v1  ;;  %v19432_v25 = vsub.f32 %v4920_v38, %v19419_v1  ;;  %v19435_v43 = vsub.f32 %v4922_v41, %v19419_v1 }
 0x322   : > { %v19438_v22 = vsub.f32 %v4924_v31, %v19419_v1  ;;  %v19450_v9 = vsub.f32 %v4926_v58, %v19419_v1  ;;  %v19453_v12 = vsub.f32 %v4928_v60, %v19419_v1  ;;  %v19456_v15 = vsub.f32 %v4930_v8, %v19419_v1 }
 0x323   : > { %v4887_v49 = vmul.f32 %v19443_v51, %v19257_v53  ;;  %v19472_v19 = vsub.f32 %v4932_v59, %v19419_v1  ;;  %v4897_v38 = vmul.f32 %v19443_v51, %v19297_v10  ;;  %v19483_v53 = vsub.f32 %v4934_v32, %v19419_v1 }
 0x324   : > { %v4917_v41 = vsub.f32 0.0, %v4885_v14  ;;  %v4938_v31 = vsub.f32 0.0, %v4906_v40  ;;  %v23728_v61 = vand.u32 4294901760, %v19465_v48  ;;  %v4921_v58 = vsub.f32 0.0, %v4889_v17 }
 0x325   : > { %v4919_v62 = vsub.f32 0.0, %v4887_v49  ;;  %v4925_v10 = vsub.f32 0.0, %v4893_v46  ;;  %v19493_v60 = vsub.f32 %v4936_v56, %v19419_v1  ;;  %v4927_v8 = vsub.f32 0.0, %v4895_v55  ;;  %v24576_v49 = vld [vmem:[#allocation31_spill] sm:$0xff]  ;;  %v24577_v56 = vld [vmem:[#allocation70_spill] sm:$0xff] }
 0x326   : > { %v4929_v59 = vsub.f32 0.0, %v4897_v38  ;;  %v19498_v57 = vsub.f32 %v4938_v31, %v19419_v1  ;;  %v4223_v46 = vsub.f32 %v19465_v48, %v23728_v61  ;;  %v4901_v31 = vmul.f32 %v19443_v51, %v19321_v5  ;;  %v24579_v5 = vld [vmem:[#allocation95_spill] sm:$0xff]  ;;  %v24589_v61 = vld [vmem:[#allocation96_spill] sm:$0xff] }
 0x327   : > { %v16777_v44 = vpop.eup %16776  ;;  %24574 = vst [vmem:[#allocation59_spill] sm:$0xff] %v19493_v60 }
 0x328   : > { %v4126_v37 = vmul.f32 0.6931472, %v16777_v44  ;;  %24575 = vst [vmem:[#allocation21_spill] sm:$0xff] %v19498_v57 }
 0x32a   : > { %v4128_v47 = vsel %vm3903_vm2, %v4126_v37, 0  ;;  %v4875_v26 = vadd.f32 0.9189385, %v4126_v37 }
 0x32b   : > { %v19486_v50 = vand.u32 4294901760, %v4128_v47 }
 0x32c   : > { %v19490_v20 = vrot.slane %v4875_v26, %v19155_v16  ;;  %v4224_v26 = vand.u32 4294901760, %v4223_v46  ;;  %v24582_v46 = vld [vmem:[#allocation101_spill] sm:$0xff] }
 0x32d   : > { %4395 = vmatprep.mubr.f32.mxu1 %v19486_v50  ;;  %v4215_v27 = vsub.f32 %v4128_v47, %v19486_v50 }
 0x32e   : > { %4397 = vmatmul.mubr.f32.vlgmr.msra.gmra.mrb[34].mxu1 %v19447_v35  ;;  %v19502_v14 = vsub.f32 %v4917_v41, %v19490_v20  ;;  %v19505_v32 = vsub.f32 %v4919_v62, %v19490_v20  ;;  %v19508_v40 = vsub.f32 %v4921_v58, %v19490_v20  ;;  %v19511_v44 = vsub.f32 %v4923_v42, %v19490_v20  ;;  %v24578_v58 = vld [vmem:[#allocation86_spill] sm:$0xff] }
 0x32f   : > { %14820 = vmatpush1.bf16.msra.mxu1 %v24576_v49  ;;  %v4216_v17 = vand.u32 4294901760, %v4215_v27  ;;  %v19515_v37 = vsub.f32 %v4925_v10, %v19490_v20  ;;  %v19518_v23 = vsub.f32 %v4927_v8, %v19490_v20  ;;  %v19525_v55 = vsub.f32 %v4929_v59, %v19490_v20  ;;  %v24580_v59 = vld [vmem:[#allocation97_spill] sm:$0xff] }
 0x330   : > { %14821 = vmatprep.subr.bf16.mxu1 %v24464_v2  ;;  %v4899_v41 = vmul.f32 %v19443_v51, %v19314_v29  ;;  %v4903_v62 = vmul.f32 %v19443_v51, %v19342_v6  ;;  %v4933_v10 = vsub.f32 0.0, %v4901_v31  ;;  %v24586_v31 = vld [vmem:[#allocation80_spill] sm:$0xff] }
 0x331   : > { %4603 = vmatprep.mubr.f32.mxu1 %v4216_v17  ;;  %v4217_v38 = vsub.f32 %v4215_v27, %v4216_v17  ;;  %v24581_v17 = vld [vmem:[#allocation118_spill] sm:$0xff] }
 0x332   : > { %v4931_v42 = vsub.f32 0.0, %v4899_v41  ;;  %v4935_v8 = vsub.f32 0.0, %v4903_v62  ;;  %v19545_v6 = vsub.f32 %v4933_v10, %v19490_v20  ;;  %v24585_v41 = vld [vmem:[#allocation73_spill] sm:$0xff] }
 0x333   : > { %14823 = vmatpush1.bf16.msra.mxu1 %v24577_v56  ;;  %v4218_v47 = vand.u32 4294901760, %v4217_v38  ;;  %v4905_v38 = vmul.f32 %v19443_v51, %v19351_v24  ;;  %v19566_v62 = vpack.c.bf16 %v24586_v31, %v24585_v41  ;;  %v24591_v24 = vld [vmem:[#allocation108_spill] sm:$0xff] }
 0x334   : > { %14824 = vmatprep.subr.bf16.mxu1 %v24464_v2  ;;  %v19540_v29 = vsub.f32 %v4931_v42, %v19490_v20  ;;  %v4907_v42 = vmul.f32 %v19443_v51, %v19360_v0 }
 0x335   : > { %4219 = vmatprep.mubr.f32.mxu0 %v4218_v47  ;;  %v24583_v47 = vld [vmem:[#allocation119_spill] sm:$0xff]  ;;  %24587 = vst [vmem:[#allocation68_spill] sm:$0xff] %v19566_v62  ;;  %v4937_v10 = vsub.f32 0.0, %v4905_v38  ;;  %v4910_v38 = vmul.f32 %v19404_v33, %v19306_v13 }
 0x336   : > { %4225 = vmatmul.mubr.f32.vlgmr.msra.gmra.mrb[32].mxu0 %v4224_v26  ;;  %v24584_v26 = vld [vmem:[#allocation104_spill] sm:$0xff]  ;;  %v4939_v0 = vsub.f32 0.0, %v4907_v42 }
 0x337   : > { %14790 = vmatpush1.bf16.msra.mxu0 %v19140_v54  ;;  %14826 = vmatpush1.bf16.msra.mxu1 %v24578_v58  ;;  %v4942_v13 = vsub.f32 0.0, %v4910_v38  ;;  %v4915_v38 = vmul.f32 %v19443_v51, %v19388_v63 }
 0x338   : > { %4508 = vmatprep.mubr.f32.mxu0 %v4215_v27  ;;  %14791 = vmatprep.subr.bf16.mxu0 %v24464_v2  ;;  %v19550_v27 = vsub.f32 %v4935_v8, %v19490_v20  ;;  %v24588_v8 = vld [vmem:[#allocation93_spill] sm:$0xff] }
 0x339   : > { %14827 = vmatprep.subr.bf16.mxu1 %v24464_v2  ;;  %v19574_v16 = vpack.c.bf16 %v24589_v61, %v24588_v8 }
 0x33b   : > { %14793 = vmatpush1.bf16.msra.mxu0 %v19145_v52  ;;  %14829 = vmatpush1.bf16.msra.mxu1 %v24579_v5  ;;  %24590 = vst [vmem:[#allocation29_spill] sm:$0xff] %v19574_v16  ;;  %v24594_v52 = vld [vmem:[#allocation99_spill] sm:$0xff] }
 0x33c   : > { %14794 = vmatprep.subr.bf16.mxu0 %v24464_v2  ;;  %14830 = vmatprep.subr.bf16.mxu1 %v24464_v2 }
 0x33f   : > { %14796 = vmatpush1.bf16.msra.mxu0 %v19152_v39  ;;  %14832 = vmatpush1.bf16.msra.mxu1 %v24580_v59  ;;  %v4908_v39 = vmul.f32 %v19404_v33, %v19295_v34  ;;  %v24595_v34 = vld [vmem:[#allocation100_spill] sm:$0xff] }
 0x340   : > { %14797 = vmatprep.subr.bf16.mxu0 %v24464_v2  ;;  %14833 = vmatprep.subr.bf16.mxu1 %v24464_v2  ;;  %v19598_v54 = vpack.c.bf16 %v24595_v34, %v24594_v52 }
 0x341   : > { %v4940_v60 = vsub.f32 0.0, %v4908_v39  ;;  %v4914_v39 = vmul.f32 %v19404_v33, %v19336_v3  ;;  %v24598_v3 = vand.u32 4294901760, %v19465_v48 }
 0x342   : > { %24596 = vst [vmem:[#allocation33_spill] sm:$0xff] %v19598_v54 }
 0x343   : > { %14799 = vmatpush1.bf16.msra.mxu0 %v24581_v17  ;;  %14835 = vmatpush1.bf16.msra.mxu1 %v24582_v46  ;;  %v4909_v17 = vmul.f32 %v19443_v51, %v19367_v4  ;;  %v24593_v4 = vld [vmem:[#allocation110_spill] sm:$0xff] }
 0x344   : > { %14800 = vmatprep.subr.bf16.mxu0 %v24464_v2  ;;  %14836 = vmatprep.subr.bf16.mxu1 %v24464_v2 }
 0x345   : > { %v4941_v57 = vsub.f32 0.0, %v4909_v17  ;;  %v24597_v17 = vld [vmem:[#allocation112_spill] sm:$0xff] }
 0x347   : > { %14802 = vmatpush1.bf16.msra.mxu0 %v24583_v47  ;;  %14838 = vmatpush1.bf16.msra.mxu1 %v24584_v26  ;;  %v19579_v47 = vsub.f32 %v4937_v10, %v19490_v20  ;;  %v4912_v10 = vmul.f32 %v19404_v33, %v19310_v36  ;;  %v19603_v42 = vsub.f32 %v4941_v57, %v19490_v20 }
 0x348   : > { %14803 = vmatprep.subr.bf16.mxu0 %v24464_v2  ;;  %14839 = vmatprep.subr.bf16.mxu1 %v24464_v2  ;;  %v19606_v36 = vsub.f32 %v4940_v60, %v19419_v1  ;;  %v4913_v57 = vmul.f32 %v19443_v51, %v19381_v30 }
 0x34b   : > { %14805 = vmatpush1.bf16.msra.mxu0 %v19566_v62  ;;  %14841 = vmatpush1.bf16.msra.mxu1 %v24591_v24  ;;  %v19590_v62 = vsub.f32 %v4939_v0, %v19490_v20  ;;  %v4911_v0 = vmul.f32 %v19443_v51, %v19374_v18 }
 0x34c   : > { %14806 = vmatprep.subr.bf16.mxu0 %v24464_v2  ;;  %14842 = vmatprep.subr.bf16.mxu1 %v24464_v2 }
 0x34d   : > { %24592 = vst [vmem:[#allocation75_spill] sm:$0xff] %v19590_v62  ;;  %v4944_v62 = vsub.f32 0.0, %v4912_v10  ;;  %v4943_v60 = vsub.f32 0.0, %v4911_v0  ;;  %v4945_v10 = vsub.f32 0.0, %v4913_v57  ;;  %v4947_v0 = vsub.f32 0.0, %v4915_v38 }
 0x34f   : > { %14808 = vmatpush1.bf16.msra.mxu0 %v19574_v16  ;;  %14844 = vmatpush1.bf16.msra.mxu1 %v24593_v4  ;;  %v19611_v16 = vsub.f32 %v4942_v13, %v19419_v1  ;;  %v19622_v18 = vsub.f32 %v4944_v62, %v19419_v1  ;;  %v19629_v33 = vsub.f32 %v4943_v60, %v19490_v20  ;;  %v4946_v13 = vsub.f32 0.0, %v4914_v39  ;;  %v24599_v62 = vld [vmem:[#allocation9_spill] sm:$0xff]  ;;  %v24601_v60 = vld [vmem:[#allocation40_spill] sm:$0xff] }
 0x350   : > { %14809 = vmatprep.subr.bf16.mxu0 %v24464_v2  ;;  %14845 = vmatprep.subr.bf16.mxu1 %v24464_v2  ;;  %v19636_v30 = vsub.f32 %v4945_v10, %v19490_v20  ;;  %v19643_v51 = vsub.f32 %v4947_v0, %v19490_v20  ;;  %v24600_v39 = vand.u32 4294901760, %v24599_v62  ;;  %v24602_v57 = vand.u32 4294901760, %v24601_v60 }
 0x351   : > { %v19639_v63 = vsub.f32 %v4946_v13, %v19419_v1  ;;  %v24604_v1 = vld [vmem:[#allocation12_spill] sm:$0xff]  ;;  %v4990_v0 = vmul.f32 1.442695, %v19502_v14  ;;  %v24616_v14 = vld [vmem:[#allocation66_spill] sm:$0xff] }
 0x352   : > { %v19651_v38 = vpack.c.bf16 %v24602_v57, %v24600_v39  ;;  %v24605_v20 = vand.u32 4294901760, %v24604_v1  ;;  %v24611_v39 = vld [vmem:[#allocation60_spill] sm:$0xff]  ;;  %v24614_v57 = vld [vmem:[#allocation55_spill] sm:$0xff] }
 0x353   : > { %14811 = vmatpush1.bf16.msra.mxu0 %v19598_v54  ;;  %14847 = vmatpush1.bf16.msra.mxu1 %v24597_v17  ;;  %16778 = vpow2.f32 %v4990_v0  ;;  %v24615_v1 = vand.u32 4294901760, %v24614_v57  ;;  %v24624_v57 = vand.u32 4294901760, %v24585_v41 }
 0x354   : > { %14812 = vmatprep.subr.bf16.mxu0 %v24464_v2  ;;  %14878 = vmatprep.subr.bf16.mxu1 %v24464_v2  ;;  %24603 = vst [vmem:[#allocation18_spill] sm:$0xff] %v19651_v38 }
 0x356   : > { %4607 = vmatmul.mubr.f32.vlgmr.msra.gmra.mrb[36].mxu1 %v24598_v3  ;;  %v24606_v3 = vld [vmem:[#allocation53_spill] sm:$0xff] }
 0x357   : > { %14814 = vmatpush1.bf16.msra.mxu0 %v19328_v45  ;;  %14880 = vmatpush1.bf16.msra.mxu1 %v24576_v49  ;;  %v24607_v10 = vand.u32 4294901760, %v24606_v3 }
 0x358   : > { %4829 = vmatprep.mubr.f32.mxu1 %v19486_v50  ;;  %14815 = vmatprep.subr.bf16.mxu0 %v24464_v2 }
 0x359   : > { %14881 = vmatprep.subr.bf16.mxu1 %v24464_v2  ;;  %v19662_v13 = vpack.c.bf16 %v24607_v10, %v24605_v20  ;;  %v24617_v20 = vand.u32 4294901760, %v24616_v14  ;;  %v24619_v10 = vld [vmem:[#allocation32_spill] sm:$0xff] }
 0x35b   : > { %14817 = vmatpush1.bf16.msra.mxu0 %v19332_v7  ;;  %14883 = vmatpush1.bf16.msra.mxu1 %v24577_v56  ;;  %24608 = vst [vmem:[#allocation38_spill] sm:$0xff] %v19662_v13  ;;  %v19683_v3 = vpack.c.bf16 %v24617_v20, %v24615_v1  ;;  %v24625_v1 = vand.u32 4294901760, %v24586_v31  ;;  %v24630_v31 = vand.u32 4294901760, %v24594_v52 }
 0x35c   : > { %14848 = vmatprep.subr.bf16.mxu0 %v24464_v2  ;;  %14884 = vmatprep.subr.bf16.mxu1 %v24464_v2 }
 0x35d   : > { %24618 = vst [vmem:[#allocation39_spill] sm:$0xff] %v19683_v3  ;;  %v19703_v14 = vpack.c.bf16 %v24625_v1, %v24624_v57  ;;  %v24634_v57 = vld [vmem:[#allocation103_spill] sm:$0xff] }
 0x35e   : > { %4511 = vmatmul.mubr.f32.vlgmr.msra.gmra.mrb[34].mxu0 %v19465_v48  ;;  %v24609_v48 = vld [vmem:[#allocation19_spill] sm:$0xff]  ;;  %v24635_v1 = vand.u32 4294901760, %v24634_v57 }
 0x35f   : > { %14850 = vmatpush1.bf16.msra.mxu0 %v19651_v38  ;;  %4737 = vmatprep.mubr.f32.mxu0 %v19486_v50  ;;  %v24610_v62 = vand.u32 4294901760, %v24609_v48  ;;  %v24612_v50 = vand.u32 4294901760, %v24611_v39  ;;  %v24620_v48 = vand.u32 4294901760, %v24619_v10  ;;  %24626 = vst [vmem:[#allocation46_spill] sm:$0xff] %v19703_v14  ;;  %v24627_v10 = vand.u32 4294901760, %v24588_v8 }
 0x360   : > { %14886 = vmatpush1.bf16.msra.mxu1 %v24578_v58  ;;  %14851 = vmatprep.subr.bf16.mxu0 %v24464_v2  ;;  %v24633_v8 = vand.u32 4294901760, %v19066_v11 }
 0x361   : > { %14887 = vmatprep.subr.bf16.mxu1 %v24464_v2  ;;  %v19673_v60 = vpack.c.bf16 %v24612_v50, %v24610_v62  ;;  %v24621_v62 = vld [vmem:[#allocation64_spill] sm:$0xff]  ;;  %v16779_v50 = vpop.eup %16778 }
 0x362   : > { %v24622_v0 = vand.u32 4294901760, %v24621_v62  ;;  %v5053_v20 = vsel %vm3903_vm2, %v16779_v50, 0  ;;  %v19739_v52 = vpack.c.bf16 %v24635_v1, %v24633_v8  ;;  %v24643_v8 = vld [vmem:[#allocation15_spill] sm:$0xff]  ;;  %v24644_v1 = vmov 0.0  }
 0x363   : > { %14853 = vmatpush1.bf16.msra.mxu0 %v19662_v13  ;;  %24613 = vst [vmem:[#allocation94_spill] sm:$0xff] %v19673_v60  ;;  %v19719_v41 = vand.u32 4294901760, %v5053_v20  ;;  %v24652_v13 = vld [vmem:[#allocation23_spill] sm:$0xff] }
 0x364   : > { %14889 = vmatpush1.bf16.msra.mxu1 %v24579_v5  ;;  %14854 = vmatprep.subr.bf16.mxu0 %v24464_v2  ;;  %v19693_v39 = vpack.c.bf16 %v24622_v0, %v24620_v48  ;;  %v24628_v48 = vand.u32 4294901760, %v24589_v61  ;;  %v24631_v0 = vand.u32 4294901760, %v24595_v34  ;;  %24636 = vst [vmem:[#allocation8_spill] sm:$0xff] %v19739_v52 }
 0x365   : > { %14890 = vmatprep.subr.bf16.mxu1 %v24464_v2  ;;  %v19732_v61 = vsub.f32 %v5053_v20, %v19719_v41  ;;  %v24638_v20 = vld [vmem:[#allocation105_spill] sm:$0xff] }
 0x366   : > { %24623 = vst [vmem:[#allocation78_spill] sm:$0xff] %v19693_v39  ;;  %v19714_v62 = vpack.c.bf16 %v24628_v48, %v24627_v10  ;;  %v19726_v50 = vpack.c.bf16 %v24631_v0, %v24630_v31  ;;  %v24637_v10 = vld [vmem:[#allocation13_spill] sm:$0xff]  ;;  %v24639_v48 = vand.u32 4294901760, %v24638_v20  ;;  %v24640_v31 = vld [vmem:[#allocation106_spill] sm:$0xff] }
 0x367   : > { %14856 = vmatpush1.bf16.msra.mxu0 %v19673_v60  ;;  %v23741_v34 = vand.u32 4294901760, %v19732_v61  ;;  %v24641_v11 = vand.u32 4294901760, %v24640_v31  ;;  %v4988_v31 = vmul.f32 1.442695, %v19426_v21  ;;  %v4996_v21 = vmul.f32 1.442695, %v19432_v25 }
 0x368   : > { %14892 = vmatpush1.bf16.msra.mxu1 %v24580_v59  ;;  %14857 = vmatprep.subr.bf16.mxu0 %v24464_v2  ;;  %24629 = vst [vmem:[#allocation30_spill] sm:$0xff] %v19714_v62  ;;  %24632 = vst [vmem:[#allocation54_spill] sm:$0xff] %v19726_v50 }
 0x369   : > { %14893 = vmatprep.subr.bf16.mxu1 %v24464_v2  ;;  %v19751_v0 = vpack.c.bf16 %v24641_v11, %v24639_v48  ;;  %v5187_v57 = vsub.f32 %v19732_v61, %v23741_v34  ;;  %v4994_v48 = vmul.f32 1.442695, %v19505_v32  ;;  %v4998_v11 = vmul.f32 1.442695, %v19508_v40 }
 0x36a   : > { %v5006_v32 = vmul.f32 1.442695, %v19515_v37  ;;  %v5000_v40 = vmul.f32 1.442695, %v19435_v43 }
 0x36b   : > { %14859 = vmatpush1.bf16.msra.mxu0 %v19683_v3  ;;  %24642 = vst [vmem:[#allocation63_spill] sm:$0xff] %v19751_v0  ;;  %v5188_v20 = vand.u32 4294901760, %v5187_v57  ;;  %16780 = vpow2.f32 %v4994_v48  ;;  %v4992_v57 = vmul.f32 1.442695, %v19429_v28  ;;  %v5004_v48 = vmul.f32 1.442695, %v19438_v22 }
 0x36c   : > { %14895 = vmatpush1.bf16.msra.mxu1 %v24582_v46  ;;  %14860 = vmatprep.subr.bf16.mxu0 %v24464_v2  ;;  %16782 = vpow2.f32 %v4988_v31 }
 0x36d   : > { %14896 = vmatprep.subr.bf16.mxu1 %v24464_v2  ;;  %16784 = vpow2.f32 %v4998_v11  ;;  %v5014_v11 = vmul.f32 1.442695, %v19525_v55  ;;  %v5012_v55 = vmul.f32 1.442695, %v19453_v12 }
 0x36e   : > { %16786 = vpow2.f32 %v4992_v57 }
 0x36f   : > { %14862 = vmatpush1.bf16.msra.mxu0 %v19693_v39 }
 0x370   : > { %14898 = vmatpush1.bf16.msra.mxu1 %v24584_v26  ;;  %14863 = vmatprep.subr.bf16.mxu0 %v24464_v2 }
 0x371   : > { %14899 = vmatprep.subr.bf16.mxu1 %v24464_v2 }
 0x373   : > { %14865 = vmatpush1.bf16.msra.mxu0 %v19703_v14 }
 0x374   : > { %14901 = vmatpush1.bf16.msra.mxu1 %v24591_v24  ;;  %14866 = vmatprep.subr.bf16.mxu0 %v24464_v2 }
 0x375   : > { %14902 = vmatprep.subr.bf16.mxu1 %v24464_v2  ;;  %v16781_v28 = vpop.eup %16780 }
 0x376   : > { %v5056_v25 = vsel %vm3903_vm2, %v16781_v28, 0  ;;  %v5018_v28 = vmul.f32 1.442695, %v19540_v29 }
 0x377   : > { %14868 = vmatpush1.bf16.msra.mxu0 %v19714_v62  ;;  %v19789_v57 = vand.u32 4294901760, %v5056_v25 }
 0x378   : > { %14904 = vmatpush1.bf16.msra.mxu1 %v24593_v4  ;;  %14869 = vmatprep.subr.bf16.mxu0 %v24464_v2 }
 0x379   : > { %14905 = vmatprep.subr.bf16.mxu1 %v24464_v2 }
 0x37b   : > { %14871 = vmatpush1.bf16.msra.mxu0 %v19726_v50 }
 0x37c   : > { %14907 = vmatpush1.bf16.msra.mxu1 %v24597_v17  ;;  %14872 = vmatprep.subr.bf16.mxu0 %v24464_v2 }
 0x37d   : > { %15089 = vmatprep.subr.bf16.mxu1 %v24637_v10  ;;  %v24645_v10 = vld [vmem:[#allocation22_spill] sm:$0xff] }
 0x37f   : > { %4831 = vmatmul.mubr.f32.vlgmr.msra.gmra.mrb[38].mxu1 %v19447_v35  ;;  %14874 = vmatpush1.bf16.msra.mxu0 %v19739_v52 }
 0x380   : > { %14875 = vmatprep.subr.bf16.mxu0 %v24464_v2  ;;  %15091 = vmatpush1.bf16.msra.mxu1 %v24643_v8 }
 0x381   : > { %6933 = vmatprep.mubr.f32.mxu1 %v24644_v1  ;;  %15093 = vmatprep.subr.bf16.mxu1 %v24645_v10 }
 0x383   : > { %14877 = vmatpush1.bf16.msra.mxu0 %v19751_v0 }
 0x384   : > { %14908 = vmatprep.subr.bf16.mxu0 %v24464_v2 }
 0x386   : > { %4739 = vmatmul.mubr.f32.vlgmr.msra.gmra.mrb[36].mxu0 %v19447_v35  ;;  %v5002_v35 = vmul.f32 1.442695, %v19511_v44  ;;  %v5010_v44 = vmul.f32 1.442695, %v19518_v23  ;;  %v5008_v23 = vmul.f32 1.442695, %v19450_v9  ;;  %v19803_v9 = vsub.f32 %v5056_v25, %v19789_v57 }
 0x387   : > { %14910 = vmatpush1.bf16.msra.mxu0 %v24576_v49  ;;  %5189 = vmatprep.mubr.f32.mxu0 %v5188_v20  ;;  %v16783_v20 = vpop.eup %16782 }
 0x388   : > { %14911 = vmatprep.subr.bf16.mxu0 %v24464_v2  ;;  %16788 = vpow2.f32 %v5002_v35  ;;  %v16785_v31 = vpop.eup %16784  ;;  %v19785_v37 = vand.u32 4294901760, %v16783_v20  ;;  %v24647_v1 = vand.u32 4294901760, %v19803_v9 }
 0x389   : > { %16790 = vpow2.f32 %v4996_v21  ;;  %v16787_v43 = vpop.eup %16786  ;;  %v5059_v21 = vsel %vm3903_vm2, %v16785_v31, 0  ;;  %v5016_v31 = vmul.f32 1.442695, %v19456_v15 }
 0x38a   : > { %16792 = vpow2.f32 %v5006_v32  ;;  %v19795_v22 = vsub.f32 %v16783_v20, %v19785_v37  ;;  %v19797_v32 = vand.u32 4294901760, %v16787_v43 }
 0x38b   : > { %14913 = vmatpush1.bf16.msra.mxu0 %v24577_v56  ;;  %16794 = vpow2.f32 %v5000_v40 }
 0x38c   : > { %14914 = vmatprep.subr.bf16.mxu0 %v24464_v2  ;;  %16796 = vpow2.f32 %v5010_v44  ;;  %v19805_v44 = vand.u32 4294901760, %v5059_v21  ;;  %v19812_v12 = vsub.f32 %v16787_v43, %v19797_v32  ;;  %v24646_v8 = vand.u32 4294901760, %v19795_v22 }
 0x38d   : > { %16798 = vpow2.f32 %v5004_v48 }
 0x38e   : > { %16800 = vpow2.f32 %v5014_v11  ;;  %v19822_v15 = vsub.f32 %v5059_v21, %v19805_v44 }
 0x38f   : > { %14916 = vmatpush1.bf16.msra.mxu0 %v24578_v58  ;;  %16802 = vpow2.f32 %v5008_v23  ;;  %v5022_v23 = vmul.f32 1.442695, %v19545_v6 }
 0x390   : > { %14917 = vmatprep.subr.bf16.mxu0 %v24464_v2  ;;  %16804 = vpow2.f32 %v5018_v28  ;;  %v5193_v28 = vsub.f32 %v19795_v22, %v24646_v8  ;;  %v5202_v8 = vsub.f32 %v19803_v9, %v24647_v1  ;;  %v5030_v1 = vmul.f32 1.442695, %v19579_v47 }
 0x391   : > { %16806 = vpow2.f32 %v5012_v55 }
 0x392   : > { %v16789_v35 = vpop.eup %16788  ;;  %16808 = vpow2.f32 %v5016_v31  ;;  %v5026_v31 = vmul.f32 1.442695, %v19550_v27  ;;  %v24649_v27 = vand.u32 4294901760, %v19812_v12  ;;  %v5203_v6 = vand.u32 4294901760, %v5202_v8 }
 0x393   : > { %14919 = vmatpush1.bf16.msra.mxu0 %v24579_v5  ;;  %v16791_v40 = vpop.eup %16790  ;;  %v5062_v48 = vsel %vm3903_vm2, %v16789_v35, 0  ;;  %16810 = vpow2.f32 %v5022_v23  ;;  %v5194_v23 = vand.u32 4294901760, %v5193_v28  ;;  %v24651_v28 = vand.u32 4294901760, %v19822_v15 }
 0x394   : > { %14920 = vmatprep.subr.bf16.mxu0 %v24464_v2  ;;  %v16793_v20 = vpop.eup %16792  ;;  %v19814_v29 = vand.u32 4294901760, %v16791_v40  ;;  %v19817_v25 = vand.u32 4294901760, %v5062_v48  ;;  %v5208_v62 = vsub.f32 %v19812_v12, %v24649_v27  ;;  %16812 = vpow2.f32 %v5026_v31 }
 0x395   : > { %v16795_v34 = vpop.eup %16794  ;;  %v5065_v10 = vsel %vm3903_vm2, %v16793_v20, 0  ;;  %v5217_v39 = vsub.f32 %v19822_v15, %v24651_v28 }
 0x396   : > { %v16797_v11 = vpop.eup %16796  ;;  %v19825_v43 = vand.u32 4294901760, %v16795_v34  ;;  %v19833_v35 = vsub.f32 %v16791_v40, %v19814_v29  ;;  %v19837_v55 = vsub.f32 %v5062_v48, %v19817_v25  ;;  %v19839_v20 = vand.u32 4294901760, %v5065_v10 }
 0x397   : > { %14922 = vmatpush1.bf16.msra.mxu0 %v24580_v59  ;;  %v16799_v21 = vpop.eup %16798  ;;  %v5068_v40 = vsel %vm3903_vm2, %v16797_v11, 0  ;;  %v5020_v48 = vmul.f32 1.442695, %v19472_v19  ;;  %v5209_v31 = vand.u32 4294901760, %v5208_v62  ;;  %v24656_v62 = vld [vmem:[#allocation75_spill] sm:$0xff]  ;;  %v5218_v38 = vand.u32 4294901760, %v5217_v39 }
 0x398   : > { %14923 = vmatprep.subr.bf16.mxu0 %v24464_v2  ;;  %v16801_v0 = vpop.eup %16800  ;;  %v19848_v52 = vsub.f32 %v16795_v34, %v19825_v43  ;;  %v19856_v14 = vand.u32 4294901760, %v16799_v21  ;;  %v19861_v34 = vsub.f32 %v5065_v10, %v19839_v20  ;;  %v19863_v19 = vand.u32 4294901760, %v5068_v40  ;;  %v24660_v39 = vld [vmem:[#allocation62_spill] sm:$0xff] }
 0x399   : > { %v16803_v50 = vpop.eup %16802  ;;  %v5071_v27 = vsel %vm3903_vm2, %v16801_v0, 0  ;;  %16814 = vpow2.f32 %v5020_v48  ;;  %v5024_v10 = vmul.f32 1.442695, %v19483_v53  ;;  %v24653_v8 = vand.u32 4294901760, %v19833_v35 }
 0x39a   : > { %24648 = vst [vmem:[#allocation11_spill] sm:$0xff] %v19848_v52  ;;  %24650 = vst [vmem:[#allocation71_spill] sm:$0xff] %v19861_v34  ;;  %v16805_v3 = vpop.eup %16804  ;;  %v19870_v60 = vand.u32 4294901760, %v16803_v50  ;;  %v19879_v47 = vsub.f32 %v16799_v21, %v19856_v14  ;;  %v19884_v53 = vsub.f32 %v5068_v40, %v19863_v19  ;;  %16816 = vpow2.f32 %v5030_v1  ;;  %v24659_v40 = vld [vmem:[#allocation59_spill] sm:$0xff] }
 0x39b   : > { %14925 = vmatpush1.bf16.msra.mxu0 %v24582_v46  ;;  %v16807_v11 = vpop.eup %16806  ;;  %v5223_v28 = vsub.f32 %v19833_v35, %v24653_v8  ;;  %v24657_v8 = vand.u32 4294901760, %v19837_v55  ;;  %v5074_v21 = vsel %vm3903_vm2, %v16805_v3, 0  ;;  %16818 = vpow2.f32 %v5024_v10 }
 0x39c   : > { %14926 = vmatprep.subr.bf16.mxu0 %v24464_v2  ;;  %24654 = vst [vmem:[#allocation16_spill] sm:$0xff] %v19879_v47  ;;  %24655 = vst [vmem:[#allocation82_spill] sm:$0xff] %v19884_v53  ;;  %v19896_v48 = vand.u32 4294901760, %v16807_v11  ;;  %v5038_v3 = vmul.f32 1.442695, %v19603_v42 }
 0x39d   : > { %v5232_v0 = vsub.f32 %v19837_v55, %v24657_v8 }
 0x39f   : > { %14928 = vmatpush1.bf16.msra.mxu0 %v24584_v26  ;;  %v24661_v26 = vand.u32 4294901760, %v19848_v52 }
 0x3a0   : > { %14929 = vmatprep.subr.bf16.mxu0 %v24464_v2 }
 0x3a1   : > { %v5238_v8 = vsub.f32 %v19848_v52, %v24661_v26 }
 0x3a3   : > { %14931 = vmatpush1.bf16.msra.mxu0 %v24591_v24  ;;  %v5028_v24 = vmul.f32 1.442695, %v24659_v40  ;;  %v5239_v5 = vand.u32 4294901760, %v5238_v8 }
 0x3a4   : > { %14932 = vmatprep.subr.bf16.mxu0 %v24464_v2 }
 0x3a7   : > { %14934 = vmatpush1.bf16.msra.mxu0 %v24593_v4  ;;  %v19894_v4 = vsub.f32 %v16803_v50, %v19870_v60  ;;  %v24663_v50 = vand.u32 4294901760, %v19861_v34 }
 0x3a8   : > { %14935 = vmatprep.subr.bf16.mxu0 %v24464_v2 }
 0x3a9   : > { %24658 = vst [vmem:[#allocation34_spill] sm:$0xff] %v19894_v4  ;;  %v23771_v46 = vand.u32 4294901760, %v19894_v4 }
 0x3ab   : > { %14937 = vmatpush1.bf16.msra.mxu0 %v24597_v17 }
 0x3ac   : > { %14938 = vmatprep.subr.bf16.mxu0 %v24464_v2 }
 0x3ae   : > { %5195 = vmatmul.mubr.f32.vlgmr.msra.gmra.mrb[38].mxu0 %v5194_v23  ;;  %v16809_v23 = vpop.eup %16808 }
 0x3af   : > { %5204 = vmatprep.mubr.f32.mxu0 %v5203_v6  ;;  %14940 = vmatpush1.bf16.msra.mxu0 %v24652_v13  ;;  %v19886_v6 = vand.u32 4294901760, %v5071_v27  ;;  %v5034_v13 = vmul.f32 1.442695, %v24656_v62  ;;  %v16811_v17 = vpop.eup %16810  ;;  %v5224_v62 = vand.u32 4294901760, %v5223_v28  ;;  %v19904_v1 = vand.u32 4294901760, %v16809_v23 }
 0x3b0   : > { %14941 = vmatprep.subr.bf16.mxu0 %v24464_v2  ;;  %v5233_v28 = vand.u32 4294901760, %v5232_v0  ;;  %v5077_v26 = vsel %vm3903_vm2, %v16811_v17, 0  ;;  %v24669_v0 = vand.u32 4294901760, %v19879_v47 }
 0x3b1   : > { %24662 = vst [vmem:[#allocation87_spill] sm:$0xff] %v19904_v1  ;;  %v19911_v10 = vsub.f32 %v5071_v27, %v19886_v6  ;;  %16820 = vpow2.f32 %v5034_v13  ;;  %v24667_v27 = vld [vmem:[#allocation21_spill] sm:$0xff]  ;;  %v24668_v13 = vld [vmem:[#allocation72_spill] sm:$0xff] }
 0x3b2   : > { %5210 = vmatmul.mubr.f32.gmra.mrb[40].mxu0 %v5209_v31  ;;  %v5247_v31 = vsub.f32 %v19861_v34, %v24663_v50  ;;  %v19920_v50 = vsub.f32 %v16807_v11, %v19896_v48  ;;  %16822 = vpow2.f32 %v5028_v24  ;;  %v5032_v59 = vmul.f32 1.442695, %v24667_v27 }
 0x3b3   : > { %5219 = vmatprep.mubr.f32.mxu0 %v5218_v38  ;;  %14943 = vmatpush1.bf16.msra.mxu0 %v24660_v39  ;;  %24664 = vst [vmem:[#allocation35_spill] sm:$0xff] %v19911_v10  ;;  %v19913_v38 = vand.u32 4294901760, %v5074_v21  ;;  %v16813_v39 = vpop.eup %16812  ;;  %v5253_v17 = vsub.f32 %v19879_v47, %v24669_v0  ;;  %v19932_v24 = vand.u32 4294901760, %v5077_v26  ;;  %16824 = vpow2.f32 %v5038_v3 }
 0x3b4   : > { %14944 = vmatprep.subr.bf16.mxu0 %v24464_v2  ;;  %24666 = vst [vmem:[#allocation41_spill] sm:$0xff] %v19920_v50  ;;  %v16815_v40 = vpop.eup %16814  ;;  %v5248_v42 = vand.u32 4294901760, %v5247_v31  ;;  %v5080_v27 = vsel %vm3903_vm2, %v16813_v39, 0  ;;  %v5042_v0 = vmul.f32 1.442695, %v19629_v33  ;;  %v5268_v31 = vsub.f32 %v19894_v4, %v23771_v46 }
 0x3b5   : > { %24665 = vst [vmem:[#allocation44_spill] sm:$0xff] %v19913_v38  ;;  %v19930_v11 = vsub.f32 %v5074_v21, %v19913_v38  ;;  %24671 = vst [vmem:[#allocation73_spill] sm:$0xff] %v19932_v24  ;;  %v19944_v21 = vsub.f32 %v16809_v23, %v19904_v1  ;;  %16826 = vpow2.f32 %v5032_v59  ;;  %v5254_v47 = vand.u32 4294901760, %v5253_v17 }
 0x3b6   : > { %5225 = vmatmul.mubr.f32.gmra.mrb[42].mxu0 %v5224_v62  ;;  %v19947_v39 = vand.u32 4294901760, %v16815_v40  ;;  %v5036_v33 = vmul.f32 1.442695, %v19606_v36  ;;  %v24676_v3 = vand.u32 4294901760, %v19911_v10  ;;  %v19956_v59 = vsub.f32 %v5077_v26, %v19932_v24  ;;  %v24680_v26 = vld [vmem:[#allocation85_spill] sm:$0xff] }
 0x3b7   : > { %5234 = vmatprep.mubr.f32.mxu0 %v5233_v28  ;;  %14946 = vmatpush1.bf16.msra.mxu0 %v24668_v13  ;;  %24670 = vst [vmem:[#allocation57_spill] sm:$0xff] %v19930_v11  ;;  %v24672_v28 = vand.u32 4294901760, %v19884_v53  ;;  %24673 = vst [vmem:[#allocation80_spill] sm:$0xff] %v19944_v21  ;;  %v16817_v13 = vpop.eup %16816  ;;  %v19958_v23 = vand.u32 4294901760, %v5080_v27  ;;  %16828 = vpow2.f32 %v5042_v0  ;;  %v5269_v36 = vand.u32 4294901760, %v5268_v31 }
 0x3b8   : > { %14947 = vmatprep.subr.bf16.mxu0 %v24464_v2  ;;  %24675 = vst [vmem:[#allocation93_spill] sm:$0xff] %v19947_v39  ;;  %v5277_v46 = vsub.f32 %v19911_v10, %v24676_v3  ;;  %24677 = vst [vmem:[#allocation96_spill] sm:$0xff] %v19956_v59  ;;  %v24679_v4 = vand.u32 4294901760, %v19920_v50  ;;  %v5083_v10 = vsel %vm3903_vm2, %v16817_v13, 0  ;;  %16830 = vpow2.f32 %v5036_v33 }
 0x3b9   : > { %v5262_v8 = vsub.f32 %v19884_v53, %v24672_v28  ;;  %v24674_v28 = vld [vmem:[#allocation74_spill] sm:$0xff]  ;;  %24678 = vst [vmem:[#allocation99_spill] sm:$0xff] %v19958_v23  ;;  %v19968_v53 = vsub.f32 %v16815_v40, %v19947_v39  ;;  %v24683_v31 = vand.u32 4294901760, %v19930_v11  ;;  %v19978_v13 = vsub.f32 %v5080_v27, %v19958_v23 }
 0x3ba   : > { %5240 = vmatmul.mubr.f32.gmra.mrb[44].mxu0 %v5239_v5  ;;  %v16819_v5 = vpop.eup %16818  ;;  %v5283_v3 = vsub.f32 %v19920_v50, %v24679_v4  ;;  %v5278_v0 = vand.u32 4294901760, %v5277_v46  ;;  %v19981_v40 = vand.u32 4294901760, %v5083_v10  ;;  %v24686_v46 = vand.u32 4294901760, %v19944_v21 }
 0x3bb   : > { %5249 = vmatprep.mubr.f32.mxu0 %v5248_v42  ;;  %14949 = vmatpush1.bf16.msra.mxu0 %v24674_v28  ;;  %v5263_v17 = vand.u32 4294901760, %v5262_v8  ;;  %v5046_v42 = vmul.f32 1.442695, %v19636_v30  ;;  %v16821_v28 = vpop.eup %16820  ;;  %24681 = vst [vmem:[#allocation100_spill] sm:$0xff] %v19968_v53  ;;  %v19970_v8 = vand.u32 4294901760, %v16819_v5  ;;  %v5292_v4 = vsub.f32 %v19930_v11, %v24683_v31  ;;  %24684 = vst [vmem:[#allocation40_spill] sm:$0xff] %v19978_v13 }
 0x3bc   : > { %14950 = vmatprep.subr.bf16.mxu0 %v24464_v2  ;;  %v5040_v30 = vmul.f32 1.442695, %v19611_v16  ;;  %24685 = vst [vmem:[#allocation12_spill] sm:$0xff] %v19981_v40  ;;  %v5050_v16 = vmul.f32 1.442695, %v19643_v51  ;;  %v5298_v33 = vsub.f32 %v19944_v21, %v24686_v46  ;;  %v5284_v62 = vand.u32 4294901760, %v5283_v3 }
 0x3bd   : > { %24682 = vst [vmem:[#allocation9_spill] sm:$0xff] %v19970_v8  ;;  %16832 = vpow2.f32 %v5046_v42  ;;  %v5044_v11 = vmul.f32 1.442695, %v19622_v18  ;;  %v19994_v51 = vsub.f32 %v16819_v5, %v19970_v8  ;;  %v24691_v3 = vand.u32 4294901760, %v19956_v59  ;;  %v24694_v42 = vld [vmem:[#allocation102_spill] sm:$0xff]  ;;  %v24708_v21 = vld [vmem:[#allocation109_spill] sm:$0xff] }
 0x3be   : > { %5255 = vmatmul.mubr.f32.gmra.mrb[46].mxu0 %v5254_v47  ;;  %v16823_v47 = vpop.eup %16822  ;;  %16834 = vpow2.f32 %v5040_v30  ;;  %v20004_v30 = vsub.f32 %v5083_v10, %v19981_v40  ;;  %v5299_v46 = vand.u32 4294901760, %v5298_v33  ;;  %v24696_v10 = vand.u32 4294901760, %v19968_v53 }
 0x3bf   : > { %5264 = vmatprep.mubr.f32.mxu0 %v5263_v17  ;;  %14952 = vmatpush1.bf16.msra.mxu0 %v24680_v26  ;;  %v5086_v17 = vsel %vm3903_vm2, %v16821_v28, 0  ;;  %v16825_v31 = vpop.eup %16824  ;;  %v24687_v26 = vld [vmem:[#allocation98_spill] sm:$0xff]  ;;  %v19989_v27 = vand.u32 4294901760, %v16823_v47  ;;  %v5293_v28 = vand.u32 4294901760, %v5292_v4  ;;  %24689 = vst [vmem:[#allocation19_spill] sm:$0xff] %v19994_v51  ;;  %16836 = vpow2.f32 %v5050_v16 }
 0x3c0   : > { %14953 = vmatprep.subr.bf16.mxu0 %v24464_v2  ;;  %v16827_v50 = vpop.eup %16826  ;;  %24692 = vst [vmem:[#allocation55_spill] sm:$0xff] %v20004_v30  ;;  %v5089_v18 = vsel %vm3903_vm2, %v16825_v31, 0  ;;  %16838 = vpow2.f32 %v5044_v11  ;;  %v5313_v16 = vsub.f32 %v19968_v53, %v24696_v10 }
 0x3c1   : > { %24688 = vst [vmem:[#allocation53_spill] sm:$0xff] %v19989_v27  ;;  %v16829_v4 = vpop.eup %16828  ;;  %v20008_v5 = vsub.f32 %v16823_v47, %v19989_v27  ;;  %v20026_v33 = vand.u32 4294901760, %v5089_v18 }
 0x3c2   : > { %5270 = vmatmul.mubr.f32.gmra.mrb[48].mxu0 %v5269_v36  ;;  %v19997_v36 = vand.u32 4294901760, %v5086_v17  ;;  %v16831_v47 = vpop.eup %16830  ;;  %v5092_v10 = vsel %vm3903_vm2, %v16829_v4, 0 }
 0x3c3   : > { %5279 = vmatprep.mubr.f32.mxu0 %v5278_v0  ;;  %14955 = vmatpush1.bf16.msra.mxu0 %v24687_v26  ;;  %v5307_v0 = vsub.f32 %v19956_v59, %v24691_v3  ;;  %24693 = vst [vmem:[#allocation66_spill] sm:$0xff] %v20008_v5  ;;  %v20011_v26 = vand.u32 4294901760, %v16827_v50  ;;  %v5048_v3 = vmul.f32 1.442695, %v19639_v63  ;;  %24699 = vst [vmem:[#allocation103_spill] sm:$0xff] %v20026_v33  ;;  %v24701_v59 = vld [vmem:[#allocation107_spill] sm:$0xff] }
 0x3c4   : > { %14956 = vmatprep.subr.bf16.mxu0 %v24464_v2  ;;  %24690 = vst [vmem:[#allocation60_spill] sm:$0xff] %v19997_v36  ;;  %v20019_v31 = vsub.f32 %v5086_v17, %v19997_v36  ;;  %v24704_v17 = vand.u32 4294901760, %v20004_v30 }
 0x3c5   : > { %24695 = vst [vmem:[#allocation32_spill] sm:$0xff] %v20011_v26  ;;  %16840 = vpow2.f32 %v5048_v3  ;;  %v20047_v3 = vand.u32 4294901760, %v5092_v10 }
 0x3c6   : > { %5285 = vmatmul.mubr.f32.gmra.mrb[50].mxu0 %v5284_v62  ;;  %24697 = vst [vmem:[#allocation64_spill] sm:$0xff] %v20019_v31  ;;  %v20031_v62 = vsub.f32 %v16827_v50, %v20011_v26  ;;  %v5337_v50 = vsub.f32 %v20004_v30, %v24704_v17  ;;  %v24709_v17 = vand.u32 4294901760, %v20019_v31 }
 0x3c7   : > { %5294 = vmatprep.mubr.f32.mxu0 %v5293_v28  ;;  %14958 = vmatpush1.bf16.msra.mxu0 %v24694_v42  ;;  %v5308_v28 = vand.u32 4294901760, %v5307_v0  ;;  %v24698_v42 = vand.u32 4294901760, %v19978_v13  ;;  %v16833_v53 = vpop.eup %16832  ;;  %v5314_v0 = vand.u32 4294901760, %v5313_v16  ;;  %24706 = vst [vmem:[#allocation59_spill] sm:$0xff] %v20047_v3 }
 0x3c8   : > { %14959 = vmatprep.subr.bf16.mxu0 %v24464_v2  ;;  %24700 = vst [vmem:[#allocation105_spill] sm:$0xff] %v20031_v62  ;;  %v16835_v4 = vpop.eup %16834  ;;  %v5095_v16 = vsel %vm3903_vm2, %v16833_v53, 0 }
 0x3c9   : > { %v5322_v11 = vsub.f32 %v19978_v13, %v24698_v42  ;;  %v24702_v42 = vand.u32 4294901760, %v19994_v51  ;;  %v24707_v13 = vand.u32 4294901760, %v20008_v5 }
 0x3ca   : > { %5300 = vmatmul.mubr.f32.gmra.mrb[52].mxu0 %v5299_v46  ;;  %v20038_v46 = vand.u32 4294901760, %v16831_v47 }
 0x3cb   : > { %5309 = vmatprep.mubr.f32.mxu0 %v5308_v28  ;;  %14961 = vmatpush1.bf16.msra.mxu0 %v24701_v59  ;;  %v5328_v63 = vsub.f32 %v19994_v51, %v24702_v42  ;;  %v5323_v28 = vand.u32 4294901760, %v5322_v11  ;;  %v20045_v59 = vsub.f32 %v5089_v18, %v20026_v33  ;;  %v16837_v42 = vpop.eup %16836  ;;  %v5343_v51 = vsub.f32 %v20008_v5, %v24707_v13  ;;  %v24714_v5 = vld [vmem:[#allocation111_spill] sm:$0xff] }
 0x3cc   : > { %24703 = vst [vmem:[#allocation106_spill] sm:$0xff] %v20038_v46  ;;  %14962 = vmatprep.subr.bf16.mxu0 %v24464_v2  ;;  %v5352_v18 = vsub.f32 %v20019_v31, %v24709_v17  ;;  %v20059_v30 = vsub.f32 %v16831_v47, %v20038_v46  ;;  %v16839_v53 = vpop.eup %16838  ;;  %v20066_v11 = vsub.f32 %v5092_v10, %v20047_v3  ;;  %v24713_v47 = vand.u32 4294901760, %v20031_v62 }
 0x3cd   : > { %24705 = vst [vmem:[#allocation75_spill] sm:$0xff] %v20045_v59  ;;  %v5329_v34 = vand.u32 4294901760, %v5328_v63  ;;  %v5098_v63 = vsel %vm3903_vm2, %v16837_v42, 0  ;;  %v5344_v17 = vand.u32 4294901760, %v5343_v51  ;;  %v20079_v10 = vand.u32 4294901760, %v16839_v53 }
 0x3ce   : > { %5315 = vmatmul.mubr.f32.gmra.mrb[54].mxu0 %v5314_v0  ;;  %24710 = vst [vmem:[#allocation21_spill] sm:$0xff] %v20059_v30  ;;  %v20061_v0 = vand.u32 4294901760, %v16835_v4  ;;  %v5358_v31 = vsub.f32 %v20031_v62, %v24713_v47  ;;  %v5353_v52 = vand.u32 4294901760, %v5352_v18  ;;  %v24716_v42 = vand.u32 4294901760, %v20045_v59 }
 0x3cf   : > { %5324 = vmatprep.mubr.f32.mxu0 %v5323_v28  ;;  %14964 = vmatpush1.bf16.msra.mxu0 %v24708_v21  ;;  %v5338_v28 = vand.u32 4294901760, %v5337_v50  ;;  %v20068_v21 = vand.u32 4294901760, %v5095_v16  ;;  %v23807_v50 = vand.u32 4294901760, %v20059_v30  ;;  %24715 = vst [vmem:[#allocation122_spill] sm:$0xff] %v20079_v10  ;;  %v20089_v18 = vand.u32 4294901760, %v5098_v63 }
 0x3d0   : > { %24711 = vst [vmem:[#allocation120_spill] sm:$0xff] %v20061_v0  ;;  %14965 = vmatprep.subr.bf16.mxu0 %v24464_v2  ;;  %v20077_v13 = vsub.f32 %v16835_v4, %v20061_v0  ;;  %v5367_v51 = vsub.f32 %v20045_v59, %v24716_v42  ;;  %v5359_v4 = vand.u32 4294901760, %v5358_v31  ;;  %v20096_v58 = vsub.f32 %v16839_v53, %v20079_v10 }
 0x3d1   : > { %24712 = vst [vmem:[#allocation121_spill] sm:$0xff] %v20068_v21  ;;  %v20087_v47 = vsub.f32 %v5095_v16, %v20068_v21  ;;  %24717 = vst [vmem:[#allocation123_spill] sm:$0xff] %v20089_v18  ;;  %v24719_v16 = vand.u32 4294901760, %v20066_v11 }
 0x3d2   : > { %5330 = vmatmul.mubr.f32.gmra.mrb[56].mxu0 %v5329_v34  ;;  %v16841_v34 = vpop.eup %16840  ;;  %v23810_v62 = vand.u32 4294901760, %v20077_v13 }
 0x3d3   : > { %5339 = vmatprep.mubr.f32.mxu0 %v5338_v28  ;;  %14967 = vmatpush1.bf16.msra.mxu0 %v24714_v5  ;;  %v5373_v5 = vsub.f32 %v20059_v30, %v23807_v50  ;;  %v20098_v42 = vand.u32 4294901760, %v16841_v34  ;;  %v5368_v28 = vand.u32 4294901760, %v5367_v51  ;;  %v5382_v59 = vsub.f32 %v20066_v11, %v24719_v16 }
 0x3d4   : > { %14968 = vmatprep.subr.bf16.mxu0 %v24464_v2  ;;  %v5388_v53 = vsub.f32 %v20077_v13, %v23810_v62  ;;  %v23813_v50 = vand.u32 4294901760, %v20096_v58 }
 0x3d5   : > { %24718 = vst [vmem:[#allocation124_spill] sm:$0xff] %v20098_v42  ;;  %v5374_v31 = vand.u32 4294901760, %v5373_v5  ;;  %v20112_v51 = vsub.f32 %v16841_v34, %v20098_v42  ;;  %v5383_v30 = vand.u32 4294901760, %v5382_v59 }
 0x3d6   : > { %5345 = vmatmul.mubr.f32.gmra.mrb[58].mxu0 %v5344_v17  ;;  %v23814_v17 = vand.u32 4294901760, %v20087_v47  ;;  %v5403_v5 = vsub.f32 %v20096_v58, %v23813_v50 }
 0x3d7   : > { %5354 = vmatprep.mubr.f32.mxu0 %v5353_v52  ;;  %v20105_v52 = vsub.f32 %v5098_v63, %v20089_v18 }
 0x3d8   : > { %v5397_v16 = vsub.f32 %v20087_v47, %v23814_v17  ;;  %v5404_v34 = vand.u32 4294901760, %v5403_v5  ;;  %v24723_v5 = vld [vmem:[#allocation118_spill] sm:$0xff] }
 0x3d9   : > { %v23812_v63 = vand.u32 4294901760, %v20105_v52 }
 0x3da   : > { %5360 = vmatmul.mubr.f32.gmra.mrb[60].mxu0 %v5359_v4  ;;  %v23811_v4 = vand.u32 4294901760, %v20112_v51  ;;  %v5398_v62 = vand.u32 4294901760, %v5397_v16  ;;  %v24720_v16 = vld [vmem:[#allocation113_spill] sm:$0xff] }
 0x3db   : > { %5369 = vmatprep.mubr.f32.mxu0 %v5368_v28  ;;  %v5389_v28 = vand.u32 4294901760, %v5388_v53  ;;  %v5412_v59 = vsub.f32 %v20105_v52, %v23812_v63 }
 0x3de   : > { %5375 = vmatmul.mubr.f32.gmra.mrb[62].mxu0 %v5374_v31  ;;  %v5418_v31 = vsub.f32 %v20112_v51, %v23811_v4 }
 0x3df   : > { %5384 = vmatprep.mubr.f32.mxu0 %v5383_v30  ;;  %v5413_v30 = vand.u32 4294901760, %v5412_v59  ;;  %v24724_v59 = vld [vmem:[#allocation119_spill] sm:$0xff] }
 0x3e0   : > { %v5419_v53 = vand.u32 4294901760, %v5418_v31 }
 0x3e2   : > { %5390 = vmatmul.mubr.f32.gmra.mrb[64].mxu0 %v5389_v28  ;;  %v24722_v28 = vld [vmem:[#allocation116_spill] sm:$0xff] }
 0x3e3   : > { %5399 = vmatprep.mubr.f32.mxu0 %v5398_v62  ;;  %v24721_v62 = vld [vmem:[#allocation114_spill] sm:$0xff] }
 0x3e6   : > { %5405 = vmatmul.mubr.f32.gmra.mrb[66].mxu0 %v5404_v34 }
 0x3e7   : > { %5414 = vmatprep.mubr.f32.mxu0 %v5413_v30  ;;  %v24725_v30 = vld [vmem:[#allocation68_spill] sm:$0xff] }
 0x3ea   : > { %5420 = vmatmul.mubr.f32.gmra.mrb[68].mxu0 %v5419_v53  ;;  %v24726_v53 = vld [vmem:[#allocation29_spill] sm:$0xff] }
 0x3eb   : > { %5590 = vmatprep.mubr.f32.mxu0 %v19719_v41 }
 0x3ee   : > { %5592 = vmatmul.mubr.f32.vlgmr.msra.gmra.mrb[38].mxu0 %v19785_v37 }
 0x3ef   : > { %5597 = vmatprep.mubr.f32.mxu0 %v19789_v57  ;;  %14970 = vmatpush1.bf16.msra.mxu0 %v24720_v16  ;;  %v24741_v16 = vld [vmem:[#allocation96_spill] sm:$0xff] }
 0x3f0   : > { %14971 = vmatprep.subr.bf16.mxu0 %v24464_v2 }
 0x3f2   : > { %5599 = vmatmul.mubr.f32.gmra.mrb[40].mxu0 %v19797_v32 }
 0x3f3   : > { %5604 = vmatprep.mubr.f32.mxu0 %v19805_v44  ;;  %14973 = vmatpush1.bf16.msra.mxu0 %v24721_v62  ;;  %v24740_v62 = vld [vmem:[#allocation80_spill] sm:$0xff] }
 0x3f4   : > { %14974 = vmatprep.subr.bf16.mxu0 %v24464_v2 }
 0x3f6   : > { %5606 = vmatmul.mubr.f32.gmra.mrb[42].mxu0 %v19814_v29 }
 0x3f7   : > { %5611 = vmatprep.mubr.f32.mxu0 %v19817_v25  ;;  %14976 = vmatpush1.bf16.msra.mxu0 %v24722_v28  ;;  %v24739_v28 = vld [vmem:[#allocation104_spill] sm:$0xff] }
 0x3f8   : > { %14977 = vmatprep.subr.bf16.mxu0 %v24464_v2 }
 0x3fa   : > { %5613 = vmatmul.mubr.f32.gmra.mrb[44].mxu0 %v19825_v43 }
 0x3fb   : > { %5618 = vmatprep.mubr.f32.mxu0 %v19839_v20  ;;  %14979 = vmatpush1.bf16.msra.mxu0 %v24723_v5  ;;  %v24738_v5 = vld [vmem:[#allocation57_spill] sm:$0xff] }
 0x3fc   : > { %14980 = vmatprep.subr.bf16.mxu0 %v24464_v2 }
 0x3fe   : > { %5620 = vmatmul.mubr.f32.gmra.mrb[46].mxu0 %v19856_v14 }
 0x3ff   : > { %5625 = vmatprep.mubr.f32.mxu0 %v19863_v19  ;;  %14982 = vmatpush1.bf16.msra.mxu0 %v24724_v59  ;;  %v24737_v59 = vld [vmem:[#allocation41_spill] sm:$0xff] }
 0x400   : > { %14983 = vmatprep.subr.bf16.mxu0 %v24464_v2 }
 0x401   : > { %v4398_v34 = vpop.f32.mrb[34].mxu1 }
 0x402   : > { %5627 = vmatmul.mubr.f32.gmra.mrb[48].mxu0 %v19870_v60  ;;  %v4400_v31 = vpop.f32.mrb[35].mxu1 }
 0x403   : > { %5632 = vmatprep.mubr.f32.mxu0 %v19886_v6  ;;  %14985 = vmatpush1.bf16.msra.mxu0 %v24725_v30  ;;  %v24736_v30 = vld [vmem:[#allocation101_spill] sm:$0xff] }
 0x404   : > { %14986 = vmatprep.subr.bf16.mxu0 %v24464_v2 }
 0x406   : > { %5634 = vmatmul.mubr.f32.gmra.mrb[50].mxu0 %v19896_v48 }
 0x407   : > { %5639 = vmatprep.mubr.f32.mxu0 %v19913_v38  ;;  %14988 = vmatpush1.bf16.msra.mxu0 %v24726_v53  ;;  %v24735_v53 = vld [vmem:[#allocation35_spill] sm:$0xff] }
 0x408   : > { %14989 = vmatprep.subr.bf16.mxu0 %v24464_v2 }
 0x409   : > { %v4226_v4 = vpop.f32.mrb[32].mxu0 }
 0x40a   : > { %v4399_v63 = vadd.f32 %v4398_v34, %v4226_v4  ;;  %5641 = vmatmul.mubr.f32.gmra.mrb[52].mxu0 %v19904_v1  ;;  %v4228_v50 = vpop.f32.mrb[33].mxu0  ;;  %v24754_v1 = vld [vmem:[#allocation21_spill] sm:$0xff] }
 0x40b   : > { %5646 = vmatprep.mubr.f32.mxu0 %v19932_v24  ;;  %14991 = vmatpush1.bf16.msra.mxu0 %v19598_v54  ;;  %v24732_v54 = vld [vmem:[#allocation82_spill] sm:$0xff] }
 0x40c   : > { %14992 = vmatprep.subr.bf16.mxu0 %v24464_v2 }
 0x40e   : > { %5648 = vmatmul.mubr.f32.gmra.mrb[54].mxu0 %v19947_v39 }
 0x40f   : > { %5653 = vmatprep.mubr.f32.mxu0 %v19958_v23  ;;  %14994 = vmatpush1.bf16.msra.mxu0 %v19328_v45  ;;  %v24728_v45 = vld [vmem:[#allocation11_spill] sm:$0xff] }
 0x410   : > { %14995 = vmatprep.subr.bf16.mxu0 %v24464_v2 }
 0x412   : > { %5655 = vmatmul.mubr.f32.gmra.mrb[56].mxu0 %v19970_v8 }
 0x413   : > { %5660 = vmatprep.mubr.f32.mxu0 %v19981_v40  ;;  %14997 = vmatpush1.bf16.msra.mxu0 %v19332_v7  ;;  %v24727_v7 = vld [vmem:[#allocation86_spill] sm:$0xff]  ;;  %v426_v40 = vld [vmem:[%s23288_s4] sm:$0x1] }
 0x414   : > { %14998 = vmatprep.subr.bf16.mxu0 %v24464_v2 }
 0x416   : > { %5662 = vmatmul.mubr.f32.gmra.mrb[58].mxu0 %v19989_v27  ;;  %v24750_v27 = vld [vmem:[#allocation64_spill] sm:$0xff] }
 0x417   : > { %5667 = vmatprep.mubr.f32.mxu0 %v19997_v36  ;;  %v24749_v36 = vld [vmem:[#allocation66_spill] sm:$0xff] }
 0x41a   : > { %5669 = vmatmul.mubr.f32.gmra.mrb[60].mxu0 %v20011_v26  ;;  %v24748_v26 = vld [vmem:[#allocation112_spill] sm:$0xff] }
 0x41b   : > { %5674 = vmatprep.mubr.f32.mxu0 %v20026_v33  ;;  %v24747_v33 = vld [vmem:[#allocation55_spill] sm:$0xff] }
 0x41e   : > { %5676 = vmatmul.mubr.f32.gmra.mrb[62].mxu0 %v20038_v46 }
 0x41f   : > { %5681 = vmatprep.mubr.f32.mxu0 %v20047_v3  ;;  %v24746_v3 = vld [vmem:[#allocation19_spill] sm:$0xff] }
 0x422   : > { %5683 = vmatmul.mubr.f32.gmra.mrb[64].mxu0 %v20061_v0 }
 0x423   : > { %5688 = vmatprep.mubr.f32.mxu0 %v20068_v21  ;;  %v24745_v21 = vld [vmem:[#allocation110_spill] sm:$0xff] }
 0x426   : > { %5690 = vmatmul.mubr.f32.gmra.mrb[66].mxu0 %v20079_v10  ;;  %v24744_v10 = vld [vmem:[#allocation40_spill] sm:$0xff] }
 0x427   : > { %5695 = vmatprep.mubr.f32.mxu0 %v20089_v18  ;;  %v24743_v18 = vld [vmem:[#allocation100_spill] sm:$0xff] }
 0x429   : > { %v4608_v50 = vpop.f32.mrb[36].mxu1 }
 0x42a   : > { %v4610_v4 = vpop.f32.mrb[37].mxu1  ;;  %5697 = vmatmul.mubr.f32.gmra.mrb[68].mxu0 %v20098_v42  ;;  %v24742_v42 = vld [vmem:[#allocation108_spill] sm:$0xff] }
 0x42b   : > { %5808 = vmatprep.mubr.f32.mxu0 %v19732_v61 }
 0x42e   : > { %5811 = vmatmul.mubr.f32.vlgmr.msra.gmra.mrb[38].mxu0 %v19795_v22 }
 0x42f   : > { %5817 = vmatprep.mubr.f32.mxu0 %v19803_v9  ;;  %15000 = vmatpush1.bf16.msra.mxu0 %v24576_v49 }
 0x430   : > { %15001 = vmatprep.subr.bf16.mxu0 %v24464_v2 }
 0x431   : > { %v4512_v34 = vpop.f32.mrb[34].mxu0 }
 0x432   : > { %v4513_v31 = vadd.f32 %v4512_v34, %v4399_v63  ;;  %v4514_v17 = vpop.f32.mrb[35].mxu0  ;;  %5820 = vmatmul.mubr.f32.gmra.mrb[40].mxu0 %v19812_v12  ;;  %v24730_v63 = vld [vmem:[#allocation95_spill] sm:$0xff]  ;;  %v24731_v34 = vld [vmem:[#allocation16_spill] sm:$0xff] }
 0x433   : > { %5826 = vmatprep.mubr.f32.mxu0 %v19822_v15  ;;  %15003 = vmatpush1.bf16.msra.mxu0 %v24577_v56  ;;  %v24729_v17 = vld [vmem:[#allocation71_spill] sm:$0xff] }
 0x434   : > { %15004 = vmatprep.subr.bf16.mxu0 %v24464_v2  ;;  %v4609_v4 = vadd.f32 %v4608_v50, %v4513_v31  ;;  %v24733_v50 = vld [vmem:[#allocation97_spill] sm:$0xff]  ;;  %v24734_v31 = vld [vmem:[#allocation34_spill] sm:$0xff] }
 0x436   : > { %5829 = vmatmul.mubr.f32.gmra.mrb[42].mxu0 %v19833_v35 }
 0x437   : > { %5835 = vmatprep.mubr.f32.mxu0 %v19837_v55  ;;  %15006 = vmatpush1.bf16.msra.mxu0 %v24727_v7 }
 0x438   : > { %15007 = vmatprep.subr.bf16.mxu0 %v24464_v2 }
 0x43a   : > { %5838 = vmatmul.mubr.f32.gmra.mrb[44].mxu0 %v24728_v45 }
 0x43b   : > { %5844 = vmatprep.mubr.f32.mxu0 %v24729_v17  ;;  %15009 = vmatpush1.bf16.msra.mxu0 %v24730_v63 }
 0x43c   : > { %15010 = vmatprep.subr.bf16.mxu0 %v24464_v2 }
 0x43e   : > { %5847 = vmatmul.mubr.f32.gmra.mrb[46].mxu0 %v24731_v34 }
 0x43f   : > { %5853 = vmatprep.mubr.f32.mxu0 %v24732_v54  ;;  %15012 = vmatpush1.bf16.msra.mxu0 %v24733_v50 }
 0x440   : > { %15013 = vmatprep.subr.bf16.mxu0 %v24464_v2 }
 0x442   : > { %5856 = vmatmul.mubr.f32.gmra.mrb[48].mxu0 %v24734_v31 }
 0x443   : > { %5862 = vmatprep.mubr.f32.mxu0 %v24735_v53  ;;  %15015 = vmatpush1.bf16.msra.mxu0 %v24736_v30 }
 0x444   : > { %15016 = vmatprep.subr.bf16.mxu0 %v24464_v2 }
 0x446   : > { %5865 = vmatmul.mubr.f32.gmra.mrb[50].mxu0 %v24737_v59 }
 0x447   : > { %5871 = vmatprep.mubr.f32.mxu0 %v24738_v5  ;;  %15018 = vmatpush1.bf16.msra.mxu0 %v24739_v28  ;;  %v24755_v28 = vld [vmem:[#allocation5_spill] sm:$0xff] }
 0x448   : > { %15019 = vmatprep.subr.bf16.mxu0 %v24464_v2 }
 0x44a   : > { %5874 = vmatmul.mubr.f32.gmra.mrb[52].mxu0 %v24740_v62 }
 0x44b   : > { %5880 = vmatprep.mubr.f32.mxu0 %v24741_v16  ;;  %15021 = vmatpush1.bf16.msra.mxu0 %v24742_v42  ;;  %v24753_v42 = vld [vmem:[#allocation75_spill] sm:$0xff] }
 0x44c   : > { %15022 = vmatprep.subr.bf16.mxu0 %v24464_v2 }
 0x44e   : > { %5883 = vmatmul.mubr.f32.gmra.mrb[54].mxu0 %v24743_v18 }
 0x44f   : > { %5889 = vmatprep.mubr.f32.mxu0 %v24744_v10  ;;  %15024 = vmatpush1.bf16.msra.mxu0 %v24745_v21  ;;  %v20226_v21 = vmul.f32 16.0, %v426_v40  ;;  %v24760_v40 = vand.u32 4294901760, %v19812_v12  ;;  %v24766_v12 = vand.u32 4294901760, %v24728_v45  ;;  %v24772_v45 = vand.u32 4294901760, %v24734_v31 }
 0x450   : > { %15025 = vmatprep.subr.bf16.mxu0 %v24464_v2  ;;  %v24778_v31 = vand.u32 4294901760, %v24740_v62  ;;  %v24784_v62 = vand.u32 4294901760, %v24746_v3 }
 0x451   : > { %24751 = vst [vmem:[#allocation11_spill] sm:$0xff] %v20226_v21 }
 0x452   : > { %v4832_v0 = vpop.f32.mrb[38].mxu1  ;;  %5892 = vmatmul.mubr.f32.gmra.mrb[56].mxu0 %v24746_v3  ;;  %v24791_v3 = vand.u32 4294901760, %v24754_v1 }
 0x453   : > { %v4834_v46 = vpop.f32.mrb[39].mxu1  ;;  %5898 = vmatprep.mubr.f32.mxu0 %v24747_v33  ;;  %15027 = vmatpush1.bf16.msra.mxu0 %v24748_v26 }
 0x454   : > { %15028 = vmatprep.subr.bf16.mxu0 %v24464_v2  ;;  %v24752_v46 = vld [vmem:[#allocation105_spill] sm:$0xff] }
 0x456   : > { %5901 = vmatmul.mubr.f32.gmra.mrb[58].mxu0 %v24749_v36 }
 0x457   : > { %5907 = vmatprep.mubr.f32.mxu0 %v24750_v27 }
 0x459   : > { %v4740_v8 = vpop.f32.mrb[36].mxu0 }
 0x45a   : > { %v4741_v23 = vadd.f32 %v4740_v8, %v4609_v4  ;;  %v4742_v39 = vpop.f32.mrb[37].mxu0  ;;  %5910 = vmatmul.mubr.f32.gmra.mrb[60].mxu0 %v24752_v46  ;;  %v24759_v8 = vld [vmem:[#allocation18_spill] sm:$0xff]  ;;  %v24768_v4 = vld [vmem:[#allocation39_spill] sm:$0xff] }
 0x45b   : > { %5916 = vmatprep.mubr.f32.mxu0 %v24753_v42 }
 0x45c   : > { %v4833_v26 = vadd.f32 %v4832_v0, %v4741_v23  ;;  %v24756_v23 = vand.u32 4294901760, %v19732_v61  ;;  %v24761_v0 = vand.u32 4294901760, %v19822_v15  ;;  %v24763_v61 = vand.u32 4294901760, %v19833_v35 }
 0x45d   : > { %v24767_v15 = vand.u32 4294901760, %v24729_v17  ;;  %v24769_v35 = vand.u32 4294901760, %v24731_v34  ;;  %v24773_v17 = vand.u32 4294901760, %v24735_v53  ;;  %v24775_v34 = vand.u32 4294901760, %v24737_v59 }
 0x45e   : > { %v4836_v24 = vadd.f32 %v4833_v26, %v20226_v21  ;;  %5919 = vmatmul.mubr.f32.gmra.mrb[62].mxu0 %v24754_v1  ;;  %v24758_v26 = vand.u32 4294901760, %v19803_v9  ;;  %v24765_v9 = vld [vmem:[#allocation94_spill] sm:$0xff]  ;;  %v24779_v53 = vand.u32 4294901760, %v24741_v16  ;;  %v24781_v59 = vand.u32 4294901760, %v24743_v18  ;;  %v24799_v1 = vld [vmem:[#allocation104_spill] sm:$0xff] }
 0x45f   : > { %5925 = vmatprep.mubr.f32.mxu0 %v20066_v11  ;;  %v24785_v16 = vand.u32 4294901760, %v24747_v33  ;;  %v24787_v18 = vand.u32 4294901760, %v24749_v36  ;;  %v24792_v33 = vand.u32 4294901760, %v20066_v11  ;;  %v24794_v36 = vand.u32 4294901760, %v20087_v47  ;;  %v24800_v11 = vld [vmem:[#allocation87_spill] sm:$0xff] }
 0x460   : > { %v20234_v38 = vmul.f32 %v4836_v24, %v24755_v28  ;;  %v24757_v24 = vand.u32 4294901760, %v19795_v22  ;;  %v24762_v28 = vld [vmem:[#allocation38_spill] sm:$0xff]  ;;  %v24764_v22 = vand.u32 4294901760, %v19837_v55  ;;  %v24770_v55 = vand.u32 4294901760, %v24732_v54 }
 0x461   : > { %v24776_v54 = vand.u32 4294901760, %v24738_v5  ;;  %v24782_v5 = vand.u32 4294901760, %v24744_v10  ;;  %v24788_v10 = vand.u32 4294901760, %v24750_v27  ;;  %v24795_v27 = vand.u32 4294901760, %v20096_v58 }
 0x462   : > { %5928 = vmatmul.mubr.f32.gmra.mrb[64].mxu0 %v20077_v13  ;;  %v4839_v39 = vsel %vm4838_vm7, %v20234_v38, 0.0 }
 0x463   : > { %5934 = vmatprep.mubr.f32.mxu0 %v20087_v47  ;;  %4840 = vadd.xlane.f32.xlu0 %v4839_v39  ;;  %v24771_v39 = vld [vmem:[#allocation78_spill] sm:$0xff]  ;;  %v24802_v47 = vld [vmem:[#allocation108_spill] sm:$0xff] }
 0x466   : > { %5937 = vmatmul.mubr.f32.gmra.mrb[66].mxu0 %v20096_v58  ;;  %v24798_v58 = vld [vmem:[#allocation44_spill] sm:$0xff] }
 0x467   : > { %5943 = vmatprep.mubr.f32.mxu0 %v20105_v52 }
 0x46a   : > { %5946 = vmatmul.mubr.f32.gmra.mrb[68].mxu0 %v20112_v51 }
 0x46b   : > { %6038 = vmatprep.mubr.f32.mxu0 %v24756_v23  ;;  %v24774_v23 = vld [vmem:[#allocation46_spill] sm:$0xff] }
 0x46e   : > { %6042 = vmatmul.mubr.f32.vlgmr.msra.gmra.mrb[38].mxu0 %v24757_v24  ;;  %v24777_v24 = vld [vmem:[#allocation30_spill] sm:$0xff] }
 0x46f   : > { %6049 = vmatprep.mubr.f32.mxu0 %v24758_v26  ;;  %15030 = vmatpush1.bf16.msra.mxu0 %v24759_v8  ;;  %v24780_v26 = vld [vmem:[#allocation54_spill] sm:$0xff] }
 0x470   : > { %15031 = vmatprep.subr.bf16.mxu0 %v24464_v2 }
 0x472   : > { %6053 = vmatmul.mubr.f32.gmra.mrb[40].mxu0 %v24760_v40  ;;  %v24783_v40 = vld [vmem:[#allocation8_spill] sm:$0xff] }
 0x473   : > { %6060 = vmatprep.mubr.f32.mxu0 %v24761_v0  ;;  %15033 = vmatpush1.bf16.msra.mxu0 %v24762_v28  ;;  %v24786_v0 = vld [vmem:[#allocation63_spill] sm:$0xff] }
 0x474   : > { %15034 = vmatprep.subr.bf16.mxu0 %v24464_v2 }
 0x476   : > { %6064 = vmatmul.mubr.f32.gmra.mrb[42].mxu0 %v24763_v61  ;;  %v24789_v61 = vand.u32 4294901760, %v24752_v46  ;;  %v24796_v46 = vand.u32 4294901760, %v20105_v52  ;;  %v24803_v52 = vld [vmem:[#allocation93_spill] sm:$0xff] }
 0x477   : > { %6071 = vmatprep.mubr.f32.mxu0 %v24764_v22  ;;  %15036 = vmatpush1.bf16.msra.mxu0 %v24765_v9  ;;  %v24790_v22 = vand.u32 4294901760, %v24753_v42  ;;  %v24797_v42 = vand.u32 4294901760, %v20112_v51  ;;  %v24804_v51 = vld [vmem:[#allocation99_spill] sm:$0xff] }
 0x478   : > { %15037 = vmatprep.subr.bf16.mxu0 %v24464_v2 }
 0x47a   : > { %6075 = vmatmul.mubr.f32.gmra.mrb[44].mxu0 %v24766_v12  ;;  %v24793_v12 = vand.u32 4294901760, %v20077_v13  ;;  %v24801_v13 = vld [vmem:[#allocation73_spill] sm:$0xff] }
 0x47b   : > { %6082 = vmatprep.mubr.f32.mxu0 %v24767_v15  ;;  %15039 = vmatpush1.bf16.msra.mxu0 %v24768_v4  ;;  %v24805_v15 = vld [vmem:[#allocation110_spill] sm:$0xff] }
 0x47c   : > { %15040 = vmatprep.subr.bf16.mxu0 %v24464_v2 }
 0x47e   : > { %6086 = vmatmul.mubr.f32.gmra.mrb[46].mxu0 %v24769_v35  ;;  %v24806_v35 = vld [vmem:[#allocation9_spill] sm:$0xff] }
 0x47f   : > { %6093 = vmatprep.mubr.f32.mxu0 %v24770_v55  ;;  %15042 = vmatpush1.bf16.msra.mxu0 %v24771_v39  ;;  %v24807_v55 = vld [vmem:[#allocation12_spill] sm:$0xff] }
 0x480   : > { %15043 = vmatprep.subr.bf16.mxu0 %v24464_v2 }
 0x482   : > { %6097 = vmatmul.mubr.f32.gmra.mrb[48].mxu0 %v24772_v45  ;;  %v24808_v45 = vld [vmem:[#allocation112_spill] sm:$0xff] }
 0x483   : > { %6104 = vmatprep.mubr.f32.mxu0 %v24773_v17  ;;  %15045 = vmatpush1.bf16.msra.mxu0 %v24774_v23  ;;  %v24809_v17 = vld [vmem:[#allocation53_spill] sm:$0xff] }
 0x484   : > { %15046 = vmatprep.subr.bf16.mxu0 %v24464_v2 }
 0x486   : > { %6108 = vmatmul.mubr.f32.gmra.mrb[50].mxu0 %v24775_v34  ;;  %v24810_v34 = vld [vmem:[#allocation60_spill] sm:$0xff] }
 0x487   : > { %6115 = vmatprep.mubr.f32.mxu0 %v24776_v54  ;;  %15048 = vmatpush1.bf16.msra.mxu0 %v24777_v24  ;;  %v24811_v54 = vld [vmem:[#allocation32_spill] sm:$0xff] }
 0x488   : > { %15049 = vmatprep.subr.bf16.mxu0 %v24464_v2 }
 0x48a   : > { %6119 = vmatmul.mubr.f32.gmra.mrb[52].mxu0 %v24778_v31  ;;  %v24812_v31 = vld [vmem:[#allocation103_spill] sm:$0xff] }
 0x48b   : > { %6126 = vmatprep.mubr.f32.mxu0 %v24779_v53  ;;  %15051 = vmatpush1.bf16.msra.mxu0 %v24780_v26  ;;  %v24813_v53 = vld [vmem:[#allocation106_spill] sm:$0xff] }
 0x48c   : > { %15052 = vmatprep.subr.bf16.mxu0 %v24464_v2 }
 0x48e   : > { %6130 = vmatmul.mubr.f32.gmra.mrb[54].mxu0 %v24781_v59  ;;  %v24814_v59 = vld [vmem:[#allocation59_spill] sm:$0xff] }
 0x48f   : > { %6137 = vmatprep.mubr.f32.mxu0 %v24782_v5  ;;  %15054 = vmatpush1.bf16.msra.mxu0 %v24783_v40  ;;  %v24815_v5 = vld [vmem:[#allocation120_spill] sm:$0xff] }
 0x490   : > { %15055 = vmatprep.subr.bf16.mxu0 %v24464_v2 }
 0x492   : > { %6141 = vmatmul.mubr.f32.gmra.mrb[56].mxu0 %v24784_v62  ;;  %v24816_v62 = vld [vmem:[#allocation121_spill] sm:$0xff] }
 0x493   : > { %6148 = vmatprep.mubr.f32.mxu0 %v24785_v16  ;;  %15057 = vmatpush1.bf16.msra.mxu0 %v24786_v0  ;;  %v24817_v16 = vld [vmem:[#allocation122_spill] sm:$0xff] }
 0x494   : > { %15058 = vmatprep.subr.bf16.mxu0 %v24464_v2 }
 0x496   : > { %6152 = vmatmul.mubr.f32.gmra.mrb[58].mxu0 %v24787_v18  ;;  %v24818_v18 = vld [vmem:[#allocation123_spill] sm:$0xff] }
 0x497   : > { %6159 = vmatprep.mubr.f32.mxu0 %v24788_v10  ;;  %v24819_v10 = vld [vmem:[#allocation124_spill] sm:$0xff] }
 0x49a   : > { %6163 = vmatmul.mubr.f32.gmra.mrb[60].mxu0 %v24789_v61 }
 0x49b   : > { %6170 = vmatprep.mubr.f32.mxu0 %v24790_v22 }
 0x49e   : > { %6174 = vmatmul.mubr.f32.gmra.mrb[62].mxu0 %v24791_v3 }
 0x49f   : > { %6181 = vmatprep.mubr.f32.mxu0 %v24792_v33 }
 0x4a2   : > { %6185 = vmatmul.mubr.f32.gmra.mrb[64].mxu0 %v24793_v12 }
 0x4a3   : > { %6192 = vmatprep.mubr.f32.mxu0 %v24794_v36 }
 0x4a6   : > { %6196 = vmatmul.mubr.f32.gmra.mrb[66].mxu0 %v24795_v27 }
 0x4a7   : > { %6203 = vmatprep.mubr.f32.mxu0 %v24796_v46 }
 0x4aa   : > { %6207 = vmatmul.mubr.f32.gmra.mrb[68].mxu0 %v24797_v42 }
 0x4ab   : > { %6337 = vmatprep.mubr.f32.mxu0 %v19719_v41 }
 0x4ae   : > { %6339 = vmatmul.mubr.f32.vlgmr.msra.gmra.mrb[38].mxu0 %v19785_v37 }
 0x4af   : > { %6344 = vmatprep.mubr.f32.mxu0 %v19789_v57  ;;  %15060 = vmatpush1.bf16.msra.mxu0 %v24576_v49 }
 0x4b0   : > { %15061 = vmatprep.subr.bf16.mxu0 %v24464_v2 }
 0x4b2   : > { %6346 = vmatmul.mubr.f32.gmra.mrb[40].mxu0 %v19797_v32 }
 0x4b3   : > { %6351 = vmatprep.mubr.f32.mxu0 %v19805_v44  ;;  %15063 = vmatpush1.bf16.msra.mxu0 %v24577_v56 }
 0x4b4   : > { %15064 = vmatprep.subr.bf16.mxu0 %v24464_v2 }
 0x4b6   : > { %6353 = vmatmul.mubr.f32.gmra.mrb[42].mxu0 %v19814_v29 }
 0x4b7   : > { %6358 = vmatprep.mubr.f32.mxu0 %v19817_v25  ;;  %15066 = vmatpush1.bf16.msra.mxu0 %v24727_v7 }
 0x4b8   : > { %15067 = vmatprep.subr.bf16.mxu0 %v24464_v2 }
 0x4ba   : > { %6360 = vmatmul.mubr.f32.gmra.mrb[44].mxu0 %v19825_v43 }
 0x4bb   : > { %6365 = vmatprep.mubr.f32.mxu0 %v19839_v20  ;;  %15069 = vmatpush1.bf16.msra.mxu0 %v24730_v63 }
 0x4bc   : > { %15070 = vmatprep.subr.bf16.mxu0 %v24464_v2 }
 0x4be   : > { %6367 = vmatmul.mubr.f32.gmra.mrb[46].mxu0 %v19856_v14 }
 0x4bf   : > { %6372 = vmatprep.mubr.f32.mxu0 %v19863_v19  ;;  %15072 = vmatpush1.bf16.msra.mxu0 %v24733_v50 }
 0x4c0   : > { %15073 = vmatprep.subr.bf16.mxu0 %v24464_v2 }
 0x4c2   : > { %6374 = vmatmul.mubr.f32.gmra.mrb[48].mxu0 %v19870_v60 }
 0x4c3   : > { %6379 = vmatprep.mubr.f32.mxu0 %v19886_v6  ;;  %15075 = vmatpush1.bf16.msra.mxu0 %v24736_v30 }
 0x4c4   : > { %15076 = vmatprep.subr.bf16.mxu0 %v24464_v2 }
 0x4c6   : > { %6381 = vmatmul.mubr.f32.gmra.mrb[50].mxu0 %v19896_v48 }
 0x4c7   : > { %6386 = vmatprep.mubr.f32.mxu0 %v24798_v58  ;;  %15078 = vmatpush1.bf16.msra.mxu0 %v24799_v1 }
 0x4c8   : > { %15079 = vmatprep.subr.bf16.mxu0 %v24464_v2 }
 0x4ca   : > { %6388 = vmatmul.mubr.f32.gmra.mrb[52].mxu0 %v24800_v11 }
 0x4cb   : > { %6393 = vmatprep.mubr.f32.mxu0 %v24801_v13  ;;  %15081 = vmatpush1.bf16.msra.mxu0 %v24802_v47 }
 0x4cc   : > { %15082 = vmatprep.subr.bf16.mxu0 %v24464_v2 }
 0x4ce   : > { %6395 = vmatmul.mubr.f32.gmra.mrb[54].mxu0 %v24803_v52 }
 0x4cf   : > { %6400 = vmatprep.mubr.f32.mxu0 %v24804_v51  ;;  %15084 = vmatpush1.bf16.msra.mxu0 %v24805_v15 }
 0x4d0   : > { %15085 = vmatprep.subr.bf16.mxu0 %v24464_v2 }
 0x4d2   : > { %6402 = vmatmul.mubr.f32.gmra.mrb[56].mxu0 %v24806_v35 }
 0x4d3   : > { %6407 = vmatprep.mubr.f32.mxu0 %v24807_v55  ;;  %15087 = vmatpush1.bf16.msra.mxu0 %v24808_v45 }
 0x4d4   : > { %15136 = vmatprep.subr.bf16.mxu0 %v24464_v2 }
 0x4d6   : > { %6409 = vmatmul.mubr.f32.gmra.mrb[58].mxu0 %v24809_v17 }
 0x4d7   : > { %6414 = vmatprep.mubr.f32.mxu0 %v24810_v34 }
 0x4da   : > { %6416 = vmatmul.mubr.f32.gmra.mrb[60].mxu0 %v24811_v54 }
 0x4db   : > { %6421 = vmatprep.mubr.f32.mxu0 %v24812_v31 }
 0x4de   : > { %6423 = vmatmul.mubr.f32.gmra.mrb[62].mxu0 %v24813_v53 }
 0x4df   : > { %6428 = vmatprep.mubr.f32.mxu0 %v24814_v59 }
 0x4e2   : > { %6430 = vmatmul.mubr.f32.gmra.mrb[64].mxu0 %v24815_v5 }
 0x4e3   : > { %6435 = vmatprep.mubr.f32.mxu0 %v24816_v62 }
 0x4e6   : > { %6437 = vmatmul.mubr.f32.gmra.mrb[66].mxu0 %v24817_v16 }
 0x4e7   : > { %6442 = vmatprep.mubr.f32.mxu0 %v24818_v18 }
 0x4ea   : > { %6444 = vmatmul.mubr.f32.gmra.mrb[68].mxu0 %v24819_v10 }
 0x4eb   : > { %6534 = vmatprep.mubr.f32.mxu0 %v19719_v41 }
 0x4ee   : > { %6536 = vmatmul.mubr.f32.vlgmr.msra.gmra.mrb[38].mxu0 %v19785_v37 }
 0x4ef   : > { %6541 = vmatprep.mubr.f32.mxu0 %v19789_v57  ;;  %15138 = vmatpush1.bf16.msra.mxu0 %v24576_v49 }
 0x4f0   : > { %v4841_v61 = vpop.xlane.xlu0 %4840  ;;  %15139 = vmatprep.subr.bf16.mxu0 %v24464_v2 }
 0x4f1   : > { %v20384_v22 = vmul.f32 0.1, %v4841_v61 }
 0x4f2   : > { %6543 = vmatmul.mubr.f32.gmra.mrb[40].mxu0 %v19797_v32 }
 0x4f3   : > { %v4844_v3 = vsub.f32 %v20234_v38, %v20384_v22  ;;  %6548 = vmatprep.mubr.f32.mxu0 %v19805_v44  ;;  %15141 = vmatpush1.bf16.msra.mxu0 %v24577_v56 }
 0x4f4   : > { %15142 = vmatprep.subr.bf16.mxu0 %v24464_v2 }
 0x4f5   : > { %v4845_v41 = vmul.f32 %v4844_v3, %v4844_v3 }
 0x4f6   : > { %6550 = vmatmul.mubr.f32.gmra.mrb[42].mxu0 %v19814_v29 }
 0x4f7   : > { %6555 = vmatprep.mubr.f32.mxu0 %v19817_v25  ;;  %v4846_v37 = vsel %vm4838_vm7, %v4845_v41, 0.0  ;;  %15144 = vmatpush1.bf16.msra.mxu0 %v24727_v7 }
 0x4f8   : > { %4847 = vadd.xlane.f32.xlu0 %v4846_v37  ;;  %15145 = vmatprep.subr.bf16.mxu0 %v24464_v2 }
 0x4fa   : > { %6557 = vmatmul.mubr.f32.gmra.mrb[44].mxu0 %v19825_v43 }
 0x4fb   : > { %6562 = vmatprep.mubr.f32.mxu0 %v19839_v20  ;;  %15147 = vmatpush1.bf16.msra.mxu0 %v24730_v63  ;;  %v4857_v20 = vsub.f32 %v20384_v22, %v20234_v38 }
 0x4fc   : > { %15148 = vmatprep.subr.bf16.mxu0 %v24464_v2 }
 0x4fe   : > { %6564 = vmatmul.mubr.f32.gmra.mrb[46].mxu0 %v19856_v14 }
 0x4ff   : > { %6569 = vmatprep.mubr.f32.mxu0 %v19863_v19  ;;  %15150 = vmatpush1.bf16.msra.mxu0 %v24733_v50 }
 0x500   : > { %15151 = vmatprep.subr.bf16.mxu0 %v24464_v2 }
 0x502   : > { %6571 = vmatmul.mubr.f32.gmra.mrb[48].mxu0 %v19870_v60 }
 0x503   : > { %6576 = vmatprep.mubr.f32.mxu0 %v19886_v6  ;;  %15153 = vmatpush1.bf16.msra.mxu0 %v24736_v30 }
 0x504   : > { %15154 = vmatprep.subr.bf16.mxu0 %v24464_v2 }
 0x506   : > { %6578 = vmatmul.mubr.f32.gmra.mrb[50].mxu0 %v19896_v48  ;;  %v427_v48 = vld [vmem:[%s23289_s5] sm:$0x1] }
 0x507   : > { %6583 = vmatprep.mubr.f32.mxu0 %v24798_v58  ;;  %15156 = vmatpush1.bf16.msra.mxu0 %v24799_v1  ;;  %v24820_v58 = vld [vmem:[#allocation117_spill] sm:$0xff] }
 0x508   : > { %15157 = vmatprep.subr.bf16.mxu0 %v24464_v2 }
 0x50a   : > { %6585 = vmatmul.mubr.f32.gmra.mrb[52].mxu0 %v24800_v11 }
 0x50b   : > { %6590 = vmatprep.mubr.f32.mxu0 %v24801_v13  ;;  %15159 = vmatpush1.bf16.msra.mxu0 %v24802_v47 }
 0x50c   : > { %15160 = vmatprep.subr.bf16.mxu0 %v24464_v2 }
 0x50e   : > { %6592 = vmatmul.mubr.f32.gmra.mrb[54].mxu0 %v24803_v52 }
 0x50f   : > { %6597 = vmatprep.mubr.f32.mxu0 %v24804_v51  ;;  %15162 = vmatpush1.bf16.msra.mxu0 %v24805_v15 }
 0x510   : > { %15163 = vmatprep.subr.bf16.mxu0 %v24464_v2 }
 0x512   : > { %6599 = vmatmul.mubr.f32.gmra.mrb[56].mxu0 %v24806_v35 }
 0x513   : > { %6604 = vmatprep.mubr.f32.mxu0 %v24807_v55  ;;  %15165 = vmatpush1.bf16.msra.mxu0 %v24808_v45 }
 0x514   : > { %15166 = vmatprep.subr.bf16.mxu0 %v24464_v2 }
 0x516   : > { %6606 = vmatmul.mubr.f32.gmra.mrb[58].mxu0 %v24809_v17 }
 0x517   : > { %6611 = vmatprep.mubr.f32.mxu0 %v24810_v34 }
 0x51a   : > { %6613 = vmatmul.mubr.f32.gmra.mrb[60].mxu0 %v24811_v54 }
 0x51b   : > { %6618 = vmatprep.mubr.f32.mxu0 %v24812_v31 }
 0x51e   : > { %6620 = vmatmul.mubr.f32.gmra.mrb[62].mxu0 %v24813_v53 }
 0x51f   : > { %6625 = vmatprep.mubr.f32.mxu0 %v24814_v59 }
 0x522   : > { %6627 = vmatmul.mubr.f32.gmra.mrb[64].mxu0 %v24815_v5 }
 0x523   : > { %6632 = vmatprep.mubr.f32.mxu0 %v24816_v62 }
 0x526   : > { %6634 = vmatmul.mubr.f32.gmra.mrb[66].mxu0 %v24817_v16 }
 0x527   : > { %6639 = vmatprep.mubr.f32.mxu0 %v24818_v18 }
 0x52a   : > { %6641 = vmatmul.mubr.f32.gmra.mrb[68].mxu0 %v24819_v10 }
 0x585   : > { %v4848_v60 = vpop.xlane.xlu0 %4847 }
 0x586   : > { %v4849_v14 = vmul.f32 0.1, %v4848_v60 }
 0x588   : > { %16842 = vrsqrt.f32 %v4849_v14  ;;  %vm4852_vm8 = vcmp.eq.f32.partialorder %v4849_v14, inf  ;;  %v4855_v44 = vand.u32 2147483648, %v4849_v14  ;;  %vm4854_vm9 = vcmp.eq.f32.partialorder %v4849_v14, 0.0 }
 0x592   : > { %v16843_v57 = vpop.eup %16842 }
 0x593   : > { %v4851_v32 = vmul.f32 %v16843_v57, %v4849_v14 }
 0x595   : > { %v4853_v29 = vsel %vm4852_vm8, %v4849_v14, %v4851_v32 }
 0x596   : > { %v4856_v25 = vsel %vm4854_vm9, %v4855_v44, %v4853_v29 }
 0x597   : > { %v4858_v43 = vadd.f32 1e-09, %v4856_v25 }
 0x599   : > { %16844 = vrcp.f32 %v4858_v43 }
 0x5a3   : > { %v16845_v19 = vpop.eup %16844 }
 0x5a4   : > { %v4860_v6 = vmul.f32 %v16845_v19, %v4857_v20 }
 0x5a6   : > { %v4861_v33 = vadd.f32 %v4860_v6, %v427_v48 }
 0x5a8   : > { %v14482_v12 = vmul.f32 -1.442695, %v4861_v33 }
 0x5aa   : > { %16846 = vpow2.f32 %v14482_v12 }
 0x5b4   : > { %v16847_v36 = vpop.eup %16846 }
 0x5b5   : > { %v4865_v27 = vadd.f32 1.0, %v16847_v36 }
 0x5b7   : > { %16848 = vrcp.f32 %v4865_v27 }
 0x5c1   : > { %v16849_v46 = vpop.eup %16848  ;;  %v6537_v42 = vpop.f32.mrb[38].mxu0 }
 0x5c2   : > { %v20442_v11 = vrot.slane %v16849_v46, %v24820_v58  ;;  %v6539_v13 = vpop.f32.mrb[39].mxu0 }
 0x5c4   : > { %v20445_v38 = vmul.f32 %v20442_v11, %v6537_v42 }
 0x5c5   : > { %v6544_v52 = vpop.f32.mrb[40].mxu0 }
 0x5c6   : > { %v20448_v51 = vmul.f32 %v20442_v11, %v6544_v52  ;;  %v6546_v35 = vpop.f32.mrb[41].mxu0  ;;  %v6668_v55 = vsel %vm2035_vm1, %v20445_v38, 0.0 }
 0x5c7   : > { %6669 = vadd.xlane.f32.xlu1 %v6668_v55 }
 0x5c8   : > { %v6671_v31 = vsel %vm2035_vm1, %v20448_v51, 0.0 }
 0x5c9   : > { %v6551_v17 = vpop.f32.mrb[42].mxu0 }
 0x5ca   : > { %v20453_v34 = vmul.f32 %v20442_v11, %v6551_v17  ;;  %v6553_v54 = vpop.f32.mrb[43].mxu0 }
 0x5cb   : > { %6672 = vadd.xlane.f32.xlu1 %v6671_v31 }
 0x5cc   : > { %v6674_v53 = vsel %vm2035_vm1, %v20453_v34, 0.0 }
 0x5cd   : > { %v6558_v59 = vpop.f32.mrb[44].mxu0  ;;  %6675 = vadd.xlane.f32.xlu0 %v6674_v53 }
 0x5ce   : > { %v20460_v5 = vmul.f32 %v20442_v11, %v6558_v59  ;;  %v6560_v62 = vpop.f32.mrb[45].mxu0 }
 0x5d0   : > { %v6677_v16 = vsel %vm2035_vm1, %v20460_v5, 0.0 }
 0x5d1   : > { %v6565_v18 = vpop.f32.mrb[46].mxu0  ;;  %6678 = vadd.xlane.f32.xlu1 %v6677_v16 }
 0x5d2   : > { %v20465_v10 = vmul.f32 %v20442_v11, %v6565_v18  ;;  %v6567_v61 = vpop.f32.mrb[47].mxu0 }
 0x5d4   : > { %v6680_v22 = vsel %vm2035_vm1, %v20465_v10, 0.0 }
 0x5d5   : > { %v6572_v3 = vpop.f32.mrb[48].mxu0  ;;  %6681 = vadd.xlane.f32.xlu0 %v6680_v22 }
 0x5d6   : > { %v20470_v41 = vmul.f32 %v20442_v11, %v6572_v3  ;;  %v6574_v37 = vpop.f32.mrb[49].mxu0 }
 0x5d8   : > { %v6683_v60 = vsel %vm2035_vm1, %v20470_v41, 0.0 }
 0x5d9   : > { %v6579_v14 = vpop.f32.mrb[50].mxu0  ;;  %6684 = vadd.xlane.f32.xlu1 %v6683_v60 }
 0x5da   : > { %v20475_v57 = vmul.f32 %v20442_v11, %v6579_v14  ;;  %v6581_v32 = vpop.f32.mrb[51].mxu0 }
 0x5dc   : > { %v6686_v44 = vsel %vm2035_vm1, %v20475_v57, 0.0 }
 0x5dd   : > { %v6586_v29 = vpop.f32.mrb[52].mxu0  ;;  %6687 = vadd.xlane.f32.xlu0 %v6686_v44 }
 0x5de   : > { %v20480_v25 = vmul.f32 %v20442_v11, %v6586_v29  ;;  %v6588_v43 = vpop.f32.mrb[53].mxu0 }
 0x5e0   : > { %v6689_v20 = vsel %vm2035_vm1, %v20480_v25, 0.0 }
 0x5e1   : > { %v6593_v19 = vpop.f32.mrb[54].mxu0  ;;  %6690 = vadd.xlane.f32.xlu1 %v6689_v20 }
 0x5e2   : > { %v20485_v48 = vmul.f32 %v20442_v11, %v6593_v19  ;;  %v6595_v6 = vpop.f32.mrb[55].mxu0 }
 0x5e4   : > { %v6692_v33 = vsel %vm2035_vm1, %v20485_v48, 0.0 }
 0x5e5   : > { %v6600_v12 = vpop.f32.mrb[56].mxu0  ;;  %6693 = vadd.xlane.f32.xlu0 %v6692_v33 }
 0x5e6   : > { %v20490_v36 = vmul.f32 %v20442_v11, %v6600_v12  ;;  %v6602_v27 = vpop.f32.mrb[57].mxu0 }
 0x5e8   : > { %v6695_v46 = vsel %vm2035_vm1, %v20490_v36, 0.0 }
 0x5e9   : > { %v6607_v42 = vpop.f32.mrb[58].mxu0  ;;  %6696 = vadd.xlane.f32.xlu1 %v6695_v46 }
 0x5ea   : > { %v20495_v13 = vmul.f32 %v20442_v11, %v6607_v42  ;;  %v6609_v52 = vpop.f32.mrb[59].mxu0 }
 0x5ec   : > { %v6698_v35 = vsel %vm2035_vm1, %v20495_v13, 0.0 }
 0x5ed   : > { %v6614_v55 = vpop.f32.mrb[60].mxu0  ;;  %6699 = vadd.xlane.f32.xlu0 %v6698_v35 }
 0x5ee   : > { %v20500_v17 = vmul.f32 %v20442_v11, %v6614_v55  ;;  %v6616_v54 = vpop.f32.mrb[61].mxu0 }
 0x5f0   : > { %v6701_v31 = vsel %vm2035_vm1, %v20500_v17, 0.0 }
 0x5f1   : > { %v6621_v53 = vpop.f32.mrb[62].mxu0  ;;  %6702 = vadd.xlane.f32.xlu1 %v6701_v31  ;;  %v17022_v31 = vld [vmem:[%s17336_s26] sm:$0xff] }
 0x5f2   : > { %v20505_v59 = vmul.f32 %v20442_v11, %v6621_v53  ;;  %v6623_v62 = vpop.f32.mrb[63].mxu0 }
 0x5f4   : > { %v6704_v16 = vsel %vm2035_vm1, %v20505_v59, 0.0 }
 0x5f5   : > { %v6628_v18 = vpop.f32.mrb[64].mxu0  ;;  %6705 = vadd.xlane.f32.xlu0 %v6704_v16 }
 0x5f6   : > { %v20510_v61 = vmul.f32 %v20442_v11, %v6628_v18  ;;  %v6630_v22 = vpop.f32.mrb[65].mxu0 }
 0x5f8   : > { %v6707_v3 = vsel %vm2035_vm1, %v20510_v61, 0.0 }
 0x5f9   : > { %v6635_v37 = vpop.f32.mrb[66].mxu0  ;;  %6708 = vadd.xlane.f32.xlu1 %v6707_v3 }
 0x5fa   : > { %v20515_v60 = vmul.f32 %v20442_v11, %v6635_v37  ;;  %v6637_v14 = vpop.f32.mrb[67].mxu0 }
 0x5fc   : > { %v6710_v32 = vsel %vm2035_vm1, %v20515_v60, 0.0 }
 0x5fd   : > { %v6642_v44 = vpop.f32.mrb[68].mxu0  ;;  %6711 = vadd.xlane.f32.xlu0 %v6710_v32 }
 0x5fe   : > { %v20520_v29 = vmul.f32 %v20442_v11, %v6642_v44  ;;  %v6644_v43 = vpop.f32.mrb[69].mxu0  ;;  %v17023_v44 = vld [vmem:[%s17336_s26 + $0x8] sm:$0xff] }
 0x600   : > { %v6713_v20 = vsel %vm2035_vm1, %v20520_v29, 0.0 }
 0x601   : > { %6714 = vadd.xlane.f32.xlu1 %v6713_v20 }
 0x654   : > { %v6670_v19 = vpop.xlane.xlu1 %6669 }
 0x655   : > { %v6716_v6 = vadd.f32 1e-09, %v6670_v19 }
 0x657   : > { %16850 = vrcp.f32 %v6716_v6 }
 0x658   : > { %v6673_v33 = vpop.xlane.xlu1 %6672 }
 0x659   : > { %v6717_v12 = vadd.f32 1e-09, %v6673_v33  ;;  %v17024_v33 = vld [vmem:[%s17336_s26 + $0x10] sm:$0xff] }
 0x65a   : > { %v6676_v27 = vpop.xlane.xlu0 %6675 }
 0x65b   : > { %16852 = vrcp.f32 %v6717_v12  ;;  %v6718_v46 = vadd.f32 1e-09, %v6676_v27 }
 0x65d   : > { %16854 = vrcp.f32 %v6718_v46 }
 0x65e   : > { %v6679_v42 = vpop.xlane.xlu1 %6678 }
 0x65f   : > { %v6719_v52 = vadd.f32 1e-09, %v6679_v42 }
 0x661   : > { %v16851_v35 = vpop.eup %16850  ;;  %16856 = vrcp.f32 %v6719_v52 }
 0x662   : > { %v6748_v11 = vmul.f32 %v16851_v35, %v20445_v38  ;;  %v6682_v55 = vpop.xlane.xlu0 %6681 }
 0x663   : > { %v6720_v54 = vadd.f32 1e-09, %v6682_v55 }
 0x664   : > { %v6764_v53 = vmul.f32 %v17022_v31, %v6748_v11 }
 0x665   : > { %v16853_v62 = vpop.eup %16852  ;;  %16858 = vrcp.f32 %v6720_v54 }
 0x666   : > { %v6749_v16 = vmul.f32 %v16853_v62, %v20448_v51  ;;  %v6685_v18 = vpop.xlane.xlu1 %6684  ;;  %v6818_v22 = vsel %vm2035_vm1, %v6764_v53, 0  ;;  %v6780_v19 = vsel %vm2035_vm1, %v6764_v53, 0.0 }
 0x667   : > { %v16855_v3 = vpop.eup %16854  ;;  %v6721_v37 = vadd.f32 1e-09, %v6685_v18  ;;  %v20528_v14 = vand.u32 4294901760, %v6818_v22  ;;  %v17025_v18 = vld [vmem:[%s17336_s26 + $0x18] sm:$0xff] }
 0x668   : > { %v6750_v32 = vmul.f32 %v16855_v3, %v20453_v34  ;;  %v6765_v38 = vmul.f32 %v17023_v44, %v6749_v16 }
 0x669   : > { %16860 = vrcp.f32 %v6721_v37  ;;  %v20533_v43 = vsub.f32 %v6818_v22, %v20528_v14 }
 0x66a   : > { %v6688_v20 = vpop.xlane.xlu0 %6687  ;;  %v6781_v51 = vsel %vm2035_vm1, %v6765_v38, 0.0  ;;  %v6821_v6 = vsel %vm2035_vm1, %v6765_v38, 0  ;;  %v6766_v12 = vmul.f32 %v17024_v33, %v6750_v32 }
 0x66b   : > { %v16857_v27 = vpop.eup %16856  ;;  %v6722_v46 = vadd.f32 1e-09, %v6688_v20  ;;  %v23861_v34 = vand.u32 4294901760, %v20533_v43  ;;  %v6782_v42 = vadd.f32 %v6781_v51, %v6780_v19  ;;  %v20540_v52 = vand.u32 4294901760, %v6821_v6 }
 0x66c   : > { %v6751_v35 = vmul.f32 %v16857_v27, %v20460_v5  ;;  %v6783_v11 = vsel %vm2035_vm1, %v6766_v12, 0.0  ;;  %v6824_v55 = vsel %vm2035_vm1, %v6766_v12, 0  ;;  %v24821_v12 = vld [vmem:[#allocation25_spill] sm:$0xff] }
 0x66d   : > { %16862 = vrcp.f32 %v6722_v46  ;;  %v6937_v54 = vsub.f32 %v20533_v43, %v23861_v34  ;;  %v20549_v31 = vsub.f32 %v6821_v6, %v20540_v52  ;;  %v6784_v53 = vadd.f32 %v6783_v11, %v6782_v42  ;;  %v17026_v42 = vld [vmem:[%s17336_s26 + $0x20] sm:$0xff] }
 0x66e   : > { %v6691_v62 = vpop.xlane.xlu1 %6690  ;;  %v20551_v16 = vand.u32 4294901760, %v6824_v55  ;;  %v6767_v22 = vmul.f32 %v17025_v18, %v6751_v35  ;;  %v24823_v18 = vld [vmem:[#allocation84_spill] sm:$0xff] }
 0x66f   : > { %v16859_v3 = vpop.eup %16858  ;;  %v6723_v5 = vadd.f32 1e-09, %v6691_v62  ;;  %v6938_v37 = vand.u32 4294901760, %v6937_v54  ;;  %v23859_v32 = vand.u32 4294901760, %v20549_v31 }
 0x670   : > { %v6752_v44 = vmul.f32 %v16859_v3, %v20465_v10  ;;  %v20557_v38 = vsub.f32 %v6824_v55, %v20551_v16  ;;  %v6785_v20 = vsel %vm2035_vm1, %v6767_v22, 0.0  ;;  %v6827_v19 = vsel %vm2035_vm1, %v6767_v22, 0 }
 0x671   : > { %16864 = vrcp.f32 %v6723_v5  ;;  %6939 = vmatmul.mubr.f32.vlgmr.msra.gmra.mrb[40].mxu1 %v6938_v37  ;;  %v6948_v51 = vsub.f32 %v20549_v31, %v23859_v32  ;;  %v6786_v6 = vadd.f32 %v6785_v20, %v6784_v53  ;;  %v20564_v33 = vand.u32 4294901760, %v6827_v19 }
 0x672   : > { %15095 = vmatpush1.bf16.msra.mxu1 %v24821_v12  ;;  %v6694_v27 = vpop.xlane.xlu0 %6693  ;;  %v24822_v10 = vmov 0.0   ;;  %v23858_v46 = vand.u32 4294901760, %v20557_v38  ;;  %v6768_v35 = vmul.f32 %v17026_v42, %v6752_v44 }
 0x673   : > { %6944 = vmatprep.mubr.f32.mxu1 %v24822_v10  ;;  %v16861_v11 = vpop.eup %16860  ;;  %v6724_v55 = vadd.f32 1e-09, %v6694_v27  ;;  %v6949_v54 = vand.u32 4294901760, %v6948_v51  ;;  %v20571_v62 = vsub.f32 %v6827_v19, %v20564_v33  ;;  %15097 = vmatprep.subr.bf16.mxu1 %v24823_v18  ;;  %v17027_v51 = vld [vmem:[%s17336_s26 + $0x28] sm:$0xff] }
 0x674   : > { %v6753_v53 = vmul.f32 %v16861_v11, %v20470_v41  ;;  %v6959_v22 = vsub.f32 %v20557_v38, %v23858_v46  ;;  %v6787_v3 = vsel %vm2035_vm1, %v6768_v35, 0.0  ;;  %v6830_v5 = vsel %vm2035_vm1, %v6768_v35, 0 }
 0x675   : > { %16866 = vrcp.f32 %v6724_v55  ;;  %6950 = vmatmul.mubr.f32.gmra.mrb[42].mxu1 %v6949_v54  ;;  %v23857_v37 = vand.u32 4294901760, %v20571_v62  ;;  %v6788_v44 = vadd.f32 %v6787_v3, %v6786_v6  ;;  %v20581_v20 = vand.u32 4294901760, %v6830_v5 }
 0x676   : > { %v6697_v19 = vpop.xlane.xlu1 %6696  ;;  %6955 = vmatprep.mubr.f32.mxu1 %v24822_v10  ;;  %v6769_v41 = vmul.f32 %v17027_v51, %v6753_v53  ;;  %v6960_v11 = vand.u32 4294901760, %v6959_v22 }
 0x677   : > { %v16863_v27 = vpop.eup %16862  ;;  %v6725_v42 = vadd.f32 1e-09, %v6697_v19  ;;  %v6970_v35 = vsub.f32 %v20571_v62, %v23857_v37  ;;  %v20589_v55 = vsub.f32 %v6830_v5, %v20581_v20  ;;  %v17028_v37 = vld [vmem:[%s17336_s26 + $0x30] sm:$0xff] }
 0x678   : > { %v6754_v6 = vmul.f32 %v16863_v27, %v20475_v57  ;;  %v6789_v54 = vsel %vm2035_vm1, %v6769_v41, 0.0  ;;  %v6833_v3 = vsel %vm2035_vm1, %v6769_v41, 0 }
 0x679   : > { %16868 = vrcp.f32 %v6725_v42  ;;  %6961 = vmatmul.mubr.f32.gmra.mrb[44].mxu1 %v6960_v11  ;;  %v23860_v53 = vand.u32 4294901760, %v20589_v55  ;;  %v6790_v51 = vadd.f32 %v6789_v54, %v6788_v44  ;;  %v20596_v22 = vand.u32 4294901760, %v6833_v3 }
 0x67a   : > { %v6700_v19 = vpop.xlane.xlu0 %6699  ;;  %6966 = vmatprep.mubr.f32.mxu1 %v24822_v10  ;;  %v6770_v46 = vmul.f32 %v17028_v37, %v6754_v6  ;;  %v6971_v57 = vand.u32 4294901760, %v6970_v35 }
 0x67b   : > { %v16865_v5 = vpop.eup %16864  ;;  %v6726_v32 = vadd.f32 1e-09, %v6700_v19  ;;  %v6981_v41 = vsub.f32 %v20589_v55, %v23860_v53  ;;  %v20604_v42 = vsub.f32 %v6833_v3, %v20596_v22  ;;  %v17029_v19 = vld [vmem:[%s17336_s26 + $0x38] sm:$0xff] }
 0x67c   : > { %v6755_v27 = vmul.f32 %v16865_v5, %v20480_v25  ;;  %v6791_v44 = vsel %vm2035_vm1, %v6770_v46, 0.0  ;;  %v6836_v11 = vsel %vm2035_vm1, %v6770_v46, 0 }
 0x67d   : > { %16870 = vrcp.f32 %v6726_v32  ;;  %6972 = vmatmul.mubr.f32.gmra.mrb[46].mxu1 %v6971_v57  ;;  %v6792_v37 = vadd.f32 %v6791_v44, %v6790_v51  ;;  %v20608_v6 = vand.u32 4294901760, %v6836_v11  ;;  %v23862_v35 = vand.u32 4294901760, %v20604_v42 }
 0x67e   : > { %v6703_v54 = vpop.xlane.xlu1 %6702  ;;  %6977 = vmatprep.mubr.f32.mxu1 %v24822_v10  ;;  %v6771_v53 = vmul.f32 %v17029_v19, %v6755_v27  ;;  %v6982_v5 = vand.u32 4294901760, %v6981_v41 }
 0x67f   : > { %v16867_v25 = vpop.eup %16866  ;;  %v6727_v3 = vadd.f32 1e-09, %v6703_v54  ;;  %v20614_v34 = vsub.f32 %v6836_v11, %v20608_v6  ;;  %v6992_v46 = vsub.f32 %v20604_v42, %v23862_v35  ;;  %v17030_v11 = vld [vmem:[%s17336_s26 + $0x40] sm:$0xff] }
 0x680   : > { %v6756_v32 = vmul.f32 %v16867_v25, %v20485_v48  ;;  %v6793_v51 = vsel %vm2035_vm1, %v6771_v53, 0.0  ;;  %v6839_v57 = vsel %vm2035_vm1, %v6771_v53, 0 }
 0x681   : > { %16872 = vrcp.f32 %v6727_v3  ;;  %6983 = vmatmul.mubr.f32.gmra.mrb[48].mxu1 %v6982_v5  ;;  %v23863_v27 = vand.u32 4294901760, %v20614_v34  ;;  %v6794_v44 = vadd.f32 %v6793_v51, %v6792_v37  ;;  %v20623_v54 = vand.u32 4294901760, %v6839_v57 }
 0x682   : > { %v6706_v41 = vpop.xlane.xlu0 %6705  ;;  %6988 = vmatprep.mubr.f32.mxu1 %v24822_v10  ;;  %v6772_v48 = vmul.f32 %v17030_v11, %v6756_v32  ;;  %v6993_v35 = vand.u32 4294901760, %v6992_v46 }
 0x683   : > { %v16869_v19 = vpop.eup %16868  ;;  %v6728_v25 = vadd.f32 1e-09, %v6706_v41  ;;  %v7003_v53 = vsub.f32 %v20614_v34, %v23863_v27  ;;  %v20631_v3 = vsub.f32 %v6839_v57, %v20623_v54  ;;  %v17031_v27 = vld [vmem:[%s17336_s26 + $0x48] sm:$0xff] }
 0x684   : > { %v6757_v37 = vmul.f32 %v16869_v19, %v20490_v36  ;;  %v6795_v5 = vsel %vm2035_vm1, %v6772_v48, 0.0  ;;  %v6842_v51 = vsel %vm2035_vm1, %v6772_v48, 0 }
 0x685   : > { %16874 = vrcp.f32 %v6728_v25  ;;  %6994 = vmatmul.mubr.f32.gmra.mrb[50].mxu1 %v6993_v35  ;;  %v23867_v32 = vand.u32 4294901760, %v20631_v3  ;;  %v6796_v11 = vadd.f32 %v6795_v5, %v6794_v44  ;;  %v20638_v46 = vand.u32 4294901760, %v6842_v51 }
 0x686   : > { %v6709_v41 = vpop.xlane.xlu1 %6708  ;;  %6999 = vmatprep.mubr.f32.mxu1 %v24822_v10  ;;  %v6773_v21 = vmul.f32 %v17031_v27, %v6757_v37  ;;  %v7004_v36 = vand.u32 4294901760, %v7003_v53 }
 0x687   : > { %v16871_v57 = vpop.eup %16870  ;;  %v6729_v45 = vadd.f32 1e-09, %v6709_v41  ;;  %v7014_v48 = vsub.f32 %v20631_v3, %v23867_v32  ;;  %v20646_v19 = vsub.f32 %v6842_v51, %v20638_v46  ;;  %v17032_v41 = vld [vmem:[%s17336_s26 + $0x50] sm:$0xff] }
 0x688   : > { %v6758_v35 = vmul.f32 %v16871_v57, %v20495_v13  ;;  %v6797_v44 = vsel %vm2035_vm1, %v6773_v21, 0.0  ;;  %v6845_v25 = vsel %vm2035_vm1, %v6773_v21, 0 }
 0x689   : > { %16876 = vrcp.f32 %v6729_v45  ;;  %7005 = vmatmul.mubr.f32.gmra.mrb[52].mxu1 %v7004_v36  ;;  %v6798_v27 = vadd.f32 %v6797_v44, %v6796_v11  ;;  %v20650_v37 = vand.u32 4294901760, %v6845_v25  ;;  %v23869_v53 = vand.u32 4294901760, %v20646_v19 }
 0x68a   : > { %v6712_v5 = vpop.xlane.xlu0 %6711  ;;  %7010 = vmatprep.mubr.f32.mxu1 %v24822_v10  ;;  %v6774_v32 = vmul.f32 %v17032_v41, %v6758_v35  ;;  %v7015_v57 = vand.u32 4294901760, %v7014_v48 }
 0x68b   : > { %v16873_v13 = vpop.eup %16872  ;;  %v6730_v51 = vadd.f32 1e-09, %v6712_v5  ;;  %v20656_v15 = vsub.f32 %v6845_v25, %v20650_v37  ;;  %v7025_v45 = vsub.f32 %v20646_v19, %v23869_v53  ;;  %v17033_v25 = vld [vmem:[%s17336_s26 + $0x58] sm:$0xff] }
 0x68c   : > { %v6759_v21 = vmul.f32 %v16873_v13, %v20500_v17  ;;  %v6799_v11 = vsel %vm2035_vm1, %v6774_v32, 0.0  ;;  %v6848_v36 = vsel %vm2035_vm1, %v6774_v32, 0 }
 0x68d   : > { %16878 = vrcp.f32 %v6730_v51  ;;  %7016 = vmatmul.mubr.f32.gmra.mrb[54].mxu1 %v7015_v57  ;;  %v23870_v35 = vand.u32 4294901760, %v20656_v15  ;;  %v6800_v44 = vadd.f32 %v6799_v11, %v6798_v27  ;;  %v20665_v5 = vand.u32 4294901760, %v6848_v36 }
 0x68e   : > { %v6715_v48 = vpop.xlane.xlu1 %6714  ;;  %7021 = vmatprep.mubr.f32.mxu1 %v24822_v10  ;;  %v6775_v17 = vmul.f32 %v17033_v25, %v6759_v21  ;;  %v7026_v53 = vand.u32 4294901760, %v7025_v45 }
 0x68f   : > { %v16875_v41 = vpop.eup %16874  ;;  %v6731_v13 = vadd.f32 1e-09, %v6715_v48  ;;  %v7036_v32 = vsub.f32 %v20656_v15, %v23870_v35  ;;  %v20673_v51 = vsub.f32 %v6848_v36, %v20665_v5  ;;  %v17034_v48 = vld [vmem:[%s17336_s26 + $0x60] sm:$0xff] }
 0x690   : > { %v6760_v27 = vmul.f32 %v16875_v41, %v20505_v59  ;;  %v6801_v57 = vsel %vm2035_vm1, %v6775_v17, 0.0  ;;  %v6851_v11 = vsel %vm2035_vm1, %v6775_v17, 0 }
 0x691   : > { %16880 = vrcp.f32 %v6731_v13  ;;  %7027 = vmatmul.mubr.f32.gmra.mrb[56].mxu1 %v7026_v53  ;;  %v23872_v21 = vand.u32 4294901760, %v20673_v51  ;;  %v6802_v25 = vadd.f32 %v6801_v57, %v6800_v44  ;;  %v20680_v45 = vand.u32 4294901760, %v6851_v11 }
 0x692   : > { %7032 = vmatprep.mubr.f32.mxu1 %v24822_v10  ;;  %v6776_v35 = vmul.f32 %v17034_v48, %v6760_v27  ;;  %v7037_v47 = vand.u32 4294901760, %v7036_v32  ;;  %v17035_v27 = vld [vmem:[%s17336_s26 + $0x68] sm:$0xff] }
 0x693   : > { %v16877_v36 = vpop.eup %16876  ;;  %v7047_v59 = vsub.f32 %v20673_v51, %v23872_v21  ;;  %v20688_v53 = vsub.f32 %v6851_v11, %v20680_v45 }
 0x694   : > { %v6761_v17 = vmul.f32 %v16877_v36, %v20510_v61  ;;  %v6803_v44 = vsel %vm2035_vm1, %v6776_v35, 0.0  ;;  %v6854_v41 = vsel %vm2035_vm1, %v6776_v35, 0 }
 0x695   : > { %7038 = vmatmul.mubr.f32.gmra.mrb[58].mxu1 %v7037_v47  ;;  %v6804_v13 = vadd.f32 %v6803_v44, %v6802_v25  ;;  %v20692_v57 = vand.u32 4294901760, %v6854_v41  ;;  %v23874_v32 = vand.u32 4294901760, %v20688_v53  ;;  %v7048_v61 = vand.u32 4294901760, %v7047_v59  ;;  %v17036_v59 = vld [vmem:[%s17336_s26 + $0x70] sm:$0xff] }
 0x696   : > { %7043 = vmatprep.mubr.f32.mxu1 %v24822_v10  ;;  %v6777_v48 = vmul.f32 %v17035_v27, %v6761_v17 }
 0x697   : > { %v16879_v21 = vpop.eup %16878  ;;  %v20698_v11 = vsub.f32 %v6854_v41, %v20692_v57  ;;  %v7058_v47 = vsub.f32 %v20688_v53, %v23874_v32 }
 0x698   : > { %v6762_v36 = vmul.f32 %v16879_v21, %v20515_v60  ;;  %v6805_v35 = vsel %vm2035_vm1, %v6777_v48, 0.0  ;;  %v6857_v25 = vsel %vm2035_vm1, %v6777_v48, 0 }
 0x699   : > { %7049 = vmatmul.mubr.f32.gmra.mrb[60].mxu1 %v7048_v61  ;;  %v23876_v44 = vand.u32 4294901760, %v20698_v11  ;;  %v6806_v1 = vadd.f32 %v6805_v35, %v6804_v13  ;;  %v20707_v17 = vand.u32 4294901760, %v6857_v25  ;;  %v7059_v21 = vand.u32 4294901760, %v7058_v47  ;;  %v17037_v47 = vld [vmem:[%s17336_s26 + $0x78] sm:$0xff] }
 0x69a   : > { %7054 = vmatprep.mubr.f32.mxu1 %v24822_v10  ;;  %v6778_v41 = vmul.f32 %v17036_v59, %v6762_v36 }
 0x69b   : > { %v16881_v60 = vpop.eup %16880  ;;  %v7069_v27 = vsub.f32 %v20698_v11, %v23876_v44  ;;  %v20715_v32 = vsub.f32 %v6857_v25, %v20707_v17 }
 0x69c   : > { %v6763_v48 = vmul.f32 %v16881_v60, %v20520_v29  ;;  %v6807_v13 = vsel %vm2035_vm1, %v6778_v41, 0.0  ;;  %v6860_v61 = vsel %vm2035_vm1, %v6778_v41, 0 }
 0x69d   : > { %7060 = vmatmul.mubr.f32.gmra.mrb[62].mxu1 %v7059_v21  ;;  %v7079_v35 = vand.u32 4294901760, %v20715_v32  ;;  %v6808_v30 = vadd.f32 %v6807_v13, %v6806_v1  ;;  %v20721_v36 = vand.u32 4294901760, %v6860_v61  ;;  %v7070_v44 = vand.u32 4294901760, %v7069_v27 }
 0x69e   : > { %7065 = vmatprep.mubr.f32.mxu1 %v24822_v10  ;;  %v6779_v59 = vmul.f32 %v17037_v47, %v6763_v48 }
 0x69f   : > { %v7080_v25 = vsub.f32 %v20715_v32, %v7079_v35  ;;  %v20729_v29 = vsub.f32 %v6860_v61, %v20721_v36 }
 0x6a0   : > { %v6809_v41 = vsel %vm2035_vm1, %v6779_v59, 0.0  ;;  %v6863_v60 = vsel %vm2035_vm1, %v6779_v59, 0 }
 0x6a1   : > { %7071 = vmatmul.mubr.f32.gmra.mrb[64].mxu1 %v7070_v44  ;;  %v7090_v1 = vand.u32 4294901760, %v20729_v29  ;;  %v20734_v21 = vadd.f32 %v6809_v41, %v6808_v30  ;;  %v20736_v13 = vand.u32 4294901760, %v6863_v60  ;;  %v7081_v27 = vand.u32 4294901760, %v7080_v25  ;;  %v24824_v25 = vld [vmem:[#allocation92_spill] sm:$0xff]  ;;  %v24825_v41 = vld [vmem:[#allocation13_spill] sm:$0xff] }
 0x6a2   : > { %7076 = vmatprep.mubr.f32.mxu1 %v24822_v10 }
 0x6a3   : > { %v7091_v48 = vsub.f32 %v20729_v29, %v7090_v1  ;;  %v20743_v61 = vsub.f32 %v6863_v60, %v20736_v13  ;;  %v24826_v60 = vld [vmem:[#allocation15_spill] sm:$0xff] }
 0x6a5   : > { %7082 = vmatmul.mubr.f32.gmra.mrb[66].mxu1 %v7081_v27  ;;  %v23877_v47 = vand.u32 4294901760, %v20743_v61  ;;  %v7092_v44 = vand.u32 4294901760, %v7091_v48  ;;  %v24827_v27 = vld [vmem:[#allocation6_spill] sm:$0xff]  ;;  %v24828_v48 = vand.u32 4294901760, %v20533_v43 }
 0x6a6   : > { %7087 = vmatprep.mubr.f32.mxu1 %v24822_v10 }
 0x6a7   : > { %v7102_v30 = vsub.f32 %v20743_v61, %v23877_v47  ;;  %v24832_v47 = vand.u32 4294901760, %v20571_v62 }
 0x6a9   : > { %7093 = vmatmul.mubr.f32.gmra.mrb[68].mxu1 %v7092_v44  ;;  %v7103_v59 = vand.u32 4294901760, %v7102_v30  ;;  %v24829_v44 = vld [vmem:[#allocation7_spill] sm:$0xff]  ;;  %v24830_v30 = vand.u32 4294901760, %v20549_v31 }
 0x6aa   : > { %7098 = vmatprep.mubr.f32.mxu1 %v24822_v10 }
 0x6ad   : > { %7104 = vmatmul.mubr.f32.gmra.mrb[70].mxu1 %v7103_v59  ;;  %v24831_v59 = vand.u32 4294901760, %v20557_v38 }
 0x6ae   : > { %7194 = vmatprep.mubr.f32.mxu1 %v24822_v10 }
 0x6b1   : > { %7196 = vmatmul.mubr.f32.vlgmr.msra.gmra.mrb[40].mxu1 %v20528_v14 }
 0x6b2   : > { %15099 = vmatpush1.bf16.msra.mxu1 %v24824_v25  ;;  %7201 = vmatprep.mubr.f32.mxu1 %v24822_v10 }
 0x6b3   : > { %15101 = vmatprep.subr.bf16.mxu1 %v24825_v41 }
 0x6b5   : > { %7203 = vmatmul.mubr.f32.gmra.mrb[42].mxu1 %v20540_v52 }
 0x6b6   : > { %7208 = vmatprep.mubr.f32.mxu1 %v24822_v10 }
 0x6b9   : > { %7210 = vmatmul.mubr.f32.gmra.mrb[44].mxu1 %v20551_v16 }
 0x6ba   : > { %7215 = vmatprep.mubr.f32.mxu1 %v24822_v10 }
 0x6bd   : > { %7217 = vmatmul.mubr.f32.gmra.mrb[46].mxu1 %v20564_v33 }
 0x6be   : > { %7222 = vmatprep.mubr.f32.mxu1 %v24822_v10 }
 0x6c1   : > { %7224 = vmatmul.mubr.f32.gmra.mrb[48].mxu1 %v20581_v20 }
 0x6c2   : > { %7229 = vmatprep.mubr.f32.mxu1 %v24822_v10 }
 0x6c5   : > { %7231 = vmatmul.mubr.f32.gmra.mrb[50].mxu1 %v20596_v22 }
 0x6c6   : > { %7236 = vmatprep.mubr.f32.mxu1 %v24822_v10 }
 0x6c9   : > { %7238 = vmatmul.mubr.f32.gmra.mrb[52].mxu1 %v20608_v6 }
 0x6ca   : > { %7243 = vmatprep.mubr.f32.mxu1 %v24822_v10 }
 0x6cd   : > { %7245 = vmatmul.mubr.f32.gmra.mrb[54].mxu1 %v20623_v54 }
 0x6ce   : > { %7250 = vmatprep.mubr.f32.mxu1 %v24822_v10 }
 0x6d1   : > { %7252 = vmatmul.mubr.f32.gmra.mrb[56].mxu1 %v20638_v46 }
 0x6d2   : > { %7257 = vmatprep.mubr.f32.mxu1 %v24822_v10 }
 0x6d5   : > { %7259 = vmatmul.mubr.f32.gmra.mrb[58].mxu1 %v20650_v37 }
 0x6d6   : > { %7264 = vmatprep.mubr.f32.mxu1 %v24822_v10 }
 0x6d9   : > { %7266 = vmatmul.mubr.f32.gmra.mrb[60].mxu1 %v20665_v5 }
 0x6da   : > { %7271 = vmatprep.mubr.f32.mxu1 %v24822_v10 }
 0x6dd   : > { %7273 = vmatmul.mubr.f32.gmra.mrb[62].mxu1 %v20680_v45 }
 0x6de   : > { %7278 = vmatprep.mubr.f32.mxu1 %v24822_v10 }
 0x6e1   : > { %7280 = vmatmul.mubr.f32.gmra.mrb[64].mxu1 %v20692_v57 }
 0x6e2   : > { %7285 = vmatprep.mubr.f32.mxu1 %v24822_v10 }
 0x6e5   : > { %7287 = vmatmul.mubr.f32.gmra.mrb[66].mxu1 %v20707_v17 }
 0x6e6   : > { %7292 = vmatprep.mubr.f32.mxu1 %v24822_v10 }
 0x6e9   : > { %7294 = vmatmul.mubr.f32.gmra.mrb[68].mxu1 %v20721_v36 }
 0x6ea   : > { %7299 = vmatprep.mubr.f32.mxu1 %v24822_v10 }
 0x6ed   : > { %7301 = vmatmul.mubr.f32.gmra.mrb[70].mxu1 %v20736_v13 }
 0x6ee   : > { %7379 = vmatprep.mubr.f32.mxu1 %v24822_v10 }
 0x6f1   : > { %7382 = vmatmul.mubr.f32.vlgmr.msra.gmra.mrb[40].mxu1 %v20533_v43  ;;  %v24833_v43 = vand.u32 4294901760, %v20589_v55 }
 0x6f2   : > { %15103 = vmatpush1.bf16.msra.mxu1 %v24826_v60  ;;  %7387 = vmatprep.mubr.f32.mxu1 %v24822_v10 }
 0x6f3   : > { %15105 = vmatprep.subr.bf16.mxu1 %v24827_v27 }
 0x6f5   : > { %7390 = vmatmul.mubr.f32.gmra.mrb[42].mxu1 %v20549_v31  ;;  %v24834_v31 = vand.u32 4294901760, %v20604_v42 }
 0x6f6   : > { %7395 = vmatprep.mubr.f32.mxu1 %v24822_v10 }
 0x6f9   : > { %7398 = vmatmul.mubr.f32.gmra.mrb[44].mxu1 %v20557_v38  ;;  %v24835_v38 = vand.u32 4294901760, %v20614_v34 }
 0x6fa   : > { %7403 = vmatprep.mubr.f32.mxu1 %v24822_v10 }
 0x6fd   : > { %7406 = vmatmul.mubr.f32.gmra.mrb[46].mxu1 %v20571_v62  ;;  %v24836_v62 = vand.u32 4294901760, %v20631_v3 }
 0x6fe   : > { %7411 = vmatprep.mubr.f32.mxu1 %v24822_v10 }
 0x701   : > { %7414 = vmatmul.mubr.f32.gmra.mrb[48].mxu1 %v20589_v55  ;;  %v24837_v55 = vand.u32 4294901760, %v20646_v19 }
 0x702   : > { %7419 = vmatprep.mubr.f32.mxu1 %v24822_v10 }
 0x705   : > { %7422 = vmatmul.mubr.f32.gmra.mrb[50].mxu1 %v20604_v42  ;;  %v24838_v42 = vand.u32 4294901760, %v20656_v15 }
 0x706   : > { %7427 = vmatprep.mubr.f32.mxu1 %v24822_v10 }
 0x709   : > { %7430 = vmatmul.mubr.f32.gmra.mrb[52].mxu1 %v20614_v34  ;;  %v24839_v34 = vand.u32 4294901760, %v20673_v51 }
 0x70a   : > { %7435 = vmatprep.mubr.f32.mxu1 %v24822_v10 }
 0x70d   : > { %7438 = vmatmul.mubr.f32.gmra.mrb[54].mxu1 %v20631_v3  ;;  %v24840_v3 = vand.u32 4294901760, %v20688_v53 }
 0x70e   : > { %7443 = vmatprep.mubr.f32.mxu1 %v24822_v10 }
 0x711   : > { %7446 = vmatmul.mubr.f32.gmra.mrb[56].mxu1 %v20646_v19  ;;  %v24841_v19 = vand.u32 4294901760, %v20698_v11 }
 0x712   : > { %7451 = vmatprep.mubr.f32.mxu1 %v24822_v10 }
 0x715   : > { %7454 = vmatmul.mubr.f32.gmra.mrb[58].mxu1 %v20656_v15  ;;  %v24842_v15 = vand.u32 4294901760, %v20743_v61 }
 0x716   : > { %7459 = vmatprep.mubr.f32.mxu1 %v24822_v10 }
 0x719   : > { %7462 = vmatmul.mubr.f32.gmra.mrb[60].mxu1 %v20673_v51  ;;  %v24843_v51 = vld [vmem:[#allocation22_spill] sm:$0xff] }
 0x71a   : > { %7467 = vmatprep.mubr.f32.mxu1 %v24822_v10 }
 0x71d   : > { %7470 = vmatmul.mubr.f32.gmra.mrb[62].mxu1 %v20688_v53  ;;  %v24845_v53 = vld [vmem:[#allocation113_spill] sm:$0xff] }
 0x71e   : > { %7475 = vmatprep.mubr.f32.mxu1 %v24822_v10 }
 0x721   : > { %7478 = vmatmul.mubr.f32.gmra.mrb[64].mxu1 %v20698_v11  ;;  %v24848_v11 = vld [vmem:[#allocation118_spill] sm:$0xff] }
 0x722   : > { %7483 = vmatprep.mubr.f32.mxu1 %v24822_v10 }
 0x725   : > { %7486 = vmatmul.mubr.f32.gmra.mrb[66].mxu1 %v20715_v32  ;;  %v24847_v32 = vld [vmem:[#allocation116_spill] sm:$0xff] }
 0x726   : > { %7491 = vmatprep.mubr.f32.mxu1 %v24822_v10 }
 0x729   : > { %7494 = vmatmul.mubr.f32.gmra.mrb[68].mxu1 %v20729_v29  ;;  %v24852_v29 = vld [vmem:[#allocation33_spill] sm:$0xff] }
 0x72a   : > { %7499 = vmatprep.mubr.f32.mxu1 %v24822_v10 }
 0x72d   : > { %7502 = vmatmul.mubr.f32.gmra.mrb[70].mxu1 %v20743_v61  ;;  %v24855_v61 = vld [vmem:[#allocation47_spill] sm:$0xff] }
 0x72e   : > { %7576 = vmatprep.mubr.f32.mxu1 %v24822_v10 }
 0x731   : > { %7580 = vmatmul.mubr.f32.vlgmr.msra.gmra.mrb[40].mxu1 %v24828_v48 }
 0x732   : > { %15107 = vmatpush1.bf16.msra.mxu1 %v24829_v44  ;;  %7585 = vmatprep.mubr.f32.mxu1 %v24822_v10 }
 0x733   : > { %15109 = vmatprep.subr.bf16.mxu1 %v24825_v41 }
 0x735   : > { %7589 = vmatmul.mubr.f32.gmra.mrb[42].mxu1 %v24830_v30  ;;  %v24856_v30 = vld [vmem:[#allocation43_spill] sm:$0xff] }
 0x736   : > { %7594 = vmatprep.mubr.f32.mxu1 %v24822_v10 }
 0x739   : > { %7598 = vmatmul.mubr.f32.gmra.mrb[44].mxu1 %v24831_v59 }
 0x73a   : > { %7603 = vmatprep.mubr.f32.mxu1 %v24822_v10 }
 0x73d   : > { %7607 = vmatmul.mubr.f32.gmra.mrb[46].mxu1 %v24832_v47 }
 0x73e   : > { %7612 = vmatprep.mubr.f32.mxu1 %v24822_v10 }
 0x741   : > { %7616 = vmatmul.mubr.f32.gmra.mrb[48].mxu1 %v24833_v43 }
 0x742   : > { %7621 = vmatprep.mubr.f32.mxu1 %v24822_v10 }
 0x745   : > { %7625 = vmatmul.mubr.f32.gmra.mrb[50].mxu1 %v24834_v31  ;;  %v24857_v31 = vld [vmem:[#allocation56_spill] sm:$0xff] }
 0x746   : > { %7630 = vmatprep.mubr.f32.mxu1 %v24822_v10 }
 0x749   : > { %7634 = vmatmul.mubr.f32.gmra.mrb[52].mxu1 %v24835_v38 }
 0x74a   : > { %7639 = vmatprep.mubr.f32.mxu1 %v24822_v10 }
 0x74d   : > { %7643 = vmatmul.mubr.f32.gmra.mrb[54].mxu1 %v24836_v62 }
 0x74e   : > { %7648 = vmatprep.mubr.f32.mxu1 %v24822_v10 }
 0x751   : > { %7652 = vmatmul.mubr.f32.gmra.mrb[56].mxu1 %v24837_v55  ;;  %v24858_v55 = vld [vmem:[#allocation49_spill] sm:$0xff] }
 0x752   : > { %7657 = vmatprep.mubr.f32.mxu1 %v24822_v10 }
 0x755   : > { %7661 = vmatmul.mubr.f32.gmra.mrb[58].mxu1 %v24838_v42 }
 0x756   : > { %7666 = vmatprep.mubr.f32.mxu1 %v24822_v10 }
 0x759   : > { %7670 = vmatmul.mubr.f32.gmra.mrb[60].mxu1 %v24839_v34 }
 0x75a   : > { %7675 = vmatprep.mubr.f32.mxu1 %v24822_v10 }
 0x75d   : > { %7679 = vmatmul.mubr.f32.gmra.mrb[62].mxu1 %v24840_v3 }
 0x75e   : > { %7684 = vmatprep.mubr.f32.mxu1 %v24822_v10 }
 0x761   : > { %7688 = vmatmul.mubr.f32.gmra.mrb[64].mxu1 %v24841_v19 }
 0x762   : > { %7693 = vmatprep.mubr.f32.mxu1 %v24822_v10 }
 0x765   : > { %7697 = vmatmul.mubr.f32.gmra.mrb[66].mxu1 %v7079_v35  ;;  %v24850_v35 = vld [vmem:[#allocation68_spill] sm:$0xff] }
 0x766   : > { %7702 = vmatprep.mubr.f32.mxu1 %v24822_v10 }
 0x769   : > { %7706 = vmatmul.mubr.f32.gmra.mrb[68].mxu1 %v7090_v1  ;;  %v24853_v1 = vld [vmem:[#allocation45_spill] sm:$0xff] }
 0x76a   : > { %7711 = vmatprep.mubr.f32.mxu1 %v24822_v10 }
 0x76d   : > { %7715 = vmatmul.mubr.f32.gmra.mrb[70].mxu1 %v24842_v15 }
 0x76e   : > { %7797 = vmatprep.mubr.f32.mxu1 %v24822_v10 }
 0x771   : > { %7799 = vmatmul.mubr.f32.vlgmr.msra.gmra.mrb[40].mxu1 %v20528_v14 }
 0x772   : > { %15111 = vmatpush1.bf16.msra.mxu1 %v24826_v60  ;;  %7804 = vmatprep.mubr.f32.mxu1 %v24822_v10 }
 0x773   : > { %15113 = vmatprep.subr.bf16.mxu1 %v24825_v41 }
 0x775   : > { %7806 = vmatmul.mubr.f32.gmra.mrb[42].mxu1 %v20540_v52 }
 0x776   : > { %7811 = vmatprep.mubr.f32.mxu1 %v24822_v10 }
 0x779   : > { %7813 = vmatmul.mubr.f32.gmra.mrb[44].mxu1 %v20551_v16 }
 0x77a   : > { %7818 = vmatprep.mubr.f32.mxu1 %v24822_v10 }
 0x77d   : > { %7820 = vmatmul.mubr.f32.gmra.mrb[46].mxu1 %v20564_v33 }
 0x77e   : > { %7825 = vmatprep.mubr.f32.mxu1 %v24822_v10 }
 0x781   : > { %7827 = vmatmul.mubr.f32.gmra.mrb[48].mxu1 %v20581_v20 }
 0x782   : > { %7832 = vmatprep.mubr.f32.mxu1 %v24822_v10 }
 0x785   : > { %7834 = vmatmul.mubr.f32.gmra.mrb[50].mxu1 %v20596_v22 }
 0x786   : > { %7839 = vmatprep.mubr.f32.mxu1 %v24822_v10 }
 0x789   : > { %7841 = vmatmul.mubr.f32.gmra.mrb[52].mxu1 %v20608_v6 }
 0x78a   : > { %7846 = vmatprep.mubr.f32.mxu1 %v24822_v10 }
 0x78d   : > { %7848 = vmatmul.mubr.f32.gmra.mrb[54].mxu1 %v20623_v54 }
 0x78e   : > { %7853 = vmatprep.mubr.f32.mxu1 %v24822_v10 }
 0x791   : > { %7855 = vmatmul.mubr.f32.gmra.mrb[56].mxu1 %v20638_v46 }
 0x792   : > { %7860 = vmatprep.mubr.f32.mxu1 %v24822_v10 }
 0x795   : > { %7862 = vmatmul.mubr.f32.gmra.mrb[58].mxu1 %v20650_v37 }
 0x796   : > { %7867 = vmatprep.mubr.f32.mxu1 %v24822_v10 }
 0x799   : > { %7869 = vmatmul.mubr.f32.gmra.mrb[60].mxu1 %v20665_v5 }
 0x79a   : > { %7874 = vmatprep.mubr.f32.mxu1 %v24822_v10 }
 0x79d   : > { %7876 = vmatmul.mubr.f32.gmra.mrb[62].mxu1 %v20680_v45 }
 0x79e   : > { %7881 = vmatprep.mubr.f32.mxu1 %v24822_v10 }
 0x7a1   : > { %7883 = vmatmul.mubr.f32.gmra.mrb[64].mxu1 %v20692_v57 }
 0x7a2   : > { %7888 = vmatprep.mubr.f32.mxu1 %v24822_v10 }
 0x7a5   : > { %7890 = vmatmul.mubr.f32.gmra.mrb[66].mxu1 %v20707_v17 }
 0x7a6   : > { %7895 = vmatprep.mubr.f32.mxu1 %v24822_v10 }
 0x7a9   : > { %7897 = vmatmul.mubr.f32.gmra.mrb[68].mxu1 %v20721_v36 }
 0x7aa   : > { %7902 = vmatprep.mubr.f32.mxu1 %v24822_v10 }
 0x7ad   : > { %7904 = vmatmul.mubr.f32.gmra.mrb[70].mxu1 %v20736_v13 }
 0x7ae   : > { %7978 = vmatprep.mubr.f32.mxu1 %v24822_v10 }
 0x7b1   : > { %7980 = vmatmul.mubr.f32.vlgmr.msra.gmra.mrb[40].mxu1 %v20528_v14  ;;  %v6811_v14 = vrot.slane %v20734_v21, 4 }
 0x7b2   : > { %15115 = vmatpush1.bf16.msra.mxu1 %v24826_v60  ;;  %7985 = vmatprep.mubr.f32.mxu1 %v24822_v10 }
 0x7b3   : > { %15117 = vmatprep.subr.bf16.mxu1 %v24843_v51 }
 0x7b5   : > { %7987 = vmatmul.mubr.f32.gmra.mrb[42].mxu1 %v20540_v52  ;;  %v6812_v52 = vadd.f32 %v6811_v14, %v20734_v21  ;;  %v24854_v21 = vld [vmem:[#allocation52_spill] sm:$0xff] }
 0x7b6   : > { %7992 = vmatprep.mubr.f32.mxu1 %v24822_v10 }
 0x7b9   : > { %7994 = vmatmul.mubr.f32.gmra.mrb[44].mxu1 %v20551_v16  ;;  %v6813_v16 = vrot.slane %v6812_v52, 2 }
 0x7ba   : > { %7999 = vmatprep.mubr.f32.mxu1 %v24822_v10 }
 0x7bd   : > { %8001 = vmatmul.mubr.f32.gmra.mrb[46].mxu1 %v20564_v33  ;;  %v6814_v33 = vadd.f32 %v6813_v16, %v6812_v52  ;;  %v24859_v52 = vld [vmem:[#allocation61_spill] sm:$0xff] }
 0x7be   : > { %8006 = vmatprep.mubr.f32.mxu1 %v24822_v10 }
 0x7c1   : > { %8008 = vmatmul.mubr.f32.gmra.mrb[48].mxu1 %v20581_v20  ;;  %v6815_v20 = vrot.slane %v6814_v33, 1 }
 0x7c2   : > { %8013 = vmatprep.mubr.f32.mxu1 %v24822_v10 }
 0x7c5   : > { %8015 = vmatmul.mubr.f32.gmra.mrb[50].mxu1 %v20596_v22  ;;  %v20928_v22 = vadd.f32 %v6815_v20, %v6814_v33  ;;  %v24861_v20 = vld [vmem:[#allocation58_spill] sm:$0xff] }
 0x7c6   : > { %8020 = vmatprep.mubr.f32.mxu1 %v24822_v10 }
 0x7c7   : > { %24844 = vst [vmem:[#allocation71_spill] sm:$0xff] %v20928_v22 }
 0x7c9   : > { %8022 = vmatmul.mubr.f32.gmra.mrb[52].mxu1 %v20608_v6  ;;  %v8092_v6 = vsel %vm2035_vm1, %v20928_v22, 0 }
 0x7ca   : > { %8027 = vmatprep.mubr.f32.mxu1 %v24822_v10 }
 0x7cd   : > { %8029 = vmatmul.mubr.f32.gmra.mrb[54].mxu1 %v20623_v54  ;;  %v8163_v54 = vand.u32 4294901760, %v8092_v6 }
 0x7ce   : > { %8034 = vmatprep.mubr.f32.mxu1 %v24822_v10 }
 0x7d1   : > { %8036 = vmatmul.mubr.f32.gmra.mrb[56].mxu1 %v20638_v46  ;;  %v8164_v46 = vsub.f32 %v8092_v6, %v8163_v54 }
 0x7d2   : > { %8041 = vmatprep.mubr.f32.mxu1 %v24822_v10 }
 0x7d5   : > { %8043 = vmatmul.mubr.f32.gmra.mrb[58].mxu1 %v20650_v37  ;;  %v8165_v37 = vand.u32 4294901760, %v8164_v46 }
 0x7d6   : > { %8048 = vmatprep.mubr.f32.mxu1 %v24822_v10 }
 0x7d9   : > { %8050 = vmatmul.mubr.f32.gmra.mrb[60].mxu1 %v20665_v5  ;;  %v8166_v5 = vsub.f32 %v8164_v46, %v8165_v37 }
 0x7da   : > { %8055 = vmatprep.mubr.f32.mxu1 %v24822_v10 }
 0x7dd   : > { %8057 = vmatmul.mubr.f32.gmra.mrb[62].mxu1 %v20680_v45  ;;  %v8167_v45 = vand.u32 4294901760, %v8166_v5 }
 0x7de   : > { %8062 = vmatprep.mubr.f32.mxu1 %v24822_v10 }
 0x7e1   : > { %8064 = vmatmul.mubr.f32.gmra.mrb[64].mxu1 %v20692_v57  ;;  %v24846_v57 = vld [vmem:[#allocation114_spill] sm:$0xff] }
 0x7e2   : > { %8069 = vmatprep.mubr.f32.mxu1 %v24822_v10 }
 0x7e5   : > { %8071 = vmatmul.mubr.f32.gmra.mrb[66].mxu1 %v20707_v17  ;;  %v24849_v17 = vld [vmem:[#allocation119_spill] sm:$0xff] }
 0x7e6   : > { %8076 = vmatprep.mubr.f32.mxu1 %v24822_v10 }
 0x7e9   : > { %8078 = vmatmul.mubr.f32.gmra.mrb[68].mxu1 %v20721_v36  ;;  %v24851_v36 = vld [vmem:[#allocation29_spill] sm:$0xff] }
 0x7ea   : > { %8083 = vmatprep.mubr.f32.mxu1 %v24822_v10 }
 0x7ed   : > { %8085 = vmatmul.mubr.f32.gmra.mrb[70].mxu1 %v20736_v13 }
 0x7ee   : > { %8162 = vmatprep.mubr.f32.mxu1 %v24822_v10 }
 0x7f1   : > { %8168 = vmatmul.mubr.f32.vlgmr.msra.gmra.mrb[72].mxu1 %v8167_v45  ;;  %v24862_v45 = vld [vmem:[#allocation69_spill] sm:$0xff] }
 0x7f2   : > { %15119 = vmatpush1.bf16.msra.mxu1 %v24821_v12  ;;  %8258 = vmatprep.mubr.f32.mxu1 %v24822_v10 }
 0x7f3   : > { %15121 = vmatprep.subr.bf16.mxu1 %v24823_v18 }
 0x7f9   : > { %8260 = vmatmul.mubr.f32.vlgmr.msra.gmra.mrb[72].mxu1 %v8163_v54 }
 0x7fa   : > { %15123 = vmatpush1.bf16.msra.mxu1 %v24824_v25  ;;  %8338 = vmatprep.mubr.f32.mxu1 %v24822_v10 }
 0x7fb   : > { %15125 = vmatprep.subr.bf16.mxu1 %v24825_v41 }
 0x801   : > { %8341 = vmatmul.mubr.f32.vlgmr.msra.gmra.mrb[72].mxu1 %v8164_v46 }
 0x802   : > { %15127 = vmatpush1.bf16.msra.mxu1 %v24826_v60  ;;  %8415 = vmatprep.mubr.f32.mxu1 %v24822_v10 }
 0x803   : > { %15129 = vmatprep.subr.bf16.mxu1 %v24827_v27 }
 0x809   : > { %8419 = vmatmul.mubr.f32.vlgmr.msra.gmra.mrb[72].mxu1 %v8165_v37 }
 0x80a   : > { %15131 = vmatpush1.bf16.msra.mxu1 %v24829_v44  ;;  %8501 = vmatprep.mubr.f32.mxu1 %v24822_v10 }
 0x80b   : > { %15133 = vmatprep.subr.bf16.mxu1 %v24825_v41 }
 0x811   : > { %8503 = vmatmul.mubr.f32.vlgmr.msra.gmra.mrb[72].mxu1 %v8163_v54 }
 0x812   : > { %15135 = vmatpush1.bf16.msra.mxu1 %v24826_v60  ;;  %8577 = vmatprep.mubr.f32.mxu1 %v24822_v10 }
 0x813   : > { %15196 = vmatprep.subr.bf16.mxu1 %v24464_v2 }
 0x819   : > { %8579 = vmatmul.mubr.f32.vlgmr.msra.gmra.mrb[72].mxu1 %v8163_v54 }
 0x81a   : > { %15198 = vmatpush1.bf16.msra.mxu1 %v24845_v53 }
 0x81b   : > { %15199 = vmatprep.subr.bf16.mxu1 %v24464_v2 }
 0x81e   : > { %15201 = vmatpush1.bf16.msra.mxu1 %v24846_v57 }
 0x81f   : > { %15202 = vmatprep.subr.bf16.mxu1 %v24464_v2 }
 0x822   : > { %15204 = vmatpush1.bf16.msra.mxu1 %v24847_v32 }
 0x823   : > { %15205 = vmatprep.subr.bf16.mxu1 %v24464_v2 }
 0x826   : > { %15207 = vmatpush1.bf16.msra.mxu1 %v24848_v11 }
 0x827   : > { %15208 = vmatprep.subr.bf16.mxu1 %v24464_v2 }
 0x82a   : > { %15210 = vmatpush1.bf16.msra.mxu1 %v24849_v17 }
 0x82b   : > { %15211 = vmatprep.subr.bf16.mxu1 %v24464_v2 }
 0x82e   : > { %15213 = vmatpush1.bf16.msra.mxu1 %v24850_v35 }
 0x82f   : > { %15214 = vmatprep.subr.bf16.mxu1 %v24464_v2 }
 0x832   : > { %15216 = vmatpush1.bf16.msra.mxu1 %v24851_v36 }
 0x833   : > { %15217 = vmatprep.subr.bf16.mxu1 %v24464_v2 }
 0x836   : > { %15219 = vmatpush1.bf16.msra.mxu1 %v24852_v29 }
 0x837   : > { %15220 = vmatprep.subr.bf16.mxu1 %v24464_v2 }
 0x83a   : > { %15222 = vmatpush1.bf16.msra.mxu1 %v24853_v1 }
 0x83b   : > { %15223 = vmatprep.subr.bf16.mxu1 %v24464_v2 }
 0x83e   : > { %15225 = vmatpush1.bf16.msra.mxu1 %v24854_v21 }
 0x83f   : > { %15256 = vmatprep.subr.bf16.mxu1 %v24464_v2 }
 0x884   : > { %v20979_v13 = vpop.f32.mrb[40].mxu1 }
 0x885   : > { %v8587_v47 = vmul.f32 %v20979_v13, %v24855_v61  ;;  %v20983_v48 = vpop.f32.mrb[41].mxu1 }
 0x886   : > { %v8588_v59 = vmul.f32 %v20983_v48, %v24856_v30 }
 0x888   : > { %v20987_v43 = vpop.f32.mrb[42].mxu1  ;;  %v8640_v3 = vsel %vm3903_vm2, %v8588_v59, 0.0 }
 0x889   : > { %v8589_v38 = vmul.f32 %v20987_v43, %v24857_v31  ;;  %v20991_v62 = vpop.f32.mrb[43].mxu1 }
 0x88a   : > { %v8590_v42 = vmul.f32 %v20991_v62, %v24858_v55 }
 0x88b   : > { %v8619_v34 = vadd.f32 %v8589_v38, %v8587_v47  ;;  %v24864_v38 = vld [vmem:[#allocation65_spill] sm:$0xff] }
 0x88c   : > { %v8641_v19 = vsel %vm3903_vm2, %v8590_v42, 0.0  ;;  %v20997_v15 = vpop.f32.mrb[44].mxu1 }
 0x88d   : > { %v8642_v14 = vadd.f32 %v8641_v19, %v8640_v3  ;;  %v8591_v16 = vmul.f32 %v20997_v15, %v24859_v52  ;;  %v21001_v33 = vpop.f32.mrb[45].mxu1 }
 0x88e   : > { %24860 = vst [vmem:[#allocation16_spill] sm:$0xff] %v21001_v33  ;;  %v8592_v6 = vmul.f32 %v21001_v33, %v24861_v20 }
 0x88f   : > { %v8620_v54 = vadd.f32 %v8619_v34, %v8591_v16  ;;  %v24865_v34 = vld [vmem:[#allocation79_spill] sm:$0xff] }
 0x890   : > { %v8643_v46 = vsel %vm3903_vm2, %v8592_v6, 0.0  ;;  %v21006_v37 = vpop.f32.mrb[46].mxu1 }
 0x891   : > { %v8644_v5 = vadd.f32 %v8643_v46, %v8642_v14  ;;  %v8593_v47 = vmul.f32 %v21006_v37, %v24862_v45  ;;  %v21010_v59 = vpop.f32.mrb[47].mxu1  ;;  %v24867_v14 = vld [vmem:[#allocation17_spill] sm:$0xff] }
 0x892   : > { %24863 = vst [vmem:[#allocation82_spill] sm:$0xff] %v21010_v59  ;;  %v8594_v42 = vmul.f32 %v21010_v59, %v24864_v38 }
 0x893   : > { %v8621_v3 = vadd.f32 %v8620_v54, %v8593_v47  ;;  %v24868_v54 = vld [vmem:[#allocation89_spill] sm:$0xff] }
 0x894   : > { %v8645_v19 = vsel %vm3903_vm2, %v8594_v42, 0.0  ;;  %v21015_v44 = vpop.f32.mrb[48].mxu1 }
 0x895   : > { %v8646_v27 = vadd.f32 %v8645_v19, %v8644_v5  ;;  %v8595_v16 = vmul.f32 %v21015_v44, %v24865_v34  ;;  %v21019_v6 = vpop.f32.mrb[49].mxu1  ;;  %v24870_v5 = vld [vmem:[#allocation91_spill] sm:$0xff] }
 0x896   : > { %24866 = vst [vmem:[#allocation34_spill] sm:$0xff] %v21019_v6  ;;  %v8596_v46 = vmul.f32 %v21019_v6, %v24867_v14 }
 0x897   : > { %v8622_v25 = vadd.f32 %v8621_v3, %v8595_v16  ;;  %v24871_v3 = vld [vmem:[#allocation76_spill] sm:$0xff] }
 0x898   : > { %v8647_v18 = vsel %vm3903_vm2, %v8596_v46, 0.0  ;;  %v21024_v12 = vpop.f32.mrb[50].mxu1 }
 0x899   : > { %v8648_v22 = vadd.f32 %v8647_v18, %v8646_v27  ;;  %v8597_v47 = vmul.f32 %v21024_v12, %v24868_v54  ;;  %v21028_v42 = vpop.f32.mrb[51].mxu1  ;;  %v24873_v18 = vld [vmem:[#allocation83_spill] sm:$0xff] }
 0x89a   : > { %24869 = vst [vmem:[#allocation35_spill] sm:$0xff] %v21028_v42  ;;  %v8598_v19 = vmul.f32 %v21028_v42, %v24870_v5 }
 0x89b   : > { %v8623_v21 = vadd.f32 %v8622_v25, %v8597_v47  ;;  %v24874_v25 = vld [vmem:[#allocation20_spill] sm:$0xff] }
 0x89c   : > { %v8649_v1 = vsel %vm3903_vm2, %v8598_v19, 0.0  ;;  %v21033_v29 = vpop.f32.mrb[52].mxu1 }
 0x89d   : > { %v8650_v36 = vadd.f32 %v8649_v1, %v8648_v22  ;;  %v8599_v16 = vmul.f32 %v21033_v29, %v24871_v3  ;;  %v21037_v46 = vpop.f32.mrb[53].mxu1  ;;  %v24876_v22 = vld [vmem:[#allocation27_spill] sm:$0xff] }
 0x89e   : > { %24872 = vst [vmem:[#allocation41_spill] sm:$0xff] %v21037_v46  ;;  %v8600_v27 = vmul.f32 %v21037_v46, %v24873_v18 }
 0x89f   : > { %v8624_v35 = vadd.f32 %v8623_v21, %v8599_v16  ;;  %v24878_v21 = vld [vmem:[#allocation42_spill] sm:$0xff] }
 0x8a0   : > { %v8651_v17 = vsel %vm3903_vm2, %v8600_v27, 0.0  ;;  %v21042_v11 = vpop.f32.mrb[54].mxu1 }
 0x8a1   : > { %v8652_v32 = vadd.f32 %v8651_v17, %v8650_v36  ;;  %v8601_v47 = vmul.f32 %v21042_v11, %v24874_v25  ;;  %v21046_v19 = vpop.f32.mrb[55].mxu1  ;;  %v24880_v17 = vld [vmem:[#allocation36_spill] sm:$0xff] }
 0x8a2   : > { %24875 = vst [vmem:[#allocation57_spill] sm:$0xff] %v21046_v19  ;;  %v8602_v1 = vmul.f32 %v21046_v19, %v24876_v22 }
 0x8a3   : > { %v8625_v57 = vadd.f32 %v8624_v35, %v8601_v47  ;;  %v24882_v35 = vld [vmem:[#allocation10_spill] sm:$0xff] }
 0x8a4   : > { %v8653_v53 = vsel %vm3903_vm2, %v8602_v1, 0.0  ;;  %v21051_v51 = vpop.f32.mrb[56].mxu1 }
 0x8a5   : > { %24877 = vst [vmem:[#allocation80_spill] sm:$0xff] %v21051_v51  ;;  %v8654_v10 = vadd.f32 %v8653_v53, %v8652_v32  ;;  %v8603_v16 = vmul.f32 %v21051_v51, %v24878_v21  ;;  %v21055_v27 = vpop.f32.mrb[57].mxu1  ;;  %v24884_v53 = vld [vmem:[#allocation50_spill] sm:$0xff] }
 0x8a6   : > { %24879 = vst [vmem:[#allocation96_spill] sm:$0xff] %v21055_v27  ;;  %v8604_v36 = vmul.f32 %v21055_v27, %v24880_v17 }
 0x8a7   : > { %v8626_v60 = vadd.f32 %v8625_v57, %v8603_v16  ;;  %v24886_v57 = vld [vmem:[#allocation14_spill] sm:$0xff] }
 0x8a8   : > { %v8655_v41 = vsel %vm3903_vm2, %v8604_v36, 0.0  ;;  %v21060_v50 = vpop.f32.mrb[58].mxu1 }
 0x8a9   : > { %24881 = vst [vmem:[#allocation100_spill] sm:$0xff] %v21060_v50  ;;  %v8656_v63 = vadd.f32 %v8655_v41, %v8654_v10  ;;  %v8605_v47 = vmul.f32 %v21060_v50, %v24882_v35  ;;  %v21064_v1 = vpop.f32.mrb[59].mxu1  ;;  %v24888_v10 = vld [vmem:[#allocation48_spill] sm:$0xff] }
 0x8aa   : > { %24883 = vst [vmem:[#allocation40_spill] sm:$0xff] %v21064_v1  ;;  %v8606_v32 = vmul.f32 %v21064_v1, %v24884_v53 }
 0x8ab   : > { %v8627_v7 = vadd.f32 %v8626_v60, %v8605_v47  ;;  %v24890_v60 = vld [vmem:[#allocation51_spill] sm:$0xff] }
 0x8ac   : > { %v8657_v56 = vsel %vm3903_vm2, %v8606_v32, 0.0  ;;  %v21069_v49 = vpop.f32.mrb[60].mxu1 }
 0x8ad   : > { %24885 = vst [vmem:[#allocation19_spill] sm:$0xff] %v21069_v49  ;;  %v8658_v0 = vadd.f32 %v8657_v56, %v8656_v63  ;;  %v8607_v16 = vmul.f32 %v21069_v49, %v24886_v57  ;;  %v21073_v36 = vpop.f32.mrb[61].mxu1  ;;  %v24892_v56 = vld [vmem:[#allocation24_spill] sm:$0xff] }
 0x8ae   : > { %24887 = vst [vmem:[#allocation55_spill] sm:$0xff] %v21073_v36  ;;  %v8608_v41 = vmul.f32 %v21073_v36, %v24888_v10 }
 0x8af   : > { %v8628_v40 = vadd.f32 %v8627_v7, %v8607_v16  ;;  %v24894_v7 = vld [vmem:[#allocation26_spill] sm:$0xff] }
 0x8b0   : > { %v8659_v26 = vsel %vm3903_vm2, %v8608_v41, 0.0  ;;  %v21078_v24 = vpop.f32.mrb[62].mxu1 }
 0x8b1   : > { %24889 = vst [vmem:[#allocation66_spill] sm:$0xff] %v21078_v24  ;;  %v8660_v23 = vadd.f32 %v8659_v26, %v8658_v0  ;;  %v8609_v47 = vmul.f32 %v21078_v24, %v24890_v60  ;;  %v21082_v32 = vpop.f32.mrb[63].mxu1  ;;  %v24896_v26 = vld [vmem:[#allocation28_spill] sm:$0xff] }
 0x8b2   : > { %24891 = vst [vmem:[#allocation64_spill] sm:$0xff] %v21082_v32  ;;  %v8610_v63 = vmul.f32 %v21082_v32, %v24892_v56 }
 0x8b3   : > { %v8629_v39 = vadd.f32 %v8628_v40, %v8609_v47  ;;  %v24898_v40 = vld [vmem:[#allocation67_spill] sm:$0xff] }
 0x8b4   : > { %v8661_v4 = vsel %vm3903_vm2, %v8610_v63, 0.0  ;;  %v21087_v9 = vpop.f32.mrb[64].mxu1 }
 0x8b5   : > { %24893 = vst [vmem:[#allocation105_spill] sm:$0xff] %v21087_v9  ;;  %v8662_v28 = vadd.f32 %v8661_v4, %v8660_v23  ;;  %v8611_v16 = vmul.f32 %v21087_v9, %v24894_v7  ;;  %v21091_v41 = vpop.f32.mrb[65].mxu1  ;;  %v24900_v4 = vld [vmem:[#allocation37_spill] sm:$0xff] }
 0x8b6   : > { %24895 = vst [vmem:[#allocation75_spill] sm:$0xff] %v21091_v41  ;;  %v8612_v0 = vmul.f32 %v21091_v41, %v24896_v26 }
 0x8b7   : > { %v8630_v2 = vadd.f32 %v8629_v39, %v8611_v16  ;;  %v24902_v39 = vld [vmem:[#allocation77_spill] sm:$0xff] }
 0x8b8   : > { %v8663_v8 = vsel %vm3903_vm2, %v8612_v0, 0.0  ;;  %v21096_v36 = vpop.f32.mrb[66].mxu1 }
 0x8b9   : > { %24897 = vst [vmem:[#allocation21_spill] sm:$0xff] %v21096_v36  ;;  %v8664_v32 = vadd.f32 %v8663_v8, %v8662_v28  ;;  %v8613_v47 = vmul.f32 %v21096_v36, %v24898_v40  ;;  %v21100_v63 = vpop.f32.mrb[67].mxu1  ;;  %v24904_v8 = vld [vmem:[#allocation81_spill] sm:$0xff] }
 0x8ba   : > { %24899 = vst [vmem:[#allocation5_spill] sm:$0xff] %v21100_v63  ;;  %v8614_v23 = vmul.f32 %v21100_v63, %v24900_v4 }
 0x8bb   : > { %v8631_v1 = vadd.f32 %v8630_v2, %v8613_v47  ;;  %v24906_v2 = vld [vmem:[#allocation88_spill] sm:$0xff] }
 0x8bc   : > { %v8665_v27 = vsel %vm3903_vm2, %v8614_v23, 0.0  ;;  %v21105_v19 = vpop.f32.mrb[68].mxu1 }
 0x8bd   : > { %24901 = vst [vmem:[#allocation44_spill] sm:$0xff] %v21105_v19  ;;  %v8666_v41 = vadd.f32 %v8665_v27, %v8664_v32  ;;  %v8615_v16 = vmul.f32 %v21105_v19, %v24902_v39  ;;  %v21109_v0 = vpop.f32.mrb[69].mxu1  ;;  %v24908_v27 = vld [vmem:[#allocation90_spill] sm:$0xff] }
 0x8be   : > { %24903 = vst [vmem:[#allocation87_spill] sm:$0xff] %v21109_v0  ;;  %v8616_v28 = vmul.f32 %v21109_v0, %v24904_v8 }
 0x8bf   : > { %v8632_v36 = vadd.f32 %v8631_v1, %v8615_v16 }
 0x8c0   : > { %v8667_v46 = vsel %vm3903_vm2, %v8616_v28, 0.0  ;;  %v21114_v9 = vpop.f32.mrb[70].mxu1 }
 0x8c1   : > { %24905 = vst [vmem:[#allocation73_spill] sm:$0xff] %v21114_v9  ;;  %v8668_v63 = vadd.f32 %v8667_v46, %v8666_v41  ;;  %v8617_v47 = vmul.f32 %v21114_v9, %v24906_v2  ;;  %v21118_v23 = vpop.f32.mrb[71].mxu1 }
 0x8c2   : > { %24907 = vst [vmem:[#allocation93_spill] sm:$0xff] %v21118_v23  ;;  %v8618_v32 = vmul.f32 %v21118_v23, %v24908_v27 }
 0x8c3   : > { %v8633_v19 = vadd.f32 %v8632_v36, %v8617_v47 }
 0x8c4   : > { %v8669_v42 = vsel %vm3903_vm2, %v8618_v32, 0.0 }
 0x8c5   : > { %v8670_v24 = vadd.f32 %v8669_v42, %v8668_v63  ;;  %v8634_v6 = vrot.slane %v8633_v19, 4 }
 0x8c7   : > { %v8671_v0 = vrot.slane %v8670_v24, 4  ;;  %v8635_v1 = vadd.f32 %v8634_v6, %v8633_v19 }
 0x8c9   : > { %v8672_v16 = vadd.f32 %v8671_v0, %v8670_v24  ;;  %v8636_v28 = vrot.slane %v8635_v1, 2 }
 0x8cb   : > { %v8673_v59 = vrot.slane %v8672_v16, 2  ;;  %v8637_v9 = vadd.f32 %v8636_v28, %v8635_v1 }
 0x8cd   : > { %v8674_v33 = vadd.f32 %v8673_v59, %v8672_v16  ;;  %v8638_v51 = vrot.slane %v8637_v9, 1 }
 0x8cf   : > { %v8675_v23 = vrot.slane %v8674_v33, 1  ;;  %v8639_v36 = vadd.f32 %v8638_v51, %v8637_v9 }
 0x8d1   : > { %v8676_v42 = vadd.f32 %v8675_v23, %v8674_v33 }
 0x8ec   : > { %v8580_v49 = vpop.f32.mrb[72].mxu1 }
 0x8ed   : > { %v15726_v46 = vadd.f32 1e-09, %v8580_v49  ;;  %v8582_v41 = vpop.f32.mrb[73].mxu1 }
 0x8ee   : > { %v15727_v50 = vadd.f32 1e-09, %v8582_v41 }
 0x8ef   : > { %16882 = vrcp.f32 %v15726_v46 }
 0x8f0   : > { %16884 = vrcp.f32 %v15727_v50 }
 0x8f9   : > { %v21123_v47 = vpop.eup %16882 }
 0x8fa   : > { %v21125_v63 = vpop.eup %16884  ;;  %v8677_v24 = vmul.f32 %v21123_v47, %v8639_v36 }
 0x8fb   : > { %v8678_v6 = vmul.f32 %v21125_v63, %v8676_v42 }
 0x8fc   : > { %v8682_v49 = vrot.slane %v8677_v24, %v24820_v58 }
 0x8fe   : > { %v8687_v19 = vsub.f32 %v24855_v61, %v8682_v49  ;;  %v8689_v0 = vsub.f32 %v24857_v31, %v8682_v49  ;;  %v8691_v50 = vsub.f32 %v24859_v52, %v8682_v49  ;;  %v8693_v59 = vsub.f32 %v24862_v45, %v8682_v49  ;;  %v24946_v31 = vld [vmem:[#allocation54_spill] sm:$0xff] }
 0x8ff   : > { %v8695_v9 = vsub.f32 %v24865_v34, %v8682_v49  ;;  %v8697_v51 = vsub.f32 %v24868_v54, %v8682_v49  ;;  %v8699_v33 = vsub.f32 %v24871_v3, %v8682_v49  ;;  %v8701_v23 = vsub.f32 %v24874_v25, %v8682_v49 }
 0x900   : > { %v8703_v32 = vsub.f32 %v24878_v21, %v8682_v49  ;;  %v8705_v1 = vsub.f32 %v24882_v35, %v8682_v49  ;;  %v8707_v16 = vsub.f32 %v24886_v57, %v8682_v49  ;;  %v8709_v28 = vsub.f32 %v24890_v60, %v8682_v49 }
 0x901   : > { %v21143_v46 = vsub.f32 %v24894_v7, %v8682_v49  ;;  %v21146_v41 = vsub.f32 %v24898_v40, %v8682_v49  ;;  %v21149_v36 = vsub.f32 %v24902_v39, %v8682_v49  ;;  %v21152_v42 = vsub.f32 %v24906_v2, %v8682_v49 }
 0x902   : > { %v21154_v24 = vmul.f32 %v8687_v19, %v8687_v19  ;;  %v21156_v21 = vmul.f32 %v8689_v0, %v8689_v0  ;;  %v21158_v35 = vmul.f32 %v8691_v50, %v8691_v50  ;;  %v21160_v57 = vmul.f32 %v8693_v59, %v8693_v59 }
 0x903   : > { %v8686_v39 = vrot.slane %v8678_v6, %v24820_v58  ;;  %v21167_v60 = vmul.f32 %v8695_v9, %v8695_v9  ;;  %v21169_v49 = vmul.f32 %v8697_v51, %v8697_v51  ;;  %v21171_v19 = vmul.f32 %v8699_v33, %v8699_v33 }
 0x904   : > { %v8751_v7 = vmul.f32 %v21154_v24, %v20979_v13  ;;  %v8753_v40 = vmul.f32 %v21156_v21, %v20987_v43  ;;  %v8755_v0 = vmul.f32 %v21158_v35, %v20997_v15  ;;  %v8757_v50 = vmul.f32 %v21160_v57, %v21006_v37 }
 0x905   : > { %v8688_v13 = vsub.f32 %v24856_v30, %v8686_v39  ;;  %v8690_v2 = vsub.f32 %v24858_v55, %v8686_v39  ;;  %v8692_v43 = vsub.f32 %v24861_v20, %v8686_v39  ;;  %v8694_v6 = vsub.f32 %v24864_v38, %v8686_v39  ;;  %v24943_v38 = vld [vmem:[#allocation30_spill] sm:$0xff] }
 0x906   : > { %v8783_v59 = vadd.f32 %v8753_v40, %v8751_v7  ;;  %v8696_v9 = vsub.f32 %v24867_v14, %v8686_v39  ;;  %v8698_v51 = vsub.f32 %v24870_v5, %v8686_v39  ;;  %v8700_v33 = vsub.f32 %v24873_v18, %v8686_v39  ;;  %v24944_v20 = vld [vmem:[#allocation98_spill] sm:$0xff] }
 0x907   : > { %v8702_v15 = vsub.f32 %v24876_v22, %v8686_v39  ;;  %v8704_v37 = vsub.f32 %v24880_v17, %v8686_v39  ;;  %v8706_v7 = vsub.f32 %v24884_v53, %v8686_v39  ;;  %v21188_v40 = vsub.f32 %v24888_v10, %v8686_v39 }
 0x908   : > { %v8784_v25 = vadd.f32 %v8783_v59, %v8755_v0  ;;  %v21191_v3 = vsub.f32 %v24892_v56, %v8686_v39  ;;  %v21194_v54 = vsub.f32 %v24896_v26, %v8686_v39  ;;  %v21197_v5 = vsub.f32 %v24900_v4, %v8686_v39 }
 0x909   : > { %v8759_v0 = vmul.f32 %v21167_v60, %v21015_v44  ;;  %v21202_v17 = vsub.f32 %v24904_v8, %v8686_v39  ;;  %v21205_v53 = vsub.f32 %v24908_v27, %v8686_v39  ;;  %v21207_v10 = vmul.f32 %v8688_v13, %v8688_v13 }
 0x90a   : > { %v8785_v59 = vadd.f32 %v8784_v25, %v8757_v50  ;;  %v21209_v56 = vmul.f32 %v8701_v23, %v8701_v23  ;;  %v8761_v26 = vmul.f32 %v21169_v49, %v21024_v12  ;;  %v21213_v4 = vmul.f32 %v8690_v2, %v8690_v2 }
 0x90b   : > { %v21215_v18 = vmul.f32 %v8703_v32, %v8703_v32  ;;  %v8763_v44 = vmul.f32 %v21171_v19, %v21033_v29  ;;  %v21219_v50 = vmul.f32 %v8692_v43, %v8692_v43  ;;  %v21221_v39 = vmul.f32 %v8705_v1, %v8705_v1  ;;  %v24909_v29 = vld [vmem:[#allocation80_spill] sm:$0xff] }
 0x90c   : > { %v8786_v22 = vadd.f32 %v8785_v59, %v8759_v0  ;;  %v8752_v23 = vmul.f32 %v21207_v10, %v20983_v48  ;;  %v8765_v13 = vmul.f32 %v21209_v56, %v21042_v11  ;;  %v21227_v0 = vmul.f32 %v8694_v6, %v8694_v6  ;;  %v24910_v43 = vld [vmem:[#allocation16_spill] sm:$0xff] }
 0x90d   : > { %v8754_v2 = vmul.f32 %v21213_v4, %v20991_v62  ;;  %v21231_v32 = vmul.f32 %v8707_v16, %v8707_v16  ;;  %v21235_v1 = vmul.f32 %v8696_v9, %v8696_v9  ;;  %v8756_v48 = vmul.f32 %v21219_v50, %v24910_v43  ;;  %v24911_v11 = vld [vmem:[#allocation100_spill] sm:$0xff]  ;;  %v24912_v16 = vld [vmem:[#allocation82_spill] sm:$0xff] }
 0x90e   : > { %v8787_v25 = vadd.f32 %v8786_v22, %v8761_v26  ;;  %v8767_v22 = vmul.f32 %v21215_v18, %v24909_v29  ;;  %v21239_v59 = vmul.f32 %v8709_v28, %v8709_v28  ;;  %v8769_v6 = vmul.f32 %v21221_v39, %v24911_v11 }
 0x90f   : > { %v21244_v62 = vmul.f32 %v8698_v51, %v8698_v51  ;;  %v8758_v27 = vmul.f32 %v21227_v0, %v24912_v16  ;;  %v21251_v9 = vmul.f32 %v21143_v46, %v21143_v46  ;;  %v21255_v11 = vmul.f32 %v8700_v33, %v8700_v33 }
 0x910   : > { %v8788_v12 = vadd.f32 %v8787_v25, %v8763_v44  ;;  %v8804_v44 = vsel %vm3903_vm2, %v8752_v23, 0.0  ;;  %v24914_v23 = vld [vmem:[#allocation34_spill] sm:$0xff]  ;;  %v21266_v14 = vmul.f32 %v8702_v15, %v8702_v15 }
 0x911   : > { %v8760_v51 = vmul.f32 %v21235_v1, %v24914_v23  ;;  %v21277_v23 = vmul.f32 %v8704_v37, %v8704_v37 }
 0x912   : > { %v8789_v26 = vadd.f32 %v8788_v12, %v8765_v13  ;;  %v8805_v13 = vsel %vm3903_vm2, %v8754_v2, 0.0  ;;  %v24913_v12 = vld [vmem:[#allocation19_spill] sm:$0xff]  ;;  %v24915_v2 = vld [vmem:[#allocation66_spill] sm:$0xff] }
 0x913   : > { %v8771_v28 = vmul.f32 %v21231_v32, %v24913_v12  ;;  %v8806_v29 = vadd.f32 %v8805_v13, %v8804_v44  ;;  %v8773_v46 = vmul.f32 %v21239_v59, %v24915_v2  ;;  %v24916_v44 = vld [vmem:[#allocation35_spill] sm:$0xff] }
 0x914   : > { %v8790_v25 = vadd.f32 %v8789_v26, %v8767_v22  ;;  %v8807_v22 = vsel %vm3903_vm2, %v8756_v48, 0.0  ;;  %v21262_v26 = vmul.f32 %v21146_v41, %v21146_v41  ;;  %v8762_v33 = vmul.f32 %v21244_v62, %v24916_v44  ;;  %v24917_v48 = vld [vmem:[#allocation105_spill] sm:$0xff] }
 0x915   : > { %v8808_v16 = vadd.f32 %v8807_v22, %v8806_v29  ;;  %v8775_v41 = vmul.f32 %v21251_v9, %v24917_v48  ;;  %v24918_v29 = vld [vmem:[#allocation41_spill] sm:$0xff]  ;;  %v21288_v44 = vmul.f32 %v8706_v7, %v8706_v7 }
 0x916   : > { %v8791_v43 = vadd.f32 %v8790_v25, %v8769_v6  ;;  %v8809_v6 = vsel %vm3903_vm2, %v8758_v27, 0.0  ;;  %v21273_v25 = vmul.f32 %v21149_v36, %v21149_v36  ;;  %v8764_v15 = vmul.f32 %v21255_v11, %v24918_v29  ;;  %v24919_v27 = vld [vmem:[#allocation21_spill] sm:$0xff]  ;;  %v24922_v29 = vld [vmem:[#allocation96_spill] sm:$0xff] }
 0x917   : > { %v8810_v13 = vadd.f32 %v8809_v6, %v8808_v16  ;;  %v8777_v36 = vmul.f32 %v21262_v26, %v24919_v27  ;;  %v24920_v16 = vld [vmem:[#allocation57_spill] sm:$0xff]  ;;  %v8813_v37 = vsel %vm3903_vm2, %v8762_v33, 0.0  ;;  %v21306_v33 = vmul.f32 %v21191_v3, %v21191_v3 }
 0x918   : > { %v8792_v8 = vadd.f32 %v8791_v43, %v8771_v28  ;;  %v8811_v28 = vsel %vm3903_vm2, %v8760_v51, 0.0  ;;  %v21284_v43 = vmul.f32 %v21152_v42, %v21152_v42  ;;  %v21297_v42 = vmul.f32 %v21188_v40, %v21188_v40 }
 0x919   : > { %v8812_v22 = vadd.f32 %v8811_v28, %v8810_v13  ;;  %v8768_v13 = vmul.f32 %v21277_v23, %v24922_v29  ;;  %v8815_v7 = vsel %vm3903_vm2, %v8764_v15, 0.0  ;;  %v24925_v15 = vld [vmem:[#allocation55_spill] sm:$0xff]  ;;  %v21320_v3 = vmul.f32 %v21197_v5, %v21197_v5  ;;  %v24926_v29 = vld [vmem:[#allocation64_spill] sm:$0xff] }
 0x91a   : > { %v8793_v12 = vadd.f32 %v8792_v8, %v8773_v46  ;;  %v8766_v8 = vmul.f32 %v21266_v14, %v24920_v16  ;;  %v24921_v46 = vld [vmem:[#allocation44_spill] sm:$0xff]  ;;  %v21334_v5 = vmul.f32 %v21205_v53, %v21205_v53 }
 0x91b   : > { %v8779_v6 = vmul.f32 %v21273_v25, %v24921_v46  ;;  %v8814_v51 = vadd.f32 %v8813_v37, %v8812_v22  ;;  %v24924_v22 = vld [vmem:[#allocation40_spill] sm:$0xff]  ;;  %v21313_v37 = vmul.f32 %v21194_v54, %v21194_v54  ;;  %v8772_v46 = vmul.f32 %v21297_v42, %v24925_v15 }
 0x91c   : > { %v8794_v2 = vadd.f32 %v8793_v12, %v8775_v41  ;;  %v24923_v41 = vld [vmem:[#allocation73_spill] sm:$0xff]  ;;  %v8817_v40 = vsel %vm3903_vm2, %v8766_v8, 0.0  ;;  %v8774_v8 = vmul.f32 %v21306_v33, %v24926_v29  ;;  %v21327_v54 = vmul.f32 %v21202_v17, %v21202_v17  ;;  %v24929_v17 = vld [vmem:[#allocation87_spill] sm:$0xff] }
 0x91d   : > { %v8781_v12 = vmul.f32 %v21284_v43, %v24923_v41  ;;  %v8816_v28 = vadd.f32 %v8815_v7, %v8814_v51 }
 0x91e   : > { %v8795_v48 = vadd.f32 %v8794_v2, %v8777_v36  ;;  %v8770_v36 = vmul.f32 %v21288_v44, %v24924_v22 }
 0x91f   : > { %v8818_v2 = vadd.f32 %v8817_v40, %v8816_v28  ;;  %v24927_v28 = vld [vmem:[#allocation75_spill] sm:$0xff] }
 0x920   : > { %v8796_v27 = vadd.f32 %v8795_v48, %v8779_v6  ;;  %v8819_v6 = vsel %vm3903_vm2, %v8768_v13, 0.0  ;;  %v8821_v7 = vsel %vm3903_vm2, %v8770_v36, 0.0  ;;  %v8776_v13 = vmul.f32 %v21313_v37, %v24927_v28 }
 0x921   : > { %v8820_v51 = vadd.f32 %v8819_v6, %v8818_v2  ;;  %v24928_v2 = vld [vmem:[#allocation5_spill] sm:$0xff] }
 0x922   : > { %v8797_v16 = vadd.f32 %v8796_v27, %v8781_v12  ;;  %v8823_v27 = vsel %vm3903_vm2, %v8772_v46, 0.0  ;;  %v8778_v36 = vmul.f32 %v21320_v3, %v24928_v2 }
 0x923   : > { %v8822_v41 = vadd.f32 %v8821_v7, %v8820_v51  ;;  %v8780_v51 = vmul.f32 %v21327_v54, %v24929_v17  ;;  %v24930_v7 = vld [vmem:[#allocation93_spill] sm:$0xff] }
 0x924   : > { %v8798_v48 = vrot.slane %v8797_v16, 4  ;;  %v8829_v53 = vsel %vm3903_vm2, %v8778_v36, 0.0 }
 0x925   : > { %v8824_v22 = vadd.f32 %v8823_v27, %v8822_v41  ;;  %v8782_v41 = vmul.f32 %v21334_v5, %v24930_v7  ;;  %v8831_v2 = vsel %vm3903_vm2, %v8780_v51, 0.0 }
 0x926   : > { %v8799_v12 = vadd.f32 %v8798_v48, %v8797_v16  ;;  %v8825_v16 = vsel %vm3903_vm2, %v8774_v8, 0.0  ;;  %v8827_v48 = vsel %vm3903_vm2, %v8776_v13, 0.0 }
 0x927   : > { %v8826_v15 = vadd.f32 %v8825_v16, %v8824_v22 }
 0x928   : > { %v8800_v40 = vrot.slane %v8799_v12, 2 }
 0x929   : > { %v8828_v29 = vadd.f32 %v8827_v48, %v8826_v15 }
 0x92a   : > { %v8801_v6 = vadd.f32 %v8800_v40, %v8799_v12  ;;  %v8833_v12 = vsel %vm3903_vm2, %v8782_v41, 0.0 }
 0x92b   : > { %v8830_v28 = vadd.f32 %v8829_v53, %v8828_v29 }
 0x92c   : > { %v8802_v46 = vrot.slane %v8801_v6, 1 }
 0x92d   : > { %v8832_v34 = vadd.f32 %v8831_v2, %v8830_v28 }
 0x92e   : > { %v8803_v27 = vadd.f32 %v8802_v46, %v8801_v6 }
 0x92f   : > { %v8834_v22 = vadd.f32 %v8833_v12, %v8832_v34 }
 0x930   : > { %v21347_v8 = vmul.f32 %v21123_v47, %v8803_v27 }
 0x931   : > { %v8835_v13 = vrot.slane %v8834_v22, 4 }
 0x932   : > { %16886 = vrsqrt.f32 %v21347_v8  ;;  %vm8845_vm10 = vcmp.eq.f32.partialorder %v21347_v8, inf  ;;  %v8848_v29 = vand.u32 2147483648, %v21347_v8  ;;  %vm8847_vm11 = vcmp.eq.f32.partialorder %v21347_v8, 0.0 }
 0x933   : > { %v8836_v40 = vadd.f32 %v8835_v13, %v8834_v22 }
 0x935   : > { %v8837_v16 = vrot.slane %v8836_v40, 2 }
 0x937   : > { %v8838_v15 = vadd.f32 %v8837_v16, %v8836_v40 }
 0x939   : > { %v8839_v17 = vrot.slane %v8838_v15, 1 }
 0x93b   : > { %v8840_v36 = vadd.f32 %v8839_v17, %v8838_v15 }
 0x93c   : > { %v16887_v48 = vpop.eup %16886 }
 0x93d   : > { %v8844_v6 = vmul.f32 %v16887_v48, %v21347_v8  ;;  %v8842_v51 = vmul.f32 %v21125_v63, %v8840_v36 }
 0x93f   : > { %v8846_v47 = vsel %vm8845_vm10, %v21347_v8, %v8844_v6  ;;  %16888 = vrsqrt.f32 %v8842_v51  ;;  %v9604_v7 = vmul.f32 2.0, %v8842_v51  ;;  %vm8852_vm12 = vcmp.eq.f32.partialorder %v8842_v51, inf }
 0x940   : > { %v8849_v34 = vsel %vm8847_vm11, %v8848_v29, %v8846_v47  ;;  %v8855_v27 = vand.u32 2147483648, %v8842_v51  ;;  %vm8854_vm13 = vcmp.eq.f32.partialorder %v8842_v51, 0.0 }
 0x941   : > { %v8857_v46 = vadd.f32 1e-09, %v8849_v34  ;;  %v9606_v41 = vadd.f32 1e-09, %v9604_v7 }
 0x943   : > { %16890 = vlog2.f32 %v8857_v46 }
 0x944   : > { %16892 = vrcp.f32 %v9606_v41 }
 0x949   : > { %v16889_v53 = vpop.eup %16888 }
 0x94a   : > { %v8851_v28 = vmul.f32 %v16889_v53, %v8842_v51 }
 0x94c   : > { %v8853_v2 = vsel %vm8852_vm12, %v8842_v51, %v8851_v28 }
 0x94d   : > { %v8856_v63 = vsel %vm8854_vm13, %v8855_v27, %v8853_v2  ;;  %v16891_v22 = vpop.eup %16890  ;;  %v24931_v27 = vld [vmem:[#allocation18_spill] sm:$0xff] }
 0x94e   : > { %v8858_v12 = vadd.f32 1e-09, %v8856_v63  ;;  %v21357_v13 = vmul.f32 0.6931472, %v16891_v22  ;;  %v16893_v40 = vpop.eup %16892  ;;  %v24932_v63 = vmov 0.0|0.0  }
 0x94f   : > { %v21363_v15 = vrot.slane %v16893_v40, %v24820_v58 }
 0x950   : > { %16894 = vlog2.f32 %v8858_v12  ;;  %v21360_v16 = vand.u32 4294901760, %v21357_v13 }
 0x951   : > { %v9620_v6 = vmul.f32 %v21363_v15, %v21207_v10  ;;  %v9644_v55 = vmul.f32 %v21363_v15, %v21313_v37  ;;  %v9609_v37 = vadd.f32 0.9189385, %v21357_v13 }
 0x952   : > { %v21367_v36 = vsub.f32 %v21357_v13, %v21360_v16 }
 0x953   : > { %v9652_v41 = vsub.f32 0.0, %v9620_v6  ;;  %v9636_v6 = vmul.f32 %v21363_v15, %v21277_v23  ;;  %v9676_v61 = vsub.f32 0.0, %v9644_v55  ;;  %v9646_v55 = vmul.f32 %v21363_v15, %v21320_v3 }
 0x954   : > { %v23939_v46 = vand.u32 4294901760, %v21367_v36  ;;  %v9624_v3 = vmul.f32 %v21363_v15, %v21219_v50 }
 0x956   : > { %v8959_v28 = vsub.f32 %v21367_v36, %v23939_v46  ;;  %v24942_v46 = vld [vmem:[#allocation85_spill] sm:$0xff] }
 0x958   : > { %v8960_v40 = vand.u32 4294901760, %v8959_v28  ;;  %v9668_v28 = vsub.f32 0.0, %v9636_v6 }
 0x95a   : > { %v16895_v17 = vpop.eup %16894 }
 0x95b   : > { %v8862_v48 = vmul.f32 0.6931472, %v16895_v17  ;;  %v9634_v17 = vmul.f32 %v21363_v15, %v21266_v14 }
 0x95d   : > { %v8864_v51 = vsel %vm3903_vm2, %v8862_v48, 0  ;;  %v9610_v47 = vadd.f32 0.9189385, %v8862_v48  ;;  %v24933_v48 = vld [vmem:[#allocation38_spill] sm:$0xff]  ;;  %v9666_v14 = vsub.f32 0.0, %v9634_v17  ;;  %v24938_v17 = vld [vmem:[#allocation72_spill] sm:$0xff] }
 0x95e   : > { %v21372_v29 = vand.u32 4294901760, %v8864_v51 }
 0x95f   : > { %v21375_v34 = vrot.slane %v9610_v47, %v24820_v58  ;;  %v24934_v47 = vld [vmem:[#allocation23_spill] sm:$0xff] }
 0x960   : > { %v21379_v7 = vsub.f32 %v8864_v51, %v21372_v29  ;;  %v9638_v51 = vmul.f32 %v21363_v15, %v21288_v44  ;;  %v24936_v44 = vld [vmem:[#allocation62_spill] sm:$0xff] }
 0x961   : > { %v9692_v10 = vsub.f32 %v9652_v41, %v21375_v34  ;;  %v9603_v41 = vmul.f32 2.0, %v21347_v8  ;;  %v21409_v23 = vsub.f32 %v9666_v14, %v21375_v34  ;;  %v24940_v14 = vld [vmem:[#allocation74_spill] sm:$0xff] }
 0x962   : > { %9244 = vmatprep.mubr.f32.mxu1 %v21379_v7  ;;  %v23940_v53 = vand.u32 4294901760, %v21379_v7 }
 0x963   : > { %9247 = vmatmul.mubr.f32.vlgmr.msra.gmra.mrb[74].mxu1 %v21367_v36  ;;  %v9725_v22 = vmul.f32 1.442695, %v9692_v10  ;;  %v24935_v10 = vld [vmem:[#allocation94_spill] sm:$0xff]  ;;  %v9605_v8 = vadd.f32 1e-09, %v9603_v41 }
 0x964   : > { %15258 = vmatpush1.bf16.msra.mxu1 %v24931_v27  ;;  %9473 = vmatprep.mubr.f32.mxu1 %v21372_v29  ;;  %v8953_v2 = vsub.f32 %v21379_v7, %v23940_v53  ;;  %v9642_v53 = vmul.f32 %v21363_v15, %v21306_v33  ;;  %v24968_v27 = vld [vmem:[#allocation108_spill] sm:$0xff] }
 0x965   : > { %15259 = vmatprep.subr.bf16.mxu1 %v24932_v63  ;;  %16896 = vpow2.f32 %v9725_v22 }
 0x966   : > { %v8954_v12 = vand.u32 4294901760, %v8953_v2  ;;  %v9670_v2 = vsub.f32 0.0, %v9638_v51  ;;  %16898 = vrcp.f32 %v9605_v8  ;;  %v24939_v51 = vld [vmem:[#allocation78_spill] sm:$0xff]  ;;  %v9674_v33 = vsub.f32 0.0, %v9642_v53  ;;  %v24948_v53 = vld [vmem:[#allocation8_spill] sm:$0xff] }
 0x968   : > { %15261 = vmatpush1.bf16.msra.mxu1 %v24933_v48  ;;  %8955 = vmatprep.mubr.f32.mxu0 %v8954_v12  ;;  %v21413_v12 = vsub.f32 %v9668_v28, %v21375_v34  ;;  %v21417_v22 = vsub.f32 %v9670_v2, %v21375_v34  ;;  %v24941_v28 = vld [vmem:[#allocation46_spill] sm:$0xff]  ;;  %v9640_v2 = vmul.f32 %v21363_v15, %v21297_v42 }
 0x969   : > { %8961 = vmatmul.mubr.f32.vlgmr.msra.gmra.mrb[70].mxu0 %v8960_v40  ;;  %15262 = vmatprep.subr.bf16.mxu1 %v24932_v63  ;;  %v24937_v40 = vld [vmem:[#allocation39_spill] sm:$0xff]  ;;  %v21456_v30 = vsub.f32 %v9674_v33, %v21375_v34 }
 0x96a   : > { %15168 = vmatpush1.bf16.msra.mxu0 %v24934_v47  ;;  %9131 = vmatprep.mubr.f32.mxu0 %v21372_v29  ;;  %v9672_v45 = vsub.f32 0.0, %v9640_v2 }
 0x96b   : > { %15169 = vmatprep.subr.bf16.mxu0 %v24932_v63 }
 0x96c   : > { %15264 = vmatpush1.bf16.msra.mxu1 %v24935_v10  ;;  %v21445_v52 = vsub.f32 %v9672_v45, %v21375_v34  ;;  %v24949_v45 = vld [vmem:[#allocation107_spill] sm:$0xff]  ;;  %v24955_v10 = vld [vmem:[#allocation70_spill] sm:$0xff] }
 0x96d   : > { %15265 = vmatprep.subr.bf16.mxu1 %v24932_v63 }
 0x96e   : > { %15171 = vmatpush1.bf16.msra.mxu0 %v24936_v44 }
 0x96f   : > { %15172 = vmatprep.subr.bf16.mxu0 %v24932_v63  ;;  %v16897_v6 = vpop.eup %16896 }
 0x970   : > { %15267 = vmatpush1.bf16.msra.mxu1 %v24937_v40  ;;  %v9788_v41 = vsel %vm3903_vm2, %v16897_v6, 0  ;;  %v16899_v6 = vpop.eup %16898 }
 0x971   : > { %15268 = vmatprep.subr.bf16.mxu1 %v24932_v63  ;;  %v21433_v8 = vand.u32 4294901760, %v9788_v41  ;;  %v21452_v2 = vrot.slane %v16899_v6, %v24820_v58  ;;  %v9622_v6 = vmul.f32 %v21363_v15, %v21213_v4  ;;  %v9648_v4 = vmul.f32 %v21363_v15, %v21327_v54  ;;  %v24952_v54 = vld [vmem:[#allocation109_spill] sm:$0xff] }
 0x972   : > { %15174 = vmatpush1.bf16.msra.mxu0 %v24938_v17 }
 0x973   : > { %15175 = vmatprep.subr.bf16.mxu0 %v24932_v63  ;;  %v21442_v42 = vsub.f32 %v9788_v41, %v21433_v8  ;;  %v24947_v41 = vld [vmem:[#allocation102_spill] sm:$0xff]  ;;  %v9619_v33 = vmul.f32 %v21452_v2, %v21154_v24  ;;  %v9654_v24 = vsub.f32 0.0, %v9622_v6 }
 0x974   : > { %15270 = vmatpush1.bf16.msra.mxu1 %v24939_v51  ;;  %v9650_v51 = vmul.f32 %v21363_v15, %v21334_v5  ;;  %v9626_v5 = vmul.f32 %v21363_v15, %v21227_v0 }
 0x975   : > { %15271 = vmatprep.subr.bf16.mxu1 %v24932_v63  ;;  %24945 = vst [vmem:[#allocation99_spill] sm:$0xff] %v21442_v42  ;;  %v24950_v13 = vand.u32 4294901760, %v21442_v42  ;;  %v9694_v6 = vsub.f32 %v9654_v24, %v21375_v34  ;;  %v24954_v24 = vld [vmem:[#allocation111_spill] sm:$0xff] }
 0x976   : > { %15177 = vmatpush1.bf16.msra.mxu0 %v24940_v14  ;;  %v9682_v40 = vsub.f32 0.0, %v9650_v51 }
 0x977   : > { %15178 = vmatprep.subr.bf16.mxu0 %v24932_v63 }
 0x978   : > { %15273 = vmatpush1.bf16.msra.mxu1 %v24941_v28  ;;  %v24951_v28 = vld [vmem:[#allocation63_spill] sm:$0xff] }
 0x979   : > { %15274 = vmatprep.subr.bf16.mxu1 %v24932_v63 }
 0x97a   : > { %15180 = vmatpush1.bf16.msra.mxu0 %v24942_v46 }
 0x97b   : > { %15181 = vmatprep.subr.bf16.mxu0 %v24932_v63 }
 0x97c   : > { %15276 = vmatpush1.bf16.msra.mxu1 %v24943_v38  ;;  %v21478_v38 = vrot.slane %v9609_v37, %v24820_v58  ;;  %v9621_v37 = vmul.f32 %v21452_v2, %v21156_v21  ;;  %v9680_v58 = vsub.f32 0.0, %v9648_v4  ;;  %v9623_v4 = vmul.f32 %v21452_v2, %v21158_v35 }
 0x97d   : > { %15277 = vmatprep.subr.bf16.mxu1 %v24932_v63 }
 0x97e   : > { %15183 = vmatpush1.bf16.msra.mxu0 %v24944_v20  ;;  %v21502_v21 = vsub.f32 %v9680_v58, %v21375_v34  ;;  %v9653_v51 = vsub.f32 0.0, %v9621_v37  ;;  %v9625_v37 = vmul.f32 %v21452_v2, %v21160_v57  ;;  %v9655_v35 = vsub.f32 0.0, %v9623_v4  ;;  %v24957_v4 = vld [vmem:[#allocation86_spill] sm:$0xff] }
 0x97f   : > { %15184 = vmatprep.subr.bf16.mxu0 %v24932_v63 }
 0x980   : > { %15279 = vmatpush1.bf16.msra.mxu1 %v24946_v31  ;;  %v21466_v31 = vsub.f32 %v9676_v61, %v21375_v34  ;;  %v9678_v61 = vsub.f32 0.0, %v9646_v55 }
 0x981   : > { %15280 = vmatprep.subr.bf16.mxu1 %v24932_v63 }
 0x982   : > { %15186 = vmatpush1.bf16.msra.mxu0 %v24947_v41  ;;  %v21492_v55 = vsub.f32 %v9678_v61, %v21375_v34  ;;  %v9656_v61 = vsub.f32 0.0, %v9624_v3  ;;  %v9658_v3 = vsub.f32 0.0, %v9626_v5 }
 0x983   : > { %15187 = vmatprep.subr.bf16.mxu0 %v24932_v63 }
 0x984   : > { %15282 = vmatpush1.bf16.msra.mxu1 %v24948_v53  ;;  %v9922_v53 = vsub.f32 %v21442_v42, %v24950_v13  ;;  %v9651_v13 = vsub.f32 0.0, %v9619_v33  ;;  %v24953_v33 = vld [vmem:[#allocation31_spill] sm:$0xff]  ;;  %v9696_v0 = vsub.f32 %v9656_v61, %v21375_v34  ;;  %v9695_v61 = vsub.f32 %v9655_v35, %v21478_v38 }
 0x985   : > { %15283 = vmatprep.subr.bf16.mxu1 %v24932_v63 }
 0x986   : > { %15189 = vmatpush1.bf16.msra.mxu0 %v24949_v45  ;;  %v9691_v50 = vsub.f32 %v9651_v13, %v21478_v38  ;;  %v9729_v13 = vmul.f32 1.442695, %v9694_v6  ;;  %v9698_v6 = vsub.f32 %v9658_v3, %v21375_v34  ;;  %v9733_v5 = vmul.f32 1.442695, %v9696_v0 }
 0x987   : > { %15190 = vmatprep.subr.bf16.mxu0 %v24932_v63  ;;  %v9657_v3 = vsub.f32 0.0, %v9625_v37  ;;  %v9731_v0 = vmul.f32 1.442695, %v9695_v61  ;;  %v9629_v37 = vmul.f32 %v21452_v2, %v21169_v49 }
 0x988   : > { %15285 = vmatpush1.bf16.msra.mxu1 %v24951_v28  ;;  %v9923_v28 = vand.u32 4294901760, %v9922_v53  ;;  %v21506_v53 = vsub.f32 %v9682_v40, %v21375_v34  ;;  %v9723_v58 = vmul.f32 1.442695, %v9691_v50  ;;  %v9628_v40 = vmul.f32 %v21363_v15, %v21235_v1 }
 0x989   : > { %15316 = vmatprep.subr.bf16.mxu1 %v24932_v63  ;;  %v24956_v50 = vand.u32 4294901760, %v21379_v7  ;;  %16900 = vpow2.f32 %v9729_v13  ;;  %v9630_v1 = vmul.f32 %v21363_v15, %v21244_v62  ;;  %v9737_v48 = vmul.f32 1.442695, %v9698_v6 }
 0x98a   : > { %15192 = vmatpush1.bf16.msra.mxu0 %v24952_v54  ;;  %16902 = vpow2.f32 %v9723_v58  ;;  %v9627_v13 = vmul.f32 %v21452_v2, %v21167_v60  ;;  %v9697_v62 = vsub.f32 %v9657_v3, %v21478_v38  ;;  %v9633_v3 = vmul.f32 %v21452_v2, %v21209_v56 }
 0x98b   : > { %9475 = vmatmul.mubr.f32.vlgmr.msra.gmra.mrb[76].mxu1 %v21360_v16  ;;  %15193 = vmatprep.subr.bf16.mxu0 %v24932_v63  ;;  %16904 = vpow2.f32 %v9733_v5  ;;  %v9662_v58 = vsub.f32 0.0, %v9630_v1  ;;  %v9631_v5 = vmul.f32 %v21452_v2, %v21171_v19  ;;  %v24959_v1 = vld [vmem:[#allocation97_spill] sm:$0xff] }
 0x98c   : > { %15318 = vmatpush1.bf16.msra.mxu1 %v24953_v33  ;;  %9924 = vmatprep.mubr.f32.mxu1 %v9923_v28  ;;  %v9693_v28 = vsub.f32 %v9653_v51, %v21478_v38  ;;  %v9660_v51 = vsub.f32 0.0, %v9628_v40  ;;  %v24958_v40 = vld [vmem:[#allocation95_spill] sm:$0xff]  ;;  %v9659_v35 = vsub.f32 0.0, %v9627_v13 }
 0x98d   : > { %15319 = vmatprep.subr.bf16.mxu1 %v24932_v63  ;;  %v9702_v6 = vsub.f32 %v9662_v58, %v21375_v34  ;;  %v24960_v58 = vld [vmem:[#allocation101_spill] sm:$0xff] }
 0x98e   : > { %15195 = vmatpush1.bf16.msra.mxu0 %v24954_v24  ;;  %v9727_v57 = vmul.f32 1.442695, %v9693_v28  ;;  %v9700_v7 = vsub.f32 %v9660_v51, %v21375_v34  ;;  %v9632_v28 = vmul.f32 %v21363_v15, %v21255_v11  ;;  %v9699_v11 = vsub.f32 %v9659_v35, %v21478_v38 }
 0x98f   : > { %15226 = vmatprep.subr.bf16.mxu0 %v24932_v63  ;;  %v9745_v61 = vmul.f32 1.442695, %v9702_v6  ;;  %v9665_v35 = vsub.f32 0.0, %v9633_v3  ;;  %v21594_v3 = vmul.f32 %v21452_v2, %v21262_v26 }
 0x990   : > { %15321 = vmatpush1.bf16.msra.mxu1 %v24955_v10  ;;  %16906 = vpow2.f32 %v9727_v57  ;;  %v9741_v60 = vmul.f32 1.442695, %v9700_v7  ;;  %v9664_v15 = vsub.f32 0.0, %v9632_v28  ;;  %v9739_v13 = vmul.f32 1.442695, %v9699_v11 }
 0x991   : > { %9133 = vmatmul.mubr.f32.vlgmr.msra.gmra.mrb[72].mxu0 %v21360_v16  ;;  %15322 = vmatprep.subr.bf16.mxu1 %v24932_v63  ;;  %16908 = vpow2.f32 %v9737_v48  ;;  %v9661_v48 = vsub.f32 0.0, %v9629_v37  ;;  %v9637_v11 = vmul.f32 %v21452_v2, %v21221_v39 }
 0x992   : > { %15228 = vmatpush1.bf16.msra.mxu0 %v24953_v33  ;;  %9339 = vmatprep.mubr.f32.mxu0 %v24956_v50  ;;  %v9735_v50 = vmul.f32 1.442695, %v9697_v62  ;;  %16910 = vpow2.f32 %v9731_v0  ;;  %v9704_v51 = vsub.f32 %v9664_v15, %v21375_v34  ;;  %v9663_v62 = vsub.f32 0.0, %v9631_v5 }
 0x993   : > { %15229 = vmatprep.subr.bf16.mxu0 %v24932_v63  ;;  %v16901_v49 = vpop.eup %16900  ;;  %16912 = vpow2.f32 %v9741_v60  ;;  %v9701_v7 = vsub.f32 %v9661_v48, %v21478_v38  ;;  %v9635_v34 = vmul.f32 %v21452_v2, %v21215_v18  ;;  %v21573_v15 = vmul.f32 %v21452_v2, %v21231_v32 }
 0x994   : > { %15324 = vmatpush1.bf16.msra.mxu1 %v24957_v4  ;;  %v16903_v57 = vpop.eup %16902  ;;  %16914 = vpow2.f32 %v9735_v50  ;;  %v9791_v19 = vsel %vm3903_vm2, %v16901_v49, 0  ;;  %v9749_v37 = vmul.f32 1.442695, %v9704_v51  ;;  %v9703_v60 = vsub.f32 %v9663_v62, %v21478_v38 }
 0x995   : > { %15325 = vmatprep.subr.bf16.mxu1 %v24932_v63  ;;  %v16905_v0 = vpop.eup %16904  ;;  %v21560_v28 = vand.u32 4294901760, %v16903_v57  ;;  %16916 = vpow2.f32 %v9745_v61  ;;  %v21567_v6 = vand.u32 4294901760, %v9791_v19  ;;  %v9743_v50 = vmul.f32 1.442695, %v9701_v7  ;;  %v24963_v61 = vld [vmem:[#allocation104_spill] sm:$0xff] }
 0x996   : > { %15231 = vmatpush1.bf16.msra.mxu0 %v24955_v10  ;;  %v9794_v5 = vsel %vm3903_vm2, %v16905_v0, 0  ;;  %16918 = vpow2.f32 %v9739_v13  ;;  %v9705_v49 = vsub.f32 %v9665_v35, %v21478_v38  ;;  %v21580_v48 = vmul.f32 %v21452_v2, %v21239_v59 }
 0x997   : > { %15232 = vmatprep.subr.bf16.mxu0 %v24932_v63  ;;  %24961 = vst [vmem:[#allocation9_spill] sm:$0xff] %v21560_v28  ;;  %24962 = vst [vmem:[#allocation12_spill] sm:$0xff] %v21567_v6  ;;  %v21584_v39 = vsub.f32 %v16903_v57, %v21560_v28  ;;  %v21590_v32 = vmul.f32 %v21452_v2, %v21251_v9  ;;  %16920 = vpow2.f32 %v9749_v37  ;;  %v9747_v59 = vmul.f32 1.442695, %v9703_v60 }
 0x998   : > { %15327 = vmatpush1.bf16.msra.mxu1 %v24958_v40  ;;  %v9753_v13 = vmul.f32 1.442695, %v21409_v23  ;;  %v9667_v62 = vsub.f32 0.0, %v9635_v34  ;;  %v21600_v57 = vsub.f32 %v9791_v19, %v21567_v6  ;;  %v21602_v0 = vand.u32 4294901760, %v9794_v5 }
 0x999   : > { %15328 = vmatprep.subr.bf16.mxu1 %v24932_v63  ;;  %24964 = vst [vmem:[#allocation53_spill] sm:$0xff] %v21584_v39  ;;  %16922 = vpow2.f32 %v9743_v50  ;;  %v9751_v35 = vmul.f32 1.442695, %v9705_v49  ;;  %v9669_v60 = vsub.f32 0.0, %v9637_v11  ;;  %v9757_v11 = vmul.f32 1.442695, %v21413_v12 }
 0x99a   : > { %15234 = vmatpush1.bf16.msra.mxu0 %v24957_v4  ;;  %v16907_v56 = vpop.eup %16906  ;;  %24966 = vst [vmem:[#allocation32_spill] sm:$0xff] %v21600_v57  ;;  %24967 = vst [vmem:[#allocation103_spill] sm:$0xff] %v21602_v0  ;;  %v9707_v37 = vsub.f32 %v9667_v62, %v21478_v38  ;;  %16924 = vpow2.f32 %v9753_v13  ;;  %v24973_v49 = vld [vmem:[#allocation110_spill] sm:$0xff] }
 0x99b   : > { %15235 = vmatprep.subr.bf16.mxu0 %v24932_v63  ;;  %v16909_v18 = vpop.eup %16908  ;;  %v21586_v51 = vand.u32 4294901760, %v16907_v56  ;;  %16926 = vpow2.f32 %v9747_v59  ;;  %v9709_v12 = vsub.f32 %v9669_v60, %v21478_v38  ;;  %v9761_v60 = vmul.f32 1.442695, %v21417_v22 }
 0x99c   : > { %15330 = vmatpush1.bf16.msra.mxu1 %v24959_v1  ;;  %v16911_v7 = vpop.eup %16910  ;;  %v9797_v9 = vsel %vm3903_vm2, %v16909_v18, 0  ;;  %16928 = vpow2.f32 %v9751_v35  ;;  %v9755_v13 = vmul.f32 1.442695, %v9707_v37 }
 0x99d   : > { %15331 = vmatprep.subr.bf16.mxu1 %v24932_v63  ;;  %24965 = vst [vmem:[#allocation60_spill] sm:$0xff] %v21586_v51  ;;  %v16913_v26 = vpop.eup %16912  ;;  %v21611_v42 = vsub.f32 %v16907_v56, %v21586_v51  ;;  %v21613_v6 = vand.u32 4294901760, %v16911_v7  ;;  %v21617_v18 = vand.u32 4294901760, %v9797_v9  ;;  %v21624_v56 = vsub.f32 %v9794_v5, %v21602_v0  ;;  %v24978_v5 = vld [vmem:[#allocation112_spill] sm:$0xff] }
 0x99e   : > { %15237 = vmatpush1.bf16.msra.mxu0 %v24958_v40  ;;  %v16915_v34 = vpop.eup %16914  ;;  %v9800_v23 = vsel %vm3903_vm2, %v16913_v26, 0  ;;  %v24974_v51 = vand.u32 4294901760, %v21584_v39  ;;  %16930 = vpow2.f32 %v9757_v11  ;;  %v9759_v22 = vmul.f32 1.442695, %v9709_v12 }
 0x99f   : > { %15238 = vmatprep.subr.bf16.mxu0 %v24932_v63  ;;  %24969 = vst [vmem:[#allocation106_spill] sm:$0xff] %v21611_v42  ;;  %24970 = vst [vmem:[#allocation59_spill] sm:$0xff] %v21613_v6  ;;  %v16917_v50 = vpop.eup %16916  ;;  %v21628_v19 = vand.u32 4294901760, %v16915_v34  ;;  %v21637_v26 = vsub.f32 %v16911_v7, %v21613_v6  ;;  %v21642_v35 = vsub.f32 %v9797_v9, %v21617_v18  ;;  %v21644_v37 = vand.u32 4294901760, %v9800_v23 }
 0x9a0   : > { %15333 = vmatpush1.bf16.msra.mxu1 %v24960_v58  ;;  %24971 = vst [vmem:[#allocation120_spill] sm:$0xff] %v21617_v18  ;;  %24972 = vst [vmem:[#allocation121_spill] sm:$0xff] %v21624_v56  ;;  %v9928_v62 = vsub.f32 %v21584_v39, %v24974_v51  ;;  %v16919_v0 = vpop.eup %16918  ;;  %v24977_v51 = vand.u32 4294901760, %v21600_v57  ;;  %v9803_v59 = vsel %vm3903_vm2, %v16917_v50, 0  ;;  %v21655_v39 = vmul.f32 %v21452_v2, %v21273_v25 }
 0x9a1   : > { %15334 = vmatprep.subr.bf16.mxu1 %v24932_v63  ;;  %24975 = vst [vmem:[#allocation122_spill] sm:$0xff] %v21637_v26  ;;  %24976 = vst [vmem:[#allocation123_spill] sm:$0xff] %v21644_v37  ;;  %v16921_v9 = vpop.eup %16920  ;;  %v21659_v11 = vsub.f32 %v16915_v34, %v21628_v19  ;;  %16932 = vpow2.f32 %v9755_v13  ;;  %v21663_v18 = vmul.f32 %v21452_v2, %v21284_v43  ;;  %v21670_v28 = vand.u32 4294901760, %v16919_v0 }
 0x9a2   : > { %15240 = vmatpush1.bf16.msra.mxu0 %v24959_v1  ;;  %v9937_v7 = vsub.f32 %v21600_v57, %v24977_v51  ;;  %v9929_v50 = vand.u32 4294901760, %v9928_v62  ;;  %v24979_v57 = vand.u32 4294901760, %v21611_v42  ;;  %v21674_v13 = vsub.f32 %v9800_v23, %v21644_v37 }
 0x9a3   : > { %15241 = vmatprep.subr.bf16.mxu0 %v24932_v63  ;;  %v16923_v51 = vpop.eup %16922  ;;  %v21676_v12 = vand.u32 4294901760, %v9803_v59  ;;  %16934 = vpow2.f32 %v9761_v60  ;;  %v24981_v2 = vand.u32 4294901760, %v21624_v56  ;;  %v9806_v62 = vsel %vm3903_vm2, %v16921_v9, 0 }
 0x9a4   : > { %15336 = vmatpush1.bf16.msra.mxu1 %v24963_v61  ;;  %v9943_v25 = vsub.f32 %v21611_v42, %v24979_v57  ;;  %v9938_v43 = vand.u32 4294901760, %v9937_v7  ;;  %v9765_v6 = vmul.f32 1.442695, %v21445_v52  ;;  %v16925_v34 = vpop.eup %16924  ;;  %v21686_v23 = vand.u32 4294901760, %v16923_v51 }
 0x9a5   : > { %15337 = vmatprep.subr.bf16.mxu1 %v24932_v63  ;;  %24980 = vst [vmem:[#allocation124_spill] sm:$0xff] %v21676_v12  ;;  %v9952_v57 = vsub.f32 %v21624_v56, %v24981_v2  ;;  %16936 = vpow2.f32 %v9759_v22  ;;  %v24982_v60 = vsub.f32 0.0, %v21573_v15  ;;  %v16927_v37 = vpop.eup %16926  ;;  %v24983_v9 = vand.u32 4294901760, %v21637_v26 }
 0x9a6   : > { %15243 = vmatpush1.bf16.msra.mxu0 %v24960_v58  ;;  %v9944_v2 = vand.u32 4294901760, %v9943_v25  ;;  %v21697_v56 = vsub.f32 %v16919_v0, %v21670_v28  ;;  %v16929_v22 = vpop.eup %16928  ;;  %v21704_v7 = vand.u32 4294901760, %v9806_v62  ;;  %v9769_v25 = vmul.f32 1.442695, %v21456_v30 }
 0x9a7   : > { %15244 = vmatprep.subr.bf16.mxu0 %v24932_v63  ;;  %v9711_v42 = vsub.f32 %v24982_v60, %v21478_v38  ;;  %v9958_v52 = vsub.f32 %v21637_v26, %v24983_v9  ;;  %v21702_v60 = vsub.f32 %v9803_v59, %v21676_v12  ;;  %v24984_v0 = vand.u32 4294901760, %v21642_v35 }
 0x9a8   : > { %15339 = vmatpush1.bf16.msra.mxu1 %v24968_v27  ;;  %16938 = vpow2.f32 %v9765_v6  ;;  %v16931_v15 = vpop.eup %16930  ;;  %v21715_v59 = vsub.f32 %v16923_v51, %v21686_v23 }
 0x9a9   : > { %15340 = vmatprep.subr.bf16.mxu1 %v24932_v63  ;;  %v9967_v9 = vsub.f32 %v21642_v35, %v24984_v0  ;;  %v9763_v30 = vmul.f32 1.442695, %v9711_v42  ;;  %v9959_v12 = vand.u32 4294901760, %v9958_v52  ;;  %v24987_v0 = vand.u32 4294901760, %v21659_v11 }
 0x9aa   : > { %15246 = vmatpush1.bf16.msra.mxu0 %v24963_v61  ;;  %24985 = vst [vmem:[#allocation80_spill] sm:$0xff] %v21715_v59  ;;  %v24989_v42 = vand.u32 4294901760, %v21367_v36  ;;  %v21737_v52 = vsub.f32 %v9806_v62, %v21704_v7  ;;  %16940 = vpow2.f32 %v9769_v25 }
 0x9ab   : > { %15247 = vmatprep.subr.bf16.mxu0 %v24932_v63  ;;  %v9973_v6 = vsub.f32 %v21659_v11, %v24987_v0  ;;  %v21729_v51 = vpop.eup %16932  ;;  %v9968_v0 = vand.u32 4294901760, %v9967_v9  ;;  %16942 = vpow2.f32 %v9763_v30  ;;  %v24991_v9 = vand.u32 4294901760, %v21697_v56 }
 0x9ac   : > { %15342 = vmatpush1.bf16.msra.mxu1 %v24973_v49 }
 0x9ad   : > { %15343 = vmatprep.subr.bf16.mxu1 %v24932_v63  ;;  %v9988_v36 = vsub.f32 %v21697_v56, %v24991_v9 }
 0x9ae   : > { %15249 = vmatpush1.bf16.msra.mxu0 %v24968_v27 }
 0x9af   : > { %15250 = vmatprep.subr.bf16.mxu0 %v24932_v63 }
 0x9b0   : > { %15345 = vmatpush1.bf16.msra.mxu1 %v24978_v5 }
 0x9b1   : > { %15346 = vmatprep.subr.bf16.mxu1 %v24932_v63 }
 0x9b2   : > { %15252 = vmatpush1.bf16.msra.mxu0 %v24973_v49 }
 0x9b3   : > { %9930 = vmatmul.mubr.f32.vlgmr.msra.gmra.mrb[78].mxu1 %v9929_v50  ;;  %15253 = vmatprep.subr.bf16.mxu0 %v24932_v63  ;;  %v9809_v50 = vsel %vm3903_vm2, %v16925_v34, 0  ;;  %v9773_v34 = vmul.f32 1.442695, %v21466_v31  ;;  %v24992_v31 = vsub.f32 0.0, %v21590_v32 }
 0x9b4   : > { %9939 = vmatprep.mubr.f32.mxu1 %v9938_v43  ;;  %15348 = vmatpush1.bf16.msra.mxu1 %v24934_v47  ;;  %v9953_v43 = vand.u32 4294901760, %v9952_v57  ;;  %v21717_v47 = vand.u32 4294901760, %v16927_v37  ;;  %v24986_v57 = vsub.f32 0.0, %v21580_v48  ;;  %v24990_v48 = vand.u32 4294901760, %v21674_v13 }
 0x9b5   : > { %15349 = vmatprep.subr.bf16.mxu1 %v24932_v63  ;;  %16944 = vpow2.f32 %v9773_v34 }
 0x9b6   : > { %15255 = vmatpush1.bf16.msra.mxu0 %v24978_v5  ;;  %v9713_v26 = vsub.f32 %v24986_v57, %v21478_v38  ;;  %v21739_v57 = vand.u32 4294901760, %v9809_v50 }
 0x9b7   : > { %9945 = vmatmul.mubr.f32.gmra.mrb[80].mxu1 %v9944_v2  ;;  %15286 = vmatprep.subr.bf16.mxu0 %v24932_v63  ;;  %v21726_v2 = vand.u32 4294901760, %v16929_v22 }
 0x9b8   : > { %9954 = vmatprep.mubr.f32.mxu1 %v9953_v43  ;;  %15351 = vmatpush1.bf16.msra.mxu1 %v24936_v44  ;;  %v9982_v43 = vsub.f32 %v21674_v13, %v24990_v48  ;;  %v16935_v48 = vpop.eup %16934  ;;  %v21750_v44 = vsub.f32 %v16927_v37, %v21717_v47  ;;  %v9767_v25 = vmul.f32 1.442695, %v9713_v26  ;;  %v21766_v30 = vsub.f32 %v9809_v50, %v21739_v57 }
 0x9b9   : > { %24988 = vst [vmem:[#allocation16_spill] sm:$0xff] %v21726_v2  ;;  %9343 = vmatmul.mubr.f32.vlgmr.msra.gmra.mrb[74].mxu0 %v24989_v42  ;;  %15352 = vmatprep.subr.bf16.mxu1 %v24932_v63  ;;  %v9812_v42 = vsel %vm3903_vm2, %v16931_v15, 0  ;;  %v21756_v15 = vsub.f32 %v16929_v22, %v21726_v2  ;;  %v21762_v62 = vpop.eup %16936  ;;  %v24995_v22 = vand.u32 4294901760, %v21702_v60  ;;  %v9815_v32 = vsel %vm3903_vm2, %v16935_v48, 0 }
 0x9ba   : > { %15288 = vmatpush1.bf16.msra.mxu0 %v24953_v33  ;;  %9565 = vmatprep.mubr.f32.mxu0 %v21372_v29  ;;  %v9974_v29 = vand.u32 4294901760, %v9973_v6  ;;  %v9983_v37 = vand.u32 4294901760, %v9982_v43  ;;  %24993 = vst [vmem:[#allocation100_spill] sm:$0xff] %v21766_v30  ;;  %v21768_v6 = vand.u32 4294901760, %v9812_v42  ;;  %v9777_v43 = vmul.f32 1.442695, %v21492_v55 }
 0x9bb   : > { %9960 = vmatmul.mubr.f32.gmra.mrb[82].mxu1 %v9959_v12  ;;  %15289 = vmatprep.subr.bf16.mxu0 %v24932_v63  ;;  %v9715_v12 = vsub.f32 %v24992_v31, %v21478_v38  ;;  %v24996_v50 = vand.u32 4294901760, %v21715_v59  ;;  %v21783_v26 = vand.u32 4294901760, %v21729_v51  ;;  %16946 = vpow2.f32 %v9767_v25 }
 0x9bc   : > { %9969 = vmatprep.mubr.f32.mxu1 %v9968_v0  ;;  %15354 = vmatpush1.bf16.msra.mxu1 %v24938_v17  ;;  %24994 = vst [vmem:[#allocation82_spill] sm:$0xff] %v21768_v6  ;;  %v9997_v0 = vsub.f32 %v21702_v60, %v24995_v22  ;;  %v16939_v17 = vpop.eup %16938  ;;  %v9989_v22 = vand.u32 4294901760, %v9988_v36  ;;  %v24998_v55 = vsub.f32 0.0, %v21594_v3  ;;  %v21795_v25 = vsub.f32 %v9812_v42, %v21768_v6 }
 0x9bd   : > { %15355 = vmatprep.subr.bf16.mxu1 %v24932_v63  ;;  %v10003_v9 = vsub.f32 %v21715_v59, %v24996_v50  ;;  %24997 = vst [vmem:[#allocation19_spill] sm:$0xff] %v21783_v26  ;;  %v9771_v34 = vmul.f32 1.442695, %v9715_v12  ;;  %v24999_v50 = vand.u32 4294901760, %v21737_v52  ;;  %16948 = vpow2.f32 %v9777_v43  ;;  %v16941_v12 = vpop.eup %16940 }
 0x9be   : > { %15291 = vmatpush1.bf16.msra.mxu0 %v24955_v10  ;;  %v9717_v48 = vsub.f32 %v24998_v55, %v21478_v38  ;;  %v9998_v36 = vand.u32 4294901760, %v9997_v0  ;;  %v25001_v42 = vand.u32 4294901760, %v21750_v44  ;;  %v21809_v59 = vsub.f32 %v21729_v51, %v21783_v26  ;;  %v16943_v3 = vpop.eup %16942 }
 0x9bf   : > { %9975 = vmatmul.mubr.f32.gmra.mrb[84].mxu1 %v9974_v29  ;;  %15292 = vmatprep.subr.bf16.mxu0 %v24932_v63  ;;  %v9681_v29 = vsub.f32 0.0, %v21663_v18  ;;  %v10012_v31 = vsub.f32 %v21737_v52, %v24999_v50  ;;  %v9781_v18 = vmul.f32 1.442695, %v21502_v21  ;;  %v10004_v55 = vand.u32 4294901760, %v10003_v9 }
 0x9c0   : > { %9984 = vmatprep.mubr.f32.mxu1 %v9983_v37  ;;  %15357 = vmatpush1.bf16.msra.mxu1 %v24940_v14  ;;  %v21797_v37 = vand.u32 4294901760, %v9815_v32  ;;  %v10018_v50 = vsub.f32 %v21750_v44, %v25001_v42  ;;  %v9818_v0 = vsel %vm3903_vm2, %v16939_v17, 0  ;;  %v21813_v43 = vand.u32 4294901760, %v21762_v62 }
 0x9c1   : > { %15358 = vmatprep.subr.bf16.mxu1 %v24932_v63  ;;  %16950 = vpow2.f32 %v9771_v34  ;;  %v9775_v21 = vmul.f32 1.442695, %v9717_v48  ;;  %v25003_v9 = vsub.f32 0.0, %v21655_v39  ;;  %v10013_v42 = vand.u32 4294901760, %v10012_v31 }
 0x9c2   : > { %25000 = vst [vmem:[#allocation34_spill] sm:$0xff] %v21797_v37  ;;  %15294 = vmatpush1.bf16.msra.mxu0 %v24957_v4  ;;  %25002 = vst [vmem:[#allocation66_spill] sm:$0xff] %v21813_v43  ;;  %v25004_v14 = vand.u32 4294901760, %v21766_v30  ;;  %v21828_v34 = vand.u32 4294901760, %v9818_v0  ;;  %v9821_v39 = vsel %vm3903_vm2, %v16941_v12, 0  ;;  %16952 = vpow2.f32 %v9781_v18 }
 0x9c3   : > { %9990 = vmatmul.mubr.f32.gmra.mrb[86].mxu1 %v9989_v22  ;;  %15295 = vmatprep.subr.bf16.mxu0 %v24932_v63  ;;  %v9719_v22 = vsub.f32 %v25003_v9, %v21478_v38  ;;  %v9785_v31 = vmul.f32 1.442695, %v21506_v53  ;;  %v25007_v48 = vand.u32 4294901760, %v21756_v15  ;;  %v16945_v9 = vpop.eup %16944  ;;  %v21836_v17 = vand.u32 4294901760, %v16943_v3 }
 0x9c4   : > { %9999 = vmatprep.mubr.f32.mxu1 %v9998_v36  ;;  %15360 = vmatpush1.bf16.msra.mxu1 %v24942_v46  ;;  %v10027_v51 = vsub.f32 %v21766_v30, %v25004_v14  ;;  %v21824_v36 = vsub.f32 %v9815_v32, %v21797_v37  ;;  %25006 = vst [vmem:[#allocation105_spill] sm:$0xff] %v21828_v34  ;;  %v10019_v14 = vand.u32 4294901760, %v10018_v50  ;;  %16954 = vpow2.f32 %v9775_v21 }
 0x9c5   : > { %15361 = vmatprep.subr.bf16.mxu1 %v24932_v63  ;;  %v10033_v32 = vsub.f32 %v21756_v15, %v25007_v48  ;;  %25008 = vst [vmem:[#allocation41_spill] sm:$0xff] %v21836_v17  ;;  %v9779_v46 = vmul.f32 1.442695, %v9719_v22  ;;  %v9721_v18 = vsub.f32 %v9681_v29, %v21478_v38  ;;  %v16947_v12 = vpop.eup %16946  ;;  %v21843_v50 = vsub.f32 %v21762_v62, %v21813_v43 }
 0x9c6   : > { %25005 = vst [vmem:[#allocation35_spill] sm:$0xff] %v21824_v36  ;;  %15297 = vmatpush1.bf16.msra.mxu0 %v24958_v40  ;;  %v10028_v53 = vand.u32 4294901760, %v10027_v51  ;;  %v21845_v30 = vand.u32 4294901760, %v9821_v39  ;;  %v21854_v29 = vsub.f32 %v9818_v0, %v21828_v34  ;;  %16956 = vpow2.f32 %v9785_v31 }
 0x9c7   : > { %10005 = vmatmul.mubr.f32.gmra.mrb[88].mxu1 %v10004_v55  ;;  %15298 = vmatprep.subr.bf16.mxu0 %v24932_v63  ;;  %v23987_v55 = vand.u32 4294901760, %v21809_v59  ;;  %25009 = vst [vmem:[#allocation21_spill] sm:$0xff] %v21843_v50  ;;  %v9824_v62 = vsel %vm3903_vm2, %v16945_v9, 0  ;;  %v16949_v22 = vpop.eup %16948  ;;  %v21859_v51 = vsub.f32 %v16943_v3, %v21836_v17  ;;  %v21861_v48 = vand.u32 4294901760, %v16947_v12 }
 0x9c8   : > { %10014 = vmatprep.mubr.f32.mxu1 %v10013_v42  ;;  %15363 = vmatpush1.bf16.msra.mxu1 %v24944_v20  ;;  %25010 = vst [vmem:[#allocation57_spill] sm:$0xff] %v21845_v30  ;;  %v25011_v42 = vand.u32 4294901760, %v21795_v25  ;;  %25012 = vst [vmem:[#allocation44_spill] sm:$0xff] %v21854_v29  ;;  %16958 = vpow2.f32 %v9779_v46  ;;  %v10034_v38 = vand.u32 4294901760, %v10033_v32 }
 0x9c9   : > { %15364 = vmatprep.subr.bf16.mxu1 %v24932_v63  ;;  %25013 = vst [vmem:[#allocation96_spill] sm:$0xff] %v21859_v51  ;;  %25014 = vst [vmem:[#allocation73_spill] sm:$0xff] %v21861_v48  ;;  %v10048_v0 = vsub.f32 %v21809_v59, %v23987_v55 }
 0x9ca   : > { %15300 = vmatpush1.bf16.msra.mxu0 %v24959_v1  ;;  %v10042_v21 = vsub.f32 %v21795_v25, %v25011_v42  ;;  %v9783_v42 = vmul.f32 1.442695, %v9721_v18  ;;  %v21877_v18 = vand.u32 4294901760, %v9824_v62 }
 0x9cb   : > { %10020 = vmatmul.mubr.f32.gmra.mrb[90].mxu1 %v10019_v14  ;;  %15301 = vmatprep.subr.bf16.mxu0 %v24932_v63  ;;  %v21869_v14 = vsub.f32 %v9821_v39, %v21845_v30  ;;  %v16951_v3 = vpop.eup %16950  ;;  %v9827_v39 = vsel %vm3903_vm2, %v16949_v22, 0 }
 0x9cc   : > { %10029 = vmatprep.mubr.f32.mxu1 %v10028_v53  ;;  %15366 = vmatpush1.bf16.msra.mxu1 %v24947_v41  ;;  %v10043_v9 = vand.u32 4294901760, %v10042_v21  ;;  %v25016_v53 = vand.u32 4294901760, %v21824_v36  ;;  %25017 = vst [vmem:[#allocation55_spill] sm:$0xff] %v21877_v18  ;;  %v16953_v55 = vpop.eup %16952  ;;  %v21883_v41 = vsub.f32 %v16947_v12, %v21861_v48  ;;  %16960 = vpow2.f32 %v9783_v42 }
 0x9cd   : > { %25015 = vst [vmem:[#allocation40_spill] sm:$0xff] %v21869_v14  ;;  %15367 = vmatprep.subr.bf16.mxu1 %v24932_v63  ;;  %v10049_v21 = vand.u32 4294901760, %v10048_v0  ;;  %v21890_v20 = vand.u32 4294901760, %v16951_v3  ;;  %v25021_v12 = vand.u32 4294901760, %v21854_v29  ;;  %v21898_v42 = vsub.f32 %v9824_v62, %v21877_v18 }
 0x9ce   : > { %15303 = vmatpush1.bf16.msra.mxu0 %v24960_v58  ;;  %v10057_v46 = vsub.f32 %v21824_v36, %v25016_v53  ;;  %25018 = vst [vmem:[#allocation64_spill] sm:$0xff] %v21883_v41  ;;  %v25019_v53 = vand.u32 4294901760, %v21843_v50  ;;  %v16955_v22 = vpop.eup %16954  ;;  %v21900_v0 = vand.u32 4294901760, %v9827_v39  ;;  %v25025_v62 = vand.u32 4294901760, %v21869_v14 }
 0x9cf   : > { %10035 = vmatmul.mubr.f32.gmra.mrb[92].mxu1 %v10034_v38  ;;  %15304 = vmatprep.subr.bf16.mxu0 %v24932_v63  ;;  %25020 = vst [vmem:[#allocation75_spill] sm:$0xff] %v21890_v20  ;;  %v10072_v31 = vsub.f32 %v21854_v29, %v25021_v12  ;;  %25022 = vst [vmem:[#allocation5_spill] sm:$0xff] %v21898_v42  ;;  %v21915_v36 = vand.u32 4294901760, %v16955_v22 }
 0x9d0   : > { %10044 = vmatprep.mubr.f32.mxu1 %v10043_v9  ;;  %15369 = vmatpush1.bf16.msra.mxu1 %v24949_v45  ;;  %v10063_v32 = vsub.f32 %v21843_v50, %v25019_v53  ;;  %v10058_v9 = vand.u32 4294901760, %v10057_v46  ;;  %25023 = vst [vmem:[#allocation87_spill] sm:$0xff] %v21900_v0  ;;  %v9830_v53 = vsel %vm3903_vm2, %v16953_v55, 0  ;;  %v16957_v38 = vpop.eup %16956  ;;  %v25024_v45 = vand.u32 4294901760, %v21859_v51 }
 0x9d1   : > { %15370 = vmatprep.subr.bf16.mxu1 %v24932_v63  ;;  %v10087_v29 = vsub.f32 %v21869_v14, %v25025_v62  ;;  %25027 = vst [vmem:[#allocation125_spill] sm:$0xff] %v21915_v36  ;;  %v21921_v50 = vsub.f32 %v9827_v39, %v21900_v0  ;;  %v21933_v39 = vsub.f32 %v16955_v22, %v21915_v36 }
 0x9d2   : > { %15306 = vmatpush1.bf16.msra.mxu0 %v24963_v61  ;;  %v10078_v46 = vsub.f32 %v21859_v51, %v25024_v45  ;;  %v10064_v12 = vand.u32 4294901760, %v10063_v32  ;;  %v16959_v55 = vpop.eup %16958  ;;  %v10073_v45 = vand.u32 4294901760, %v10072_v31  ;;  %v21923_v32 = vand.u32 4294901760, %v9830_v53 }
 0x9d3   : > { %10050 = vmatmul.mubr.f32.gmra.mrb[94].mxu1 %v10049_v21  ;;  %15307 = vmatprep.subr.bf16.mxu0 %v24932_v63  ;;  %v21913_v21 = vsub.f32 %v16951_v3, %v21890_v20  ;;  %v9833_v3 = vsel %vm3903_vm2, %v16957_v38, 0  ;;  %v10088_v31 = vand.u32 4294901760, %v10087_v29  ;;  %25030 = vst [vmem:[#allocation127_spill] sm:$0xff] %v21933_v39  ;;  %v21935_v51 = vand.u32 4294901760, %v16959_v55 }
 0x9d4   : > { %10059 = vmatprep.mubr.f32.mxu1 %v10058_v9  ;;  %15372 = vmatpush1.bf16.msra.mxu1 %v24952_v54  ;;  %25028 = vst [vmem:[#allocation126_spill] sm:$0xff] %v21923_v32  ;;  %v10079_v62 = vand.u32 4294901760, %v10078_v46  ;;  %v25029_v54 = vand.u32 4294901760, %v21883_v41  ;;  %v25032_v38 = vand.u32 4294901760, %v21898_v42  ;;  %v21944_v29 = vsub.f32 %v9830_v53, %v21923_v32 }
 0x9d5   : > { %25026 = vst [vmem:[#allocation93_spill] sm:$0xff] %v21913_v21  ;;  %15373 = vmatprep.subr.bf16.mxu1 %v24932_v63  ;;  %v24007_v9 = vand.u32 4294901760, %v21913_v21  ;;  %25031 = vst [vmem:[#allocation128_spill] sm:$0xff] %v21935_v51 }
 0x9d6   : > { %15309 = vmatpush1.bf16.msra.mxu0 %v24968_v27  ;;  %v10093_v14 = vsub.f32 %v21883_v41, %v25029_v54  ;;  %v10102_v46 = vsub.f32 %v21898_v42, %v25032_v38  ;;  %v24010_v41 = vand.u32 4294901760, %v21933_v39  ;;  %v21954_v38 = vsub.f32 %v16959_v55, %v21935_v51 }
 0x9d7   : > { %10065 = vmatmul.mubr.f32.gmra.mrb[96].mxu1 %v10064_v12  ;;  %15310 = vmatprep.subr.bf16.mxu0 %v24932_v63  ;;  %v16961_v12 = vpop.eup %16960 }
 0x9d8   : > { %10074 = vmatprep.mubr.f32.mxu1 %v10073_v45  ;;  %15375 = vmatpush1.bf16.msra.mxu1 %v24954_v24  ;;  %v21946_v45 = vand.u32 4294901760, %v9833_v3  ;;  %v10094_v22 = vand.u32 4294901760, %v10093_v14  ;;  %v10108_v24 = vsub.f32 %v21913_v21, %v24007_v9  ;;  %v21956_v54 = vand.u32 4294901760, %v16961_v12  ;;  %v25036_v9 = vld [vmem:[#allocation13_spill] sm:$0xff] }
 0x9d9   : > { %15376 = vmatprep.subr.bf16.mxu1 %v24932_v63  ;;  %v10103_v53 = vand.u32 4294901760, %v10102_v46  ;;  %v10123_v46 = vsub.f32 %v21933_v39, %v24010_v41  ;;  %v24013_v21 = vand.u32 4294901760, %v21954_v38 }
 0x9da   : > { %15312 = vmatpush1.bf16.msra.mxu0 %v24973_v49  ;;  %25033 = vst [vmem:[#allocation129_spill] sm:$0xff] %v21946_v45  ;;  %25034 = vst [vmem:[#allocation130_spill] sm:$0xff] %v21956_v54  ;;  %v10109_v55 = vand.u32 4294901760, %v10108_v24  ;;  %v25040_v24 = vld [vmem:[#allocation22_spill] sm:$0xff] }
 0x9db   : > { %10080 = vmatmul.mubr.f32.gmra.mrb[98].mxu1 %v10079_v62  ;;  %15313 = vmatprep.subr.bf16.mxu0 %v24932_v63  ;;  %v25035_v62 = vand.u32 4294901760, %v21921_v50  ;;  %v10124_v41 = vand.u32 4294901760, %v10123_v46 }
 0x9dc   : > { %10089 = vmatprep.mubr.f32.mxu1 %v10088_v31  ;;  %v21964_v31 = vsub.f32 %v9833_v3, %v21946_v45  ;;  %v25037_v3 = vand.u32 4294901760, %v21944_v29 }
 0x9dd   : > { %v10117_v42 = vsub.f32 %v21921_v50, %v25035_v62  ;;  %v21973_v62 = vsub.f32 %v16961_v12, %v21956_v54  ;;  %v10138_v12 = vsub.f32 %v21954_v38, %v24013_v21  ;;  %v25041_v21 = vld [vmem:[#allocation9_spill] sm:$0xff] }
 0x9de   : > { %15315 = vmatpush1.bf16.msra.mxu0 %v24978_v5 }
 0x9df   : > { %10095 = vmatmul.mubr.f32.gmra.mrb[100].mxu1 %v10094_v22  ;;  %15497 = vmatprep.subr.bf16.mxu0 %v25036_v9  ;;  %v10118_v14 = vand.u32 4294901760, %v10117_v42  ;;  %v10132_v22 = vsub.f32 %v21944_v29, %v25037_v3  ;;  %v24015_v9 = vand.u32 4294901760, %v21964_v31  ;;  %v24014_v42 = vand.u32 4294901760, %v21973_v62 }
 0x9e0   : > { %10104 = vmatprep.mubr.f32.mxu1 %v10103_v53  ;;  %v25038_v53 = vld [vmem:[#allocation15_spill] sm:$0xff] }
 0x9e1   : > { %9567 = vmatmul.mubr.f32.vlgmr.msra.gmra.mrb[76].mxu0 %v21360_v16  ;;  %v25039_v16 = vmov 0.0   ;;  %v10133_v39 = vand.u32 4294901760, %v10132_v22  ;;  %v10147_v3 = vsub.f32 %v21964_v31, %v24015_v9  ;;  %v25042_v22 = vld [vmem:[#allocation12_spill] sm:$0xff]  ;;  %v25053_v9 = vld [vmem:[#allocation119_spill] sm:$0xff] }
 0x9e2   : > { %15499 = vmatpush1.bf16.msra.mxu0 %v25038_v53  ;;  %11668 = vmatprep.mubr.f32.mxu0 %v25039_v16  ;;  %v10139_v53 = vand.u32 4294901760, %v10138_v12  ;;  %v25046_v12 = vld [vmem:[#allocation114_spill] sm:$0xff] }
 0x9e3   : > { %10110 = vmatmul.mubr.f32.gmra.mrb[102].mxu1 %v10109_v55  ;;  %15501 = vmatprep.subr.bf16.mxu0 %v25040_v24  ;;  %v10153_v55 = vsub.f32 %v21973_v62, %v24014_v42  ;;  %v25043_v24 = vld [vmem:[#allocation113_spill] sm:$0xff]  ;;  %v25052_v42 = vld [vmem:[#allocation124_spill] sm:$0xff] }
 0x9e4   : > { %10119 = vmatprep.mubr.f32.mxu1 %v10118_v14  ;;  %v10148_v14 = vand.u32 4294901760, %v10147_v3  ;;  %v25048_v3 = vld [vmem:[#allocation120_spill] sm:$0xff] }
 0x9e5   : > { %v10154_v46 = vand.u32 4294901760, %v10153_v55  ;;  %v25049_v55 = vld [vmem:[#allocation116_spill] sm:$0xff] }
 0x9e7   : > { %10125 = vmatmul.mubr.f32.gmra.mrb[104].mxu1 %v10124_v41  ;;  %v25044_v41 = vld [vmem:[#allocation60_spill] sm:$0xff] }
 0x9e8   : > { %10134 = vmatprep.mubr.f32.mxu1 %v10133_v39  ;;  %v25045_v39 = vld [vmem:[#allocation103_spill] sm:$0xff] }
 0x9eb   : > { %10140 = vmatmul.mubr.f32.gmra.mrb[106].mxu1 %v10139_v53  ;;  %v25047_v53 = vld [vmem:[#allocation59_spill] sm:$0xff] }
 0x9ec   : > { %10149 = vmatprep.mubr.f32.mxu1 %v10148_v14  ;;  %v25050_v14 = vld [vmem:[#allocation123_spill] sm:$0xff] }
 0x9ef   : > { %10155 = vmatmul.mubr.f32.gmra.mrb[108].mxu1 %v10154_v46  ;;  %v25051_v46 = vld [vmem:[#allocation118_spill] sm:$0xff] }
 0x9f0   : > { %10325 = vmatprep.mubr.f32.mxu1 %v21433_v8 }
 0x9f3   : > { %10327 = vmatmul.mubr.f32.vlgmr.msra.gmra.mrb[78].mxu1 %v25041_v21 }
 0x9f4   : > { %10332 = vmatprep.mubr.f32.mxu1 %v25042_v22  ;;  %15378 = vmatpush1.bf16.msra.mxu1 %v25043_v24  ;;  %v25062_v24 = vld [vmem:[#allocation106_spill] sm:$0xff] }
 0x9f5   : > { %15379 = vmatprep.subr.bf16.mxu1 %v24932_v63 }
 0x9f7   : > { %10334 = vmatmul.mubr.f32.gmra.mrb[80].mxu1 %v25044_v41 }
 0x9f8   : > { %10339 = vmatprep.mubr.f32.mxu1 %v25045_v39  ;;  %15381 = vmatpush1.bf16.msra.mxu1 %v25046_v12 }
 0x9f9   : > { %15382 = vmatprep.subr.bf16.mxu1 %v24932_v63 }
 0x9fb   : > { %10341 = vmatmul.mubr.f32.gmra.mrb[82].mxu1 %v25047_v53 }
 0x9fc   : > { %10346 = vmatprep.mubr.f32.mxu1 %v25048_v3  ;;  %15384 = vmatpush1.bf16.msra.mxu1 %v25049_v55  ;;  %v25054_v55 = vld [vmem:[#allocation68_spill] sm:$0xff] }
 0x9fd   : > { %15385 = vmatprep.subr.bf16.mxu1 %v24932_v63 }
 0x9ff   : > { %10348 = vmatmul.mubr.f32.gmra.mrb[84].mxu1 %v21628_v19 }
 0xa00   : > { %10353 = vmatprep.mubr.f32.mxu1 %v25050_v14  ;;  %15387 = vmatpush1.bf16.msra.mxu1 %v25051_v46  ;;  %v25055_v46 = vld [vmem:[#allocation29_spill] sm:$0xff] }
 0xa01   : > { %15388 = vmatprep.subr.bf16.mxu1 %v24932_v63 }
 0xa03   : > { %10355 = vmatmul.mubr.f32.gmra.mrb[86].mxu1 %v21670_v28 }
 0xa04   : > { %10360 = vmatprep.mubr.f32.mxu1 %v25052_v42  ;;  %15390 = vmatpush1.bf16.msra.mxu1 %v25053_v9  ;;  %v25056_v9 = vld [vmem:[#allocation33_spill] sm:$0xff] }
 0xa05   : > { %15391 = vmatprep.subr.bf16.mxu1 %v24932_v63 }
 0xa07   : > { %10362 = vmatmul.mubr.f32.gmra.mrb[88].mxu1 %v21686_v23 }
 0xa08   : > { %10367 = vmatprep.mubr.f32.mxu1 %v21704_v7  ;;  %15393 = vmatpush1.bf16.msra.mxu1 %v25054_v55  ;;  %v25057_v55 = vld [vmem:[#allocation45_spill] sm:$0xff] }
 0xa09   : > { %15394 = vmatprep.subr.bf16.mxu1 %v24932_v63 }
 0xa0b   : > { %10369 = vmatmul.mubr.f32.gmra.mrb[90].mxu1 %v21717_v47 }
 0xa0c   : > { %10374 = vmatprep.mubr.f32.mxu1 %v21739_v57  ;;  %15396 = vmatpush1.bf16.msra.mxu1 %v25055_v46  ;;  %v25058_v46 = vld [vmem:[#allocation52_spill] sm:$0xff] }
 0xa0d   : > { %15397 = vmatprep.subr.bf16.mxu1 %v24932_v63 }
 0xa0f   : > { %10376 = vmatmul.mubr.f32.gmra.mrb[92].mxu1 %v21726_v2 }
 0xa10   : > { %10381 = vmatprep.mubr.f32.mxu1 %v21768_v6  ;;  %15399 = vmatpush1.bf16.msra.mxu1 %v25056_v9  ;;  %v25061_v9 = vld [vmem:[#allocation32_spill] sm:$0xff] }
 0xa11   : > { %15400 = vmatprep.subr.bf16.mxu1 %v24932_v63 }
 0xa13   : > { %10383 = vmatmul.mubr.f32.gmra.mrb[94].mxu1 %v21783_v26 }
 0xa14   : > { %10388 = vmatprep.mubr.f32.mxu1 %v21797_v37  ;;  %15402 = vmatpush1.bf16.msra.mxu1 %v25057_v55  ;;  %v25060_v55 = vld [vmem:[#allocation53_spill] sm:$0xff] }
 0xa15   : > { %15403 = vmatprep.subr.bf16.mxu1 %v24932_v63  ;;  %v25077_v2 = vand.u32 4294901760, %v25060_v55 }
 0xa17   : > { %10390 = vmatmul.mubr.f32.gmra.mrb[96].mxu1 %v21813_v43  ;;  %v25073_v43 = vld [vmem:[#allocation5_spill] sm:$0xff] }
 0xa18   : > { %10395 = vmatprep.mubr.f32.mxu1 %v21828_v34  ;;  %15405 = vmatpush1.bf16.msra.mxu1 %v25058_v46  ;;  %v25059_v46 = vld [vmem:[#allocation99_spill] sm:$0xff]  ;;  %v25072_v34 = vld [vmem:[#allocation64_spill] sm:$0xff] }
 0xa19   : > { %15406 = vmatprep.subr.bf16.mxu1 %v24932_v63 }
 0xa1b   : > { %10397 = vmatmul.mubr.f32.gmra.mrb[98].mxu1 %v21836_v17 }
 0xa1c   : > { %10402 = vmatprep.mubr.f32.mxu1 %v21845_v30 }
 0xa1f   : > { %10404 = vmatmul.mubr.f32.gmra.mrb[100].mxu1 %v21861_v48  ;;  %v25071_v48 = vld [vmem:[#allocation40_spill] sm:$0xff] }
 0xa20   : > { %10409 = vmatprep.mubr.f32.mxu1 %v21877_v18  ;;  %v25070_v18 = vld [vmem:[#allocation96_spill] sm:$0xff] }
 0xa23   : > { %10411 = vmatmul.mubr.f32.gmra.mrb[102].mxu1 %v21890_v20  ;;  %v25069_v20 = vld [vmem:[#allocation44_spill] sm:$0xff] }
 0xa24   : > { %10416 = vmatprep.mubr.f32.mxu1 %v21900_v0  ;;  %v25068_v0 = vld [vmem:[#allocation21_spill] sm:$0xff] }
 0xa27   : > { %10418 = vmatmul.mubr.f32.gmra.mrb[104].mxu1 %v21915_v36  ;;  %v25067_v36 = vld [vmem:[#allocation35_spill] sm:$0xff] }
 0xa28   : > { %10423 = vmatprep.mubr.f32.mxu1 %v21923_v32  ;;  %v25063_v32 = vld [vmem:[#allocation121_spill] sm:$0xff] }
 0xa2b   : > { %10425 = vmatmul.mubr.f32.gmra.mrb[106].mxu1 %v21935_v51 }
 0xa2c   : > { %10430 = vmatprep.mubr.f32.mxu1 %v21946_v45 }
 0xa2f   : > { %10432 = vmatmul.mubr.f32.gmra.mrb[108].mxu1 %v21956_v54  ;;  %v25064_v54 = vld [vmem:[#allocation122_spill] sm:$0xff] }
 0xa30   : > { %10543 = vmatprep.mubr.f32.mxu1 %v25059_v46 }
 0xa33   : > { %10546 = vmatmul.mubr.f32.vlgmr.msra.gmra.mrb[78].mxu1 %v25060_v55  ;;  %v25083_v55 = vand.u32 4294901760, %v25064_v54 }
 0xa34   : > { %10552 = vmatprep.mubr.f32.mxu1 %v25061_v9  ;;  %15408 = vmatpush1.bf16.msra.mxu1 %v24953_v33 }
 0xa35   : > { %15409 = vmatprep.subr.bf16.mxu1 %v24932_v63 }
 0xa36   : > { %v9248_v12 = vpop.f32.mrb[74].mxu1 }
 0xa37   : > { %10555 = vmatmul.mubr.f32.gmra.mrb[80].mxu1 %v25062_v24  ;;  %v9250_v16 = vpop.f32.mrb[75].mxu1 }
 0xa38   : > { %10561 = vmatprep.mubr.f32.mxu1 %v25063_v32  ;;  %15411 = vmatpush1.bf16.msra.mxu1 %v24955_v10  ;;  %v25065_v16 = vld [vmem:[#allocation80_spill] sm:$0xff] }
 0xa39   : > { %15412 = vmatprep.subr.bf16.mxu1 %v24932_v63 }
 0xa3b   : > { %10564 = vmatmul.mubr.f32.gmra.mrb[82].mxu1 %v25064_v54  ;;  %v25089_v54 = vand.u32 4294901760, %v21697_v56 }
 0xa3c   : > { %10570 = vmatprep.mubr.f32.mxu1 %v21642_v35  ;;  %v8962_v45 = vpop.f32.mrb[70].mxu0  ;;  %15414 = vmatpush1.bf16.msra.mxu1 %v24957_v4 }
 0xa3d   : > { %v8964_v51 = vpop.f32.mrb[71].mxu0  ;;  %15415 = vmatprep.subr.bf16.mxu1 %v24932_v63 }
 0xa3e   : > { %v25066_v51 = vld [vmem:[#allocation100_spill] sm:$0xff] }
 0xa3f   : > { %10573 = vmatmul.mubr.f32.gmra.mrb[84].mxu1 %v21659_v11 }
 0xa40   : > { %10579 = vmatprep.mubr.f32.mxu1 %v21674_v13  ;;  %15417 = vmatpush1.bf16.msra.mxu1 %v24958_v40 }
 0xa41   : > { %15418 = vmatprep.subr.bf16.mxu1 %v24932_v63 }
 0xa43   : > { %10582 = vmatmul.mubr.f32.gmra.mrb[86].mxu1 %v21697_v56  ;;  %v25095_v56 = vand.u32 4294901760, %v21750_v44 }
 0xa44   : > { %10588 = vmatprep.mubr.f32.mxu1 %v21702_v60  ;;  %15420 = vmatpush1.bf16.msra.mxu1 %v24959_v1 }
 0xa45   : > { %15421 = vmatprep.subr.bf16.mxu1 %v24932_v63 }
 0xa47   : > { %10591 = vmatmul.mubr.f32.gmra.mrb[88].mxu1 %v25065_v16 }
 0xa48   : > { %10597 = vmatprep.mubr.f32.mxu1 %v21737_v52  ;;  %15423 = vmatpush1.bf16.msra.mxu1 %v24960_v58 }
 0xa49   : > { %15424 = vmatprep.subr.bf16.mxu1 %v24932_v63 }
 0xa4b   : > { %10600 = vmatmul.mubr.f32.gmra.mrb[90].mxu1 %v21750_v44  ;;  %v25101_v44 = vand.u32 4294901760, %v21809_v59 }
 0xa4c   : > { %10606 = vmatprep.mubr.f32.mxu1 %v25066_v51  ;;  %15426 = vmatpush1.bf16.msra.mxu1 %v24963_v61 }
 0xa4d   : > { %15427 = vmatprep.subr.bf16.mxu1 %v24932_v63 }
 0xa4f   : > { %10609 = vmatmul.mubr.f32.gmra.mrb[92].mxu1 %v21756_v15 }
 0xa50   : > { %10615 = vmatprep.mubr.f32.mxu1 %v21795_v25  ;;  %15429 = vmatpush1.bf16.msra.mxu1 %v24968_v27 }
 0xa51   : > { %15430 = vmatprep.subr.bf16.mxu1 %v24932_v63 }
 0xa53   : > { %10618 = vmatmul.mubr.f32.gmra.mrb[94].mxu1 %v21809_v59  ;;  %v25107_v59 = vand.u32 4294901760, %v25070_v18 }
 0xa54   : > { %10624 = vmatprep.mubr.f32.mxu1 %v25067_v36  ;;  %15432 = vmatpush1.bf16.msra.mxu1 %v24973_v49  ;;  %v25074_v49 = vld [vmem:[#allocation93_spill] sm:$0xff] }
 0xa55   : > { %15433 = vmatprep.subr.bf16.mxu1 %v24932_v63 }
 0xa57   : > { %10627 = vmatmul.mubr.f32.gmra.mrb[96].mxu1 %v25068_v0 }
 0xa58   : > { %10633 = vmatprep.mubr.f32.mxu1 %v25069_v20  ;;  %15435 = vmatpush1.bf16.msra.mxu1 %v24978_v5  ;;  %v25075_v5 = vld [vmem:[#allocation127_spill] sm:$0xff] }
 0xa59   : > { %15436 = vmatprep.subr.bf16.mxu1 %v24932_v63 }
 0xa5b   : > { %10636 = vmatmul.mubr.f32.gmra.mrb[98].mxu1 %v25070_v18  ;;  %v25114_v18 = vand.u32 4294901760, %v21944_v29 }
 0xa5c   : > { %10642 = vmatprep.mubr.f32.mxu1 %v25071_v48 }
 0xa5e   : > { %v9476_v30 = vpop.f32.mrb[76].mxu1 }
 0xa5f   : > { %v9478_v17 = vpop.f32.mrb[77].mxu1  ;;  %10645 = vmatmul.mubr.f32.gmra.mrb[100].mxu1 %v25072_v34 }
 0xa60   : > { %10651 = vmatprep.mubr.f32.mxu1 %v25073_v43  ;;  %v25076_v17 = vand.u32 4294901760, %v25059_v46  ;;  %v25088_v46 = vld [vmem:[#allocation39_spill] sm:$0xff] }
 0xa63   : > { %10654 = vmatmul.mubr.f32.gmra.mrb[102].mxu1 %v25074_v49 }
 0xa64   : > { %v9134_v37 = vpop.f32.mrb[72].mxu0  ;;  %10660 = vmatprep.mubr.f32.mxu1 %v21921_v50 }
 0xa65   : > { %v9135_v26 = vadd.f32 %v9134_v37, %v8962_v45  ;;  %v9136_v27 = vpop.f32.mrb[73].mxu0  ;;  %v25078_v37 = vand.u32 4294901760, %v25061_v9  ;;  %v25081_v45 = vand.u32 4294901760, %v25063_v32  ;;  %v25085_v9 = vld [vmem:[#allocation94_spill] sm:$0xff]  ;;  %v25087_v32 = vand.u32 4294901760, %v21674_v13 }
 0xa66   : > { %v25079_v27 = vld [vmem:[#allocation18_spill] sm:$0xff]  ;;  %v25093_v13 = vand.u32 4294901760, %v21737_v52  ;;  %v25098_v52 = vand.u32 4294901760, %v21756_v15  ;;  %v25104_v15 = vand.u32 4294901760, %v25068_v0  ;;  %v25111_v0 = vand.u32 4294901760, %v25074_v49 }
 0xa67   : > { %10663 = vmatmul.mubr.f32.gmra.mrb[104].mxu1 %v25075_v5  ;;  %v9249_v6 = vadd.f32 %v9248_v12, %v9135_v26  ;;  %v25080_v26 = vand.u32 4294901760, %v25062_v24  ;;  %v25082_v12 = vld [vmem:[#allocation38_spill] sm:$0xff]  ;;  %v25086_v24 = vand.u32 4294901760, %v21659_v11  ;;  %v25092_v11 = vand.u32 4294901760, %v25065_v16 }
 0xa68   : > { %10669 = vmatprep.mubr.f32.mxu1 %v21944_v29  ;;  %v25118_v29 = vld [vmem:[#allocation11_spill] sm:$0xff] }
 0xa6b   : > { %10672 = vmatmul.mubr.f32.gmra.mrb[106].mxu1 %v21954_v38 }
 0xa6c   : > { %10678 = vmatprep.mubr.f32.mxu1 %v21964_v31 }
 0xa6f   : > { %10681 = vmatmul.mubr.f32.gmra.mrb[108].mxu1 %v21973_v62 }
 0xa70   : > { %10773 = vmatprep.mubr.f32.mxu1 %v25076_v17  ;;  %v25091_v17 = vld [vmem:[#allocation78_spill] sm:$0xff] }
 0xa73   : > { %10777 = vmatmul.mubr.f32.vlgmr.msra.gmra.mrb[78].mxu1 %v25077_v2  ;;  %v25084_v2 = vand.u32 4294901760, %v21642_v35  ;;  %v25090_v35 = vand.u32 4294901760, %v21702_v60  ;;  %v25096_v60 = vand.u32 4294901760, %v25066_v51  ;;  %v25102_v51 = vand.u32 4294901760, %v25067_v36 }
 0xa74   : > { %10784 = vmatprep.mubr.f32.mxu1 %v25078_v37  ;;  %15438 = vmatpush1.bf16.msra.mxu1 %v25079_v27  ;;  %v25094_v37 = vld [vmem:[#allocation46_spill] sm:$0xff]  ;;  %v25108_v36 = vand.u32 4294901760, %v25071_v48  ;;  %v25115_v48 = vand.u32 4294901760, %v21954_v38 }
 0xa75   : > { %15439 = vmatprep.subr.bf16.mxu1 %v24932_v63 }
 0xa77   : > { %10788 = vmatmul.mubr.f32.gmra.mrb[80].mxu1 %v25080_v26 }
 0xa78   : > { %10795 = vmatprep.mubr.f32.mxu1 %v25081_v45  ;;  %15441 = vmatpush1.bf16.msra.mxu1 %v25082_v12  ;;  %v25097_v45 = vld [vmem:[#allocation30_spill] sm:$0xff] }
 0xa79   : > { %15442 = vmatprep.subr.bf16.mxu1 %v24932_v63 }
 0xa7b   : > { %10799 = vmatmul.mubr.f32.gmra.mrb[82].mxu1 %v25083_v55 }
 0xa7c   : > { %10806 = vmatprep.mubr.f32.mxu1 %v25084_v2  ;;  %15444 = vmatpush1.bf16.msra.mxu1 %v25085_v9 }
 0xa7d   : > { %15445 = vmatprep.subr.bf16.mxu1 %v24932_v63 }
 0xa7f   : > { %10810 = vmatmul.mubr.f32.gmra.mrb[84].mxu1 %v25086_v24  ;;  %v25099_v24 = vand.u32 4294901760, %v21795_v25  ;;  %v25106_v25 = vld [vmem:[#allocation63_spill] sm:$0xff] }
 0xa80   : > { %10817 = vmatprep.mubr.f32.mxu1 %v25087_v32  ;;  %15447 = vmatpush1.bf16.msra.mxu1 %v25088_v46  ;;  %v25100_v32 = vld [vmem:[#allocation54_spill] sm:$0xff] }
 0xa81   : > { %15448 = vmatprep.subr.bf16.mxu1 %v24932_v63 }
 0xa83   : > { %10821 = vmatmul.mubr.f32.gmra.mrb[86].mxu1 %v25089_v54  ;;  %v25109_v54 = vand.u32 4294901760, %v25072_v34  ;;  %v25116_v34 = vand.u32 4294901760, %v21964_v31  ;;  %v25119_v31 = vld [vmem:[#allocation71_spill] sm:$0xff] }
 0xa84   : > { %10828 = vmatprep.mubr.f32.mxu1 %v25090_v35  ;;  %15450 = vmatpush1.bf16.msra.mxu1 %v25091_v17  ;;  %v25110_v35 = vand.u32 4294901760, %v25073_v43  ;;  %v25117_v43 = vand.u32 4294901760, %v21973_v62 }
 0xa85   : > { %15451 = vmatprep.subr.bf16.mxu1 %v24932_v63 }
 0xa87   : > { %10832 = vmatmul.mubr.f32.gmra.mrb[88].mxu1 %v25092_v11  ;;  %v25113_v11 = vand.u32 4294901760, %v25075_v5 }
 0xa88   : > { %10839 = vmatprep.mubr.f32.mxu1 %v25093_v13  ;;  %15453 = vmatpush1.bf16.msra.mxu1 %v25094_v37 }
 0xa89   : > { %15454 = vmatprep.subr.bf16.mxu1 %v24932_v63 }
 0xa8b   : > { %10843 = vmatmul.mubr.f32.gmra.mrb[90].mxu1 %v25095_v56  ;;  %v25120_v56 = vld [vmem:[#allocation16_spill] sm:$0xff] }
 0xa8c   : > { %v9344_v26 = vpop.f32.mrb[74].mxu0  ;;  %10850 = vmatprep.mubr.f32.mxu1 %v25096_v60  ;;  %15456 = vmatpush1.bf16.msra.mxu1 %v25097_v45  ;;  %v25122_v60 = vld [vmem:[#allocation108_spill] sm:$0xff] }
 0xa8d   : > { %v9345_v55 = vadd.f32 %v9344_v26, %v9249_v6  ;;  %v9346_v2 = vpop.f32.mrb[75].mxu0  ;;  %15457 = vmatprep.subr.bf16.mxu1 %v24932_v63  ;;  %v25103_v6 = vld [vmem:[#allocation8_spill] sm:$0xff]  ;;  %v25121_v26 = vld [vmem:[#allocation82_spill] sm:$0xff] }
 0xa8e   : > { %v25124_v2 = vld [vmem:[#allocation34_spill] sm:$0xff] }
 0xa8f   : > { %10854 = vmatmul.mubr.f32.gmra.mrb[92].mxu1 %v25098_v52  ;;  %v9477_v16 = vadd.f32 %v9476_v30, %v9345_v55  ;;  %v25105_v30 = vand.u32 4294901760, %v25069_v20  ;;  %v25112_v20 = vand.u32 4294901760, %v21921_v50  ;;  %v25123_v55 = vld [vmem:[#allocation19_spill] sm:$0xff]  ;;  %v25125_v52 = vld [vmem:[#allocation110_spill] sm:$0xff] }
 0xa90   : > { %10861 = vmatprep.mubr.f32.mxu1 %v25099_v24  ;;  %15459 = vmatpush1.bf16.msra.mxu1 %v25100_v32  ;;  %v25127_v24 = vld [vmem:[#allocation105_spill] sm:$0xff] }
 0xa91   : > { %15460 = vmatprep.subr.bf16.mxu1 %v24932_v63 }
 0xa93   : > { %10865 = vmatmul.mubr.f32.gmra.mrb[94].mxu1 %v25101_v44  ;;  %v25128_v44 = vld [vmem:[#allocation112_spill] sm:$0xff] }
 0xa94   : > { %10872 = vmatprep.mubr.f32.mxu1 %v25102_v51  ;;  %15462 = vmatpush1.bf16.msra.mxu1 %v25103_v6  ;;  %v25129_v51 = vld [vmem:[#allocation41_spill] sm:$0xff] }
 0xa95   : > { %15463 = vmatprep.subr.bf16.mxu1 %v24932_v63 }
 0xa97   : > { %10876 = vmatmul.mubr.f32.gmra.mrb[96].mxu1 %v25104_v15  ;;  %v25130_v15 = vld [vmem:[#allocation57_spill] sm:$0xff] }
 0xa98   : > { %10883 = vmatprep.mubr.f32.mxu1 %v25105_v30  ;;  %15465 = vmatpush1.bf16.msra.mxu1 %v25106_v25  ;;  %v25131_v30 = vld [vmem:[#allocation73_spill] sm:$0xff] }
 0xa99   : > { %15466 = vmatprep.subr.bf16.mxu1 %v24932_v63 }
 0xa9b   : > { %10887 = vmatmul.mubr.f32.gmra.mrb[98].mxu1 %v25107_v59  ;;  %v25132_v59 = vld [vmem:[#allocation55_spill] sm:$0xff] }
 0xa9c   : > { %10894 = vmatprep.mubr.f32.mxu1 %v25108_v36  ;;  %v25133_v36 = vld [vmem:[#allocation75_spill] sm:$0xff] }
 0xa9f   : > { %10898 = vmatmul.mubr.f32.gmra.mrb[100].mxu1 %v25109_v54  ;;  %v25134_v54 = vld [vmem:[#allocation87_spill] sm:$0xff] }
 0xaa0   : > { %10905 = vmatprep.mubr.f32.mxu1 %v25110_v35  ;;  %v25135_v35 = vld [vmem:[#allocation125_spill] sm:$0xff] }
 0xaa3   : > { %10909 = vmatmul.mubr.f32.gmra.mrb[102].mxu1 %v25111_v0  ;;  %v25136_v0 = vld [vmem:[#allocation126_spill] sm:$0xff] }
 0xaa4   : > { %10916 = vmatprep.mubr.f32.mxu1 %v25112_v20  ;;  %v25137_v20 = vld [vmem:[#allocation128_spill] sm:$0xff] }
 0xaa7   : > { %10920 = vmatmul.mubr.f32.gmra.mrb[104].mxu1 %v25113_v11  ;;  %v25138_v11 = vld [vmem:[#allocation129_spill] sm:$0xff] }
 0xaa8   : > { %10927 = vmatprep.mubr.f32.mxu1 %v25114_v18  ;;  %v25139_v18 = vld [vmem:[#allocation130_spill] sm:$0xff] }
 0xaab   : > { %10931 = vmatmul.mubr.f32.gmra.mrb[106].mxu1 %v25115_v48 }
 0xaac   : > { %10938 = vmatprep.mubr.f32.mxu1 %v25116_v34 }
 0xaaf   : > { %10942 = vmatmul.mubr.f32.gmra.mrb[108].mxu1 %v25117_v43 }
 0xab0   : > { %11072 = vmatprep.mubr.f32.mxu1 %v21433_v8 }
 0xab3   : > { %11074 = vmatmul.mubr.f32.vlgmr.msra.gmra.mrb[78].mxu1 %v25041_v21 }
 0xab4   : > { %v9568_v49 = vpop.f32.mrb[76].mxu0  ;;  %11079 = vmatprep.mubr.f32.mxu1 %v25042_v22  ;;  %15468 = vmatpush1.bf16.msra.mxu1 %v24953_v33 }
 0xab5   : > { %v9569_v5 = vadd.f32 %v9568_v49, %v9477_v16  ;;  %v9570_v50 = vpop.f32.mrb[77].mxu0  ;;  %15469 = vmatprep.subr.bf16.mxu1 %v24932_v63  ;;  %v25126_v16 = vld [vmem:[#allocation66_spill] sm:$0xff] }
 0xab7   : > { %v9572_v38 = vadd.f32 %v9569_v5, %v25118_v29  ;;  %11081 = vmatmul.mubr.f32.gmra.mrb[80].mxu1 %v25044_v41 }
 0xab8   : > { %11086 = vmatprep.mubr.f32.mxu1 %v25045_v39  ;;  %15471 = vmatpush1.bf16.msra.mxu1 %v24955_v10 }
 0xab9   : > { %v22190_v62 = vmul.f32 %v9572_v38, %v25119_v31  ;;  %15472 = vmatprep.subr.bf16.mxu1 %v24932_v63 }
 0xabb   : > { %11088 = vmatmul.mubr.f32.gmra.mrb[82].mxu1 %v25047_v53  ;;  %v9574_v13 = vsel %vm4838_vm7, %v22190_v62, 0.0 }
 0xabc   : > { %11093 = vmatprep.mubr.f32.mxu1 %v25048_v3  ;;  %9575 = vadd.xlane.f32.xlu0 %v9574_v13 }
 0xabd   : > { %15474 = vmatpush1.bf16.msra.mxu1 %v24957_v4 }
 0xabe   : > { %15475 = vmatprep.subr.bf16.mxu1 %v24932_v63 }
 0xabf   : > { %11095 = vmatmul.mubr.f32.gmra.mrb[84].mxu1 %v21628_v19 }
 0xac0   : > { %11100 = vmatprep.mubr.f32.mxu1 %v25050_v14 }
 0xac1   : > { %15477 = vmatpush1.bf16.msra.mxu1 %v24958_v40 }
 0xac2   : > { %15478 = vmatprep.subr.bf16.mxu1 %v24932_v63 }
 0xac3   : > { %11102 = vmatmul.mubr.f32.gmra.mrb[86].mxu1 %v21670_v28 }
 0xac4   : > { %11107 = vmatprep.mubr.f32.mxu1 %v25052_v42 }
 0xac5   : > { %15480 = vmatpush1.bf16.msra.mxu1 %v24959_v1 }
 0xac6   : > { %15481 = vmatprep.subr.bf16.mxu1 %v24932_v63 }
 0xac7   : > { %11109 = vmatmul.mubr.f32.gmra.mrb[88].mxu1 %v21686_v23 }
 0xac8   : > { %11114 = vmatprep.mubr.f32.mxu1 %v21704_v7 }
 0xac9   : > { %15483 = vmatpush1.bf16.msra.mxu1 %v24960_v58 }
 0xaca   : > { %15484 = vmatprep.subr.bf16.mxu1 %v24932_v63 }
 0xacb   : > { %11116 = vmatmul.mubr.f32.gmra.mrb[90].mxu1 %v21717_v47 }
 0xacc   : > { %11121 = vmatprep.mubr.f32.mxu1 %v21739_v57 }
 0xacd   : > { %15486 = vmatpush1.bf16.msra.mxu1 %v24963_v61 }
 0xace   : > { %15487 = vmatprep.subr.bf16.mxu1 %v24932_v63 }
 0xacf   : > { %11123 = vmatmul.mubr.f32.gmra.mrb[92].mxu1 %v25120_v56 }
 0xad0   : > { %11128 = vmatprep.mubr.f32.mxu1 %v25121_v26 }
 0xad1   : > { %15489 = vmatpush1.bf16.msra.mxu1 %v25122_v60 }
 0xad2   : > { %15490 = vmatprep.subr.bf16.mxu1 %v24932_v63 }
 0xad3   : > { %11130 = vmatmul.mubr.f32.gmra.mrb[94].mxu1 %v25123_v55 }
 0xad4   : > { %11135 = vmatprep.mubr.f32.mxu1 %v25124_v2 }
 0xad5   : > { %15492 = vmatpush1.bf16.msra.mxu1 %v25125_v52 }
 0xad6   : > { %15493 = vmatprep.subr.bf16.mxu1 %v24932_v63 }
 0xad7   : > { %11137 = vmatmul.mubr.f32.gmra.mrb[96].mxu1 %v25126_v16 }
 0xad8   : > { %11142 = vmatprep.mubr.f32.mxu1 %v25127_v24 }
 0xad9   : > { %15495 = vmatpush1.bf16.msra.mxu1 %v25128_v44 }
 0xada   : > { %15544 = vmatprep.subr.bf16.mxu1 %v24932_v63 }
 0xadb   : > { %11144 = vmatmul.mubr.f32.gmra.mrb[98].mxu1 %v25129_v51 }
 0xadc   : > { %11149 = vmatprep.mubr.f32.mxu1 %v25130_v15 }
 0xadf   : > { %11151 = vmatmul.mubr.f32.gmra.mrb[100].mxu1 %v25131_v30 }
 0xae0   : > { %11156 = vmatprep.mubr.f32.mxu1 %v25132_v59 }
 0xae3   : > { %11158 = vmatmul.mubr.f32.gmra.mrb[102].mxu1 %v25133_v36 }
 0xae4   : > { %11163 = vmatprep.mubr.f32.mxu1 %v25134_v54 }
 0xae7   : > { %11165 = vmatmul.mubr.f32.gmra.mrb[104].mxu1 %v25135_v35 }
 0xae8   : > { %11170 = vmatprep.mubr.f32.mxu1 %v25136_v0 }
 0xaeb   : > { %11172 = vmatmul.mubr.f32.gmra.mrb[106].mxu1 %v25137_v20 }
 0xaec   : > { %11177 = vmatprep.mubr.f32.mxu1 %v25138_v11 }
 0xaef   : > { %11179 = vmatmul.mubr.f32.gmra.mrb[108].mxu1 %v25139_v18 }
 0xaf0   : > { %11269 = vmatprep.mubr.f32.mxu1 %v21433_v8 }
 0xaf3   : > { %11271 = vmatmul.mubr.f32.vlgmr.msra.gmra.mrb[78].mxu1 %v25041_v21 }
 0xaf4   : > { %11276 = vmatprep.mubr.f32.mxu1 %v25042_v22  ;;  %15546 = vmatpush1.bf16.msra.mxu1 %v24953_v33 }
 0xaf5   : > { %15547 = vmatprep.subr.bf16.mxu1 %v24932_v63 }
 0xaf7   : > { %11278 = vmatmul.mubr.f32.gmra.mrb[80].mxu1 %v25044_v41 }
 0xaf8   : > { %11283 = vmatprep.mubr.f32.mxu1 %v25045_v39  ;;  %15549 = vmatpush1.bf16.msra.mxu1 %v24955_v10 }
 0xaf9   : > { %15550 = vmatprep.subr.bf16.mxu1 %v24932_v63 }
 0xafb   : > { %11285 = vmatmul.mubr.f32.gmra.mrb[82].mxu1 %v25047_v53 }
 0xafc   : > { %11290 = vmatprep.mubr.f32.mxu1 %v25048_v3  ;;  %15552 = vmatpush1.bf16.msra.mxu1 %v24957_v4 }
 0xafd   : > { %15553 = vmatprep.subr.bf16.mxu1 %v24932_v63 }
 0xaff   : > { %11292 = vmatmul.mubr.f32.gmra.mrb[84].mxu1 %v21628_v19 }
 0xb00   : > { %11297 = vmatprep.mubr.f32.mxu1 %v25050_v14  ;;  %15555 = vmatpush1.bf16.msra.mxu1 %v24958_v40 }
 0xb01   : > { %15556 = vmatprep.subr.bf16.mxu1 %v24932_v63 }
 0xb03   : > { %11299 = vmatmul.mubr.f32.gmra.mrb[86].mxu1 %v21670_v28 }
 0xb04   : > { %11304 = vmatprep.mubr.f32.mxu1 %v25052_v42  ;;  %15558 = vmatpush1.bf16.msra.mxu1 %v24959_v1 }
 0xb05   : > { %15559 = vmatprep.subr.bf16.mxu1 %v24932_v63 }
 0xb07   : > { %11306 = vmatmul.mubr.f32.gmra.mrb[88].mxu1 %v21686_v23 }
 0xb08   : > { %11311 = vmatprep.mubr.f32.mxu1 %v21704_v7  ;;  %15561 = vmatpush1.bf16.msra.mxu1 %v24960_v58 }
 0xb09   : > { %15562 = vmatprep.subr.bf16.mxu1 %v24932_v63 }
 0xb0b   : > { %11313 = vmatmul.mubr.f32.gmra.mrb[90].mxu1 %v21717_v47 }
 0xb0c   : > { %11318 = vmatprep.mubr.f32.mxu1 %v21739_v57  ;;  %15564 = vmatpush1.bf16.msra.mxu1 %v24963_v61 }
 0xb0d   : > { %15565 = vmatprep.subr.bf16.mxu1 %v24932_v63 }
 0xb0f   : > { %11320 = vmatmul.mubr.f32.gmra.mrb[92].mxu1 %v25120_v56 }
 0xb10   : > { %11325 = vmatprep.mubr.f32.mxu1 %v25121_v26  ;;  %15567 = vmatpush1.bf16.msra.mxu1 %v25122_v60  ;;  %v17051_v60 = vld [vmem:[%s17336_s26 + $0x60] sm:$0xff] }
 0xb11   : > { %15568 = vmatprep.subr.bf16.mxu1 %v24932_v63 }
 0xb13   : > { %11327 = vmatmul.mubr.f32.gmra.mrb[94].mxu1 %v25123_v55 }
 0xb14   : > { %11332 = vmatprep.mubr.f32.mxu1 %v25124_v2  ;;  %15570 = vmatpush1.bf16.msra.mxu1 %v25125_v52 }
 0xb15   : > { %15571 = vmatprep.subr.bf16.mxu1 %v24932_v63 }
 0xb17   : > { %11334 = vmatmul.mubr.f32.gmra.mrb[96].mxu1 %v25126_v16 }
 0xb18   : > { %11339 = vmatprep.mubr.f32.mxu1 %v25127_v24  ;;  %15573 = vmatpush1.bf16.msra.mxu1 %v25128_v44 }
 0xb19   : > { %15574 = vmatprep.subr.bf16.mxu1 %v24932_v63 }
 0xb1b   : > { %11341 = vmatmul.mubr.f32.gmra.mrb[98].mxu1 %v25129_v51 }
 0xb1c   : > { %11346 = vmatprep.mubr.f32.mxu1 %v25130_v15 }
 0xb1f   : > { %11348 = vmatmul.mubr.f32.gmra.mrb[100].mxu1 %v25131_v30 }
 0xb20   : > { %11353 = vmatprep.mubr.f32.mxu1 %v25132_v59 }
 0xb23   : > { %11355 = vmatmul.mubr.f32.gmra.mrb[102].mxu1 %v25133_v36 }
 0xb24   : > { %11360 = vmatprep.mubr.f32.mxu1 %v25134_v54 }
 0xb27   : > { %11362 = vmatmul.mubr.f32.gmra.mrb[104].mxu1 %v25135_v35 }
 0xb28   : > { %11367 = vmatprep.mubr.f32.mxu1 %v25136_v0 }
 0xb2b   : > { %11369 = vmatmul.mubr.f32.gmra.mrb[106].mxu1 %v25137_v20 }
 0xb2c   : > { %11374 = vmatprep.mubr.f32.mxu1 %v25138_v11 }
 0xb2f   : > { %11376 = vmatmul.mubr.f32.gmra.mrb[108].mxu1 %v25139_v18 }
 0xb49   : > { %v9576_v47 = vpop.xlane.xlu0 %9575 }
 0xb4a   : > { %v9577_v8 = vmul.f32 0.1, %v9576_v47 }
 0xb4c   : > { %v9578_v28 = vsub.f32 %v22190_v62, %v9577_v8  ;;  %v9591_v18 = vsub.f32 %v9577_v8, %v22190_v62  ;;  %v25140_v62 = vld [vmem:[#allocation117_spill] sm:$0xff] }
 0xb4e   : > { %v9579_v19 = vmul.f32 %v9578_v28, %v9578_v28 }
 0xb50   : > { %v9580_v23 = vsel %vm4838_vm7, %v9579_v19, 0.0 }
 0xb51   : > { %9581 = vadd.xlane.f32.xlu1 %v9580_v23 }
 0xbc6   : > { %v22292_v7 = vpop.f32.mrb[78].mxu1 }
 0xbc7   : > { %v11274_v57 = vpop.f32.mrb[79].mxu1 }
 0xbc8   : > { %v17038_v57 = vld [vmem:[%s23289_s5] sm:$0x1] }
 0xbca   : > { %v22294_v21 = vpop.f32.mrb[80].mxu1 }
 0xbcb   : > { %v11281_v42 = vpop.f32.mrb[81].mxu1 }
 0xbce   : > { %v22296_v22 = vpop.f32.mrb[82].mxu1 }
 0xbcf   : > { %v11288_v41 = vpop.f32.mrb[83].mxu1 }
 0xbd2   : > { %v11293_v39 = vpop.f32.mrb[84].mxu1 }
 0xbd3   : > { %v11295_v53 = vpop.f32.mrb[85].mxu1 }
 0xbd6   : > { %v22298_v3 = vpop.f32.mrb[86].mxu1 }
 0xbd7   : > { %v11302_v14 = vpop.f32.mrb[87].mxu1 }
 0xbda   : > { %v11307_v48 = vpop.f32.mrb[88].mxu1 }
 0xbdb   : > { %v11309_v34 = vpop.f32.mrb[89].mxu1 }
 0xbde   : > { %v11314_v43 = vpop.f32.mrb[90].mxu1  ;;  %v9582_v49 = vpop.xlane.xlu1 %9581 }
 0xbdf   : > { %v9583_v5 = vmul.f32 0.1, %v9582_v49  ;;  %v11316_v50 = vpop.f32.mrb[91].mxu1 }
 0xbe1   : > { %16962 = vrsqrt.f32 %v9583_v5  ;;  %vm9586_vm14 = vcmp.eq.f32.partialorder %v9583_v5, inf  ;;  %v9589_v24 = vand.u32 2147483648, %v9583_v5  ;;  %vm9588_vm15 = vcmp.eq.f32.partialorder %v9583_v5, 0.0 }
 0xbe2   : > { %v11321_v38 = vpop.f32.mrb[92].mxu1 }
 0xbe3   : > { %v11323_v31 = vpop.f32.mrb[93].mxu1 }
 0xbe6   : > { %v11328_v13 = vpop.f32.mrb[94].mxu1 }
 0xbe7   : > { %v11330_v56 = vpop.f32.mrb[95].mxu1 }
 0xbea   : > { %v11335_v26 = vpop.f32.mrb[96].mxu1 }
 0xbeb   : > { %v16963_v55 = vpop.eup %16962  ;;  %v11337_v2 = vpop.f32.mrb[97].mxu1 }
 0xbec   : > { %v9585_v16 = vmul.f32 %v16963_v55, %v9583_v5 }
 0xbee   : > { %v9587_v51 = vsel %vm9586_vm14, %v9583_v5, %v9585_v16  ;;  %v11342_v15 = vpop.f32.mrb[98].mxu1 }
 0xbef   : > { %v9590_v30 = vsel %vm9588_vm15, %v9589_v24, %v9587_v51  ;;  %v11344_v59 = vpop.f32.mrb[99].mxu1 }
 0xbf0   : > { %v9592_v36 = vadd.f32 1e-09, %v9590_v30 }
 0xbf2   : > { %16964 = vrcp.f32 %v9592_v36  ;;  %v11349_v54 = vpop.f32.mrb[100].mxu1 }
 0xbf3   : > { %v11351_v35 = vpop.f32.mrb[101].mxu1 }
 0xbf6   : > { %v11356_v0 = vpop.f32.mrb[102].mxu1 }
 0xbf7   : > { %v11358_v20 = vpop.f32.mrb[103].mxu1 }
 0xbfa   : > { %v11363_v11 = vpop.f32.mrb[104].mxu1 }
 0xbfb   : > { %v11365_v47 = vpop.f32.mrb[105].mxu1 }
 0xbfc   : > { %v16965_v28 = vpop.eup %16964 }
 0xbfd   : > { %v9594_v19 = vmul.f32 %v16965_v28, %v9591_v18 }
 0xbfe   : > { %v11370_v23 = vpop.f32.mrb[106].mxu1 }
 0xbff   : > { %v9595_v42 = vadd.f32 %v17038_v57, %v9594_v19  ;;  %v11372_v41 = vpop.f32.mrb[107].mxu1 }
 0xc01   : > { %v14483_v53 = vmul.f32 -2.0, %v9595_v42 }
 0xc02   : > { %v11377_v14 = vpop.f32.mrb[108].mxu1 }
 0xc03   : > { %v9598_v34 = vmul.f32 1.442695, %v14483_v53  ;;  %v11379_v49 = vpop.f32.mrb[109].mxu1 }
 0xc05   : > { %16966 = vpow2.f32 %v9598_v34 }
 0xc0f   : > { %v16967_v5 = vpop.eup %16966 }
 0xc10   : > { %v9600_v50 = vadd.f32 1.0, %v16967_v5 }
 0xc12   : > { %16968 = vrcp.f32 %v9600_v50 }
 0xc1c   : > { %v16969_v31 = vpop.eup %16968 }
 0xc1d   : > { %v11385_v8 = vrot.slane %v16969_v31, %v25140_v62 }
 0xc1f   : > { %v22305_v56 = vmul.f32 %v11385_v8, %v11321_v38  ;;  %v22307_v55 = vmul.f32 %v11385_v8, %v11328_v13  ;;  %v22309_v2 = vmul.f32 %v11385_v8, %v11335_v26  ;;  %v22311_v16 = vmul.f32 %v11385_v8, %v11342_v15 }
 0xc20   : > { %v22313_v24 = vmul.f32 %v11385_v8, %v11349_v54  ;;  %v22315_v51 = vmul.f32 %v11385_v8, %v11356_v0  ;;  %v22317_v30 = vmul.f32 %v11385_v8, %v11363_v11  ;;  %v22319_v59 = vmul.f32 %v11385_v8, %v11370_v23 }
 0xc21   : > { %v22321_v36 = vmul.f32 %v11385_v8, %v11377_v14  ;;  %v22324_v35 = vmul.f32 %v11385_v8, %v22294_v21  ;;  %v22327_v38 = vmul.f32 %v11385_v8, %v22292_v7  ;;  %v22329_v13 = vmul.f32 %v11385_v8, %v11293_v39 }
 0xc22   : > { %v22332_v26 = vmul.f32 %v11385_v8, %v22296_v22  ;;  %v22334_v15 = vmul.f32 %v11385_v8, %v11307_v48  ;;  %v22337_v54 = vmul.f32 %v11385_v8, %v22298_v3  ;;  %v22343_v20 = vmul.f32 %v11385_v8, %v11314_v43 }
 0xc23   : > { %v11406_v0 = vsel %vm2035_vm1, %v22324_v35, 0.0  ;;  %v11403_v21 = vsel %vm2035_vm1, %v22327_v38, 0.0  ;;  %v11412_v7 = vsel %vm2035_vm1, %v22329_v13, 0.0  ;;  %v11424_v48 = vsel %vm2035_vm1, %v22305_v56, 0.0 }
 0xc24   : > { %11407 = vadd.xlane.f32.xlu1 %v11406_v0  ;;  %11404 = vadd.xlane.f32.xlu0 %v11403_v21  ;;  %v11409_v22 = vsel %vm2035_vm1, %v22332_v26, 0.0  ;;  %v11418_v39 = vsel %vm2035_vm1, %v22334_v15, 0.0  ;;  %v11415_v3 = vsel %vm2035_vm1, %v22337_v54, 0.0  ;;  %v11421_v43 = vsel %vm2035_vm1, %v22343_v20, 0.0 }
 0xc25   : > { %v11430_v11 = vsel %vm2035_vm1, %v22309_v2, 0.0  ;;  %v11427_v18 = vsel %vm2035_vm1, %v22307_v55, 0.0  ;;  %v11436_v47 = vsel %vm2035_vm1, %v22313_v24, 0.0  ;;  %v11433_v28 = vsel %vm2035_vm1, %v22311_v16, 0.0 }
 0xc26   : > { %v11442_v19 = vsel %vm2035_vm1, %v22317_v30, 0.0  ;;  %v11439_v23 = vsel %vm2035_vm1, %v22315_v51, 0.0  ;;  %v11448_v57 = vsel %vm2035_vm1, %v22321_v36, 0.0  ;;  %v11445_v42 = vsel %vm2035_vm1, %v22319_v59, 0.0 }
 0xc28   : > { %11413 = vadd.xlane.f32.xlu1 %v11412_v7  ;;  %11410 = vadd.xlane.f32.xlu0 %v11409_v22 }
 0xc2c   : > { %11419 = vadd.xlane.f32.xlu1 %v11418_v39  ;;  %11416 = vadd.xlane.f32.xlu0 %v11415_v3 }
 0xc30   : > { %11425 = vadd.xlane.f32.xlu1 %v11424_v48  ;;  %11422 = vadd.xlane.f32.xlu0 %v11421_v43 }
 0xc34   : > { %11431 = vadd.xlane.f32.xlu1 %v11430_v11  ;;  %11428 = vadd.xlane.f32.xlu0 %v11427_v18 }
 0xc38   : > { %11437 = vadd.xlane.f32.xlu1 %v11436_v47  ;;  %11434 = vadd.xlane.f32.xlu0 %v11433_v28 }
 0xc3c   : > { %11443 = vadd.xlane.f32.xlu1 %v11442_v19  ;;  %11440 = vadd.xlane.f32.xlu0 %v11439_v23  ;;  %v17039_v23 = vld [vmem:[%s17336_s26 + $0x8] sm:$0xff] }
 0xc40   : > { %11449 = vadd.xlane.f32.xlu1 %v11448_v57  ;;  %11446 = vadd.xlane.f32.xlu0 %v11445_v42 }
 0xcb1   : > { %v11408_v41 = vpop.xlane.xlu1 %11407  ;;  %v11405_v53 = vpop.xlane.xlu0 %11404 }
 0xcb2   : > { %v11452_v14 = vadd.f32 1e-09, %v11408_v41  ;;  %v11451_v34 = vadd.f32 1e-09, %v11405_v53  ;;  %v17040_v41 = vld [vmem:[%s17336_s26] sm:$0xff] }
 0xcb4   : > { %16970 = vrcp.f32 %v11452_v14 }
 0xcb5   : > { %16972 = vrcp.f32 %v11451_v34  ;;  %v11414_v49 = vpop.xlane.xlu1 %11413  ;;  %v11411_v5 = vpop.xlane.xlu0 %11410 }
 0xcb6   : > { %v11454_v50 = vadd.f32 1e-09, %v11414_v49  ;;  %v11453_v31 = vadd.f32 1e-09, %v11411_v5 }
 0xcb8   : > { %16974 = vrcp.f32 %v11454_v50 }
 0xcb9   : > { %16976 = vrcp.f32 %v11453_v31  ;;  %v11420_v8 = vpop.xlane.xlu1 %11419  ;;  %v11417_v0 = vpop.xlane.xlu0 %11416 }
 0xcba   : > { %v11456_v21 = vadd.f32 1e-09, %v11420_v8  ;;  %v11455_v7 = vadd.f32 1e-09, %v11417_v0 }
 0xcbc   : > { %16978 = vrcp.f32 %v11455_v7 }
 0xcbd   : > { %v11426_v22 = vpop.xlane.xlu1 %11425  ;;  %v11423_v39 = vpop.xlane.xlu0 %11422  ;;  %16980 = vrcp.f32 %v11456_v21 }
 0xcbe   : > { %v16971_v3 = vpop.eup %16970  ;;  %v11458_v48 = vadd.f32 1e-09, %v11426_v22  ;;  %v11457_v43 = vadd.f32 1e-09, %v11423_v39 }
 0xcbf   : > { %v16973_v11 = vpop.eup %16972  ;;  %v11484_v18 = vmul.f32 %v16971_v3, %v22324_v35  ;;  %v17041_v3 = vld [vmem:[%s17336_s26 + $0x10] sm:$0xff] }
 0xcc0   : > { %v11483_v47 = vmul.f32 %v16973_v11, %v22327_v38  ;;  %16982 = vrcp.f32 %v11458_v48 }
 0xcc1   : > { %16984 = vrcp.f32 %v11457_v43  ;;  %v11432_v28 = vpop.xlane.xlu1 %11431  ;;  %v11429_v19 = vpop.xlane.xlu0 %11428  ;;  %v11500_v57 = vmul.f32 %v17039_v23, %v11484_v18  ;;  %v17042_v43 = vld [vmem:[%s17336_s26 + $0x18] sm:$0xff] }
 0xcc2   : > { %v16975_v42 = vpop.eup %16974  ;;  %v11499_v53 = vmul.f32 %v17040_v41, %v11483_v47  ;;  %v11460_v14 = vadd.f32 1e-09, %v11432_v28  ;;  %v11459_v34 = vadd.f32 1e-09, %v11429_v19 }
 0xcc3   : > { %v16977_v49 = vpop.eup %16976  ;;  %v11486_v5 = vmul.f32 %v16975_v42, %v22329_v13  ;;  %v11516_v35 = vsel %vm2035_vm1, %v11500_v57, 0.0  ;;  %v11556_v38 = vsel %vm2035_vm1, %v11500_v57, 0 }
 0xcc4   : > { %v11485_v50 = vmul.f32 %v16977_v49, %v22332_v26  ;;  %16986 = vrcp.f32 %v11460_v14  ;;  %v11553_v31 = vsel %vm2035_vm1, %v11499_v53, 0  ;;  %v11515_v8 = vsel %vm2035_vm1, %v11499_v53, 0.0 }
 0xcc5   : > { %16988 = vrcp.f32 %v11459_v34  ;;  %v11438_v0 = vpop.xlane.xlu1 %11437  ;;  %v11435_v21 = vpop.xlane.xlu0 %11434  ;;  %v22383_v7 = vand.u32 4294901760, %v11553_v31  ;;  %v11517_v22 = vadd.f32 %v11516_v35, %v11515_v8  ;;  %v22385_v39 = vand.u32 4294901760, %v11556_v38 }
 0xcc6   : > { %v11461_v13 = vadd.f32 1e-09, %v11435_v21  ;;  %v11501_v48 = vmul.f32 %v17041_v3, %v11485_v50  ;;  %v11502_v11 = vmul.f32 %v17042_v43, %v11486_v5  ;;  %v16979_v18 = vpop.eup %16978  ;;  %v11462_v23 = vadd.f32 1e-09, %v11438_v0 }
 0xcc7   : > { %v22390_v26 = vsub.f32 %v11553_v31, %v22383_v7  ;;  %v22393_v47 = vsub.f32 %v11556_v38, %v22385_v39  ;;  %v16981_v28 = vpop.eup %16980  ;;  %v11487_v19 = vmul.f32 %v16979_v18, %v22337_v54 }
 0xcc8   : > { %v11518_v57 = vsel %vm2035_vm1, %v11501_v48, 0.0  ;;  %v11559_v42 = vsel %vm2035_vm1, %v11501_v48, 0  ;;  %16990 = vrcp.f32 %v11461_v13  ;;  %v11520_v54 = vsel %vm2035_vm1, %v11502_v11, 0.0 }
 0xcc9   : > { %v11444_v41 = vpop.xlane.xlu1 %11443  ;;  %v11441_v53 = vpop.xlane.xlu0 %11440  ;;  %v24054_v14 = vand.u32 4294901760, %v22390_v26  ;;  %v24053_v34 = vand.u32 4294901760, %v22393_v47  ;;  %v11519_v49 = vadd.f32 %v11518_v57, %v11517_v22  ;;  %v22400_v50 = vand.u32 4294901760, %v11559_v42 }
 0xcca   : > { %v16983_v5 = vpop.eup %16982  ;;  %v11464_v35 = vadd.f32 1e-09, %v11444_v41  ;;  %v11463_v38 = vadd.f32 1e-09, %v11441_v53  ;;  %v11488_v8 = vmul.f32 %v16981_v28, %v22334_v15  ;;  %16992 = vrcp.f32 %v11462_v23  ;;  %v17043_v23 = vld [vmem:[%s17336_s26 + $0x20] sm:$0xff] }
 0xccb   : > { %v16985_v31 = vpop.eup %16984  ;;  %v11672_v0 = vsub.f32 %v22390_v26, %v24054_v14  ;;  %v11683_v21 = vsub.f32 %v22393_v47, %v24053_v34  ;;  %v11521_v22 = vadd.f32 %v11520_v54, %v11519_v49  ;;  %v22412_v3 = vsub.f32 %v11559_v42, %v22400_v50  ;;  %v17044_v54 = vld [vmem:[%s17336_s26 + $0x28] sm:$0xff] }
 0xccc   : > { %v11489_v13 = vmul.f32 %v16985_v31, %v22343_v20  ;;  %v11562_v48 = vsel %vm2035_vm1, %v11502_v11, 0  ;;  %16994 = vrcp.f32 %v11464_v35  ;;  %v11490_v41 = vmul.f32 %v16983_v5, %v22305_v56  ;;  %v25141_v34 = vld [vmem:[#allocation25_spill] sm:$0xff]  ;;  %v17045_v5 = vld [vmem:[%s17336_s26 + $0x30] sm:$0xff] }
 0xccd   : > { %v11450_v15 = vpop.xlane.xlu1 %11449  ;;  %v11447_v43 = vpop.xlane.xlu0 %11446  ;;  %v11673_v18 = vand.u32 4294901760, %v11672_v0  ;;  %v22415_v28 = vand.u32 4294901760, %v11562_v48  ;;  %16996 = vrcp.f32 %v11463_v38  ;;  %v24055_v20 = vand.u32 4294901760, %v22412_v3 }
 0xcce   : > { %v16987_v57 = vpop.eup %16986  ;;  %v11503_v53 = vmul.f32 %v17043_v23, %v11487_v19  ;;  %v11465_v49 = vadd.f32 1e-09, %v11447_v43  ;;  %v11684_v11 = vand.u32 4294901760, %v11683_v21  ;;  %v11504_v31 = vmul.f32 %v17044_v54, %v11488_v8 }
 0xccf   : > { %v16989_v42 = vpop.eup %16988  ;;  %11674 = vmatmul.mubr.f32.vlgmr.msra.gmra.mrb[78].mxu0 %v11673_v18  ;;  %v22421_v35 = vsub.f32 %v11562_v48, %v22415_v28  ;;  %v11466_v0 = vadd.f32 1e-09, %v11450_v15  ;;  %v25142_v14 = vmov 0.0   ;;  %v11694_v56 = vsub.f32 %v22412_v3, %v24055_v20  ;;  %v25143_v15 = vld [vmem:[#allocation84_spill] sm:$0xff] }
 0xcd0   : > { %15503 = vmatpush1.bf16.msra.mxu0 %v25141_v34  ;;  %11679 = vmatprep.mubr.f32.mxu0 %v25142_v14  ;;  %v11522_v19 = vsel %vm2035_vm1, %v11503_v53, 0.0  ;;  %v11505_v38 = vmul.f32 %v17045_v5, %v11489_v13  ;;  %v11492_v21 = vmul.f32 %v16987_v57, %v22309_v2  ;;  %v11565_v8 = vsel %vm2035_vm1, %v11503_v53, 0 }
 0xcd1   : > { %v24056_v48 = vand.u32 4294901760, %v22421_v35  ;;  %v11523_v43 = vadd.f32 %v11522_v19, %v11521_v22  ;;  %15505 = vmatprep.subr.bf16.mxu0 %v25143_v15  ;;  %v11491_v18 = vmul.f32 %v16989_v42, %v22307_v55  ;;  %v22436_v23 = vand.u32 4294901760, %v11565_v8 }
 0xcd2   : > { %v11524_v54 = vsel %vm2035_vm1, %v11504_v31, 0.0  ;;  %v11568_v20 = vsel %vm2035_vm1, %v11504_v31, 0  ;;  %v16991_v29 = vpop.eup %16990  ;;  %16998 = vrcp.f32 %v11465_v49  ;;  %v11695_v55 = vand.u32 4294901760, %v11694_v56 }
 0xcd3   : > { %11685 = vmatmul.mubr.f32.gmra.mrb[80].mxu0 %v11684_v11  ;;  %v11705_v2 = vsub.f32 %v22421_v35, %v24056_v48  ;;  %v11525_v22 = vadd.f32 %v11524_v54, %v11523_v43  ;;  %v22443_v13 = vand.u32 4294901760, %v11568_v20  ;;  %v22447_v57 = vsub.f32 %v11565_v8, %v22436_v23  ;;  %v17046_v43 = vld [vmem:[%s17336_s26 + $0x38] sm:$0xff]  ;;  %v17047_v54 = vld [vmem:[%s17336_s26 + $0x40] sm:$0xff] }
 0xcd4   : > { %11690 = vmatprep.mubr.f32.mxu0 %v25142_v14  ;;  %v11526_v53 = vsel %vm2035_vm1, %v11505_v38, 0.0  ;;  %v11571_v42 = vsel %vm2035_vm1, %v11505_v38, 0  ;;  %v11493_v49 = vmul.f32 %v16991_v29, %v22311_v16  ;;  %v16993_v5 = vpop.eup %16992  ;;  %17000 = vrcp.f32 %v11466_v0 }
 0xcd5   : > { %v22453_v11 = vsub.f32 %v11568_v20, %v22443_v13  ;;  %v11527_v31 = vadd.f32 %v11526_v53, %v11525_v22  ;;  %v22455_v19 = vand.u32 4294901760, %v11571_v42  ;;  %v24059_v56 = vand.u32 4294901760, %v22447_v57  ;;  %v17048_v53 = vld [vmem:[%s17336_s26 + $0x48] sm:$0xff] }
 0xcd6   : > { %v11506_v8 = vmul.f32 %v17046_v43, %v11490_v41  ;;  %v11507_v48 = vmul.f32 %v17047_v54, %v11491_v18  ;;  %v16995_v44 = vpop.eup %16994  ;;  %v11706_v38 = vand.u32 4294901760, %v11705_v2  ;;  %v11508_v41 = vmul.f32 %v17048_v53, %v11492_v21 }
 0xcd7   : > { %11696 = vmatmul.mubr.f32.gmra.mrb[82].mxu0 %v11695_v55  ;;  %v22461_v29 = vsub.f32 %v11571_v42, %v22455_v19  ;;  %v16997_v16 = vpop.eup %16996  ;;  %v11716_v18 = vsub.f32 %v22447_v57, %v24059_v56  ;;  %v17049_v42 = vld [vmem:[%s17336_s26 + $0x50] sm:$0xff]  ;;  %v11494_v54 = vmul.f32 %v16993_v5, %v22313_v24  ;;  %v17050_v56 = vld [vmem:[%s17336_s26 + $0x58] sm:$0xff] }
 0xcd8   : > { %11701 = vmatprep.mubr.f32.mxu0 %v25142_v14  ;;  %v11528_v0 = vsel %vm2035_vm1, %v11506_v8, 0.0  ;;  %v11574_v22 = vsel %vm2035_vm1, %v11506_v8, 0  ;;  %v11509_v43 = vmul.f32 %v17049_v42, %v11493_v49  ;;  %v11530_v52 = vsel %vm2035_vm1, %v11507_v48, 0.0 }
 0xcd9   : > { %v11529_v55 = vadd.f32 %v11528_v0, %v11527_v31  ;;  %v22471_v2 = vand.u32 4294901760, %v11574_v22  ;;  %v11577_v20 = vsel %vm2035_vm1, %v11507_v48, 0  ;;  %v11495_v8 = vmul.f32 %v16997_v16, %v22315_v51 }
 0xcda   : > { %v25144_v31 = vand.u32 4294901760, %v22453_v11  ;;  %v11717_v53 = vand.u32 4294901760, %v11716_v18  ;;  %v22486_v42 = vand.u32 4294901760, %v11577_v20  ;;  %v11532_v51 = vsel %vm2035_vm1, %v11508_v41, 0.0 }
 0xcdb   : > { %11707 = vmatmul.mubr.f32.gmra.mrb[84].mxu0 %v11706_v38  ;;  %v22484_v49 = vsub.f32 %v11574_v22, %v22471_v2  ;;  %v11531_v24 = vadd.f32 %v11530_v52, %v11529_v55  ;;  %v11534_v48 = vsel %vm2035_vm1, %v11509_v43, 0.0  ;;  %v11580_v16 = vsel %vm2035_vm1, %v11508_v41, 0 }
 0xcdc   : > { %11712 = vmatprep.mubr.f32.mxu0 %v25142_v14  ;;  %v11727_v0 = vsub.f32 %v22453_v11, %v25144_v31  ;;  %v16999_v5 = vpop.eup %16998  ;;  %v11510_v21 = vmul.f32 %v17050_v56, %v11494_v54  ;;  %v25145_v31 = vand.u32 4294901760, %v22461_v29  ;;  %v11511_v52 = vmul.f32 %v17051_v60, %v11495_v8 }
 0xcdd   : > { %v11533_v38 = vadd.f32 %v11532_v51, %v11531_v24  ;;  %v11496_v18 = vmul.f32 %v16995_v44, %v22317_v30  ;;  %v11497_v61 = vmul.f32 %v16999_v5, %v22319_v59  ;;  %v11748_v24 = vand.u32 4294901760, %v22484_v49  ;;  %v17052_v51 = vld [vmem:[%s17336_s26 + $0x68] sm:$0xff] }
 0xcde   : > { %v11738_v22 = vsub.f32 %v22461_v29, %v25145_v31  ;;  %v17001_v55 = vpop.eup %17000  ;;  %v11728_v56 = vand.u32 4294901760, %v11727_v0  ;;  %v22501_v54 = vsub.f32 %v11577_v20, %v22486_v42  ;;  %v11536_v60 = vsel %vm2035_vm1, %v11510_v21, 0.0 }
 0xcdf   : > { %11718 = vmatmul.mubr.f32.gmra.mrb[86].mxu0 %v11717_v53  ;;  %v11535_v41 = vadd.f32 %v11534_v48, %v11533_v38  ;;  %v22503_v53 = vand.u32 4294901760, %v11580_v16  ;;  %v11583_v8 = vsel %vm2035_vm1, %v11509_v43, 0  ;;  %v11538_v30 = vsel %vm2035_vm1, %v11511_v52, 0.0  ;;  %v17053_v38 = vld [vmem:[%s17336_s26 + $0x70] sm:$0xff] }
 0xce0   : > { %11723 = vmatprep.mubr.f32.mxu0 %v25142_v14  ;;  %v11498_v59 = vmul.f32 %v17001_v55, %v22321_v36  ;;  %v11739_v5 = vand.u32 4294901760, %v11738_v22  ;;  %v11749_v20 = vsub.f32 %v22484_v49, %v11748_v24  ;;  %v11512_v48 = vmul.f32 %v17052_v51, %v11496_v18 }
 0xce1   : > { %v11537_v44 = vadd.f32 %v11536_v60, %v11535_v41  ;;  %v11513_v31 = vmul.f32 %v17053_v38, %v11497_v61  ;;  %v24065_v43 = vand.u32 4294901760, %v22501_v54  ;;  %v22517_v41 = vsub.f32 %v11580_v16, %v22503_v53  ;;  %v17054_v61 = vld [vmem:[%s17336_s26 + $0x78] sm:$0xff]  ;;  %s14481_s26 = sshll.u32 %s25296_s9, 1 }
 0xce2   : > { %v22519_v36 = vand.u32 4294901760, %v11583_v8  ;;  %v11586_v22 = vsel %vm2035_vm1, %v11510_v21, 0  ;;  %v11540_v55 = vsel %vm2035_vm1, %v11512_v48, 0.0  ;;  %v11750_v18 = vand.u32 4294901760, %v11749_v20  ;;  %s337_s12 = scalar_lea.vmem %s23291_s7, %s14481_s26  ;;  %s17056_s26 = scalar_lea.vmem %s23243_s22, 16 }
 0xce3   : > { %11729 = vmatmul.mubr.f32.gmra.mrb[88].mxu0 %v11728_v56  ;;  %v11539_v0 = vadd.f32 %v11538_v30, %v11537_v44  ;;  %v11542_v56 = vsel %vm2035_vm1, %v11513_v31, 0.0  ;;  %v22525_v44 = vand.u32 4294901760, %v11586_v22  ;;  %v11514_v30 = vmul.f32 %v17054_v61, %v11498_v59  ;;  %p17057_p12 = scmp.ne.s32.totalorder %s23243_s22, %s17056_s26 }
 0xce4   : > { %11734 = vmatprep.mubr.f32.mxu0 %v25142_v14  ;;  %v11760_v16 = vsub.f32 %v22501_v54, %v24065_v43  ;;  %v24062_v51 = vand.u32 4294901760, %v22517_v41  ;;  %v22533_v21 = vsub.f32 %v11583_v8, %v22519_v36 }
 0xce5   : > { %v11541_v60 = vadd.f32 %v11540_v55, %v11539_v0  ;;  %v11544_v0 = vsel %vm2035_vm1, %v11514_v30, 0.0  ;;  %v22541_v59 = vsub.f32 %v11586_v22, %v22525_v44  ;;  %p17058_p13 = pnand %p17057_p12, %p17207_p5 }
 0xce6   : > { %v11761_v55 = vand.u32 4294901760, %v11760_v16  ;;  %v11771_v61 = vsub.f32 %v22517_v41, %v24062_v51  ;;  %v24063_v8 = vand.u32 4294901760, %v22533_v21 }
 0xce7   : > { %11740 = vmatmul.mubr.f32.gmra.mrb[90].mxu0 %v11739_v5  ;;  %v11543_v38 = vadd.f32 %v11542_v56, %v11541_v60  ;;  %v11589_v5 = vsel %vm2035_vm1, %v11511_v52, 0  ;;  %v11592_v52 = vsel %vm2035_vm1, %v11512_v48, 0  ;;  %v24064_v60 = vand.u32 4294901760, %v22541_v59  ;;  %p17059_p0 = pneg %p17058_p13 }
 0xce8   : > { %11745 = vmatprep.mubr.f32.mxu0 %v25142_v14  ;;  %v22547_v56 = vand.u32 4294901760, %v11589_v5  ;;  %v11782_v22 = vsub.f32 %v22533_v21, %v24063_v8 }
 0xce9   : > { %v22537_v20 = vadd.f32 %v11544_v0, %v11543_v38  ;;  %v22558_v38 = vand.u32 4294901760, %v11592_v52  ;;  %v11595_v0 = vsel %vm2035_vm1, %v11513_v31, 0  ;;  %v11793_v48 = vsub.f32 %v22541_v59, %v24064_v60 }
 0xcea   : > { %v22556_v16 = vsub.f32 %v11589_v5, %v22547_v56  ;;  %v22569_v8 = vand.u32 4294901760, %v11595_v0  ;;  %v11598_v5 = vsel %vm2035_vm1, %v11514_v30, 0 }
 0xceb   : > { %11751 = vmatmul.mubr.f32.gmra.mrb[92].mxu0 %v11750_v18  ;;  %v11772_v18 = vand.u32 4294901760, %v11771_v61  ;;  %v22567_v51 = vsub.f32 %v11592_v52, %v22558_v38  ;;  %v11794_v31 = vand.u32 4294901760, %v11793_v48  ;;  %v22580_v43 = vand.u32 4294901760, %v11598_v5 }
 0xcec   : > { %11756 = vmatprep.mubr.f32.mxu0 %v25142_v14  ;;  %v24066_v61 = vand.u32 4294901760, %v22556_v16 }
 0xced   : > { %v24067_v60 = vand.u32 4294901760, %v22567_v51 }
 0xcef   : > { %11762 = vmatmul.mubr.f32.gmra.mrb[94].mxu0 %v11761_v55  ;;  %v11783_v55 = vand.u32 4294901760, %v11782_v22  ;;  %v22578_v22 = vsub.f32 %v11595_v0, %v22569_v8  ;;  %v11815_v30 = vsub.f32 %v22567_v51, %v24067_v60 }
 0xcf0   : > { %11767 = vmatprep.mubr.f32.mxu0 %v25142_v14 }
 0xcf1   : > { %v24069_v48 = vand.u32 4294901760, %v22578_v22  ;;  %v11816_v0 = vand.u32 4294901760, %v11815_v30  ;;  %v25147_v30 = vld [vmem:[#allocation13_spill] sm:$0xff] }
 0xcf3   : > { %11773 = vmatmul.mubr.f32.gmra.mrb[96].mxu0 %v11772_v18  ;;  %v11804_v18 = vsub.f32 %v22556_v16, %v24066_v61 }
 0xcf4   : > { %11778 = vmatprep.mubr.f32.mxu0 %v25142_v14 }
 0xcf5   : > { %v11805_v52 = vand.u32 4294901760, %v11804_v18 }
 0xcf7   : > { %11784 = vmatmul.mubr.f32.gmra.mrb[98].mxu0 %v11783_v55  ;;  %v22588_v55 = vsub.f32 %v11598_v5, %v22580_v43 }
 0xcf8   : > { %11789 = vmatprep.mubr.f32.mxu0 %v25142_v14 }
 0xcf9   : > { %v24068_v61 = vand.u32 4294901760, %v22588_v55 }
 0xcfb   : > { %11795 = vmatmul.mubr.f32.gmra.mrb[100].mxu0 %v11794_v31  ;;  %v11826_v31 = vsub.f32 %v22578_v22, %v24069_v48  ;;  %v11837_v60 = vsub.f32 %v22588_v55, %v24068_v61  ;;  %v25153_v61 = vand.u32 4294901760, %v22412_v3  ;;  %v25154_v48 = vand.u32 4294901760, %v22421_v35 }
 0xcfc   : > { %11800 = vmatprep.mubr.f32.mxu0 %v25142_v14 }
 0xcfd   : > { %v11827_v18 = vand.u32 4294901760, %v11826_v31  ;;  %v11838_v5 = vand.u32 4294901760, %v11837_v60  ;;  %v25148_v60 = vld [vmem:[#allocation15_spill] sm:$0xff]  ;;  %v25150_v31 = vand.u32 4294901760, %v22390_v26 }
 0xcff   : > { %11806 = vmatmul.mubr.f32.gmra.mrb[102].mxu0 %v11805_v52  ;;  %v25146_v52 = vld [vmem:[#allocation92_spill] sm:$0xff] }
 0xd00   : > { %11811 = vmatprep.mubr.f32.mxu0 %v25142_v14 }
 0xd03   : > { %11817 = vmatmul.mubr.f32.gmra.mrb[104].mxu0 %v11816_v0  ;;  %v25149_v0 = vld [vmem:[#allocation6_spill] sm:$0xff] }
 0xd04   : > { %11822 = vmatprep.mubr.f32.mxu0 %v25142_v14 }
 0xd07   : > { %11828 = vmatmul.mubr.f32.gmra.mrb[106].mxu0 %v11827_v18  ;;  %v25151_v18 = vld [vmem:[#allocation7_spill] sm:$0xff] }
 0xd08   : > { %11833 = vmatprep.mubr.f32.mxu0 %v25142_v14 }
 0xd0b   : > { %11839 = vmatmul.mubr.f32.gmra.mrb[108].mxu0 %v11838_v5  ;;  %v25152_v5 = vand.u32 4294901760, %v22393_v47 }
 0xd0c   : > { %11929 = vmatprep.mubr.f32.mxu0 %v25142_v14 }
 0xd0f   : > { %11931 = vmatmul.mubr.f32.vlgmr.msra.gmra.mrb[78].mxu0 %v22383_v7 }
 0xd10   : > { %15507 = vmatpush1.bf16.msra.mxu0 %v25146_v52  ;;  %11936 = vmatprep.mubr.f32.mxu0 %v25142_v14 }
 0xd11   : > { %15509 = vmatprep.subr.bf16.mxu0 %v25147_v30 }
 0xd13   : > { %11938 = vmatmul.mubr.f32.gmra.mrb[80].mxu0 %v22385_v39 }
 0xd14   : > { %11943 = vmatprep.mubr.f32.mxu0 %v25142_v14 }
 0xd17   : > { %11945 = vmatmul.mubr.f32.gmra.mrb[82].mxu0 %v22400_v50 }
 0xd18   : > { %11950 = vmatprep.mubr.f32.mxu0 %v25142_v14 }
 0xd1b   : > { %11952 = vmatmul.mubr.f32.gmra.mrb[84].mxu0 %v22415_v28 }
 0xd1c   : > { %11957 = vmatprep.mubr.f32.mxu0 %v25142_v14 }
 0xd1f   : > { %11959 = vmatmul.mubr.f32.gmra.mrb[86].mxu0 %v22436_v23 }
 0xd20   : > { %11964 = vmatprep.mubr.f32.mxu0 %v25142_v14 }
 0xd23   : > { %11966 = vmatmul.mubr.f32.gmra.mrb[88].mxu0 %v22443_v13 }
 0xd24   : > { %11971 = vmatprep.mubr.f32.mxu0 %v25142_v14 }
 0xd27   : > { %11973 = vmatmul.mubr.f32.gmra.mrb[90].mxu0 %v22455_v19 }
 0xd28   : > { %11978 = vmatprep.mubr.f32.mxu0 %v25142_v14 }
 0xd2b   : > { %11980 = vmatmul.mubr.f32.gmra.mrb[92].mxu0 %v22471_v2 }
 0xd2c   : > { %11985 = vmatprep.mubr.f32.mxu0 %v25142_v14 }
 0xd2f   : > { %11987 = vmatmul.mubr.f32.gmra.mrb[94].mxu0 %v22486_v42 }
 0xd30   : > { %11992 = vmatprep.mubr.f32.mxu0 %v25142_v14 }
 0xd33   : > { %11994 = vmatmul.mubr.f32.gmra.mrb[96].mxu0 %v22503_v53 }
 0xd34   : > { %11999 = vmatprep.mubr.f32.mxu0 %v25142_v14 }
 0xd37   : > { %12001 = vmatmul.mubr.f32.gmra.mrb[98].mxu0 %v22519_v36 }
 0xd38   : > { %12006 = vmatprep.mubr.f32.mxu0 %v25142_v14 }
 0xd3b   : > { %12008 = vmatmul.mubr.f32.gmra.mrb[100].mxu0 %v22525_v44 }
 0xd3c   : > { %12013 = vmatprep.mubr.f32.mxu0 %v25142_v14 }
 0xd3f   : > { %12015 = vmatmul.mubr.f32.gmra.mrb[102].mxu0 %v22547_v56 }
 0xd40   : > { %12020 = vmatprep.mubr.f32.mxu0 %v25142_v14 }
 0xd43   : > { %12022 = vmatmul.mubr.f32.gmra.mrb[104].mxu0 %v22558_v38 }
 0xd44   : > { %12027 = vmatprep.mubr.f32.mxu0 %v25142_v14 }
 0xd47   : > { %12029 = vmatmul.mubr.f32.gmra.mrb[106].mxu0 %v22569_v8 }
 0xd48   : > { %12034 = vmatprep.mubr.f32.mxu0 %v25142_v14 }
 0xd4b   : > { %12036 = vmatmul.mubr.f32.gmra.mrb[108].mxu0 %v22580_v43 }
 0xd4c   : > { %12114 = vmatprep.mubr.f32.mxu0 %v25142_v14 }
 0xd4f   : > { %12117 = vmatmul.mubr.f32.vlgmr.msra.gmra.mrb[78].mxu0 %v22390_v26  ;;  %v25155_v26 = vand.u32 4294901760, %v22447_v57 }
 0xd50   : > { %15511 = vmatpush1.bf16.msra.mxu0 %v25148_v60  ;;  %12122 = vmatprep.mubr.f32.mxu0 %v25142_v14 }
 0xd51   : > { %15513 = vmatprep.subr.bf16.mxu0 %v25149_v0 }
 0xd53   : > { %12125 = vmatmul.mubr.f32.gmra.mrb[80].mxu0 %v22393_v47  ;;  %v25156_v47 = vand.u32 4294901760, %v22453_v11 }
 0xd54   : > { %12130 = vmatprep.mubr.f32.mxu0 %v25142_v14 }
 0xd57   : > { %12133 = vmatmul.mubr.f32.gmra.mrb[82].mxu0 %v22412_v3  ;;  %v25157_v3 = vand.u32 4294901760, %v22461_v29 }
 0xd58   : > { %12138 = vmatprep.mubr.f32.mxu0 %v25142_v14 }
 0xd5b   : > { %12141 = vmatmul.mubr.f32.gmra.mrb[84].mxu0 %v22421_v35  ;;  %v25158_v35 = vand.u32 4294901760, %v22501_v54 }
 0xd5c   : > { %12146 = vmatprep.mubr.f32.mxu0 %v25142_v14 }
 0xd5f   : > { %12149 = vmatmul.mubr.f32.gmra.mrb[86].mxu0 %v22447_v57  ;;  %v25159_v57 = vand.u32 4294901760, %v22517_v41 }
 0xd60   : > { %12154 = vmatprep.mubr.f32.mxu0 %v25142_v14 }
 0xd63   : > { %12157 = vmatmul.mubr.f32.gmra.mrb[88].mxu0 %v22453_v11  ;;  %v25160_v11 = vand.u32 4294901760, %v22533_v21 }
 0xd64   : > { %12162 = vmatprep.mubr.f32.mxu0 %v25142_v14 }
 0xd67   : > { %12165 = vmatmul.mubr.f32.gmra.mrb[90].mxu0 %v22461_v29  ;;  %v25161_v29 = vand.u32 4294901760, %v22541_v59 }
 0xd68   : > { %12170 = vmatprep.mubr.f32.mxu0 %v25142_v14 }
 0xd6b   : > { %12173 = vmatmul.mubr.f32.gmra.mrb[92].mxu0 %v22484_v49  ;;  %v25162_v49 = vand.u32 4294901760, %v22556_v16 }
 0xd6c   : > { %12178 = vmatprep.mubr.f32.mxu0 %v25142_v14 }
 0xd6f   : > { %12181 = vmatmul.mubr.f32.gmra.mrb[94].mxu0 %v22501_v54  ;;  %v25164_v54 = vand.u32 4294901760, %v22578_v22 }
 0xd70   : > { %12186 = vmatprep.mubr.f32.mxu0 %v25142_v14 }
 0xd73   : > { %12189 = vmatmul.mubr.f32.gmra.mrb[96].mxu0 %v22517_v41  ;;  %v25165_v41 = vand.u32 4294901760, %v22588_v55 }
 0xd74   : > { %12194 = vmatprep.mubr.f32.mxu0 %v25142_v14 }
 0xd77   : > { %12197 = vmatmul.mubr.f32.gmra.mrb[98].mxu0 %v22533_v21  ;;  %v25171_v21 = vld [vmem:[#allocation118_spill] sm:$0xff] }
 0xd78   : > { %12202 = vmatprep.mubr.f32.mxu0 %v25142_v14 }
 0xd7b   : > { %12205 = vmatmul.mubr.f32.gmra.mrb[100].mxu0 %v22541_v59  ;;  %v25174_v59 = vld [vmem:[#allocation29_spill] sm:$0xff] }
 0xd7c   : > { %12210 = vmatprep.mubr.f32.mxu0 %v25142_v14 }
 0xd7f   : > { %12213 = vmatmul.mubr.f32.gmra.mrb[102].mxu0 %v22556_v16  ;;  %v25177_v16 = vld [vmem:[#allocation52_spill] sm:$0xff] }
 0xd80   : > { %12218 = vmatprep.mubr.f32.mxu0 %v25142_v14 }
 0xd83   : > { %12221 = vmatmul.mubr.f32.gmra.mrb[104].mxu0 %v22567_v51 }
 0xd84   : > { %12226 = vmatprep.mubr.f32.mxu0 %v25142_v14 }
 0xd87   : > { %12229 = vmatmul.mubr.f32.gmra.mrb[106].mxu0 %v22578_v22 }
 0xd88   : > { %12234 = vmatprep.mubr.f32.mxu0 %v25142_v14 }
 0xd8b   : > { %12237 = vmatmul.mubr.f32.gmra.mrb[108].mxu0 %v22588_v55  ;;  %v25180_v55 = vld [vmem:[#allocation43_spill] sm:$0xff] }
 0xd8c   : > { %12311 = vmatprep.mubr.f32.mxu0 %v25142_v14 }
 0xd8f   : > { %12315 = vmatmul.mubr.f32.vlgmr.msra.gmra.mrb[78].mxu0 %v25150_v31 }
 0xd90   : > { %15515 = vmatpush1.bf16.msra.mxu0 %v25151_v18  ;;  %12320 = vmatprep.mubr.f32.mxu0 %v25142_v14 }
 0xd91   : > { %15517 = vmatprep.subr.bf16.mxu0 %v25147_v30 }
 0xd93   : > { %12324 = vmatmul.mubr.f32.gmra.mrb[80].mxu0 %v25152_v5 }
 0xd94   : > { %12329 = vmatprep.mubr.f32.mxu0 %v25142_v14 }
 0xd97   : > { %12333 = vmatmul.mubr.f32.gmra.mrb[82].mxu0 %v25153_v61  ;;  %v25178_v61 = vld [vmem:[#allocation47_spill] sm:$0xff] }
 0xd98   : > { %12338 = vmatprep.mubr.f32.mxu0 %v25142_v14 }
 0xd9b   : > { %12342 = vmatmul.mubr.f32.gmra.mrb[84].mxu0 %v25154_v48 }
 0xd9c   : > { %12347 = vmatprep.mubr.f32.mxu0 %v25142_v14 }
 0xd9f   : > { %12351 = vmatmul.mubr.f32.gmra.mrb[86].mxu0 %v25155_v26 }
 0xda0   : > { %12356 = vmatprep.mubr.f32.mxu0 %v25142_v14 }
 0xda3   : > { %12360 = vmatmul.mubr.f32.gmra.mrb[88].mxu0 %v25156_v47 }
 0xda4   : > { %12365 = vmatprep.mubr.f32.mxu0 %v25142_v14 }
 0xda7   : > { %12369 = vmatmul.mubr.f32.gmra.mrb[90].mxu0 %v25157_v3 }
 0xda8   : > { %12374 = vmatprep.mubr.f32.mxu0 %v25142_v14 }
 0xdab   : > { %12378 = vmatmul.mubr.f32.gmra.mrb[92].mxu0 %v11748_v24  ;;  %v25163_v24 = vand.u32 4294901760, %v22567_v51  ;;  %v25166_v51 = vld [vmem:[#allocation22_spill] sm:$0xff] }
 0xdac   : > { %12383 = vmatprep.mubr.f32.mxu0 %v25142_v14 }
 0xdaf   : > { %12387 = vmatmul.mubr.f32.gmra.mrb[94].mxu0 %v25158_v35 }
 0xdb0   : > { %12392 = vmatprep.mubr.f32.mxu0 %v25142_v14 }
 0xdb3   : > { %12396 = vmatmul.mubr.f32.gmra.mrb[96].mxu0 %v25159_v57 }
 0xdb4   : > { %12401 = vmatprep.mubr.f32.mxu0 %v25142_v14 }
 0xdb7   : > { %12405 = vmatmul.mubr.f32.gmra.mrb[98].mxu0 %v25160_v11  ;;  %v25184_v11 = vld [vmem:[#allocation61_spill] sm:$0xff] }
 0xdb8   : > { %12410 = vmatprep.mubr.f32.mxu0 %v25142_v14 }
 0xdbb   : > { %12414 = vmatmul.mubr.f32.gmra.mrb[100].mxu0 %v25161_v29 }
 0xdbc   : > { %12419 = vmatprep.mubr.f32.mxu0 %v25142_v14 }
 0xdbf   : > { %12423 = vmatmul.mubr.f32.gmra.mrb[102].mxu0 %v25162_v49 }
 0xdc0   : > { %12428 = vmatprep.mubr.f32.mxu0 %v25142_v14 }
 0xdc3   : > { %12432 = vmatmul.mubr.f32.gmra.mrb[104].mxu0 %v25163_v24  ;;  %v25186_v24 = vld [vmem:[#allocation58_spill] sm:$0xff] }
 0xdc4   : > { %12437 = vmatprep.mubr.f32.mxu0 %v25142_v14 }
 0xdc7   : > { %12441 = vmatmul.mubr.f32.gmra.mrb[106].mxu0 %v25164_v54 }
 0xdc8   : > { %12446 = vmatprep.mubr.f32.mxu0 %v25142_v14 }
 0xdcb   : > { %12450 = vmatmul.mubr.f32.gmra.mrb[108].mxu0 %v25165_v41 }
 0xdcc   : > { %12532 = vmatprep.mubr.f32.mxu0 %v25142_v14 }
 0xdcf   : > { %12534 = vmatmul.mubr.f32.vlgmr.msra.gmra.mrb[78].mxu0 %v22383_v7 }
 0xdd0   : > { %15519 = vmatpush1.bf16.msra.mxu0 %v25148_v60  ;;  %12539 = vmatprep.mubr.f32.mxu0 %v25142_v14 }
 0xdd1   : > { %15521 = vmatprep.subr.bf16.mxu0 %v25147_v30 }
 0xdd3   : > { %12541 = vmatmul.mubr.f32.gmra.mrb[80].mxu0 %v22385_v39 }
 0xdd4   : > { %12546 = vmatprep.mubr.f32.mxu0 %v25142_v14 }
 0xdd7   : > { %12548 = vmatmul.mubr.f32.gmra.mrb[82].mxu0 %v22400_v50 }
 0xdd8   : > { %12553 = vmatprep.mubr.f32.mxu0 %v25142_v14 }
 0xddb   : > { %12555 = vmatmul.mubr.f32.gmra.mrb[84].mxu0 %v22415_v28 }
 0xddc   : > { %12560 = vmatprep.mubr.f32.mxu0 %v25142_v14 }
 0xddf   : > { %12562 = vmatmul.mubr.f32.gmra.mrb[86].mxu0 %v22436_v23 }
 0xde0   : > { %12567 = vmatprep.mubr.f32.mxu0 %v25142_v14 }
 0xde3   : > { %12569 = vmatmul.mubr.f32.gmra.mrb[88].mxu0 %v22443_v13 }
 0xde4   : > { %12574 = vmatprep.mubr.f32.mxu0 %v25142_v14 }
 0xde7   : > { %12576 = vmatmul.mubr.f32.gmra.mrb[90].mxu0 %v22455_v19 }
 0xde8   : > { %12581 = vmatprep.mubr.f32.mxu0 %v25142_v14 }
 0xdeb   : > { %12583 = vmatmul.mubr.f32.gmra.mrb[92].mxu0 %v22471_v2 }
 0xdec   : > { %12588 = vmatprep.mubr.f32.mxu0 %v25142_v14 }
 0xdef   : > { %12590 = vmatmul.mubr.f32.gmra.mrb[94].mxu0 %v22486_v42 }
 0xdf0   : > { %12595 = vmatprep.mubr.f32.mxu0 %v25142_v14 }
 0xdf3   : > { %12597 = vmatmul.mubr.f32.gmra.mrb[96].mxu0 %v22503_v53 }
 0xdf4   : > { %12602 = vmatprep.mubr.f32.mxu0 %v25142_v14 }
 0xdf7   : > { %12604 = vmatmul.mubr.f32.gmra.mrb[98].mxu0 %v22519_v36 }
 0xdf8   : > { %12609 = vmatprep.mubr.f32.mxu0 %v25142_v14 }
 0xdfb   : > { %12611 = vmatmul.mubr.f32.gmra.mrb[100].mxu0 %v22525_v44 }
 0xdfc   : > { %12616 = vmatprep.mubr.f32.mxu0 %v25142_v14 }
 0xdff   : > { %12618 = vmatmul.mubr.f32.gmra.mrb[102].mxu0 %v22547_v56 }
 0xe00   : > { %12623 = vmatprep.mubr.f32.mxu0 %v25142_v14 }
 0xe03   : > { %12625 = vmatmul.mubr.f32.gmra.mrb[104].mxu0 %v22558_v38 }
 0xe04   : > { %12630 = vmatprep.mubr.f32.mxu0 %v25142_v14 }
 0xe07   : > { %12632 = vmatmul.mubr.f32.gmra.mrb[106].mxu0 %v22569_v8 }
 0xe08   : > { %12637 = vmatprep.mubr.f32.mxu0 %v25142_v14 }
 0xe0b   : > { %12639 = vmatmul.mubr.f32.gmra.mrb[108].mxu0 %v22580_v43 }
 0xe0c   : > { %12713 = vmatprep.mubr.f32.mxu0 %v25142_v14 }
 0xe0f   : > { %12715 = vmatmul.mubr.f32.vlgmr.msra.gmra.mrb[78].mxu0 %v22383_v7  ;;  %v11546_v7 = vrot.slane %v22537_v20, 4 }
 0xe10   : > { %15523 = vmatpush1.bf16.msra.mxu0 %v25148_v60  ;;  %12720 = vmatprep.mubr.f32.mxu0 %v25142_v14 }
 0xe11   : > { %15525 = vmatprep.subr.bf16.mxu0 %v25166_v51 }
 0xe13   : > { %12722 = vmatmul.mubr.f32.gmra.mrb[80].mxu0 %v22385_v39  ;;  %v11547_v39 = vadd.f32 %v11546_v7, %v22537_v20  ;;  %v25173_v20 = vld [vmem:[#allocation68_spill] sm:$0xff] }
 0xe14   : > { %12727 = vmatprep.mubr.f32.mxu0 %v25142_v14 }
 0xe17   : > { %12729 = vmatmul.mubr.f32.gmra.mrb[82].mxu0 %v22400_v50  ;;  %v11548_v50 = vrot.slane %v11547_v39, 2 }
 0xe18   : > { %12734 = vmatprep.mubr.f32.mxu0 %v25142_v14 }
 0xe1b   : > { %12736 = vmatmul.mubr.f32.gmra.mrb[84].mxu0 %v22415_v28  ;;  %v11549_v28 = vadd.f32 %v11548_v50, %v11547_v39  ;;  %v25187_v50 = vld [vmem:[#allocation69_spill] sm:$0xff] }
 0xe1c   : > { %12741 = vmatprep.mubr.f32.mxu0 %v25142_v14 }
 0xe1f   : > { %12743 = vmatmul.mubr.f32.gmra.mrb[86].mxu0 %v22436_v23  ;;  %v11550_v23 = vrot.slane %v11549_v28, 1 }
 0xe20   : > { %12748 = vmatprep.mubr.f32.mxu0 %v25142_v14 }
 0xe23   : > { %12750 = vmatmul.mubr.f32.gmra.mrb[88].mxu0 %v22443_v13  ;;  %v22777_v13 = vadd.f32 %v11550_v23, %v11549_v28 }
 0xe24   : > { %12755 = vmatprep.mubr.f32.mxu0 %v25142_v14 }
 0xe25   : > { %25167 = vst [vmem:[#allocation9_spill] sm:$0xff] %v22777_v13 }
 0xe27   : > { %12757 = vmatmul.mubr.f32.gmra.mrb[90].mxu0 %v22455_v19  ;;  %v12827_v19 = vsel %vm2035_vm1, %v22777_v13, 0 }
 0xe28   : > { %12762 = vmatprep.mubr.f32.mxu0 %v25142_v14 }
 0xe2b   : > { %12764 = vmatmul.mubr.f32.gmra.mrb[92].mxu0 %v22471_v2  ;;  %v12898_v2 = vand.u32 4294901760, %v12827_v19 }
 0xe2c   : > { %12769 = vmatprep.mubr.f32.mxu0 %v25142_v14 }
 0xe2f   : > { %12771 = vmatmul.mubr.f32.gmra.mrb[94].mxu0 %v22486_v42  ;;  %v12899_v42 = vsub.f32 %v12827_v19, %v12898_v2  ;;  %v25189_v19 = vld [vmem:[#allocation65_spill] sm:$0xff] }
 0xe30   : > { %12776 = vmatprep.mubr.f32.mxu0 %v25142_v14 }
 0xe33   : > { %12778 = vmatmul.mubr.f32.gmra.mrb[96].mxu0 %v22503_v53  ;;  %v12900_v53 = vand.u32 4294901760, %v12899_v42 }
 0xe34   : > { %12783 = vmatprep.mubr.f32.mxu0 %v25142_v14 }
 0xe37   : > { %12785 = vmatmul.mubr.f32.gmra.mrb[98].mxu0 %v22519_v36  ;;  %v12901_v36 = vsub.f32 %v12899_v42, %v12900_v53 }
 0xe38   : > { %12790 = vmatprep.mubr.f32.mxu0 %v25142_v14 }
 0xe3b   : > { %12792 = vmatmul.mubr.f32.gmra.mrb[100].mxu0 %v22525_v44  ;;  %v12902_v44 = vand.u32 4294901760, %v12901_v36 }
 0xe3c   : > { %12797 = vmatprep.mubr.f32.mxu0 %v25142_v14 }
 0xe3f   : > { %12799 = vmatmul.mubr.f32.gmra.mrb[102].mxu0 %v22547_v56  ;;  %v25176_v56 = vld [vmem:[#allocation45_spill] sm:$0xff] }
 0xe40   : > { %12804 = vmatprep.mubr.f32.mxu0 %v25142_v14 }
 0xe43   : > { %12806 = vmatmul.mubr.f32.gmra.mrb[104].mxu0 %v22558_v38 }
 0xe44   : > { %12811 = vmatprep.mubr.f32.mxu0 %v25142_v14 }
 0xe47   : > { %12813 = vmatmul.mubr.f32.gmra.mrb[106].mxu0 %v22569_v8  ;;  %v25175_v8 = vld [vmem:[#allocation33_spill] sm:$0xff] }
 0xe48   : > { %12818 = vmatprep.mubr.f32.mxu0 %v25142_v14 }
 0xe4b   : > { %12820 = vmatmul.mubr.f32.gmra.mrb[108].mxu0 %v22580_v43  ;;  %v25170_v43 = vld [vmem:[#allocation116_spill] sm:$0xff] }
 0xe4c   : > { %12897 = vmatprep.mubr.f32.mxu0 %v25142_v14 }
 0xe4f   : > { %12903 = vmatmul.mubr.f32.vlgmr.msra.gmra.mrb[110].mxu0 %v12902_v44 }
 0xe50   : > { %15527 = vmatpush1.bf16.msra.mxu0 %v25141_v34  ;;  %12993 = vmatprep.mubr.f32.mxu0 %v25142_v14  ;;  %v25168_v34 = vld [vmem:[#allocation113_spill] sm:$0xff] }
 0xe51   : > { %15529 = vmatprep.subr.bf16.mxu0 %v25143_v15  ;;  %v25169_v15 = vld [vmem:[#allocation114_spill] sm:$0xff] }
 0xe57   : > { %12995 = vmatmul.mubr.f32.vlgmr.msra.gmra.mrb[110].mxu0 %v12898_v2 }
 0xe58   : > { %15531 = vmatpush1.bf16.msra.mxu0 %v25146_v52  ;;  %13073 = vmatprep.mubr.f32.mxu0 %v25142_v14 }
 0xe59   : > { %15533 = vmatprep.subr.bf16.mxu0 %v25147_v30 }
 0xe5f   : > { %13076 = vmatmul.mubr.f32.vlgmr.msra.gmra.mrb[110].mxu0 %v12899_v42 }
 0xe60   : > { %15535 = vmatpush1.bf16.msra.mxu0 %v25148_v60  ;;  %13150 = vmatprep.mubr.f32.mxu0 %v25142_v14 }
 0xe61   : > { %15537 = vmatprep.subr.bf16.mxu0 %v25149_v0 }
 0xe67   : > { %13154 = vmatmul.mubr.f32.vlgmr.msra.gmra.mrb[110].mxu0 %v12900_v53 }
 0xe68   : > { %15539 = vmatpush1.bf16.msra.mxu0 %v25151_v18  ;;  %13236 = vmatprep.mubr.f32.mxu0 %v25142_v14  ;;  %v25183_v18 = vld [vmem:[#allocation49_spill] sm:$0xff] }
 0xe69   : > { %15541 = vmatprep.subr.bf16.mxu0 %v25147_v30 }
 0xe6f   : > { %13238 = vmatmul.mubr.f32.vlgmr.msra.gmra.mrb[110].mxu0 %v12898_v2 }
 0xe70   : > { %15543 = vmatpush1.bf16.msra.mxu0 %v25148_v60  ;;  %13312 = vmatprep.mubr.f32.mxu0 %v25142_v14  ;;  %v25172_v14 = vld [vmem:[#allocation119_spill] sm:$0xff]  ;;  %v25181_v60 = vld [vmem:[#allocation56_spill] sm:$0xff] }
 0xe71   : > { %15604 = vmatprep.subr.bf16.mxu0 %v24932_v63 }
 0xe77   : > { %13314 = vmatmul.mubr.f32.vlgmr.msra.gmra.mrb[110].mxu0 %v12898_v2 }
 0xe78   : > { %15606 = vmatpush1.bf16.msra.mxu0 %v25168_v34  ;;  %v25190_v34 = vld [vmem:[#allocation79_spill] sm:$0xff] }
 0xe79   : > { %15607 = vmatprep.subr.bf16.mxu0 %v24932_v63 }
 0xe7c   : > { %15609 = vmatpush1.bf16.msra.mxu0 %v25169_v15 }
 0xe7d   : > { %15610 = vmatprep.subr.bf16.mxu0 %v24932_v63 }
 0xe80   : > { %15612 = vmatpush1.bf16.msra.mxu0 %v25170_v43 }
 0xe81   : > { %15613 = vmatprep.subr.bf16.mxu0 %v24932_v63 }
 0xe84   : > { %15615 = vmatpush1.bf16.msra.mxu0 %v25171_v21  ;;  %v25192_v21 = vld [vmem:[#allocation17_spill] sm:$0xff] }
 0xe85   : > { %15616 = vmatprep.subr.bf16.mxu0 %v24932_v63 }
 0xe88   : > { %15618 = vmatpush1.bf16.msra.mxu0 %v25172_v14 }
 0xe89   : > { %15619 = vmatprep.subr.bf16.mxu0 %v24932_v63 }
 0xe8c   : > { %15621 = vmatpush1.bf16.msra.mxu0 %v25173_v20 }
 0xe8d   : > { %15622 = vmatprep.subr.bf16.mxu0 %v24932_v63 }
 0xe90   : > { %15624 = vmatpush1.bf16.msra.mxu0 %v25174_v59 }
 0xe91   : > { %15625 = vmatprep.subr.bf16.mxu0 %v24932_v63 }
 0xe94   : > { %15627 = vmatpush1.bf16.msra.mxu0 %v25175_v8 }
 0xe95   : > { %15628 = vmatprep.subr.bf16.mxu0 %v24932_v63 }
 0xe98   : > { %15630 = vmatpush1.bf16.msra.mxu0 %v25176_v56 }
 0xe99   : > { %15631 = vmatprep.subr.bf16.mxu0 %v24932_v63 }
 0xe9c   : > { %15633 = vmatpush1.bf16.msra.mxu0 %v25177_v16  ;;  %v25193_v16 = vld [vmem:[#allocation89_spill] sm:$0xff] }
 0xe9d   : > { %15664 = vmatprep.subr.bf16.mxu0 %v24932_v63 }
 0xee2   : > { %v22828_v38 = vpop.f32.mrb[78].mxu0 }
 0xee3   : > { %v13322_v22 = vmul.f32 %v22828_v38, %v25178_v61  ;;  %v22832_v48 = vpop.f32.mrb[79].mxu0 }
 0xee4   : > { %25179 = vst [vmem:[#allocation12_spill] sm:$0xff] %v22832_v48  ;;  %v13323_v52 = vmul.f32 %v22832_v48, %v25180_v55 }
 0xee6   : > { %v22836_v30 = vpop.f32.mrb[80].mxu0  ;;  %v13375_v47 = vsel %vm3903_vm2, %v13323_v52, 0.0 }
 0xee7   : > { %v13324_v0 = vmul.f32 %v22836_v30, %v25181_v60  ;;  %v22840_v31 = vpop.f32.mrb[81].mxu0 }
 0xee8   : > { %25182 = vst [vmem:[#allocation60_spill] sm:$0xff] %v22840_v31  ;;  %v13325_v5 = vmul.f32 %v22840_v31, %v25183_v18 }
 0xee9   : > { %v13354_v26 = vadd.f32 %v13324_v0, %v13322_v22  ;;  %v25195_v0 = vld [vmem:[#allocation91_spill] sm:$0xff] }
 0xeea   : > { %v13376_v3 = vsel %vm3903_vm2, %v13325_v5, 0.0  ;;  %v22846_v35 = vpop.f32.mrb[82].mxu0 }
 0xeeb   : > { %v13377_v57 = vadd.f32 %v13376_v3, %v13375_v47  ;;  %v13326_v29 = vmul.f32 %v22846_v35, %v25184_v11  ;;  %v22850_v49 = vpop.f32.mrb[83].mxu0 }
 0xeec   : > { %25185 = vst [vmem:[#allocation103_spill] sm:$0xff] %v22850_v49  ;;  %v13327_v54 = vmul.f32 %v22850_v49, %v25186_v24 }
 0xeed   : > { %v13355_v41 = vadd.f32 %v13354_v26, %v13326_v29  ;;  %v25196_v29 = vld [vmem:[#allocation76_spill] sm:$0xff] }
 0xeee   : > { %v13378_v51 = vsel %vm3903_vm2, %v13327_v54, 0.0  ;;  %v22855_v7 = vpop.f32.mrb[84].mxu0 }
 0xeef   : > { %v13379_v39 = vadd.f32 %v13378_v51, %v13377_v57  ;;  %v13328_v28 = vmul.f32 %v22855_v7, %v25187_v50  ;;  %v22859_v23 = vpop.f32.mrb[85].mxu0  ;;  %v25198_v51 = vld [vmem:[#allocation83_spill] sm:$0xff] }
 0xef0   : > { %25188 = vst [vmem:[#allocation59_spill] sm:$0xff] %v22859_v23  ;;  %v13329_v2 = vmul.f32 %v22859_v23, %v25189_v19 }
 0xef1   : > { %v13356_v42 = vadd.f32 %v13355_v41, %v13328_v28 }
 0xef2   : > { %v13380_v53 = vsel %vm3903_vm2, %v13329_v2, 0.0  ;;  %v22864_v36 = vpop.f32.mrb[86].mxu0 }
 0xef3   : > { %v13381_v44 = vadd.f32 %v13380_v53, %v13379_v39  ;;  %v13330_v15 = vmul.f32 %v22864_v36, %v25190_v34  ;;  %v22868_v43 = vpop.f32.mrb[87].mxu0 }
 0xef4   : > { %25191 = vst [vmem:[#allocation120_spill] sm:$0xff] %v22868_v43  ;;  %v13331_v14 = vmul.f32 %v22868_v43, %v25192_v21 }
 0xef5   : > { %v13357_v20 = vadd.f32 %v13356_v42, %v13330_v15 }
 0xef6   : > { %v13382_v59 = vsel %vm3903_vm2, %v13331_v14, 0.0  ;;  %v22873_v8 = vpop.f32.mrb[88].mxu0 }
 0xef7   : > { %v13383_v56 = vadd.f32 %v13382_v59, %v13381_v44  ;;  %v13332_v22 = vmul.f32 %v22873_v8, %v25193_v16  ;;  %v22877_v52 = vpop.f32.mrb[89].mxu0  ;;  %v25199_v44 = vld [vmem:[#allocation20_spill] sm:$0xff] }
 0xef8   : > { %25194 = vst [vmem:[#allocation123_spill] sm:$0xff] %v22877_v52  ;;  %v13333_v5 = vmul.f32 %v22877_v52, %v25195_v0 }
 0xef9   : > { %v13358_v26 = vadd.f32 %v13357_v20, %v13332_v22  ;;  %v25201_v20 = vld [vmem:[#allocation27_spill] sm:$0xff] }
 0xefa   : > { %v13384_v47 = vsel %vm3903_vm2, %v13333_v5, 0.0  ;;  %v22882_v3 = vpop.f32.mrb[90].mxu0 }
 0xefb   : > { %v13385_v57 = vadd.f32 %v13384_v47, %v13383_v56  ;;  %v13334_v54 = vmul.f32 %v22882_v3, %v25196_v29  ;;  %v22886_v41 = vpop.f32.mrb[91].mxu0 }
 0xefc   : > { %25197 = vst [vmem:[#allocation124_spill] sm:$0xff] %v22886_v41  ;;  %v13335_v39 = vmul.f32 %v22886_v41, %v25198_v51 }
 0xefd   : > { %v13359_v28 = vadd.f32 %v13358_v26, %v13334_v54  ;;  %v25202_v26 = vld [vmem:[#allocation42_spill] sm:$0xff] }
 0xefe   : > { %v13386_v2 = vsel %vm3903_vm2, %v13335_v39, 0.0  ;;  %v22891_v42 = vpop.f32.mrb[92].mxu0 }
 0xeff   : > { %v13387_v53 = vadd.f32 %v13386_v2, %v13385_v57  ;;  %v13336_v15 = vmul.f32 %v22891_v42, %v25199_v44  ;;  %v22895_v14 = vpop.f32.mrb[93].mxu0  ;;  %v25204_v57 = vld [vmem:[#allocation36_spill] sm:$0xff] }
 0xf00   : > { %25200 = vst [vmem:[#allocation99_spill] sm:$0xff] %v22895_v14  ;;  %v13337_v59 = vmul.f32 %v22895_v14, %v25201_v20 }
 0xf01   : > { %v13360_v56 = vadd.f32 %v13359_v28, %v13336_v15  ;;  %v25205_v28 = vld [vmem:[#allocation10_spill] sm:$0xff] }
 0xf02   : > { %v13388_v22 = vsel %vm3903_vm2, %v13337_v59, 0.0  ;;  %v22900_v5 = vpop.f32.mrb[94].mxu0 }
 0xf03   : > { %v13389_v47 = vadd.f32 %v13388_v22, %v13387_v53  ;;  %v13338_v54 = vmul.f32 %v22900_v5, %v25202_v26  ;;  %v22904_v39 = vpop.f32.mrb[95].mxu0  ;;  %v25207_v53 = vld [vmem:[#allocation50_spill] sm:$0xff] }
 0xf04   : > { %25203 = vst [vmem:[#allocation53_spill] sm:$0xff] %v22904_v39  ;;  %v13339_v2 = vmul.f32 %v22904_v39, %v25204_v57 }
 0xf05   : > { %v13361_v13 = vadd.f32 %v13360_v56, %v13338_v54  ;;  %v25208_v56 = vld [vmem:[#allocation14_spill] sm:$0xff] }
 0xf06   : > { %v13390_v58 = vsel %vm3903_vm2, %v13339_v2, 0.0  ;;  %v22909_v1 = vpop.f32.mrb[96].mxu0 }
 0xf07   : > { %v13391_v40 = vadd.f32 %v13390_v58, %v13389_v47  ;;  %v13340_v15 = vmul.f32 %v22909_v1, %v25205_v28  ;;  %v22913_v59 = vpop.f32.mrb[97].mxu0  ;;  %v25210_v58 = vld [vmem:[#allocation48_spill] sm:$0xff] }
 0xf08   : > { %25206 = vst [vmem:[#allocation32_spill] sm:$0xff] %v22913_v59  ;;  %v13341_v22 = vmul.f32 %v22913_v59, %v25207_v53 }
 0xf09   : > { %v13362_v4 = vadd.f32 %v13361_v13, %v13340_v15  ;;  %v25211_v13 = vld [vmem:[#allocation51_spill] sm:$0xff] }
 0xf0a   : > { %v13392_v10 = vsel %vm3903_vm2, %v13341_v22, 0.0  ;;  %v22918_v33 = vpop.f32.mrb[98].mxu0 }
 0xf0b   : > { %v13393_v25 = vadd.f32 %v13392_v10, %v13391_v40  ;;  %v13342_v54 = vmul.f32 %v22918_v33, %v25208_v56  ;;  %v22922_v2 = vpop.f32.mrb[99].mxu0  ;;  %v25213_v10 = vld [vmem:[#allocation24_spill] sm:$0xff] }
 0xf0c   : > { %25209 = vst [vmem:[#allocation106_spill] sm:$0xff] %v22922_v2  ;;  %v13343_v47 = vmul.f32 %v22922_v2, %v25210_v58 }
 0xf0d   : > { %v13363_v6 = vadd.f32 %v13362_v4, %v13342_v54  ;;  %v25214_v4 = vld [vmem:[#allocation26_spill] sm:$0xff] }
 0xf0e   : > { %v13394_v32 = vsel %vm3903_vm2, %v13343_v47, 0.0  ;;  %v22927_v45 = vpop.f32.mrb[100].mxu0 }
 0xf0f   : > { %v13395_v37 = vadd.f32 %v13394_v32, %v13393_v25  ;;  %v13344_v15 = vmul.f32 %v22927_v45, %v25211_v13  ;;  %v22931_v22 = vpop.f32.mrb[101].mxu0  ;;  %v25216_v32 = vld [vmem:[#allocation28_spill] sm:$0xff] }
 0xf10   : > { %25212 = vst [vmem:[#allocation121_spill] sm:$0xff] %v22931_v22  ;;  %v13345_v40 = vmul.f32 %v22931_v22, %v25213_v10 }
 0xf11   : > { %v13364_v17 = vadd.f32 %v13363_v6, %v13344_v15  ;;  %v25217_v6 = vld [vmem:[#allocation67_spill] sm:$0xff] }
 0xf12   : > { %v13396_v46 = vsel %vm3903_vm2, %v13345_v40, 0.0  ;;  %v22936_v9 = vpop.f32.mrb[102].mxu0 }
 0xf13   : > { %v13397_v12 = vadd.f32 %v13396_v46, %v13395_v37  ;;  %v13346_v54 = vmul.f32 %v22936_v9, %v25214_v4  ;;  %v22940_v47 = vpop.f32.mrb[103].mxu0  ;;  %v25219_v46 = vld [vmem:[#allocation37_spill] sm:$0xff] }
 0xf14   : > { %25215 = vst [vmem:[#allocation122_spill] sm:$0xff] %v22940_v47  ;;  %v13347_v25 = vmul.f32 %v22940_v47, %v25216_v32 }
 0xf15   : > { %v13365_v63 = vadd.f32 %v13364_v17, %v13346_v54  ;;  %v25220_v17 = vld [vmem:[#allocation77_spill] sm:$0xff] }
 0xf16   : > { %v13398_v27 = vsel %vm3903_vm2, %v13347_v25, 0.0  ;;  %v22945_v2 = vpop.f32.mrb[104].mxu0 }
 0xf17   : > { %v13399_v22 = vadd.f32 %v13398_v27, %v13397_v12  ;;  %v13348_v15 = vmul.f32 %v22945_v2, %v25217_v6  ;;  %v22949_v40 = vpop.f32.mrb[105].mxu0  ;;  %v25222_v27 = vld [vmem:[#allocation81_spill] sm:$0xff] }
 0xf18   : > { %25218 = vst [vmem:[#allocation80_spill] sm:$0xff] %v22949_v40  ;;  %v13349_v37 = vmul.f32 %v22949_v40, %v25219_v46 }
 0xf19   : > { %v13366_v59 = vadd.f32 %v13365_v63, %v13348_v15  ;;  %v25223_v63 = vld [vmem:[#allocation88_spill] sm:$0xff] }
 0xf1a   : > { %v13400_v39 = vsel %vm3903_vm2, %v13349_v37, 0.0  ;;  %v22954_v14 = vpop.f32.mrb[106].mxu0 }
 0xf1b   : > { %v13401_v47 = vadd.f32 %v13400_v39, %v13399_v22  ;;  %v13350_v54 = vmul.f32 %v22954_v14, %v25220_v17  ;;  %v22958_v25 = vpop.f32.mrb[107].mxu0  ;;  %v25225_v39 = vld [vmem:[#allocation90_spill] sm:$0xff] }
 0xf1c   : > { %25221 = vst [vmem:[#allocation100_spill] sm:$0xff] %v22958_v25  ;;  %v13351_v12 = vmul.f32 %v22958_v25, %v25222_v27 }
 0xf1d   : > { %v13367_v41 = vadd.f32 %v13366_v59, %v13350_v54 }
 0xf1e   : > { %v13402_v52 = vsel %vm3903_vm2, %v13351_v12, 0.0  ;;  %v22963_v43 = vpop.f32.mrb[108].mxu0 }
 0xf1f   : > { %v13403_v40 = vadd.f32 %v13402_v52, %v13401_v47  ;;  %v13352_v15 = vmul.f32 %v22963_v43, %v25223_v63  ;;  %v22967_v37 = vpop.f32.mrb[109].mxu0 }
 0xf20   : > { %25224 = vst [vmem:[#allocation35_spill] sm:$0xff] %v22967_v37  ;;  %v13353_v22 = vmul.f32 %v22967_v37, %v25225_v39 }
 0xf21   : > { %v13368_v23 = vadd.f32 %v13367_v41, %v13352_v15 }
 0xf22   : > { %v13404_v49 = vsel %vm3903_vm2, %v13353_v22, 0.0 }
 0xf23   : > { %v13405_v31 = vadd.f32 %v13404_v49, %v13403_v40  ;;  %v13369_v48 = vrot.slane %v13368_v23, 4  ;;  %v17122_v40 = vmov 1966171168  }
 0xf24   : > { %v22974_v22 = vunpack.c.l.s4 %v17122_v40 }
 0xf25   : > { %v13406_v25 = vrot.slane %v13405_v31, 4  ;;  %v13370_v59 = vadd.f32 %v13369_v48, %v13368_v23 }
 0xf27   : > { %v13407_v54 = vadd.f32 %v13406_v25, %v13405_v31  ;;  %v13371_v12 = vrot.slane %v13370_v59, 2 }
 0xf29   : > { %v13408_v46 = vrot.slane %v13407_v54, 2  ;;  %v13372_v10 = vadd.f32 %v13371_v12, %v13370_v59 }
 0xf2b   : > { %v13409_v58 = vadd.f32 %v13408_v46, %v13407_v54  ;;  %v13373_v53 = vrot.slane %v13372_v10, 1 }
 0xf2d   : > { %v13410_v37 = vrot.slane %v13409_v58, 1  ;;  %v13374_v41 = vadd.f32 %v13373_v53, %v13372_v10 }
 0xf2f   : > { %v13411_v49 = vadd.f32 %v13410_v37, %v13409_v58 }
 0xf4a   : > { %v13315_v27 = vpop.f32.mrb[110].mxu0 }
 0xf4b   : > { %v15728_v52 = vadd.f32 1e-09, %v13315_v27  ;;  %v13317_v47 = vpop.f32.mrb[111].mxu0 }
 0xf4c   : > { %v15729_v32 = vadd.f32 1e-09, %v13317_v47 }
 0xf4d   : > { %17002 = vrcp.f32 %v15728_v52 }
 0xf4e   : > { %17004 = vrcp.f32 %v15729_v32 }
 0xf57   : > { %v22972_v15 = vpop.eup %17002 }
 0xf58   : > { %25226 = vst [vmem:[#allocation21_spill] sm:$0xff] %v22972_v15  ;;  %v22976_v48 = vpop.eup %17004  ;;  %v22979_v31 = vmul.f32 %v22972_v15, %v13374_v41 }
 0xf59   : > { %25227 = vst [vmem:[#allocation44_spill] sm:$0xff] %v22976_v48  ;;  %v22982_v23 = vmul.f32 %v22976_v48, %v13411_v49 }
 0xf5a   : > { %v13417_v32 = vrot.slane %v22979_v31, %v25140_v62 }
 0xf5b   : > { %25228 = vst [vmem:[#allocation96_spill] sm:$0xff] %v22982_v23  ;;  %v22988_v53 = vrot.slane %v22982_v23, %v25140_v62 }
 0xf5c   : > { %v13422_v46 = vsub.f32 %v25178_v61, %v13417_v32  ;;  %v13424_v25 = vsub.f32 %v25181_v60, %v13417_v32  ;;  %v13426_v27 = vsub.f32 %v25184_v11, %v13417_v32  ;;  %v13428_v37 = vsub.f32 %v25187_v50, %v13417_v32 }
 0xf5d   : > { %v13430_v59 = vsub.f32 %v25190_v34, %v13417_v32  ;;  %v13432_v54 = vsub.f32 %v25193_v16, %v13417_v32  ;;  %v13434_v62 = vsub.f32 %v25196_v29, %v13417_v32  ;;  %v13436_v12 = vsub.f32 %v25199_v44, %v13417_v32 }
 0xf5e   : > { %v13438_v52 = vsub.f32 %v25202_v26, %v13417_v32  ;;  %v13440_v47 = vsub.f32 %v25205_v28, %v13417_v32  ;;  %v13442_v61 = vsub.f32 %v25208_v56, %v13417_v32  ;;  %v13444_v60 = vsub.f32 %v25211_v13, %v13417_v32 }
 0xf5f   : > { %v13446_v11 = vsub.f32 %v25214_v4, %v13417_v32  ;;  %v13448_v50 = vsub.f32 %v25217_v6, %v13417_v32  ;;  %v13450_v34 = vsub.f32 %v25220_v17, %v13417_v32  ;;  %v13452_v16 = vsub.f32 %v25223_v63, %v13417_v32 }
 0xf60   : > { %v13454_v41 = vmul.f32 %v13422_v46, %v13422_v46  ;;  %v13456_v29 = vmul.f32 %v13424_v25, %v13424_v25  ;;  %v13458_v49 = vmul.f32 %v13426_v27, %v13426_v27  ;;  %v13460_v44 = vmul.f32 %v13428_v37, %v13428_v37 }
 0xf61   : > { %v13462_v40 = vmul.f32 %v13430_v59, %v13430_v59  ;;  %v13464_v26 = vmul.f32 %v13432_v54, %v13432_v54  ;;  %v13466_v58 = vmul.f32 %v13434_v62, %v13434_v62  ;;  %v13468_v28 = vmul.f32 %v13436_v12, %v13436_v12 }
 0xf62   : > { %v13470_v10 = vmul.f32 %v13438_v52, %v13438_v52  ;;  %v13472_v56 = vmul.f32 %v13440_v47, %v13440_v47  ;;  %v13474_v48 = vmul.f32 %v13442_v61, %v13442_v61  ;;  %v13476_v13 = vmul.f32 %v13444_v60, %v13444_v60 }
 0xf63   : > { %v13478_v15 = vmul.f32 %v13446_v11, %v13446_v11  ;;  %v13480_v4 = vmul.f32 %v13448_v50, %v13448_v50  ;;  %v13482_v23 = vmul.f32 %v13450_v34, %v13450_v34  ;;  %v13484_v6 = vmul.f32 %v13452_v16, %v13452_v16 }
 0xf64   : > { %v13486_v17 = vmul.f32 %v13454_v41, %v22828_v38  ;;  %v13488_v63 = vmul.f32 %v13456_v29, %v22836_v30  ;;  %v13490_v32 = vmul.f32 %v13458_v49, %v22846_v35  ;;  %v13492_v46 = vmul.f32 %v13460_v44, %v22855_v7 }
 0xf65   : > { %v13494_v25 = vmul.f32 %v13462_v40, %v22864_v36  ;;  %v13496_v27 = vmul.f32 %v13464_v26, %v22873_v8  ;;  %v13498_v37 = vmul.f32 %v13466_v58, %v22882_v3  ;;  %v13500_v59 = vmul.f32 %v13468_v28, %v22891_v42 }
 0xf66   : > { %v23018_v54 = vmul.f32 %v13470_v10, %v22900_v5  ;;  %v23021_v62 = vmul.f32 %v13472_v56, %v22909_v1  ;;  %v23024_v38 = vmul.f32 %v13474_v48, %v22918_v33  ;;  %v23027_v30 = vmul.f32 %v13476_v13, %v22927_v45 }
 0xf67   : > { %v23030_v35 = vmul.f32 %v13478_v15, %v22936_v9  ;;  %v23033_v7 = vmul.f32 %v13480_v4, %v22945_v2  ;;  %v23036_v36 = vmul.f32 %v13482_v23, %v22954_v14  ;;  %v23039_v8 = vmul.f32 %v13484_v6, %v22963_v43  ;;  %v25236_v6 = vld [vmem:[#allocation60_spill] sm:$0xff] }
 0xf68   : > { %v13518_v1 = vadd.f32 %v13488_v63, %v13486_v17  ;;  %v13423_v33 = vsub.f32 %v25180_v55, %v22988_v53  ;;  %v13425_v45 = vsub.f32 %v25183_v18, %v22988_v53  ;;  %v13427_v9 = vsub.f32 %v25186_v24, %v22988_v53  ;;  %v25229_v24 = vld [vmem:[#allocation50_spill] sm:$0xff]  ;;  %v25237_v63 = vld [vmem:[#allocation103_spill] sm:$0xff] }
 0xf69   : > { %v13429_v3 = vsub.f32 %v25189_v19, %v22988_v53  ;;  %v13431_v42 = vsub.f32 %v25192_v21, %v22988_v53  ;;  %v13433_v43 = vsub.f32 %v25195_v0, %v22988_v53  ;;  %v13435_v14 = vsub.f32 %v25198_v51, %v22988_v53  ;;  %v25230_v19 = vld [vmem:[#allocation48_spill] sm:$0xff]  ;;  %v25233_v51 = vld [vmem:[#allocation37_spill] sm:$0xff] }
 0xf6a   : > { %v13519_v5 = vadd.f32 %v13518_v1, %v13490_v32  ;;  %v13437_v55 = vsub.f32 %v25201_v20, %v22988_v53  ;;  %v13439_v18 = vsub.f32 %v25204_v57, %v22988_v53  ;;  %v13441_v2 = vsub.f32 %v25229_v24, %v22988_v53  ;;  %v25231_v21 = vld [vmem:[#allocation24_spill] sm:$0xff]  ;;  %v25234_v20 = vld [vmem:[#allocation81_spill] sm:$0xff] }
 0xf6b   : > { %v13443_v15 = vsub.f32 %v25230_v19, %v22988_v53  ;;  %v13445_v48 = vsub.f32 %v25231_v21, %v22988_v53  ;;  %v25232_v0 = vld [vmem:[#allocation28_spill] sm:$0xff]  ;;  %v13449_v58 = vsub.f32 %v25233_v51, %v22988_v53  ;;  %v13451_v12 = vsub.f32 %v25234_v20, %v22988_v53  ;;  %v25245_v19 = vld [vmem:[#allocation106_spill] sm:$0xff]  ;;  %v25246_v21 = vld [vmem:[#allocation121_spill] sm:$0xff] }
 0xf6c   : > { %v13447_v23 = vsub.f32 %v25232_v0, %v22988_v53  ;;  %v13520_v10 = vadd.f32 %v13519_v5, %v13492_v46  ;;  %v13453_v57 = vsub.f32 %v25225_v39, %v22988_v53  ;;  %v13455_v52 = vmul.f32 %v13423_v33, %v13423_v33  ;;  %v25235_v53 = vld [vmem:[#allocation12_spill] sm:$0xff]  ;;  %v25243_v5 = vld [vmem:[#allocation53_spill] sm:$0xff]  ;;  %v25250_v20 = vld [vmem:[#allocation35_spill] sm:$0xff] }
 0xf6d   : > { %v13457_v47 = vmul.f32 %v13425_v45, %v13425_v45  ;;  %v13459_v61 = vmul.f32 %v13427_v9, %v13427_v9  ;;  %v13461_v60 = vmul.f32 %v13429_v3, %v13429_v3  ;;  %v13463_v11 = vmul.f32 %v13431_v42, %v13431_v42  ;;  %v25239_v33 = vld [vmem:[#allocation120_spill] sm:$0xff]  ;;  %v25240_v9 = vld [vmem:[#allocation123_spill] sm:$0xff] }
 0xf6e   : > { %v13521_v50 = vadd.f32 %v13520_v10, %v13494_v25  ;;  %v13465_v34 = vmul.f32 %v13433_v43, %v13433_v43  ;;  %v13467_v16 = vmul.f32 %v13435_v14, %v13435_v14  ;;  %v13469_v41 = vmul.f32 %v13437_v55, %v13437_v55  ;;  %v25238_v25 = vld [vmem:[#allocation59_spill] sm:$0xff]  ;;  %v25241_v3 = vld [vmem:[#allocation124_spill] sm:$0xff] }
 0xf6f   : > { %v13471_v29 = vmul.f32 %v13439_v18, %v13439_v18  ;;  %v13473_v49 = vmul.f32 %v13441_v2, %v13441_v2  ;;  %v13475_v44 = vmul.f32 %v13443_v15, %v13443_v15  ;;  %v13477_v40 = vmul.f32 %v13445_v48, %v13445_v48  ;;  %v25242_v43 = vld [vmem:[#allocation99_spill] sm:$0xff]  ;;  %v25244_v18 = vld [vmem:[#allocation32_spill] sm:$0xff] }
 0xf70   : > { %v13522_v26 = vadd.f32 %v13521_v50, %v13496_v27  ;;  %v13479_v28 = vmul.f32 %v13447_v23, %v13447_v23  ;;  %v13481_v56 = vmul.f32 %v13449_v58, %v13449_v58  ;;  %v13483_v13 = vmul.f32 %v13451_v12, %v13451_v12  ;;  %v25248_v23 = vld [vmem:[#allocation80_spill] sm:$0xff] }
 0xf71   : > { %v13485_v39 = vmul.f32 %v13453_v57, %v13453_v57  ;;  %v13487_v4 = vmul.f32 %v13455_v52, %v25235_v53  ;;  %v13489_v17 = vmul.f32 %v13457_v47, %v25236_v6  ;;  %v13491_v32 = vmul.f32 %v13459_v61, %v25237_v63  ;;  %v25249_v58 = vld [vmem:[#allocation100_spill] sm:$0xff]  ;;  %v25251_v61 = vld [vmem:[#allocation115_spill] sm:$0xff] }
 0xf72   : > { %v13523_v46 = vadd.f32 %v13522_v26, %v13498_v37  ;;  %v13493_v1 = vmul.f32 %v13461_v60, %v25238_v25  ;;  %v13495_v45 = vmul.f32 %v13463_v11, %v25239_v33  ;;  %v13497_v27 = vmul.f32 %v13465_v34, %v25240_v9  ;;  %v25247_v37 = vld [vmem:[#allocation122_spill] sm:$0xff] }
 0xf73   : > { %v13499_v42 = vmul.f32 %v13467_v16, %v25241_v3  ;;  %v13501_v14 = vmul.f32 %v13469_v41, %v25242_v43  ;;  %v13503_v55 = vmul.f32 %v13471_v29, %v25243_v5  ;;  %v13505_v24 = vmul.f32 %v13473_v49, %v25244_v18 }
 0xf74   : > { %v13524_v2 = vadd.f32 %v13523_v46, %v13500_v59  ;;  %v13507_v15 = vmul.f32 %v13475_v44, %v25245_v19  ;;  %v13509_v48 = vmul.f32 %v13477_v40, %v25246_v21  ;;  %v13511_v0 = vmul.f32 %v13479_v28, %v25247_v37 }
 0xf75   : > { %v13513_v51 = vmul.f32 %v13481_v56, %v25248_v23  ;;  %v13515_v10 = vmul.f32 %v13483_v13, %v25249_v58  ;;  %v13517_v12 = vmul.f32 %v13485_v39, %v25250_v20  ;;  %v13539_v57 = vsel %vm3903_vm2, %v13487_v4, 0.0 }
 0xf76   : > { %v13525_v52 = vadd.f32 %v13524_v2, %v23018_v54  ;;  %v13540_v59 = vsel %vm3903_vm2, %v13489_v17, 0.0  ;;  %v25252_v60 = vunpack.c.0.s8 %v22974_v22  ;;  %v13542_v34 = vsel %vm3903_vm2, %v13491_v32, 0.0  ;;  %v25253_v54 = vld [vmem:[#allocation96_spill] sm:$0xff]  ;;  %v25256_v2 = vld [vmem:[#allocation21_spill] sm:$0xff] }
 0xf77   : > { %v13541_v47 = vadd.f32 %v13540_v59, %v13539_v57  ;;  %v13544_v29 = vsel %vm3903_vm2, %v13493_v1, 0.0  ;;  %v25254_v44 = vcombine.low %v22979_v31, %v25253_v54  ;;  %v13546_v22 = vsel %vm3903_vm2, %v13495_v45, 0.0 }
 0xf78   : > { %v14346_v11 = vsub.s32 %v25252_v60, %v25251_v61  ;;  %v13526_v50 = vadd.f32 %v13525_v52, %v23021_v62  ;;  %v25255_v62 = vlaneseq  ;;  %v13548_v13 = vsel %vm3903_vm2, %v13497_v27, 0.0 }
 0xf79   : > { %v13543_v16 = vadd.f32 %v13542_v34, %v13541_v47  ;;  %v13552_v6 = vsel %vm3903_vm2, %v13501_v14, 0.0  ;;  %v13554_v32 = vsel %vm3903_vm2, %v13503_v55, 0.0  ;;  %v13556_v25 = vsel %vm3903_vm2, %v13505_v24, 0.0 }
 0xf7a   : > { %v13527_v41 = vadd.f32 %v13526_v50, %v23024_v38  ;;  %v14347_v40 = vrot.slane %v25254_v44, %v14346_v11  ;;  %vm14358_vm0 = vcmp.lt.s32.totalorder %v25255_v62, 160  ;;  %v13560_v27 = vsel %vm3903_vm2, %v13509_v48, 0.0 }
 0xf7b   : > { %v13545_v49 = vadd.f32 %v13544_v29, %v13543_v16  ;;  %v13564_v14 = vsel %vm3903_vm2, %v13513_v51, 0.0  ;;  %v13566_v18 = vsel %vm3903_vm2, %v13515_v10, 0.0  ;;  %v25257_v51 = vld [vmem:[#allocation44_spill] sm:$0xff] }
 0xf7c   : > { %v13528_v26 = vadd.f32 %v13527_v41, %v23027_v30  ;;  %v14354_v56 = vrot.slane %v14347_v40, %v14346_v11  ;;  %v13550_v30 = vsel %vm3903_vm2, %v13499_v42, 0.0  ;;  %v13562_v42 = vsel %vm3903_vm2, %v13511_v0, 0.0 }
 0xf7d   : > { %v13547_v28 = vadd.f32 %v13546_v22, %v13545_v49 }
 0xf7e   : > { %v13529_v38 = vadd.f32 %v13528_v26, %v23030_v35  ;;  %14360 = vst.msk [vmem:[%s337_s12] sm:$0x3] %vm14358_vm0, %v14354_v56  ;;  %s17062_s12 = scalar_lea.vmem %s17061_s10, 32 }
 0xf7f   : > { %v13549_v39 = vadd.f32 %v13548_v13, %v13547_v28  ;;  %p17064_p2 = scmp.lt.s32.totalorder %s17062_s12, %s17056_s26 }
 0xf80   : > { %v13530_v31 = vadd.f32 %v13529_v38, %v23033_v7  ;;  %v13558_v7 = vsel %vm3903_vm2, %v13507_v15, 0.0  ;;  %v13568_v15 = vsel %vm3903_vm2, %v13517_v12, 0.0 }
 0xf81   : > { %v13551_v53 = vadd.f32 %v13550_v30, %v13549_v39  ;;  %v25258_v39 = vld [vmem:[#allocation18_spill] sm:$0xff]  ;;  %v25259_v30 = vmov 0.0|0.0   ;;  %p17065_p3 = por %p17064_p2, %p17063_p1 }
 0xf82   : > { %v13531_v4 = vadd.f32 %v13530_v31, %v23036_v36 }
 0xf83   : > { %v13553_v17 = vadd.f32 %v13552_v6, %v13551_v53  ;;  %v25260_v6 = vld [vmem:[#allocation38_spill] sm:$0xff]  ;;  %p17066_p4 = pnand %p17065_p3, %p17059_p0 }
 0xf84   : > { %v13532_v63 = vadd.f32 %v13531_v4, %v23039_v8 }
 0xf85   : > { %v13555_v46 = vadd.f32 %v13554_v32, %v13553_v17  ;;  %v25261_v17 = vld [vmem:[#allocation23_spill] sm:$0xff]  ;;  %v25263_v32 = vld [vmem:[#allocation62_spill] sm:$0xff] }
 0xf86   : > { %v13533_v35 = vrot.slane %v13532_v63, 4 }
 0xf87   : > { %v13557_v1 = vadd.f32 %v13556_v25, %v13555_v46  ;;  %v25264_v46 = vld [vmem:[#allocation39_spill] sm:$0xff]  ;;  %v25266_v25 = vld [vmem:[#allocation78_spill] sm:$0xff] }
 0xf88   : > { %v13534_v33 = vadd.f32 %v13533_v35, %v13532_v63  ;;  %v25262_v63 = vld [vmem:[#allocation94_spill] sm:$0xff]  ;;  %v25265_v35 = vld [vmem:[#allocation72_spill] sm:$0xff] }
 0xf89   : > { %v13559_v45 = vadd.f32 %v13558_v7, %v13557_v1  ;;  %v25267_v1 = vld [vmem:[#allocation74_spill] sm:$0xff]  ;;  %v25269_v7 = vld [vmem:[#allocation85_spill] sm:$0xff] }
 0xf8a   : > { %v13535_v9 = vrot.slane %v13534_v33, 2 }
 0xf8b   : > { %v13561_v36 = vadd.f32 %v13560_v27, %v13559_v45  ;;  %v25270_v45 = vld [vmem:[#allocation30_spill] sm:$0xff] }
 0xf8c   : > { %v13536_v3 = vadd.f32 %v13535_v9, %v13534_v33  ;;  %v25268_v33 = vld [vmem:[#allocation46_spill] sm:$0xff] }
 0xf8d   : > { %v13563_v43 = vadd.f32 %v13562_v42, %v13561_v36  ;;  %v25271_v9 = vld [vmem:[#allocation98_spill] sm:$0xff]  ;;  %v25275_v42 = vld [vmem:[#allocation107_spill] sm:$0xff] }
 0xf8e   : > { %v13537_v8 = vrot.slane %v13536_v3, 1  ;;  %v25272_v27 = vld [vmem:[#allocation54_spill] sm:$0xff] }
 0xf8f   : > { %v13565_v5 = vadd.f32 %v13564_v14, %v13563_v43  ;;  %v25273_v36 = vld [vmem:[#allocation102_spill] sm:$0xff]  ;;  %v25276_v43 = vld [vmem:[#allocation63_spill] sm:$0xff] }
 0xf90   : > { %v13538_v55 = vadd.f32 %v13537_v8, %v13536_v3  ;;  %v25274_v3 = vld [vmem:[#allocation8_spill] sm:$0xff]  ;;  %v25277_v8 = vld [vmem:[#allocation109_spill] sm:$0xff]  ;;  %v25278_v14 = vld [vmem:[#allocation111_spill] sm:$0xff] }
 0xf91   : > { %v13567_v24 = vadd.f32 %v13566_v18, %v13565_v5  ;;  %v25279_v5 = vld [vmem:[#allocation31_spill] sm:$0xff]  ;;  %v25281_v18 = vld [vmem:[#allocation86_spill] sm:$0xff] }
 0xf92   : > { %v13576_v19 = vmul.f32 %v25256_v2, %v13538_v55  ;;  %v25280_v55 = vld [vmem:[#allocation70_spill] sm:$0xff]  ;;  %v25283_v2 = vld [vmem:[#allocation97_spill] sm:$0xff] }
 0xf93   : > { %v13569_v21 = vadd.f32 %v13568_v15, %v13567_v24  ;;  %v25282_v24 = vld [vmem:[#allocation95_spill] sm:$0xff]  ;;  %v25285_v15 = vld [vmem:[#allocation104_spill] sm:$0xff] }
 0xf94   : > { %17006 = vrsqrt.f32 %v13576_v19  ;;  %vm13580_vm1 = vcmp.eq.f32.partialorder %v13576_v19, inf  ;;  %v13583_v10 = vand.u32 2147483648, %v13576_v19  ;;  %vm13582_vm3 = vcmp.eq.f32.partialorder %v13576_v19, 0.0 }
 0xf95   : > { %v13570_v48 = vrot.slane %v13569_v21, 4 }
 0xf97   : > { %v13571_v37 = vadd.f32 %v13570_v48, %v13569_v21  ;;  %v25286_v21 = vld [vmem:[#allocation108_spill] sm:$0xff]  ;;  %v25287_v48 = vld [vmem:[#allocation110_spill] sm:$0xff] }
 0xf99   : > { %v13572_v23 = vrot.slane %v13571_v37, 2 }
 0xf9b   : > { %v13573_v58 = vadd.f32 %v13572_v23, %v13571_v37  ;;  %v25288_v37 = vld [vmem:[#allocation112_spill] sm:$0xff] }
 0xf9d   : > { %v13574_v0 = vrot.slane %v13573_v58, 1 }
 0xf9e   : > { %v17007_v20 = vpop.eup %17006 }
 0xf9f   : > { %v13575_v57 = vadd.f32 %v13574_v0, %v13573_v58  ;;  %v13579_v52 = vmul.f32 %v17007_v20, %v13576_v19 }
 0xfa1   : > { %v13577_v59 = vmul.f32 %v25257_v51, %v13575_v57  ;;  %v13581_v47 = vsel %vm13580_vm1, %v13576_v19, %v13579_v52  ;;  %v25284_v19 = vld [vmem:[#allocation101_spill] sm:$0xff] }
 0xfa2   : > { %v13584_v61 = vsel %vm13582_vm3, %v13583_v10, %v13581_v47 }
 0xfa3   : > { %17008 = vrsqrt.f32 %v13577_v59  ;;  %v13592_v60 = vadd.f32 1e-09, %v13584_v61  ;;  %vm13587_vm4 = vcmp.eq.f32.partialorder %v13577_v59, inf  ;;  %v13590_v50 = vand.u32 2147483648, %v13577_v59 }
 0xfa4   : > { %vm13589_vm5 = vcmp.eq.f32.partialorder %v13577_v59, 0.0 }
 0xfa5   : > { %17010 = vlog2.f32 %v13592_v60 }
 0xfad   : > { %v17009_v12 = vpop.eup %17008 }
 0xfae   : > { %v13586_v11 = vmul.f32 %v17009_v12, %v13577_v59 }
 0xfaf   : > { %v17011_v29 = vpop.eup %17010 }
 0xfb0   : > { %v13588_v34 = vsel %vm13587_vm4, %v13577_v59, %v13586_v11  ;;  %v13595_v49 = vmul.f32 0.6931472, %v17011_v29 }
 0xfb1   : > { %v13591_v16 = vsel %vm13589_vm5, %v13590_v50, %v13588_v34 }
 0xfb2   : > { %v13593_v41 = vadd.f32 1e-09, %v13591_v16  ;;  %v23129_v54 = vand.u32 4294901760, %v13595_v49 }
 0xfb4   : > { %17012 = vlog2.f32 %v13593_v41  ;;  %v23132_v26 = vsub.f32 %v13595_v49, %v23129_v54  ;;  %v25289_v41 = vld [vmem:[#allocation11_spill] sm:$0xff]  ;;  %v25290_v49 = vld [vmem:[#allocation9_spill] sm:$0xff] }
 0xfb6   : > { %v13693_v28 = vand.u32 4294901760, %v23132_v26 }
 0xfb8   : > { %v13694_v13 = vsub.f32 %v23132_v26, %v13693_v28 }
 0xfba   : > { %v13695_v4 = vand.u32 4294901760, %v13694_v13 }
 0xfbe   : > { %v17013_v44 = vpop.eup %17012 }
 0xfbf   : > { %v13597_v40 = vmul.f32 0.6931472, %v17013_v44 }
 0xfc1   : > { %v13599_v22 = vsel %vm3903_vm2, %v13597_v40, 0 }
 0xfc2   : > { %v23135_v62 = vand.u32 4294901760, %v13599_v22 }
 0xfc4   : > { %v13686_v56 = vsub.f32 %v13599_v22, %v23135_v62 }
 0xfc6   : > { %13979 = vmatprep.mubr.f32.mxu0 %v13686_v56  ;;  %v13687_v38 = vand.u32 4294901760, %v13686_v56 }
 0xfc7   : > { %13982 = vmatmul.mubr.f32.vlgmr.msra.gmra.mrb[112].mxu0 %v23132_v26 }
 0xfc8   : > { %15666 = vmatpush1.bf16.msra.mxu0 %v25258_v39  ;;  %14208 = vmatprep.mubr.f32.mxu0 %v23135_v62  ;;  %v13688_v31 = vsub.f32 %v13686_v56, %v13687_v38 }
 0xfc9   : > { %15667 = vmatprep.subr.bf16.mxu0 %v25259_v30 }
 0xfca   : > { %v13689_v53 = vand.u32 4294901760, %v13688_v31 }
 0xfcc   : > { %15669 = vmatpush1.bf16.msra.mxu0 %v25260_v6  ;;  %13690 = vmatprep.mubr.f32.mxu1 %v13689_v53 }
 0xfcd   : > { %13696 = vmatmul.mubr.f32.vlgmr.msra.gmra.mrb[110].mxu1 %v13695_v4  ;;  %15670 = vmatprep.subr.bf16.mxu0 %v25259_v30 }
 0xfce   : > { %15576 = vmatpush1.bf16.msra.mxu1 %v25261_v17  ;;  %13866 = vmatprep.mubr.f32.mxu1 %v23135_v62 }
 0xfcf   : > { %15577 = vmatprep.subr.bf16.mxu1 %v25259_v30 }
 0xfd0   : > { %15672 = vmatpush1.bf16.msra.mxu0 %v25262_v63 }
 0xfd1   : > { %15673 = vmatprep.subr.bf16.mxu0 %v25259_v30 }
 0xfd2   : > { %15579 = vmatpush1.bf16.msra.mxu1 %v25263_v32  ;;  %v17055_v32 = vld [vmem:[%s23289_s5] sm:$0x1] }
 0xfd3   : > { %15580 = vmatprep.subr.bf16.mxu1 %v25259_v30 }
 0xfd4   : > { %15675 = vmatpush1.bf16.msra.mxu0 %v25264_v46 }
 0xfd5   : > { %15676 = vmatprep.subr.bf16.mxu0 %v25259_v30 }
 0xfd6   : > { %15582 = vmatpush1.bf16.msra.mxu1 %v25265_v35 }
 0xfd7   : > { %15583 = vmatprep.subr.bf16.mxu1 %v25259_v30 }
 0xfd8   : > { %15678 = vmatpush1.bf16.msra.mxu0 %v25266_v25 }
 0xfd9   : > { %15679 = vmatprep.subr.bf16.mxu0 %v25259_v30 }
 0xfda   : > { %15585 = vmatpush1.bf16.msra.mxu1 %v25267_v1 }
 0xfdb   : > { %15586 = vmatprep.subr.bf16.mxu1 %v25259_v30 }
 0xfdc   : > { %15681 = vmatpush1.bf16.msra.mxu0 %v25268_v33 }
 0xfdd   : > { %15682 = vmatprep.subr.bf16.mxu0 %v25259_v30 }
 0xfde   : > { %15588 = vmatpush1.bf16.msra.mxu1 %v25269_v7 }
 0xfdf   : > { %15589 = vmatprep.subr.bf16.mxu1 %v25259_v30 }
 0xfe0   : > { %15684 = vmatpush1.bf16.msra.mxu0 %v25270_v45 }
 0xfe1   : > { %15685 = vmatprep.subr.bf16.mxu0 %v25259_v30 }
 0xfe2   : > { %15591 = vmatpush1.bf16.msra.mxu1 %v25271_v9 }
 0xfe3   : > { %15592 = vmatprep.subr.bf16.mxu1 %v25259_v30 }
 0xfe4   : > { %15687 = vmatpush1.bf16.msra.mxu0 %v25272_v27 }
 0xfe5   : > { %15688 = vmatprep.subr.bf16.mxu0 %v25259_v30 }
 0xfe6   : > { %15594 = vmatpush1.bf16.msra.mxu1 %v25273_v36 }
 0xfe7   : > { %15595 = vmatprep.subr.bf16.mxu1 %v25259_v30 }
 0xfe8   : > { %15690 = vmatpush1.bf16.msra.mxu0 %v25274_v3 }
 0xfe9   : > { %15691 = vmatprep.subr.bf16.mxu0 %v25259_v30 }
 0xfea   : > { %15597 = vmatpush1.bf16.msra.mxu1 %v25275_v42 }
 0xfeb   : > { %15598 = vmatprep.subr.bf16.mxu1 %v25259_v30 }
 0xfec   : > { %15693 = vmatpush1.bf16.msra.mxu0 %v25276_v43 }
 0xfee   : > { %15600 = vmatpush1.bf16.msra.mxu1 %v25277_v8 }
 0xfef   : > { %14210 = vmatmul.mubr.f32.vlgmr.msra.gmra.mrb[114].mxu0 %v23129_v54  ;;  %15601 = vmatprep.subr.bf16.mxu1 %v25259_v30 }
 0xff2   : > { %15603 = vmatpush1.bf16.msra.mxu1 %v25278_v14 }
 0xff3   : > { %15634 = vmatprep.subr.bf16.mxu1 %v25259_v30 }
 0xff5   : > { %13868 = vmatmul.mubr.f32.vlgmr.msra.gmra.mrb[112].mxu1 %v23129_v54 }
 0xff6   : > { %15636 = vmatpush1.bf16.msra.mxu1 %v25279_v5  ;;  %14074 = vmatprep.mubr.f32.mxu1 %v13687_v38 }
 0xff7   : > { %15637 = vmatprep.subr.bf16.mxu1 %v25259_v30 }
 0xffa   : > { %15639 = vmatpush1.bf16.msra.mxu1 %v25280_v55 }
 0xffb   : > { %15640 = vmatprep.subr.bf16.mxu1 %v25259_v30 }
 0xffe   : > { %15642 = vmatpush1.bf16.msra.mxu1 %v25281_v18 }
 0xfff   : > { %15643 = vmatprep.subr.bf16.mxu1 %v25259_v30 }
0x1002   : > { %15645 = vmatpush1.bf16.msra.mxu1 %v25282_v24 }
0x1003   : > { %15646 = vmatprep.subr.bf16.mxu1 %v25259_v30 }
0x1006   : > { %15648 = vmatpush1.bf16.msra.mxu1 %v25283_v2 }
0x1007   : > { %15649 = vmatprep.subr.bf16.mxu1 %v25259_v30 }
0x100a   : > { %15651 = vmatpush1.bf16.msra.mxu1 %v25284_v19 }
0x100b   : > { %15652 = vmatprep.subr.bf16.mxu1 %v25259_v30 }
0x100e   : > { %15654 = vmatpush1.bf16.msra.mxu1 %v25285_v15 }
0x100f   : > { %15655 = vmatprep.subr.bf16.mxu1 %v25259_v30 }
0x1012   : > { %15657 = vmatpush1.bf16.msra.mxu1 %v25286_v21 }
0x1013   : > { %15658 = vmatprep.subr.bf16.mxu1 %v25259_v30 }
0x1016   : > { %15660 = vmatpush1.bf16.msra.mxu1 %v25287_v48 }
0x1017   : > { %15661 = vmatprep.subr.bf16.mxu1 %v25259_v30 }
0x101a   : > { %15663 = vmatpush1.bf16.msra.mxu1 %v25288_v37 }
0x101b   : > { %15694 = vmatprep.subr.bf16.mxu1 %v25259_v30 }
0x101d   : > { %14078 = vmatmul.mubr.f32.vlgmr.msra.gmra.mrb[114].mxu1 %v13693_v28 }
0x101e   : > { %15696 = vmatpush1.bf16.msra.mxu1 %v25279_v5  ;;  %14300 = vmatprep.mubr.f32.mxu1 %v23135_v62 }
0x101f   : > { %15697 = vmatprep.subr.bf16.mxu1 %v25259_v30 }
0x1022   : > { %15699 = vmatpush1.bf16.msra.mxu1 %v25280_v55 }
0x1023   : > { %15700 = vmatprep.subr.bf16.mxu1 %v25259_v30 }
0x1026   : > { %15702 = vmatpush1.bf16.msra.mxu1 %v25281_v18 }
0x1027   : > { %15703 = vmatprep.subr.bf16.mxu1 %v25259_v30 }
0x102a   : > { %15705 = vmatpush1.bf16.msra.mxu1 %v25282_v24 }
0x102b   : > { %15706 = vmatprep.subr.bf16.mxu1 %v25259_v30 }
0x102e   : > { %15708 = vmatpush1.bf16.msra.mxu1 %v25283_v2 }
0x102f   : > { %15709 = vmatprep.subr.bf16.mxu1 %v25259_v30 }
0x1032   : > { %15711 = vmatpush1.bf16.msra.mxu1 %v25284_v19 }
0x1033   : > { %15712 = vmatprep.subr.bf16.mxu1 %v25259_v30 }
0x1036   : > { %15714 = vmatpush1.bf16.msra.mxu1 %v25285_v15 }
0x1037   : > { %15715 = vmatprep.subr.bf16.mxu1 %v25259_v30 }
0x103a   : > { %15717 = vmatpush1.bf16.msra.mxu1 %v25286_v21 }
0x103b   : > { %15718 = vmatprep.subr.bf16.mxu1 %v25259_v30 }
0x103e   : > { %15720 = vmatpush1.bf16.msra.mxu1 %v25287_v48 }
0x103f   : > { %15721 = vmatprep.subr.bf16.mxu1 %v25259_v30 }
0x1042   : > { %15723 = vmatpush1.bf16.msra.mxu1 %v25288_v37 }
0x1045   : > { %14302 = vmatmul.mubr.f32.vlgmr.msra.gmra.mrb[116].mxu1 %v23129_v54 }
0x109a   : > { %v13983_v23 = vpop.f32.mrb[112].mxu0 }
0x109b   : > { %v13985_v58 = vpop.f32.mrb[113].mxu0 }
0x10a0   : > { %v13697_v0 = vpop.f32.mrb[110].mxu1 }
0x10a1   : > { %v13699_v20 = vpop.f32.mrb[111].mxu1 }
0x10c2   : > { %v14211_v57 = vpop.f32.mrb[114].mxu0 }
0x10c3   : > { %v14213_v52 = vpop.f32.mrb[115].mxu0 }
0x10c8   : > { %v13869_v51 = vpop.f32.mrb[112].mxu1 }
0x10c9   : > { %v13870_v59 = vadd.f32 %v13869_v51, %v13697_v0  ;;  %v13871_v47 = vpop.f32.mrb[113].mxu1 }
0x10cb   : > { %v13984_v10 = vadd.f32 %v13983_v23, %v13870_v59 }
0x10f0   : > { %v14079_v61 = vpop.f32.mrb[114].mxu1 }
0x10f1   : > { %v14080_v60 = vadd.f32 %v14079_v61, %v13984_v10  ;;  %v14081_v12 = vpop.f32.mrb[115].mxu1 }
0x10f3   : > { %v14212_v11 = vadd.f32 %v14211_v57, %v14080_v60 }
0x1118   : > { %v14303_v50 = vpop.f32.mrb[116].mxu1 }
0x1119   : > { %v14304_v34 = vadd.f32 %v14303_v50, %v14212_v11  ;;  %v14305_v16 = vpop.f32.mrb[117].mxu1 }
0x111b   : > { %v14307_v29 = vadd.f32 %v14304_v34, %v25289_v41 }
0x111d   : > { %v14308_v54 = vmul.f32 %v14307_v29, %v25290_v49 }
0x111f   : > { %v14309_v44 = vsel %vm4838_vm7, %v14308_v54, 0.0 }
0x1120   : > { %14310 = vadd.xlane.f32.xlu0 %v14309_v44 }
0x11ad   : > { %v14311_v40 = vpop.xlane.xlu0 %14310 }
0x11ae   : > { %v14312_v26 = vmul.f32 0.1, %v14311_v40 }
0x11b0   : > { %v14313_v22 = vsub.f32 %v14308_v54, %v14312_v26  ;;  %v14326_v6 = vsub.f32 %v14312_v26, %v14308_v54 }
0x11b2   : > { %v14314_v62 = vmul.f32 %v14313_v22, %v14313_v22 }
0x11b4   : > { %v14315_v28 = vsel %vm4838_vm7, %v14314_v62, 0.0 }
0x11b5   : > { %14316 = vadd.xlane.f32.xlu1 %v14315_v28 }
0x1242   : > { %v14317_v56 = vpop.xlane.xlu1 %14316 }
0x1243   : > { %v14318_v38 = vmul.f32 0.1, %v14317_v56 }
0x1245   : > { %17014 = vrsqrt.f32 %v14318_v38  ;;  %vm14321_vm2 = vcmp.eq.f32.partialorder %v14318_v38, inf  ;;  %v14324_v31 = vand.u32 2147483648, %v14318_v38  ;;  %vm14323_vm6 = vcmp.eq.f32.partialorder %v14318_v38, 0.0 }
0x124f   : > { %v17015_v13 = vpop.eup %17014 }
0x1250   : > { %v14320_v39 = vmul.f32 %v17015_v13, %v14318_v38 }
0x1252   : > { %v14322_v30 = vsel %vm14321_vm2, %v14318_v38, %v14320_v39 }
0x1253   : > { %v14325_v53 = vsel %vm14323_vm6, %v14324_v31, %v14322_v30 }
0x1254   : > { %v14327_v4 = vadd.f32 1e-09, %v14325_v53 }
0x1256   : > { %17016 = vrcp.f32 %v14327_v4 }
0x1260   : > { %v17017_v17 = vpop.eup %17016 }
0x1261   : > { %v14329_v63 = vmul.f32 %v17017_v17, %v14326_v6 }
0x1263   : > { %v14330_v46 = vadd.f32 %v17055_v32, %v14329_v63 }
0x1265   : > { %v14484_v35 = vmul.f32 -3.0, %v14330_v46 }
0x1267   : > { %v14333_v25 = vmul.f32 1.442695, %v14484_v35 }
0x1269   : > { %17018 = vpow2.f32 %v14333_v25 }
0x1273   : > { %v17019_v1 = vpop.eup %17018 }
0x1274   : > { %v14335_v33 = vadd.f32 1.0, %v17019_v1 }
0x1276   : > { %17020 = vrcp.f32 %v14335_v33 }
0x1280   : > { %v17021_v7 = vpop.eup %17020 }
0x1281   : > { %14361 = vst.msk [vmem:[%s321_s19] sm:$0x1] %vm4838_vm7, %v17021_v7 }
0x1282   : > { %17069 = shalt.err (!%p17066_p4)
}
0x1283   : > { %s17070_s23 = scalar_lea.hbm %s23241_s21, 16  ;;  %s17074_s17 = scalar_lea.hbm %s23292_s8, 32 }
0x1284   : > { %p17071_p7 = scmp.ne.s32.totalorder %s23241_s21, %s17070_s23  ;;  %p17075_p10 = scmp.lt.u32.totalorder %s23241_s21, %s23292_s8 }
0x1285   : > { %p17076_p11 = scmp.lt.u32.totalorder %s17074_s17, %s17070_s23  ;;  %p17078_p13 = scmp.lt.u32.totalorder %s17070_s23, %s23241_s21 }
0x1286   : > { %p17072_p8 = pnand %p17071_p7, %p17207_p5 }
0x1287   : > { %p17077_p12 = por %p17076_p11, %p17075_p10 }
0x1288   : > { %p17073_p9 = pneg %p17072_p8 }
0x1289   : > { %p17079_p0 = por %p17078_p13, %p17077_p12 }
0x128b   : > { %p17080_p1 = pnand %p17079_p0, %p17073_p9 }
0x128d   : > { %17083 = shalt.err (!%p17080_p1)
}
0x128e   : > { %16720 = dma.vmem_to_hbm [thread:$0]  (%p17207_p5), %s23243_s22, 16, %s23241_s21, %s14367_s24  }
0x128f PF: > { %p16726_p2 = scmp.ge.s32.totalorder %s17118_s30, 2  ;;  %s14401_s20 = sand.u32 1, %s17106_s27  }
0x1290   : > { %s14402_s26 = scalar_lea.sflag [#allocation3], %s14401_s20 }
0x1291   : > { %p16723_p3 = pnand %p16726_p2, %p17211_p6 }
0x1293   : > { %17101 = dma.done.wait (!%p16723_p3), %s14402_s26, 16  }
0x1294   : > { %17103 = vsyncadd (!%p16723_p3), %s14402_s26, 4294967280  ;;  %p19_p4 = scmp.ge.s32.totalorder %s17194_s11, 4   ;;  %s25291_s27 = smov %s17110_s28 }
0x1295   : > { %s25292_s28 = smov %s17114_s29  ;;  %s25293_s29 = smov %s17205_s14 }
0x1296   : > { %s25294_s30 = smov %s17194_s11  ;;  %21 = sbr.rel (!%p19_p4) target bundleno = 3 (0x3), region = 98 }
0x129d   :  { %14406 = vsyncpa [#allocation3], 1 }
0x129e   :  { %14408 = vsyncpa [#allocation3 + $0x1], 1 }

</bundles_post_ra>
